<compile_context>
chip_gen: v7x
topology: tpu7x:2x2x1
jax: 0.10.0
libtpu: 0.0.40
codegen_flags: <defaults>
</compile_context>

<pallas_src>
import jax
import jax.numpy as jnp
import numpy as np
from jax.experimental import pallas as pl
from jax.experimental.pallas import tpu as pltpu


# --------------------------------------------------------------------------
# Kernel: one chunk of K decode steps per grid iteration.
# grid = (batch_tiles, time_chunks); h/c/att1 live in VMEM scratch.
# --------------------------------------------------------------------------
def _decoder_chunk_kernel(
    enc_ref, emb_ref, dlen_ref,
    w_enc_att_ref, b_enc_att_ref,
    w_dec_att_ref, b_dec_att_ref,
    w_full_att_ref, b_full_att_ref,
    w_init_h_ref, b_init_h_ref,
    w_init_c_ref, b_init_c_ref,
    w_fbeta_ref, b_fbeta_ref,
    w_ih_emb_ref, w_ih_awe_ref, w_hh_ref, b_ih_ref, b_hh_ref,
    w_fc_ref, b_fc_ref,
    pred_ref, alpha_ref,
    h_sc, c_sc, att1_sc,
):
    c_idx = pl.program_id(1)                  # time-chunk index (inner, sequential)
    BT, P, E = enc_ref.shape
    D = h_sc.shape[1]
    A = att1_sc.shape[2]
    K = emb_ref.shape[1]
    f32, bf16 = jnp.float32, jnp.bfloat16

    def mm(x, w_ref):
        # MXU matmul: bf16 operands, f32 accumulation.
        return jnp.dot(x.astype(bf16), w_ref[...], preferred_element_type=f32)

    enc = enc_ref[...]                        # (BT, P, E) bf16, resident

    # ---- t-invariant work, hoisted: runs once per batch tile (chunk 0) ----
    @pl.when(c_idx == 0)
    def _init():
        enc_f32 = enc.astype(f32)
        mean_enc = jnp.mean(enc_f32, axis=1)                              # (BT, E)
        h_sc[...] = mm(mean_enc, w_init_h_ref) + b_init_h_ref[...]
        c_sc[...] = mm(mean_enc, w_init_c_ref) + b_init_c_ref[...]
        att1 = mm(enc_f32.reshape(BT * P, E), w_enc_att_ref) + b_enc_att_ref[...]
        att1_sc[...] = att1.reshape(BT, P, A)                             # hoisted projection

    h = h_sc[...]                             # (BT, D) f32
    c = c_sc[...]                             # (BT, D) f32
    att1 = att1_sc[...]                       # (BT, P, A) f32
    dlen = dlen_ref[...]                      # (BT, 1) int32
    w_full = w_full_att_ref[...]              # (1, A) f32

    # statically unrolled K-step chunk (amortizes per-grid-step overhead)
    for k in range(K):
        t = c_idx * K + k

        # ---------------- Attention ----------------
        att2 = mm(h, w_dec_att_ref) + b_dec_att_ref[...]                  # (BT, A)
        act = jnp.maximum(att1 + att2[:, None, :], 0.0)                   # ReLU, (BT, P, A)
        att = jnp.sum(act * w_full[None, :, :], axis=2) + b_full_att_ref[...]  # (BT, P)
        att = att - jnp.max(att, axis=1, keepdims=True)
        p_exp = jnp.exp(att)
        inv = pl.reciprocal(jnp.sum(p_exp, axis=1, keepdims=True), approx=True)
        alpha = p_exp * inv                                               # (BT, P) f32
        # attention-weighted encoding on the MXU (batched, q=1)
        awe = jnp.einsum('bqp,bpe->bqe', alpha[:, None, :].astype(bf16), enc,
                         preferred_element_type=f32)[:, 0, :]             # (BT, E)

        # ---------------- Gate (bug-faithful: ADDED, as in the reference) --
        gate = jax.nn.sigmoid(mm(h, w_fbeta_ref) + b_fbeta_ref[...])
        awe = gate + awe

        # ---------------- LSTMCell (concat avoided by splitting W_ih) -----
        emb_t = emb_ref[0, k]                                             # (BT, M) bf16
        gates = (mm(emb_t, w_ih_emb_ref) + mm(awe, w_ih_awe_ref) + b_ih_ref[...]
                 + mm(h, w_hh_ref) + b_hh_ref[...])                       # (BT, 4D): i,f,g,o
        i_g = jax.nn.sigmoid(gates[:, 0 * D:1 * D])
        f_g = jax.nn.sigmoid(gates[:, 1 * D:2 * D])
        g_g = jnp.tanh(gates[:, 2 * D:3 * D])
        o_g = jax.nn.sigmoid(gates[:, 3 * D:4 * D])
        c_new = f_g * c + i_g * g_g
        h_new = o_g * jnp.tanh(c_new)

        # ---------------- fc head (dropout == identity in eval) -----------
        preds = mm(h_new, w_fc_ref) + b_fc_ref[...]                       # (BT, Vpad)

        # rows with decode_length <= t are inactive (lengths sorted desc)
        active = dlen > t                                                 # (BT, 1) bool
        h = jnp.where(active, h_new, h)
        c = jnp.where(active, c_new, c)
        pred_ref[:, 0, k, :] = jnp.where(active, preds, 0.0)
        alpha_ref[:, 0, k, :] = jnp.where(active, alpha, 0.0)

    h_sc[...] = h
    c_sc[...] = c


# --------------------------------------------------------------------------
# Parameter construction (deterministic, matches the module's shapes).
# --------------------------------------------------------------------------
def make_params(key, *, vocab_size, embed_dim, decoder_dim, encoder_dim, attention_dim):
    assert encoder_dim == attention_dim, (
        "Reference wires Attention(attention_dim, decoder_dim, attention_dim), "
        "so it only runs when encoder_dim == attention_dim.")
    ks = jax.random.split(key, 12)

    def lin(k, din, dout):
        kw, kb = jax.random.split(k)
        bound = 1.0 / np.sqrt(din)
        w = jax.random.uniform(kw, (din, dout), jnp.float32, -bound, bound)
        b = jax.random.uniform(kb, (1, dout), jnp.float32, -bound, bound)
        return w, b

    p = {}
    p['embedding'] = jax.random.uniform(ks[0], (vocab_size, embed_dim),
                                        jnp.float32, -0.1, 0.1)
    p['w_enc_att'], p['b_enc_att'] = lin(ks[1], attention_dim, attention_dim)
    p['w_dec_att'], p['b_dec_att'] = lin(ks[2], decoder_dim, attention_dim)
    wfa, bfa = lin(ks[3], attention_dim, 1)
    p['w_full_att'] = wfa.T                      # (1, A)
    p['b_full_att'] = bfa.reshape(1, 1)          # scalar
    p['w_init_h'], p['b_init_h'] = lin(ks[4], encoder_dim, decoder_dim)
    p['w_init_c'], p['b_init_c'] = lin(ks[5], encoder_dim, decoder_dim)
    p['w_fbeta'], p['b_fbeta'] = lin(ks[6], decoder_dim, encoder_dim)
    # LSTMCell(embed_dim + encoder_dim, decoder_dim); split input weight so the
    # kernel avoids a lane-axis concatenation.
    w_ih, b_ih = lin(ks[7], embed_dim + encoder_dim, 4 * decoder_dim)
    p['w_ih_emb'] = w_ih[:embed_dim]
    p['w_ih_awe'] = w_ih[embed_dim:]
    p['b_ih'] = b_ih
    p['w_hh'], p['b_hh'] = lin(ks[8], decoder_dim, 4 * decoder_dim)
    # init_weights(): fc.weight uniform(-0.1, 0.1), fc.bias = 0
    p['w_fc'] = jax.random.uniform(ks[9], (decoder_dim, vocab_size),
                                   jnp.float32, -0.1, 0.1)
    p['b_fc'] = jnp.zeros((1, vocab_size), jnp.float32)
    return p


# --------------------------------------------------------------------------
# Wrapper == DecoderWithAttention.forward
# --------------------------------------------------------------------------
def decoder_with_attention_forward(params, encoder_out, encoded_captions, caption_length,
                                   *, k_steps=4, batch_tile=8):
    B = encoder_out.shape[0]
    E = encoder_out.shape[-1]
    enc = encoder_out.reshape(B, -1, E)                  # (B, num_pixels, E)
    P = enc.shape[1]

    lens = caption_length[:, 0]
    sort_ind = jnp.argsort(-lens)                        # descending sort
    sorted_lens = lens[sort_ind]
    enc = enc[sort_ind]
    caps = encoded_captions[sort_ind]
    decode_length = sorted_lens - 1

    # Static time extent (no device->host sync, no per-length recompiles);
    # steps beyond each row's decode_length are masked to zero.  NOTE: the
    # time dim is max_cap_len-1 (upper bound) instead of max(decode_length).
    T = int(encoded_captions.shape[1]) - 1
    K = int(k_steps)
    NC = (T + K - 1) // K
    T_pad = NC * K

    BT = int(batch_tile)
    B_pad = ((B + BT - 1) // BT) * BT
    NB = B_pad // BT

    M = params['embedding'].shape[1]
    D = params['w_init_h'].shape[1]
    A = params['w_enc_att'].shape[1]
    V = params['w_fc'].shape[1]
    Vp = ((V + 127) // 128) * 128                        # lane-dense prediction stores

    f32, bf16 = jnp.float32, jnp.bfloat16

    # ---- glue (XLA side): embedding gather, batch/time padding, layout ----
    emb = params['embedding'][caps][:, :T, :]                           # (B, T, M)
    emb = jnp.pad(emb, ((0, B_pad - B), (0, T_pad - T), (0, 0)))        # (B_pad, T_pad, M)
    emb_chunks = jnp.transpose(emb, (1, 0, 2)).reshape(NC, K, B_pad, M).astype(bf16)

    enc_p = jnp.pad(enc, ((0, B_pad - B), (0, 0), (0, 0))).astype(bf16)
    dlen = jnp.pad(decode_length.astype(jnp.int32), (0, B_pad - B)).reshape(B_pad, 1)

    # bf16 matmul weights; f32 biases; fc padded to Vp lanes.
    w_fc_p = jnp.pad(params['w_fc'], ((0, 0), (0, Vp - V))).astype(bf16)
    b_fc_p = jnp.pad(params['b_fc'], ((0, 0), (0, Vp - V)))
    weights = [
        params['w_enc_att'].astype(bf16), params['b_enc_att'],
        params['w_dec_att'].astype(bf16), params['b_dec_att'],
        params['w_full_att'], params['b_full_att'],           # used on VPU, keep f32
        params['w_init_h'].astype(bf16), params['b_init_h'],
        params['w_init_c'].astype(bf16), params['b_init_c'],
        params['w_fbeta'].astype(bf16), params['b_fbeta'],
        params['w_ih_emb'].astype(bf16), params['w_ih_awe'].astype(bf16),
        params['w_hh'].astype(bf16), params['b_ih'], params['b_hh'],
        w_fc_p, b_fc_p,
    ]

    def full_spec(arr):
        n = arr.ndim
        return pl.BlockSpec(arr.shape, lambda b, c, _n=n: (0,) * _n)

    in_specs = (
        [pl.BlockSpec((BT, P, E), lambda b, c: (b, 0, 0)),        # encoder tile (resident)
         pl.BlockSpec((1, K, BT, M), lambda b, c: (c, 0, b, 0)),  # K embeddings of this chunk
         pl.BlockSpec((BT, 1), lambda b, c: (b, 0))]              # decode lengths (mask)
        + [full_spec(w) for w in weights]
    )
    # time-minor, lane-dense outputs: (B_pad, NC, K, Vp) / (B_pad, NC, K, P)
    out_specs = [pl.BlockSpec((BT, 1, K, Vp), lambda b, c: (b, c, 0, 0)),
                 pl.BlockSpec((BT, 1, K, P), lambda b, c: (b, c, 0, 0))]
    out_shape = (jax.ShapeDtypeStruct((B_pad, NC, K, Vp), f32),
                 jax.ShapeDtypeStruct((B_pad, NC, K, P), f32))

    preds_raw, alphas_raw = pl.pallas_call(
        _decoder_chunk_kernel,
        out_shape=out_shape,
        grid_spec=pltpu.PrefetchScalarGridSpec(
            num_scalar_prefetch=0,
            grid=(NB, NC),                                       # (batch tiles, time chunks)
            in_specs=in_specs,
            out_specs=out_specs,
            scratch_shapes=[pltpu.VMEM((BT, D), f32),            # h carried across chunks
                            pltpu.VMEM((BT, D), f32),            # c carried across chunks
                            pltpu.VMEM((BT, P, A), f32)],        # hoisted encoder projection
        ),
        compiler_params=pltpu.CompilerParams(
            dimension_semantics=("parallel", "arbitrary"),       # batch parallel (v7x megacore)
            vmem_limit_bytes=64 * 1024 * 1024),
    )(enc_p, emb_chunks, dlen, *weights)

    predictions = preds_raw.reshape(B_pad, T_pad, Vp)[:B, :T, :V]   # free reshape, no transpose
    alphas = alphas_raw.reshape(B_pad, T_pad, P)[:B, :T, :]
    return predictions, caps, decode_length, alphas, sort_ind


# --------------------------------------------------------------------------
# Pure-JAX reference (same masked semantics, same bf16 matmul precision).
# --------------------------------------------------------------------------
def ref_forward(params, enc_f32, emb_f32, dec_len, T):
    f32, bf16 = jnp.float32, jnp.bfloat16

    def mm(x, w):
        return jnp.dot(x.astype(bf16), w.astype(bf16), preferred_element_type=f32)

    D = params['w_hh'].shape[0]
    enc = enc_f32.astype(bf16)
    emb = emb_f32.astype(bf16)
    Bq, P, E = enc.shape

    mean_enc = jnp.mean(enc.astype(f32), axis=1)
    h = mm(mean_enc, params['w_init_h']) + params['b_init_h']
    c = mm(mean_enc, params['w_init_c']) + params['b_init_c']
    att1 = (mm(enc.astype(f32).reshape(Bq * P, E), params['w_enc_att'])
            + params['b_enc_att']).reshape(Bq, P, -1)

    preds_all, alphas_all = [], []
    for t in range(T):
        att2 = mm(h, params['w_dec_att']) + params['b_dec_att']
        act = jnp.maximum(att1 + att2[:, None, :], 0.0)
        att = jnp.sum(act * params['w_full_att'][None, :, :], axis=2) + params['b_full_att'][0, 0]
        att = att - jnp.max(att, axis=1, keepdims=True)
        p_exp = jnp.exp(att)
        alpha = p_exp / jnp.sum(p_exp, axis=1, keepdims=True)
        awe = jnp.einsum('bqp,bpe->bqe', alpha[:, None, :].astype(bf16), enc,
                         preferred_element_type=f32)[:, 0, :]
        gate = jax.nn.sigmoid(mm(h, params['w_fbeta']) + params['b_fbeta'])
        awe = gate + awe
        gates = (mm(emb[:, t, :], params['w_ih_emb']) + mm(awe, params['w_ih_awe'])
                 + params['b_ih'] + mm(h, params['w_hh']) + params['b_hh'])
        i_g = jax.nn.sigmoid(gates[:, 0 * D:1 * D])
        f_g = jax.nn.sigmoid(gates[:, 1 * D:2 * D])
        g_g = jnp.tanh(gates[:, 2 * D:3 * D])
        o_g = jax.nn.sigmoid(gates[:, 3 * D:4 * D])
        c_new = f_g * c + i_g * g_g
        h_new = o_g * jnp.tanh(c_new)
        p = mm(h_new, params['w_fc']) + params['b_fc']
        active = dec_len[:, None] > t
        h = jnp.where(active, h_new, h)
        c = jnp.where(active, c_new, c)
        preds_all.append(jnp.where(active, p, 0.0))
        alphas_all.append(jnp.where(active, alpha, 0.0))
    return jnp.stack(preds_all, axis=1), jnp.stack(alphas_all, axis=1)


if __name__ == "__main__":
    key = jax.random.PRNGKey(0)
    B, Hs, Ws = 4, 4, 4
    attention_dim = 32
    encoder_dim = 32        # must equal attention_dim (see note in make_params)
    decoder_dim = 32
    embed_dim = 16
    vocab_size = 64
    max_cap_len = 7

    kp, ke, kc = jax.random.split(key, 3)
    params = make_params(kp, vocab_size=vocab_size, embed_dim=embed_dim,
                         decoder_dim=decoder_dim, encoder_dim=encoder_dim,
                         attention_dim=attention_dim)

    encoder_out = jax.random.normal(ke, (B, Hs, Ws, encoder_dim), jnp.float32)
    encoded_captions = jax.random.randint(kc, (B, max_cap_len), 0, vocab_size)
    caption_length = jnp.array([[5], [3], [6], [4]], dtype=jnp.int32)

    # TODO(synk): the reference passes c[batch_size_t] (a single row, almost
    # certainly a typo for c[:batch_size_t]); we implement the sliced/masked
    # semantics.  Dropout is deterministic identity (eval mode).
    preds, caps_sorted, dec_len, alphas, sort_ind = decoder_with_attention_forward(
        params, encoder_out, encoded_captions, caption_length)
    jax.block_until_ready((preds, alphas))

    # correctness check vs pure-JAX reference (same bf16-matmul precision)
    enc_sorted = encoder_out.reshape(B, -1, encoder_dim)[sort_ind]
    T = preds.shape[1]
    emb_sorted = params['embedding'][caps_sorted][:, :T, :]
    ref_p, ref_a = ref_forward(params, enc_sorted, emb_sorted, dec_len, T)
    np.testing.assert_allclose(np.asarray(preds), np.asarray(ref_p), rtol=2e-2, atol=1e-2)
    np.testing.assert_allclose(np.asarray(alphas), np.asarray(ref_a), rtol=2e-2, atol=1e-2)

    print("KERNEL_OK")
</pallas_src>

<mosaic_0001>
module attributes {stable_mosaic.version = 11 : i64} {
  func.func @_decoder_chunk_kernel(%arg0: i32, %arg1: i32, %arg2: memref<8x16x32xbf16, #tpu.memory_space<vmem>>, %arg3: memref<1x4x8x16xbf16, #tpu.memory_space<vmem>>, %arg4: memref<8x1xi32, #tpu.memory_space<vmem>>, %arg5: memref<32x32xbf16, #tpu.memory_space<vmem>>, %arg6: memref<1x32xf32, #tpu.memory_space<vmem>>, %arg7: memref<32x32xbf16, #tpu.memory_space<vmem>>, %arg8: memref<1x32xf32, #tpu.memory_space<vmem>>, %arg9: memref<1x32xf32, #tpu.memory_space<vmem>>, %arg10: memref<1x1xf32, #tpu.memory_space<vmem>>, %arg11: memref<32x32xbf16, #tpu.memory_space<vmem>>, %arg12: memref<1x32xf32, #tpu.memory_space<vmem>>, %arg13: memref<32x32xbf16, #tpu.memory_space<vmem>>, %arg14: memref<1x32xf32, #tpu.memory_space<vmem>>, %arg15: memref<32x32xbf16, #tpu.memory_space<vmem>>, %arg16: memref<1x32xf32, #tpu.memory_space<vmem>>, %arg17: memref<16x128xbf16, #tpu.memory_space<vmem>>, %arg18: memref<32x128xbf16, #tpu.memory_space<vmem>>, %arg19: memref<32x128xbf16, #tpu.memory_space<vmem>>, %arg20: memref<1x128xf32, #tpu.memory_space<vmem>>, %arg21: memref<1x128xf32, #tpu.memory_space<vmem>>, %arg22: memref<32x128xbf16, #tpu.memory_space<vmem>>, %arg23: memref<1x128xf32, #tpu.memory_space<vmem>>, %arg24: memref<8x1x4x128xf32, #tpu.memory_space<vmem>>, %arg25: memref<8x1x4x16xf32, #tpu.memory_space<vmem>>, %arg26: memref<8x32xf32, #tpu.memory_space<vmem>>, %arg27: memref<8x32xf32, #tpu.memory_space<vmem>>, %arg28: memref<8x16x32xf32, #tpu.memory_space<vmem>>) attributes {dimension_semantics = [#tpu.dimension_semantics<parallel>, #tpu.dimension_semantics<arbitrary>], iteration_bounds = array<i64: 1, 2>, scalar_prefetch = 0 : i64, scratch_operands = 3 : i64, tpu.core_type = #tpu.core_type<tc>, window_params = [{transform_indices = @transform_0, window_bounds = array<i64: 8, 16, 32>}, {transform_indices = @transform_1, window_bounds = array<i64: 1, 4, 8, 16>}, {transform_indices = @transform_2, window_bounds = array<i64: 8, 1>}, {pipeline_mode = #tpu.pipeline_mode<synchronous>, transform_indices = @transform_3, window_bounds = array<i64: 32, 32>}, {pipeline_mode = #tpu.pipeline_mode<synchronous>, transform_indices = @transform_4, window_bounds = array<i64: 1, 32>}, {pipeline_mode = #tpu.pipeline_mode<synchronous>, transform_indices = @transform_5, window_bounds = array<i64: 32, 32>}, {pipeline_mode = #tpu.pipeline_mode<synchronous>, transform_indices = @transform_6, window_bounds = array<i64: 1, 32>}, {pipeline_mode = #tpu.pipeline_mode<synchronous>, transform_indices = @transform_7, window_bounds = array<i64: 1, 32>}, {pipeline_mode = #tpu.pipeline_mode<synchronous>, transform_indices = @transform_8, window_bounds = array<i64: 1, 1>}, {pipeline_mode = #tpu.pipeline_mode<synchronous>, transform_indices = @transform_9, window_bounds = array<i64: 32, 32>}, {pipeline_mode = #tpu.pipeline_mode<synchronous>, transform_indices = @transform_10, window_bounds = array<i64: 1, 32>}, {pipeline_mode = #tpu.pipeline_mode<synchronous>, transform_indices = @transform_11, window_bounds = array<i64: 32, 32>}, {pipeline_mode = #tpu.pipeline_mode<synchronous>, transform_indices = @transform_12, window_bounds = array<i64: 1, 32>}, {pipeline_mode = #tpu.pipeline_mode<synchronous>, transform_indices = @transform_13, window_bounds = array<i64: 32, 32>}, {pipeline_mode = #tpu.pipeline_mode<synchronous>, transform_indices = @transform_14, window_bounds = array<i64: 1, 32>}, {pipeline_mode = #tpu.pipeline_mode<synchronous>, transform_indices = @transform_15, window_bounds = array<i64: 16, 128>}, {pipeline_mode = #tpu.pipeline_mode<synchronous>, transform_indices = @transform_16, window_bounds = array<i64: 32, 128>}, {pipeline_mode = #tpu.pipeline_mode<synchronous>, transform_indices = @transform_17, window_bounds = array<i64: 32, 128>}, {pipeline_mode = #tpu.pipeline_mode<synchronous>, transform_indices = @transform_18, window_bounds = array<i64: 1, 128>}, {pipeline_mode = #tpu.pipeline_mode<synchronous>, transform_indices = @transform_19, window_bounds = array<i64: 1, 128>}, {pipeline_mode = #tpu.pipeline_mode<synchronous>, transform_indices = @transform_20, window_bounds = array<i64: 32, 128>}, {pipeline_mode = #tpu.pipeline_mode<synchronous>, transform_indices = @transform_21, window_bounds = array<i64: 1, 128>}, {transform_indices = @transform_22, window_bounds = array<i64: 8, 1, 4, 128>}, {transform_indices = @transform_23, window_bounds = array<i64: 8, 1, 4, 16>}]} {
    %c0 = arith.constant 0 : index
    %c0_0 = arith.constant 0 : index
    %c0_1 = arith.constant 0 : index
    %0 = vector.load %arg2[%c0, %c0_0, %c0_1] : memref<8x16x32xbf16, #tpu.memory_space<vmem>>, vector<8x16x32xbf16>
    %c0_i32 = arith.constant 0 : i32
    %1 = arith.cmpi eq, %arg1, %c0_i32 : i32
    %2 = arith.extui %1 : i1 to i32
    %c0_i32_2 = arith.constant 0 : i32
    %3 = arith.cmpi ne, %2, %c0_i32_2 : i32
    scf.if %3 {
      %479 = arith.extf %0 : vector<8x16x32xbf16> to vector<8x16x32xf32>
      %cst_230 = arith.constant dense<0.000000e+00> : vector<8x32xf32>
      %480 = vector.multi_reduction <add>, %479, %cst_230 [1] : vector<8x16x32xf32> to vector<8x32xf32>
      %cst_231 = arith.constant 1.600000e+01 : f32
      %481 = vector.broadcast %cst_231 : f32 to vector<8x32xf32>
      %482 = arith.divf %480, %481 : vector<8x32xf32>
      %483 = arith.truncf %482 : vector<8x32xf32> to vector<8x32xbf16>
      %c0_232 = arith.constant 0 : index
      %c0_233 = arith.constant 0 : index
      %484 = vector.load %arg11[%c0_232, %c0_233] : memref<32x32xbf16, #tpu.memory_space<vmem>>, vector<32x32xbf16>
      %cst_234 = arith.constant dense<0.000000e+00> : vector<8x32xf32>
      %485 = tpu.matmul %483, %484, %cst_234 {dimension_numbers = #tpu.dot_dimension_numbers<[1], [0], [0], [1], [0, 0, 1, 1], [], []>} : vector<8x32xbf16>, vector<32x32xbf16>, vector<8x32xf32> -> vector<8x32xf32>
      %c0_235 = arith.constant 0 : index
      %c0_236 = arith.constant 0 : index
      %486 = vector.load %arg12[%c0_235, %c0_236] : memref<1x32xf32, #tpu.memory_space<vmem>>, vector<1x32xf32>
      %487 = vector.broadcast %486 : vector<1x32xf32> to vector<8x32xf32>
      %488 = arith.addf %485, %487 : vector<8x32xf32>
      %c0_237 = arith.constant 0 : index
      %c0_238 = arith.constant 0 : index
      %489 = vector.load %arg26[%c0_237, %c0_238] : memref<8x32xf32, #tpu.memory_space<vmem>>, vector<8x32xf32>
      tpu.vector_store %arg26[%c0_237, %c0_238], %488 {strides = array<i32>} : memref<8x32xf32, #tpu.memory_space<vmem>>, vector<8x32xf32>,
      %490 = arith.truncf %482 : vector<8x32xf32> to vector<8x32xbf16>
      %c0_239 = arith.constant 0 : index
      %c0_240 = arith.constant 0 : index
      %491 = vector.load %arg13[%c0_239, %c0_240] : memref<32x32xbf16, #tpu.memory_space<vmem>>, vector<32x32xbf16>
      %cst_241 = arith.constant dense<0.000000e+00> : vector<8x32xf32>
      %492 = tpu.matmul %490, %491, %cst_241 {dimension_numbers = #tpu.dot_dimension_numbers<[1], [0], [0], [1], [0, 0, 1, 1], [], []>} : vector<8x32xbf16>, vector<32x32xbf16>, vector<8x32xf32> -> vector<8x32xf32>
      %c0_242 = arith.constant 0 : index
      %c0_243 = arith.constant 0 : index
      %493 = vector.load %arg14[%c0_242, %c0_243] : memref<1x32xf32, #tpu.memory_space<vmem>>, vector<1x32xf32>
      %494 = vector.broadcast %493 : vector<1x32xf32> to vector<8x32xf32>
      %495 = arith.addf %492, %494 : vector<8x32xf32>
      %c0_244 = arith.constant 0 : index
      %c0_245 = arith.constant 0 : index
      %496 = vector.load %arg27[%c0_244, %c0_245] : memref<8x32xf32, #tpu.memory_space<vmem>>, vector<8x32xf32>
      tpu.vector_store %arg27[%c0_244, %c0_245], %495 {strides = array<i32>} : memref<8x32xf32, #tpu.memory_space<vmem>>, vector<8x32xf32>,
      %497 = vector.shape_cast %479 : vector<8x16x32xf32> to vector<128x32xf32>
      %498 = arith.truncf %497 : vector<128x32xf32> to vector<128x32xbf16>
      %c0_246 = arith.constant 0 : index
      %c0_247 = arith.constant 0 : index
      %499 = vector.load %arg5[%c0_246, %c0_247] : memref<32x32xbf16, #tpu.memory_space<vmem>>, vector<32x32xbf16>
      %cst_248 = arith.constant dense<0.000000e+00> : vector<128x32xf32>
      %500 = tpu.matmul %498, %499, %cst_248 {dimension_numbers = #tpu.dot_dimension_numbers<[1], [0], [0], [1], [0, 0, 1, 1], [], []>} : vector<128x32xbf16>, vector<32x32xbf16>, vector<128x32xf32> -> vector<128x32xf32>
      %c0_249 = arith.constant 0 : index
      %c0_250 = arith.constant 0 : index
      %501 = vector.load %arg6[%c0_249, %c0_250] : memref<1x32xf32, #tpu.memory_space<vmem>>, vector<1x32xf32>
      %502 = vector.broadcast %501 : vector<1x32xf32> to vector<128x32xf32>
      %503 = arith.addf %500, %502 : vector<128x32xf32>
      %504 = vector.shape_cast %503 : vector<128x32xf32> to vector<8x16x32xf32>
      %c0_251 = arith.constant 0 : index
      %c0_252 = arith.constant 0 : index
      %c0_253 = arith.constant 0 : index
      %505 = vector.load %arg28[%c0_251, %c0_252, %c0_253] : memref<8x16x32xf32, #tpu.memory_space<vmem>>, vector<8x16x32xf32>
      tpu.vector_store %arg28[%c0_251, %c0_252, %c0_253], %504 {strides = array<i32>} : memref<8x16x32xf32, #tpu.memory_space<vmem>>, vector<8x16x32xf32>,
    } else {
    }
    %c0_3 = arith.constant 0 : index
    %c0_4 = arith.constant 0 : index
    %4 = vector.load %arg26[%c0_3, %c0_4] : memref<8x32xf32, #tpu.memory_space<vmem>>, vector<8x32xf32>
    %c0_5 = arith.constant 0 : index
    %c0_6 = arith.constant 0 : index
    %5 = vector.load %arg27[%c0_5, %c0_6] : memref<8x32xf32, #tpu.memory_space<vmem>>, vector<8x32xf32>
    %c0_7 = arith.constant 0 : index
    %c0_8 = arith.constant 0 : index
    %c0_9 = arith.constant 0 : index
    %6 = vector.load %arg28[%c0_7, %c0_8, %c0_9] : memref<8x16x32xf32, #tpu.memory_space<vmem>>, vector<8x16x32xf32>
    %c0_10 = arith.constant 0 : index
    %c0_11 = arith.constant 0 : index
    %7 = vector.load %arg4[%c0_10, %c0_11] : memref<8x1xi32, #tpu.memory_space<vmem>>, vector<8x1xi32>
    %c0_12 = arith.constant 0 : index
    %c0_13 = arith.constant 0 : index
    %8 = vector.load %arg9[%c0_12, %c0_13] : memref<1x32xf32, #tpu.memory_space<vmem>>, vector<1x32xf32>
    %c4_i32 = arith.constant 4 : i32
    %9 = arith.muli %arg1, %c4_i32 : i32
    %c0_i32_14 = arith.constant 0 : i32
    %10 = arith.addi %9, %c0_i32_14 : i32
    %11 = arith.truncf %4 : vector<8x32xf32> to vector<8x32xbf16>
    %c0_15 = arith.constant 0 : index
    %c0_16 = arith.constant 0 : index
    %12 = vector.load %arg7[%c0_15, %c0_16] : memref<32x32xbf16, #tpu.memory_space<vmem>>, vector<32x32xbf16>
    %cst = arith.constant dense<0.000000e+00> : vector<8x32xf32>
    %13 = tpu.matmul %11, %12, %cst {dimension_numbers = #tpu.dot_dimension_numbers<[1], [0], [0], [1], [0, 0, 1, 1], [], []>} : vector<8x32xbf16>, vector<32x32xbf16>, vector<8x32xf32> -> vector<8x32xf32>
    %c0_17 = arith.constant 0 : index
    %c0_18 = arith.constant 0 : index
    %14 = vector.load %arg8[%c0_17, %c0_18] : memref<1x32xf32, #tpu.memory_space<vmem>>, vector<1x32xf32>
    %15 = vector.broadcast %14 : vector<1x32xf32> to vector<8x32xf32>
    %16 = arith.addf %13, %15 : vector<8x32xf32>
    %17 = vector.shape_cast %16 : vector<8x32xf32> to vector<8x1x32xf32>
    %18 = vector.broadcast %17 : vector<8x1x32xf32> to vector<8x16x32xf32>
    %19 = arith.addf %6, %18 : vector<8x16x32xf32>
    %cst_19 = arith.constant 0.000000e+00 : f32
    %20 = vector.broadcast %cst_19 : f32 to vector<8x16x32xf32>
    %21 = arith.maximumf %19, %20 : vector<8x16x32xf32>
    %22 = vector.shape_cast %8 : vector<1x32xf32> to vector<1x1x32xf32>
    %23 = vector.broadcast %22 : vector<1x1x32xf32> to vector<8x16x32xf32>
    %24 = arith.mulf %21, %23 : vector<8x16x32xf32>
    %cst_20 = arith.constant dense<0.000000e+00> : vector<8x16xf32>
    %25 = vector.multi_reduction <add>, %24, %cst_20 [2] : vector<8x16x32xf32> to vector<8x16xf32>
    %c0_21 = arith.constant 0 : index
    %c0_22 = arith.constant 0 : index
    %26 = vector.load %arg10[%c0_21, %c0_22] : memref<1x1xf32, #tpu.memory_space<vmem>>, vector<1x1xf32>
    %27 = vector.broadcast %26 : vector<1x1xf32> to vector<8x16xf32>
    %28 = arith.addf %25, %27 : vector<8x16xf32>
    %cst_23 = arith.constant dense<0xFF800000> : vector<8xf32>
    %29 = vector.multi_reduction <maximumf>, %28, %cst_23 [1] : vector<8x16xf32> to vector<8xf32>
    %30 = vector.shape_cast %29 : vector<8xf32> to vector<8x1xf32>
    %31 = vector.broadcast %30 : vector<8x1xf32> to vector<8x16xf32>
    %32 = arith.subf %28, %31 : vector<8x16xf32>
    %33 = math.exp %32 : vector<8x16xf32>
    %cst_24 = arith.constant dense<0.000000e+00> : vector<8xf32>
    %34 = vector.multi_reduction <add>, %33, %cst_24 [1] : vector<8x16xf32> to vector<8xf32>
    %35 = vector.shape_cast %34 : vector<8xf32> to vector<8x1xf32>
    %36 = tpu.reciprocal %35 {approx = true} : vector<8x1xf32> -> vector<8x1xf32>
    %37 = vector.broadcast %36 : vector<8x1xf32> to vector<8x16xf32>
    %38 = arith.mulf %33, %37 : vector<8x16xf32>
    %39 = vector.shape_cast %38 : vector<8x16xf32> to vector<8x1x16xf32>
    %40 = arith.truncf %39 : vector<8x1x16xf32> to vector<8x1x16xbf16>
    "tpu.trace_start"() <{level = 10 : i32, message = "bqp,bpe->bqe"}> : () -> ()
    %cst_25 = arith.constant dense<0.000000e+00> : vector<8x1x32xf32>
    %41 = tpu.matmul %40, %0, %cst_25 {dimension_numbers = #tpu.dot_dimension_numbers<[2], [1], [1], [2], [0, 0, 0, 1, 1, 2], [0], [0]>} : vector<8x1x16xbf16>, vector<8x16x32xbf16>, vector<8x1x32xf32> -> vector<8x1x32xf32>
    "tpu.trace_stop"() : () -> ()
    %42 = vector.shape_cast %41 : vector<8x1x32xf32> to vector<8x32xf32>
    %43 = arith.truncf %4 : vector<8x32xf32> to vector<8x32xbf16>
    %c0_26 = arith.constant 0 : index
    %c0_27 = arith.constant 0 : index
    %44 = vector.load %arg15[%c0_26, %c0_27] : memref<32x32xbf16, #tpu.memory_space<vmem>>, vector<32x32xbf16>
    %cst_28 = arith.constant dense<0.000000e+00> : vector<8x32xf32>
    %45 = tpu.matmul %43, %44, %cst_28 {dimension_numbers = #tpu.dot_dimension_numbers<[1], [0], [0], [1], [0, 0, 1, 1], [], []>} : vector<8x32xbf16>, vector<32x32xbf16>, vector<8x32xf32> -> vector<8x32xf32>
    %c0_29 = arith.constant 0 : index
    %c0_30 = arith.constant 0 : index
    %46 = vector.load %arg16[%c0_29, %c0_30] : memref<1x32xf32, #tpu.memory_space<vmem>>, vector<1x32xf32>
    %47 = vector.broadcast %46 : vector<1x32xf32> to vector<8x32xf32>
    %48 = arith.addf %45, %47 : vector<8x32xf32>
    %49 = arith.negf %48 : vector<8x32xf32>
    %50 = math.exp %49 : vector<8x32xf32>
    %cst_31 = arith.constant 1.000000e+00 : f32
    %51 = vector.broadcast %cst_31 : f32 to vector<8x32xf32>
    %52 = arith.addf %51, %50 : vector<8x32xf32>
    %53 = arith.divf %51, %52 : vector<8x32xf32>
    %54 = arith.addf %53, %42 : vector<8x32xf32>
    %c0_32 = arith.constant 0 : index
    %c0_33 = arith.constant 0 : index
    %c0_34 = arith.constant 0 : index
    %c0_35 = arith.constant 0 : index
    %55 = vector.load %arg3[%c0_32, %c0_33, %c0_34, %c0_35] : memref<1x4x8x16xbf16, #tpu.memory_space<vmem>>, vector<1x1x8x16xbf16>
    %56 = vector.shape_cast %55 : vector<1x1x8x16xbf16> to vector<8x16xbf16>
    %c0_36 = arith.constant 0 : index
    %c0_37 = arith.constant 0 : index
    %57 = vector.load %arg17[%c0_36, %c0_37] : memref<16x128xbf16, #tpu.memory_space<vmem>>, vector<16x128xbf16>
    %cst_38 = arith.constant dense<0.000000e+00> : vector<8x128xf32>
    %58 = tpu.matmul %56, %57, %cst_38 {dimension_numbers = #tpu.dot_dimension_numbers<[1], [0], [0], [1], [0, 0, 1, 1], [], []>} : vector<8x16xbf16>, vector<16x128xbf16>, vector<8x128xf32> -> vector<8x128xf32>
    %59 = arith.truncf %54 : vector<8x32xf32> to vector<8x32xbf16>
    %c0_39 = arith.constant 0 : index
    %c0_40 = arith.constant 0 : index
    %60 = vector.load %arg18[%c0_39, %c0_40] : memref<32x128xbf16, #tpu.memory_space<vmem>>, vector<32x128xbf16>
    %cst_41 = arith.constant dense<0.000000e+00> : vector<8x128xf32>
    %61 = tpu.matmul %59, %60, %cst_41 {dimension_numbers = #tpu.dot_dimension_numbers<[1], [0], [0], [1], [0, 0, 1, 1], [], []>} : vector<8x32xbf16>, vector<32x128xbf16>, vector<8x128xf32> -> vector<8x128xf32>
    %62 = arith.addf %58, %61 : vector<8x128xf32>
    %c0_42 = arith.constant 0 : index
    %c0_43 = arith.constant 0 : index
    %63 = vector.load %arg20[%c0_42, %c0_43] : memref<1x128xf32, #tpu.memory_space<vmem>>, vector<1x128xf32>
    %64 = vector.broadcast %63 : vector<1x128xf32> to vector<8x128xf32>
    %65 = arith.addf %62, %64 : vector<8x128xf32>
    %66 = arith.truncf %4 : vector<8x32xf32> to vector<8x32xbf16>
    %c0_44 = arith.constant 0 : index
    %c0_45 = arith.constant 0 : index
    %67 = vector.load %arg19[%c0_44, %c0_45] : memref<32x128xbf16, #tpu.memory_space<vmem>>, vector<32x128xbf16>
    %cst_46 = arith.constant dense<0.000000e+00> : vector<8x128xf32>
    %68 = tpu.matmul %66, %67, %cst_46 {dimension_numbers = #tpu.dot_dimension_numbers<[1], [0], [0], [1], [0, 0, 1, 1], [], []>} : vector<8x32xbf16>, vector<32x128xbf16>, vector<8x128xf32> -> vector<8x128xf32>
    %69 = arith.addf %65, %68 : vector<8x128xf32>
    %c0_47 = arith.constant 0 : index
    %c0_48 = arith.constant 0 : index
    %70 = vector.load %arg21[%c0_47, %c0_48] : memref<1x128xf32, #tpu.memory_space<vmem>>, vector<1x128xf32>
    %71 = vector.broadcast %70 : vector<1x128xf32> to vector<8x128xf32>
    %72 = arith.addf %69, %71 : vector<8x128xf32>
    %73 = vector.extract_strided_slice %72 {offsets = [0, 0], sizes = [8, 32], strides = [1, 1]} : vector<8x128xf32> to vector<8x32xf32>
    %74 = arith.negf %73 : vector<8x32xf32>
    %75 = math.exp %74 : vector<8x32xf32>
    %cst_49 = arith.constant 1.000000e+00 : f32
    %76 = vector.broadcast %cst_49 : f32 to vector<8x32xf32>
    %77 = arith.addf %76, %75 : vector<8x32xf32>
    %78 = arith.divf %76, %77 : vector<8x32xf32>
    %79 = vector.extract_strided_slice %72 {offsets = [0, 32], sizes = [8, 32], strides = [1, 1]} : vector<8x128xf32> to vector<8x32xf32>
    %80 = arith.negf %79 : vector<8x32xf32>
    %81 = math.exp %80 : vector<8x32xf32>
    %cst_50 = arith.constant 1.000000e+00 : f32
    %82 = vector.broadcast %cst_50 : f32 to vector<8x32xf32>
    %83 = arith.addf %82, %81 : vector<8x32xf32>
    %84 = arith.divf %82, %83 : vector<8x32xf32>
    %85 = vector.extract_strided_slice %72 {offsets = [0, 64], sizes = [8, 32], strides = [1, 1]} : vector<8x128xf32> to vector<8x32xf32>
    %86 = math.tanh %85 : vector<8x32xf32>
    %87 = vector.extract_strided_slice %72 {offsets = [0, 96], sizes = [8, 32], strides = [1, 1]} : vector<8x128xf32> to vector<8x32xf32>
    %88 = arith.negf %87 : vector<8x32xf32>
    %89 = math.exp %88 : vector<8x32xf32>
    %cst_51 = arith.constant 1.000000e+00 : f32
    %90 = vector.broadcast %cst_51 : f32 to vector<8x32xf32>
    %91 = arith.addf %90, %89 : vector<8x32xf32>
    %92 = arith.divf %90, %91 : vector<8x32xf32>
    %93 = arith.mulf %84, %5 : vector<8x32xf32>
    %94 = arith.mulf %78, %86 : vector<8x32xf32>
    %95 = arith.addf %93, %94 : vector<8x32xf32>
    %96 = math.tanh %95 : vector<8x32xf32>
    %97 = arith.mulf %92, %96 : vector<8x32xf32>
    %98 = arith.truncf %97 : vector<8x32xf32> to vector<8x32xbf16>
    %c0_52 = arith.constant 0 : index
    %c0_53 = arith.constant 0 : index
    %99 = vector.load %arg22[%c0_52, %c0_53] : memref<32x128xbf16, #tpu.memory_space<vmem>>, vector<32x128xbf16>
    %cst_54 = arith.constant dense<0.000000e+00> : vector<8x128xf32>
    %100 = tpu.matmul %98, %99, %cst_54 {dimension_numbers = #tpu.dot_dimension_numbers<[1], [0], [0], [1], [0, 0, 1, 1], [], []>} : vector<8x32xbf16>, vector<32x128xbf16>, vector<8x128xf32> -> vector<8x128xf32>
    %c0_55 = arith.constant 0 : index
    %c0_56 = arith.constant 0 : index
    %101 = vector.load %arg23[%c0_55, %c0_56] : memref<1x128xf32, #tpu.memory_space<vmem>>, vector<1x128xf32>
    %102 = vector.broadcast %101 : vector<1x128xf32> to vector<8x128xf32>
    %103 = arith.addf %100, %102 : vector<8x128xf32>
    %104 = vector.broadcast %10 : i32 to vector<8x1xi32>
    %105 = arith.cmpi sgt, %7, %104 : vector<8x1xi32>
    %106 = vector.shape_cast %105 : vector<8x1xi1> to vector<8x1xi1>
    %107 = vector.broadcast %106 : vector<8x1xi1> to vector<8x32xi1>
    %108 = arith.select %107, %97, %4 : vector<8x32xi1>, vector<8x32xf32>
    %109 = vector.shape_cast %105 : vector<8x1xi1> to vector<8x1xi1>
    %110 = vector.broadcast %109 : vector<8x1xi1> to vector<8x32xi1>
    %111 = arith.select %110, %95, %5 : vector<8x32xi1>, vector<8x32xf32>
    %cst_57 = arith.constant 0.000000e+00 : f32
    %112 = vector.shape_cast %105 : vector<8x1xi1> to vector<8x1xi1>
    %113 = vector.broadcast %112 : vector<8x1xi1> to vector<8x128xi1>
    %114 = vector.broadcast %cst_57 : f32 to vector<8x128xf32>
    %115 = arith.select %113, %103, %114 : vector<8x128xi1>, vector<8x128xf32>
    %c0_58 = arith.constant 0 : index
    %c0_59 = arith.constant 0 : index
    %c0_60 = arith.constant 0 : index
    %c0_61 = arith.constant 0 : index
    %116 = vector.load %arg24[%c0_58, %c0_59, %c0_60, %c0_61] : memref<8x1x4x128xf32, #tpu.memory_space<vmem>>, vector<8x1x1x128xf32>
    %117 = vector.shape_cast %116 : vector<8x1x1x128xf32> to vector<8x128xf32>
    %118 = vector.shape_cast %115 : vector<8x128xf32> to vector<8x1x1x128xf32>
    tpu.vector_store %arg24[%c0_58, %c0_59, %c0_60, %c0_61], %118 {strides = array<i32>} : memref<8x1x4x128xf32, #tpu.memory_space<vmem>>, vector<8x1x1x128xf32>,
    %cst_62 = arith.constant 0.000000e+00 : f32
    %119 = vector.shape_cast %105 : vector<8x1xi1> to vector<8x1xi1>
    %120 = vector.broadcast %119 : vector<8x1xi1> to vector<8x16xi1>
    %121 = vector.broadcast %cst_62 : f32 to vector<8x16xf32>
    %122 = arith.select %120, %38, %121 : vector<8x16xi1>, vector<8x16xf32>
    %c0_63 = arith.constant 0 : index
    %c0_64 = arith.constant 0 : index
    %c0_65 = arith.constant 0 : index
    %c0_66 = arith.constant 0 : index
    %123 = vector.load %arg25[%c0_63, %c0_64, %c0_65, %c0_66] : memref<8x1x4x16xf32, #tpu.memory_space<vmem>>, vector<8x1x1x16xf32>
    %124 = vector.shape_cast %123 : vector<8x1x1x16xf32> to vector<8x16xf32>
    %125 = vector.shape_cast %122 : vector<8x16xf32> to vector<8x1x1x16xf32>
    tpu.vector_store %arg25[%c0_63, %c0_64, %c0_65, %c0_66], %125 {strides = array<i32>} : memref<8x1x4x16xf32, #tpu.memory_space<vmem>>, vector<8x1x1x16xf32>,
    %c4_i32_67 = arith.constant 4 : i32
    %126 = arith.muli %arg1, %c4_i32_67 : i32
    %c1_i32 = arith.constant 1 : i32
    %127 = arith.addi %126, %c1_i32 : i32
    %128 = arith.truncf %108 : vector<8x32xf32> to vector<8x32xbf16>
    %c0_68 = arith.constant 0 : index
    %c0_69 = arith.constant 0 : index
    %129 = vector.load %arg7[%c0_68, %c0_69] : memref<32x32xbf16, #tpu.memory_space<vmem>>, vector<32x32xbf16>
    %cst_70 = arith.constant dense<0.000000e+00> : vector<8x32xf32>
    %130 = tpu.matmul %128, %129, %cst_70 {dimension_numbers = #tpu.dot_dimension_numbers<[1], [0], [0], [1], [0, 0, 1, 1], [], []>} : vector<8x32xbf16>, vector<32x32xbf16>, vector<8x32xf32> -> vector<8x32xf32>
    %c0_71 = arith.constant 0 : index
    %c0_72 = arith.constant 0 : index
    %131 = vector.load %arg8[%c0_71, %c0_72] : memref<1x32xf32, #tpu.memory_space<vmem>>, vector<1x32xf32>
    %132 = vector.broadcast %131 : vector<1x32xf32> to vector<8x32xf32>
    %133 = arith.addf %130, %132 : vector<8x32xf32>
    %134 = vector.shape_cast %133 : vector<8x32xf32> to vector<8x1x32xf32>
    %135 = vector.broadcast %134 : vector<8x1x32xf32> to vector<8x16x32xf32>
    %136 = arith.addf %6, %135 : vector<8x16x32xf32>
    %cst_73 = arith.constant 0.000000e+00 : f32
    %137 = vector.broadcast %cst_73 : f32 to vector<8x16x32xf32>
    %138 = arith.maximumf %136, %137 : vector<8x16x32xf32>
    %139 = vector.shape_cast %8 : vector<1x32xf32> to vector<1x1x32xf32>
    %140 = vector.broadcast %139 : vector<1x1x32xf32> to vector<8x16x32xf32>
    %141 = arith.mulf %138, %140 : vector<8x16x32xf32>
    %cst_74 = arith.constant dense<0.000000e+00> : vector<8x16xf32>
    %142 = vector.multi_reduction <add>, %141, %cst_74 [2] : vector<8x16x32xf32> to vector<8x16xf32>
    %c0_75 = arith.constant 0 : index
    %c0_76 = arith.constant 0 : index
    %143 = vector.load %arg10[%c0_75, %c0_76] : memref<1x1xf32, #tpu.memory_space<vmem>>, vector<1x1xf32>
    %144 = vector.broadcast %143 : vector<1x1xf32> to vector<8x16xf32>
    %145 = arith.addf %142, %144 : vector<8x16xf32>
    %cst_77 = arith.constant dense<0xFF800000> : vector<8xf32>
    %146 = vector.multi_reduction <maximumf>, %145, %cst_77 [1] : vector<8x16xf32> to vector<8xf32>
    %147 = vector.shape_cast %146 : vector<8xf32> to vector<8x1xf32>
    %148 = vector.broadcast %147 : vector<8x1xf32> to vector<8x16xf32>
    %149 = arith.subf %145, %148 : vector<8x16xf32>
    %150 = math.exp %149 : vector<8x16xf32>
    %cst_78 = arith.constant dense<0.000000e+00> : vector<8xf32>
    %151 = vector.multi_reduction <add>, %150, %cst_78 [1] : vector<8x16xf32> to vector<8xf32>
    %152 = vector.shape_cast %151 : vector<8xf32> to vector<8x1xf32>
    %153 = tpu.reciprocal %152 {approx = true} : vector<8x1xf32> -> vector<8x1xf32>
    %154 = vector.broadcast %153 : vector<8x1xf32> to vector<8x16xf32>
    %155 = arith.mulf %150, %154 : vector<8x16xf32>
    %156 = vector.shape_cast %155 : vector<8x16xf32> to vector<8x1x16xf32>
    %157 = arith.truncf %156 : vector<8x1x16xf32> to vector<8x1x16xbf16>
    "tpu.trace_start"() <{level = 10 : i32, message = "bqp,bpe->bqe"}> : () -> ()
    %cst_79 = arith.constant dense<0.000000e+00> : vector<8x1x32xf32>
    %158 = tpu.matmul %157, %0, %cst_79 {dimension_numbers = #tpu.dot_dimension_numbers<[2], [1], [1], [2], [0, 0, 0, 1, 1, 2], [0], [0]>} : vector<8x1x16xbf16>, vector<8x16x32xbf16>, vector<8x1x32xf32> -> vector<8x1x32xf32>
    "tpu.trace_stop"() : () -> ()
    %159 = vector.shape_cast %158 : vector<8x1x32xf32> to vector<8x32xf32>
    %160 = arith.truncf %108 : vector<8x32xf32> to vector<8x32xbf16>
    %c0_80 = arith.constant 0 : index
    %c0_81 = arith.constant 0 : index
    %161 = vector.load %arg15[%c0_80, %c0_81] : memref<32x32xbf16, #tpu.memory_space<vmem>>, vector<32x32xbf16>
    %cst_82 = arith.constant dense<0.000000e+00> : vector<8x32xf32>
    %162 = tpu.matmul %160, %161, %cst_82 {dimension_numbers = #tpu.dot_dimension_numbers<[1], [0], [0], [1], [0, 0, 1, 1], [], []>} : vector<8x32xbf16>, vector<32x32xbf16>, vector<8x32xf32> -> vector<8x32xf32>
    %c0_83 = arith.constant 0 : index
    %c0_84 = arith.constant 0 : index
    %163 = vector.load %arg16[%c0_83, %c0_84] : memref<1x32xf32, #tpu.memory_space<vmem>>, vector<1x32xf32>
    %164 = vector.broadcast %163 : vector<1x32xf32> to vector<8x32xf32>
    %165 = arith.addf %162, %164 : vector<8x32xf32>
    %166 = arith.negf %165 : vector<8x32xf32>
    %167 = math.exp %166 : vector<8x32xf32>
    %cst_85 = arith.constant 1.000000e+00 : f32
    %168 = vector.broadcast %cst_85 : f32 to vector<8x32xf32>
    %169 = arith.addf %168, %167 : vector<8x32xf32>
    %170 = arith.divf %168, %169 : vector<8x32xf32>
    %171 = arith.addf %170, %159 : vector<8x32xf32>
    %c0_86 = arith.constant 0 : index
    %c1 = arith.constant 1 : index
    %c0_87 = arith.constant 0 : index
    %c0_88 = arith.constant 0 : index
    %172 = vector.load %arg3[%c0_86, %c1, %c0_87, %c0_88] : memref<1x4x8x16xbf16, #tpu.memory_space<vmem>>, vector<1x1x8x16xbf16>
    %173 = vector.shape_cast %172 : vector<1x1x8x16xbf16> to vector<8x16xbf16>
    %c0_89 = arith.constant 0 : index
    %c0_90 = arith.constant 0 : index
    %174 = vector.load %arg17[%c0_89, %c0_90] : memref<16x128xbf16, #tpu.memory_space<vmem>>, vector<16x128xbf16>
    %cst_91 = arith.constant dense<0.000000e+00> : vector<8x128xf32>
    %175 = tpu.matmul %173, %174, %cst_91 {dimension_numbers = #tpu.dot_dimension_numbers<[1], [0], [0], [1], [0, 0, 1, 1], [], []>} : vector<8x16xbf16>, vector<16x128xbf16>, vector<8x128xf32> -> vector<8x128xf32>
    %176 = arith.truncf %171 : vector<8x32xf32> to vector<8x32xbf16>
    %c0_92 = arith.constant 0 : index
    %c0_93 = arith.constant 0 : index
    %177 = vector.load %arg18[%c0_92, %c0_93] : memref<32x128xbf16, #tpu.memory_space<vmem>>, vector<32x128xbf16>
    %cst_94 = arith.constant dense<0.000000e+00> : vector<8x128xf32>
    %178 = tpu.matmul %176, %177, %cst_94 {dimension_numbers = #tpu.dot_dimension_numbers<[1], [0], [0], [1], [0, 0, 1, 1], [], []>} : vector<8x32xbf16>, vector<32x128xbf16>, vector<8x128xf32> -> vector<8x128xf32>
    %179 = arith.addf %175, %178 : vector<8x128xf32>
    %c0_95 = arith.constant 0 : index
    %c0_96 = arith.constant 0 : index
    %180 = vector.load %arg20[%c0_95, %c0_96] : memref<1x128xf32, #tpu.memory_space<vmem>>, vector<1x128xf32>
    %181 = vector.broadcast %180 : vector<1x128xf32> to vector<8x128xf32>
    %182 = arith.addf %179, %181 : vector<8x128xf32>
    %183 = arith.truncf %108 : vector<8x32xf32> to vector<8x32xbf16>
    %c0_97 = arith.constant 0 : index
    %c0_98 = arith.constant 0 : index
    %184 = vector.load %arg19[%c0_97, %c0_98] : memref<32x128xbf16, #tpu.memory_space<vmem>>, vector<32x128xbf16>
    %cst_99 = arith.constant dense<0.000000e+00> : vector<8x128xf32>
    %185 = tpu.matmul %183, %184, %cst_99 {dimension_numbers = #tpu.dot_dimension_numbers<[1], [0], [0], [1], [0, 0, 1, 1], [], []>} : vector<8x32xbf16>, vector<32x128xbf16>, vector<8x128xf32> -> vector<8x128xf32>
    %186 = arith.addf %182, %185 : vector<8x128xf32>
    %c0_100 = arith.constant 0 : index
    %c0_101 = arith.constant 0 : index
    %187 = vector.load %arg21[%c0_100, %c0_101] : memref<1x128xf32, #tpu.memory_space<vmem>>, vector<1x128xf32>
    %188 = vector.broadcast %187 : vector<1x128xf32> to vector<8x128xf32>
    %189 = arith.addf %186, %188 : vector<8x128xf32>
    %190 = vector.extract_strided_slice %189 {offsets = [0, 0], sizes = [8, 32], strides = [1, 1]} : vector<8x128xf32> to vector<8x32xf32>
    %191 = arith.negf %190 : vector<8x32xf32>
    %192 = math.exp %191 : vector<8x32xf32>
    %cst_102 = arith.constant 1.000000e+00 : f32
    %193 = vector.broadcast %cst_102 : f32 to vector<8x32xf32>
    %194 = arith.addf %193, %192 : vector<8x32xf32>
    %195 = arith.divf %193, %194 : vector<8x32xf32>
    %196 = vector.extract_strided_slice %189 {offsets = [0, 32], sizes = [8, 32], strides = [1, 1]} : vector<8x128xf32> to vector<8x32xf32>
    %197 = arith.negf %196 : vector<8x32xf32>
    %198 = math.exp %197 : vector<8x32xf32>
    %cst_103 = arith.constant 1.000000e+00 : f32
    %199 = vector.broadcast %cst_103 : f32 to vector<8x32xf32>
    %200 = arith.addf %199, %198 : vector<8x32xf32>
    %201 = arith.divf %199, %200 : vector<8x32xf32>
    %202 = vector.extract_strided_slice %189 {offsets = [0, 64], sizes = [8, 32], strides = [1, 1]} : vector<8x128xf32> to vector<8x32xf32>
    %203 = math.tanh %202 : vector<8x32xf32>
    %204 = vector.extract_strided_slice %189 {offsets = [0, 96], sizes = [8, 32], strides = [1, 1]} : vector<8x128xf32> to vector<8x32xf32>
    %205 = arith.negf %204 : vector<8x32xf32>
    %206 = math.exp %205 : vector<8x32xf32>
    %cst_104 = arith.constant 1.000000e+00 : f32
    %207 = vector.broadcast %cst_104 : f32 to vector<8x32xf32>
    %208 = arith.addf %207, %206 : vector<8x32xf32>
    %209 = arith.divf %207, %208 : vector<8x32xf32>
    %210 = arith.mulf %201, %111 : vector<8x32xf32>
    %211 = arith.mulf %195, %203 : vector<8x32xf32>
    %212 = arith.addf %210, %211 : vector<8x32xf32>
    %213 = math.tanh %212 : vector<8x32xf32>
    %214 = arith.mulf %209, %213 : vector<8x32xf32>
    %215 = arith.truncf %214 : vector<8x32xf32> to vector<8x32xbf16>
    %c0_105 = arith.constant 0 : index
    %c0_106 = arith.constant 0 : index
    %216 = vector.load %arg22[%c0_105, %c0_106] : memref<32x128xbf16, #tpu.memory_space<vmem>>, vector<32x128xbf16>
    %cst_107 = arith.constant dense<0.000000e+00> : vector<8x128xf32>
    %217 = tpu.matmul %215, %216, %cst_107 {dimension_numbers = #tpu.dot_dimension_numbers<[1], [0], [0], [1], [0, 0, 1, 1], [], []>} : vector<8x32xbf16>, vector<32x128xbf16>, vector<8x128xf32> -> vector<8x128xf32>
    %c0_108 = arith.constant 0 : index
    %c0_109 = arith.constant 0 : index
    %218 = vector.load %arg23[%c0_108, %c0_109] : memref<1x128xf32, #tpu.memory_space<vmem>>, vector<1x128xf32>
    %219 = vector.broadcast %218 : vector<1x128xf32> to vector<8x128xf32>
    %220 = arith.addf %217, %219 : vector<8x128xf32>
    %221 = vector.broadcast %127 : i32 to vector<8x1xi32>
    %222 = arith.cmpi sgt, %7, %221 : vector<8x1xi32>
    %223 = vector.shape_cast %222 : vector<8x1xi1> to vector<8x1xi1>
    %224 = vector.broadcast %223 : vector<8x1xi1> to vector<8x32xi1>
    %225 = arith.select %224, %214, %108 : vector<8x32xi1>, vector<8x32xf32>
    %226 = vector.shape_cast %222 : vector<8x1xi1> to vector<8x1xi1>
    %227 = vector.broadcast %226 : vector<8x1xi1> to vector<8x32xi1>
    %228 = arith.select %227, %212, %111 : vector<8x32xi1>, vector<8x32xf32>
    %cst_110 = arith.constant 0.000000e+00 : f32
    %229 = vector.shape_cast %222 : vector<8x1xi1> to vector<8x1xi1>
    %230 = vector.broadcast %229 : vector<8x1xi1> to vector<8x128xi1>
    %231 = vector.broadcast %cst_110 : f32 to vector<8x128xf32>
    %232 = arith.select %230, %220, %231 : vector<8x128xi1>, vector<8x128xf32>
    %c0_111 = arith.constant 0 : index
    %c0_112 = arith.constant 0 : index
    %c1_113 = arith.constant 1 : index
    %c0_114 = arith.constant 0 : index
    %233 = vector.load %arg24[%c0_111, %c0_112, %c1_113, %c0_114] : memref<8x1x4x128xf32, #tpu.memory_space<vmem>>, vector<8x1x1x128xf32>
    %234 = vector.shape_cast %233 : vector<8x1x1x128xf32> to vector<8x128xf32>
    %235 = vector.shape_cast %232 : vector<8x128xf32> to vector<8x1x1x128xf32>
    tpu.vector_store %arg24[%c0_111, %c0_112, %c1_113, %c0_114], %235 {strides = array<i32>} : memref<8x1x4x128xf32, #tpu.memory_space<vmem>>, vector<8x1x1x128xf32>,
    %cst_115 = arith.constant 0.000000e+00 : f32
    %236 = vector.shape_cast %222 : vector<8x1xi1> to vector<8x1xi1>
    %237 = vector.broadcast %236 : vector<8x1xi1> to vector<8x16xi1>
    %238 = vector.broadcast %cst_115 : f32 to vector<8x16xf32>
    %239 = arith.select %237, %155, %238 : vector<8x16xi1>, vector<8x16xf32>
    %c0_116 = arith.constant 0 : index
    %c0_117 = arith.constant 0 : index
    %c1_118 = arith.constant 1 : index
    %c0_119 = arith.constant 0 : index
    %240 = vector.load %arg25[%c0_116, %c0_117, %c1_118, %c0_119] : memref<8x1x4x16xf32, #tpu.memory_space<vmem>>, vector<8x1x1x16xf32>
    %241 = vector.shape_cast %240 : vector<8x1x1x16xf32> to vector<8x16xf32>
    %242 = vector.shape_cast %239 : vector<8x16xf32> to vector<8x1x1x16xf32>
    tpu.vector_store %arg25[%c0_116, %c0_117, %c1_118, %c0_119], %242 {strides = array<i32>} : memref<8x1x4x16xf32, #tpu.memory_space<vmem>>, vector<8x1x1x16xf32>,
    %c4_i32_120 = arith.constant 4 : i32
    %243 = arith.muli %arg1, %c4_i32_120 : i32
    %c2_i32 = arith.constant 2 : i32
    %244 = arith.addi %243, %c2_i32 : i32
    %245 = arith.truncf %225 : vector<8x32xf32> to vector<8x32xbf16>
    %c0_121 = arith.constant 0 : index
    %c0_122 = arith.constant 0 : index
    %246 = vector.load %arg7[%c0_121, %c0_122] : memref<32x32xbf16, #tpu.memory_space<vmem>>, vector<32x32xbf16>
    %cst_123 = arith.constant dense<0.000000e+00> : vector<8x32xf32>
    %247 = tpu.matmul %245, %246, %cst_123 {dimension_numbers = #tpu.dot_dimension_numbers<[1], [0], [0], [1], [0, 0, 1, 1], [], []>} : vector<8x32xbf16>, vector<32x32xbf16>, vector<8x32xf32> -> vector<8x32xf32>
    %c0_124 = arith.constant 0 : index
    %c0_125 = arith.constant 0 : index
    %248 = vector.load %arg8[%c0_124, %c0_125] : memref<1x32xf32, #tpu.memory_space<vmem>>, vector<1x32xf32>
    %249 = vector.broadcast %248 : vector<1x32xf32> to vector<8x32xf32>
    %250 = arith.addf %247, %249 : vector<8x32xf32>
    %251 = vector.shape_cast %250 : vector<8x32xf32> to vector<8x1x32xf32>
    %252 = vector.broadcast %251 : vector<8x1x32xf32> to vector<8x16x32xf32>
    %253 = arith.addf %6, %252 : vector<8x16x32xf32>
    %cst_126 = arith.constant 0.000000e+00 : f32
    %254 = vector.broadcast %cst_126 : f32 to vector<8x16x32xf32>
    %255 = arith.maximumf %253, %254 : vector<8x16x32xf32>
    %256 = vector.shape_cast %8 : vector<1x32xf32> to vector<1x1x32xf32>
    %257 = vector.broadcast %256 : vector<1x1x32xf32> to vector<8x16x32xf32>
    %258 = arith.mulf %255, %257 : vector<8x16x32xf32>
    %cst_127 = arith.constant dense<0.000000e+00> : vector<8x16xf32>
    %259 = vector.multi_reduction <add>, %258, %cst_127 [2] : vector<8x16x32xf32> to vector<8x16xf32>
    %c0_128 = arith.constant 0 : index
    %c0_129 = arith.constant 0 : index
    %260 = vector.load %arg10[%c0_128, %c0_129] : memref<1x1xf32, #tpu.memory_space<vmem>>, vector<1x1xf32>
    %261 = vector.broadcast %260 : vector<1x1xf32> to vector<8x16xf32>
    %262 = arith.addf %259, %261 : vector<8x16xf32>
    %cst_130 = arith.constant dense<0xFF800000> : vector<8xf32>
    %263 = vector.multi_reduction <maximumf>, %262, %cst_130 [1] : vector<8x16xf32> to vector<8xf32>
    %264 = vector.shape_cast %263 : vector<8xf32> to vector<8x1xf32>
    %265 = vector.broadcast %264 : vector<8x1xf32> to vector<8x16xf32>
    %266 = arith.subf %262, %265 : vector<8x16xf32>
    %267 = math.exp %266 : vector<8x16xf32>
    %cst_131 = arith.constant dense<0.000000e+00> : vector<8xf32>
    %268 = vector.multi_reduction <add>, %267, %cst_131 [1] : vector<8x16xf32> to vector<8xf32>
    %269 = vector.shape_cast %268 : vector<8xf32> to vector<8x1xf32>
    %270 = tpu.reciprocal %269 {approx = true} : vector<8x1xf32> -> vector<8x1xf32>
    %271 = vector.broadcast %270 : vector<8x1xf32> to vector<8x16xf32>
    %272 = arith.mulf %267, %271 : vector<8x16xf32>
    %273 = vector.shape_cast %272 : vector<8x16xf32> to vector<8x1x16xf32>
    %274 = arith.truncf %273 : vector<8x1x16xf32> to vector<8x1x16xbf16>
    "tpu.trace_start"() <{level = 10 : i32, message = "bqp,bpe->bqe"}> : () -> ()
    %cst_132 = arith.constant dense<0.000000e+00> : vector<8x1x32xf32>
    %275 = tpu.matmul %274, %0, %cst_132 {dimension_numbers = #tpu.dot_dimension_numbers<[2], [1], [1], [2], [0, 0, 0, 1, 1, 2], [0], [0]>} : vector<8x1x16xbf16>, vector<8x16x32xbf16>, vector<8x1x32xf32> -> vector<8x1x32xf32>
    "tpu.trace_stop"() : () -> ()
    %276 = vector.shape_cast %275 : vector<8x1x32xf32> to vector<8x32xf32>
    %277 = arith.truncf %225 : vector<8x32xf32> to vector<8x32xbf16>
    %c0_133 = arith.constant 0 : index
    %c0_134 = arith.constant 0 : index
    %278 = vector.load %arg15[%c0_133, %c0_134] : memref<32x32xbf16, #tpu.memory_space<vmem>>, vector<32x32xbf16>
    %cst_135 = arith.constant dense<0.000000e+00> : vector<8x32xf32>
    %279 = tpu.matmul %277, %278, %cst_135 {dimension_numbers = #tpu.dot_dimension_numbers<[1], [0], [0], [1], [0, 0, 1, 1], [], []>} : vector<8x32xbf16>, vector<32x32xbf16>, vector<8x32xf32> -> vector<8x32xf32>
    %c0_136 = arith.constant 0 : index
    %c0_137 = arith.constant 0 : index
    %280 = vector.load %arg16[%c0_136, %c0_137] : memref<1x32xf32, #tpu.memory_space<vmem>>, vector<1x32xf32>
    %281 = vector.broadcast %280 : vector<1x32xf32> to vector<8x32xf32>
    %282 = arith.addf %279, %281 : vector<8x32xf32>
    %283 = arith.negf %282 : vector<8x32xf32>
    %284 = math.exp %283 : vector<8x32xf32>
    %cst_138 = arith.constant 1.000000e+00 : f32
    %285 = vector.broadcast %cst_138 : f32 to vector<8x32xf32>
    %286 = arith.addf %285, %284 : vector<8x32xf32>
    %287 = arith.divf %285, %286 : vector<8x32xf32>
    %288 = arith.addf %287, %276 : vector<8x32xf32>
    %c0_139 = arith.constant 0 : index
    %c2 = arith.constant 2 : index
    %c0_140 = arith.constant 0 : index
    %c0_141 = arith.constant 0 : index
    %289 = vector.load %arg3[%c0_139, %c2, %c0_140, %c0_141] : memref<1x4x8x16xbf16, #tpu.memory_space<vmem>>, vector<1x1x8x16xbf16>
    %290 = vector.shape_cast %289 : vector<1x1x8x16xbf16> to vector<8x16xbf16>
    %c0_142 = arith.constant 0 : index
    %c0_143 = arith.constant 0 : index
    %291 = vector.load %arg17[%c0_142, %c0_143] : memref<16x128xbf16, #tpu.memory_space<vmem>>, vector<16x128xbf16>
    %cst_144 = arith.constant dense<0.000000e+00> : vector<8x128xf32>
    %292 = tpu.matmul %290, %291, %cst_144 {dimension_numbers = #tpu.dot_dimension_numbers<[1], [0], [0], [1], [0, 0, 1, 1], [], []>} : vector<8x16xbf16>, vector<16x128xbf16>, vector<8x128xf32> -> vector<8x128xf32>
    %293 = arith.truncf %288 : vector<8x32xf32> to vector<8x32xbf16>
    %c0_145 = arith.constant 0 : index
    %c0_146 = arith.constant 0 : index
    %294 = vector.load %arg18[%c0_145, %c0_146] : memref<32x128xbf16, #tpu.memory_space<vmem>>, vector<32x128xbf16>
    %cst_147 = arith.constant dense<0.000000e+00> : vector<8x128xf32>
    %295 = tpu.matmul %293, %294, %cst_147 {dimension_numbers = #tpu.dot_dimension_numbers<[1], [0], [0], [1], [0, 0, 1, 1], [], []>} : vector<8x32xbf16>, vector<32x128xbf16>, vector<8x128xf32> -> vector<8x128xf32>
    %296 = arith.addf %292, %295 : vector<8x128xf32>
    %c0_148 = arith.constant 0 : index
    %c0_149 = arith.constant 0 : index
    %297 = vector.load %arg20[%c0_148, %c0_149] : memref<1x128xf32, #tpu.memory_space<vmem>>, vector<1x128xf32>
    %298 = vector.broadcast %297 : vector<1x128xf32> to vector<8x128xf32>
    %299 = arith.addf %296, %298 : vector<8x128xf32>
    %300 = arith.truncf %225 : vector<8x32xf32> to vector<8x32xbf16>
    %c0_150 = arith.constant 0 : index
    %c0_151 = arith.constant 0 : index
    %301 = vector.load %arg19[%c0_150, %c0_151] : memref<32x128xbf16, #tpu.memory_space<vmem>>, vector<32x128xbf16>
    %cst_152 = arith.constant dense<0.000000e+00> : vector<8x128xf32>
    %302 = tpu.matmul %300, %301, %cst_152 {dimension_numbers = #tpu.dot_dimension_numbers<[1], [0], [0], [1], [0, 0, 1, 1], [], []>} : vector<8x32xbf16>, vector<32x128xbf16>, vector<8x128xf32> -> vector<8x128xf32>
    %303 = arith.addf %299, %302 : vector<8x128xf32>
    %c0_153 = arith.constant 0 : index
    %c0_154 = arith.constant 0 : index
    %304 = vector.load %arg21[%c0_153, %c0_154] : memref<1x128xf32, #tpu.memory_space<vmem>>, vector<1x128xf32>
    %305 = vector.broadcast %304 : vector<1x128xf32> to vector<8x128xf32>
    %306 = arith.addf %303, %305 : vector<8x128xf32>
    %307 = vector.extract_strided_slice %306 {offsets = [0, 0], sizes = [8, 32], strides = [1, 1]} : vector<8x128xf32> to vector<8x32xf32>
    %308 = arith.negf %307 : vector<8x32xf32>
    %309 = math.exp %308 : vector<8x32xf32>
    %cst_155 = arith.constant 1.000000e+00 : f32
    %310 = vector.broadcast %cst_155 : f32 to vector<8x32xf32>
    %311 = arith.addf %310, %309 : vector<8x32xf32>
    %312 = arith.divf %310, %311 : vector<8x32xf32>
    %313 = vector.extract_strided_slice %306 {offsets = [0, 32], sizes = [8, 32], strides = [1, 1]} : vector<8x128xf32> to vector<8x32xf32>
    %314 = arith.negf %313 : vector<8x32xf32>
    %315 = math.exp %314 : vector<8x32xf32>
    %cst_156 = arith.constant 1.000000e+00 : f32
    %316 = vector.broadcast %cst_156 : f32 to vector<8x32xf32>
    %317 = arith.addf %316, %315 : vector<8x32xf32>
    %318 = arith.divf %316, %317 : vector<8x32xf32>
    %319 = vector.extract_strided_slice %306 {offsets = [0, 64], sizes = [8, 32], strides = [1, 1]} : vector<8x128xf32> to vector<8x32xf32>
    %320 = math.tanh %319 : vector<8x32xf32>
    %321 = vector.extract_strided_slice %306 {offsets = [0, 96], sizes = [8, 32], strides = [1, 1]} : vector<8x128xf32> to vector<8x32xf32>
    %322 = arith.negf %321 : vector<8x32xf32>
    %323 = math.exp %322 : vector<8x32xf32>
    %cst_157 = arith.constant 1.000000e+00 : f32
    %324 = vector.broadcast %cst_157 : f32 to vector<8x32xf32>
    %325 = arith.addf %324, %323 : vector<8x32xf32>
    %326 = arith.divf %324, %325 : vector<8x32xf32>
    %327 = arith.mulf %318, %228 : vector<8x32xf32>
    %328 = arith.mulf %312, %320 : vector<8x32xf32>
    %329 = arith.addf %327, %328 : vector<8x32xf32>
    %330 = math.tanh %329 : vector<8x32xf32>
    %331 = arith.mulf %326, %330 : vector<8x32xf32>
    %332 = arith.truncf %331 : vector<8x32xf32> to vector<8x32xbf16>
    %c0_158 = arith.constant 0 : index
    %c0_159 = arith.constant 0 : index
    %333 = vector.load %arg22[%c0_158, %c0_159] : memref<32x128xbf16, #tpu.memory_space<vmem>>, vector<32x128xbf16>
    %cst_160 = arith.constant dense<0.000000e+00> : vector<8x128xf32>
    %334 = tpu.matmul %332, %333, %cst_160 {dimension_numbers = #tpu.dot_dimension_numbers<[1], [0], [0], [1], [0, 0, 1, 1], [], []>} : vector<8x32xbf16>, vector<32x128xbf16>, vector<8x128xf32> -> vector<8x128xf32>
    %c0_161 = arith.constant 0 : index
    %c0_162 = arith.constant 0 : index
    %335 = vector.load %arg23[%c0_161, %c0_162] : memref<1x128xf32, #tpu.memory_space<vmem>>, vector<1x128xf32>
    %336 = vector.broadcast %335 : vector<1x128xf32> to vector<8x128xf32>
    %337 = arith.addf %334, %336 : vector<8x128xf32>
    %338 = vector.broadcast %244 : i32 to vector<8x1xi32>
    %339 = arith.cmpi sgt, %7, %338 : vector<8x1xi32>
    %340 = vector.shape_cast %339 : vector<8x1xi1> to vector<8x1xi1>
    %341 = vector.broadcast %340 : vector<8x1xi1> to vector<8x32xi1>
    %342 = arith.select %341, %331, %225 : vector<8x32xi1>, vector<8x32xf32>
    %343 = vector.shape_cast %339 : vector<8x1xi1> to vector<8x1xi1>
    %344 = vector.broadcast %343 : vector<8x1xi1> to vector<8x32xi1>
    %345 = arith.select %344, %329, %228 : vector<8x32xi1>, vector<8x32xf32>
    %cst_163 = arith.constant 0.000000e+00 : f32
    %346 = vector.shape_cast %339 : vector<8x1xi1> to vector<8x1xi1>
    %347 = vector.broadcast %346 : vector<8x1xi1> to vector<8x128xi1>
    %348 = vector.broadcast %cst_163 : f32 to vector<8x128xf32>
    %349 = arith.select %347, %337, %348 : vector<8x128xi1>, vector<8x128xf32>
    %c0_164 = arith.constant 0 : index
    %c0_165 = arith.constant 0 : index
    %c2_166 = arith.constant 2 : index
    %c0_167 = arith.constant 0 : index
    %350 = vector.load %arg24[%c0_164, %c0_165, %c2_166, %c0_167] : memref<8x1x4x128xf32, #tpu.memory_space<vmem>>, vector<8x1x1x128xf32>
    %351 = vector.shape_cast %350 : vector<8x1x1x128xf32> to vector<8x128xf32>
    %352 = vector.shape_cast %349 : vector<8x128xf32> to vector<8x1x1x128xf32>
    tpu.vector_store %arg24[%c0_164, %c0_165, %c2_166, %c0_167], %352 {strides = array<i32>} : memref<8x1x4x128xf32, #tpu.memory_space<vmem>>, vector<8x1x1x128xf32>,
    %cst_168 = arith.constant 0.000000e+00 : f32
    %353 = vector.shape_cast %339 : vector<8x1xi1> to vector<8x1xi1>
    %354 = vector.broadcast %353 : vector<8x1xi1> to vector<8x16xi1>
    %355 = vector.broadcast %cst_168 : f32 to vector<8x16xf32>
    %356 = arith.select %354, %272, %355 : vector<8x16xi1>, vector<8x16xf32>
    %c0_169 = arith.constant 0 : index
    %c0_170 = arith.constant 0 : index
    %c2_171 = arith.constant 2 : index
    %c0_172 = arith.constant 0 : index
    %357 = vector.load %arg25[%c0_169, %c0_170, %c2_171, %c0_172] : memref<8x1x4x16xf32, #tpu.memory_space<vmem>>, vector<8x1x1x16xf32>
    %358 = vector.shape_cast %357 : vector<8x1x1x16xf32> to vector<8x16xf32>
    %359 = vector.shape_cast %356 : vector<8x16xf32> to vector<8x1x1x16xf32>
    tpu.vector_store %arg25[%c0_169, %c0_170, %c2_171, %c0_172], %359 {strides = array<i32>} : memref<8x1x4x16xf32, #tpu.memory_space<vmem>>, vector<8x1x1x16xf32>,
    %c4_i32_173 = arith.constant 4 : i32
    %360 = arith.muli %arg1, %c4_i32_173 : i32
    %c3_i32 = arith.constant 3 : i32
    %361 = arith.addi %360, %c3_i32 : i32
    %362 = arith.truncf %342 : vector<8x32xf32> to vector<8x32xbf16>
    %c0_174 = arith.constant 0 : index
    %c0_175 = arith.constant 0 : index
    %363 = vector.load %arg7[%c0_174, %c0_175] : memref<32x32xbf16, #tpu.memory_space<vmem>>, vector<32x32xbf16>
    %cst_176 = arith.constant dense<0.000000e+00> : vector<8x32xf32>
    %364 = tpu.matmul %362, %363, %cst_176 {dimension_numbers = #tpu.dot_dimension_numbers<[1], [0], [0], [1], [0, 0, 1, 1], [], []>} : vector<8x32xbf16>, vector<32x32xbf16>, vector<8x32xf32> -> vector<8x32xf32>
    %c0_177 = arith.constant 0 : index
    %c0_178 = arith.constant 0 : index
    %365 = vector.load %arg8[%c0_177, %c0_178] : memref<1x32xf32, #tpu.memory_space<vmem>>, vector<1x32xf32>
    %366 = vector.broadcast %365 : vector<1x32xf32> to vector<8x32xf32>
    %367 = arith.addf %364, %366 : vector<8x32xf32>
    %368 = vector.shape_cast %367 : vector<8x32xf32> to vector<8x1x32xf32>
    %369 = vector.broadcast %368 : vector<8x1x32xf32> to vector<8x16x32xf32>
    %370 = arith.addf %6, %369 : vector<8x16x32xf32>
    %cst_179 = arith.constant 0.000000e+00 : f32
    %371 = vector.broadcast %cst_179 : f32 to vector<8x16x32xf32>
    %372 = arith.maximumf %370, %371 : vector<8x16x32xf32>
    %373 = vector.shape_cast %8 : vector<1x32xf32> to vector<1x1x32xf32>
    %374 = vector.broadcast %373 : vector<1x1x32xf32> to vector<8x16x32xf32>
    %375 = arith.mulf %372, %374 : vector<8x16x32xf32>
    %cst_180 = arith.constant dense<0.000000e+00> : vector<8x16xf32>
    %376 = vector.multi_reduction <add>, %375, %cst_180 [2] : vector<8x16x32xf32> to vector<8x16xf32>
    %c0_181 = arith.constant 0 : index
    %c0_182 = arith.constant 0 : index
    %377 = vector.load %arg10[%c0_181, %c0_182] : memref<1x1xf32, #tpu.memory_space<vmem>>, vector<1x1xf32>
    %378 = vector.broadcast %377 : vector<1x1xf32> to vector<8x16xf32>
    %379 = arith.addf %376, %378 : vector<8x16xf32>
    %cst_183 = arith.constant dense<0xFF800000> : vector<8xf32>
    %380 = vector.multi_reduction <maximumf>, %379, %cst_183 [1] : vector<8x16xf32> to vector<8xf32>
    %381 = vector.shape_cast %380 : vector<8xf32> to vector<8x1xf32>
    %382 = vector.broadcast %381 : vector<8x1xf32> to vector<8x16xf32>
    %383 = arith.subf %379, %382 : vector<8x16xf32>
    %384 = math.exp %383 : vector<8x16xf32>
    %cst_184 = arith.constant dense<0.000000e+00> : vector<8xf32>
    %385 = vector.multi_reduction <add>, %384, %cst_184 [1] : vector<8x16xf32> to vector<8xf32>
    %386 = vector.shape_cast %385 : vector<8xf32> to vector<8x1xf32>
    %387 = tpu.reciprocal %386 {approx = true} : vector<8x1xf32> -> vector<8x1xf32>
    %388 = vector.broadcast %387 : vector<8x1xf32> to vector<8x16xf32>
    %389 = arith.mulf %384, %388 : vector<8x16xf32>
    %390 = vector.shape_cast %389 : vector<8x16xf32> to vector<8x1x16xf32>
    %391 = arith.truncf %390 : vector<8x1x16xf32> to vector<8x1x16xbf16>
    "tpu.trace_start"() <{level = 10 : i32, message = "bqp,bpe->bqe"}> : () -> ()
    %cst_185 = arith.constant dense<0.000000e+00> : vector<8x1x32xf32>
    %392 = tpu.matmul %391, %0, %cst_185 {dimension_numbers = #tpu.dot_dimension_numbers<[2], [1], [1], [2], [0, 0, 0, 1, 1, 2], [0], [0]>} : vector<8x1x16xbf16>, vector<8x16x32xbf16>, vector<8x1x32xf32> -> vector<8x1x32xf32>
    "tpu.trace_stop"() : () -> ()
    %393 = vector.shape_cast %392 : vector<8x1x32xf32> to vector<8x32xf32>
    %394 = arith.truncf %342 : vector<8x32xf32> to vector<8x32xbf16>
    %c0_186 = arith.constant 0 : index
    %c0_187 = arith.constant 0 : index
    %395 = vector.load %arg15[%c0_186, %c0_187] : memref<32x32xbf16, #tpu.memory_space<vmem>>, vector<32x32xbf16>
    %cst_188 = arith.constant dense<0.000000e+00> : vector<8x32xf32>
    %396 = tpu.matmul %394, %395, %cst_188 {dimension_numbers = #tpu.dot_dimension_numbers<[1], [0], [0], [1], [0, 0, 1, 1], [], []>} : vector<8x32xbf16>, vector<32x32xbf16>, vector<8x32xf32> -> vector<8x32xf32>
    %c0_189 = arith.constant 0 : index
    %c0_190 = arith.constant 0 : index
    %397 = vector.load %arg16[%c0_189, %c0_190] : memref<1x32xf32, #tpu.memory_space<vmem>>, vector<1x32xf32>
    %398 = vector.broadcast %397 : vector<1x32xf32> to vector<8x32xf32>
    %399 = arith.addf %396, %398 : vector<8x32xf32>
    %400 = arith.negf %399 : vector<8x32xf32>
    %401 = math.exp %400 : vector<8x32xf32>
    %cst_191 = arith.constant 1.000000e+00 : f32
    %402 = vector.broadcast %cst_191 : f32 to vector<8x32xf32>
    %403 = arith.addf %402, %401 : vector<8x32xf32>
    %404 = arith.divf %402, %403 : vector<8x32xf32>
    %405 = arith.addf %404, %393 : vector<8x32xf32>
    %c0_192 = arith.constant 0 : index
    %c3 = arith.constant 3 : index
    %c0_193 = arith.constant 0 : index
    %c0_194 = arith.constant 0 : index
    %406 = vector.load %arg3[%c0_192, %c3, %c0_193, %c0_194] : memref<1x4x8x16xbf16, #tpu.memory_space<vmem>>, vector<1x1x8x16xbf16>
    %407 = vector.shape_cast %406 : vector<1x1x8x16xbf16> to vector<8x16xbf16>
    %c0_195 = arith.constant 0 : index
    %c0_196 = arith.constant 0 : index
    %408 = vector.load %arg17[%c0_195, %c0_196] : memref<16x128xbf16, #tpu.memory_space<vmem>>, vector<16x128xbf16>
    %cst_197 = arith.constant dense<0.000000e+00> : vector<8x128xf32>
    %409 = tpu.matmul %407, %408, %cst_197 {dimension_numbers = #tpu.dot_dimension_numbers<[1], [0], [0], [1], [0, 0, 1, 1], [], []>} : vector<8x16xbf16>, vector<16x128xbf16>, vector<8x128xf32> -> vector<8x128xf32>
    %410 = arith.truncf %405 : vector<8x32xf32> to vector<8x32xbf16>
    %c0_198 = arith.constant 0 : index
    %c0_199 = arith.constant 0 : index
    %411 = vector.load %arg18[%c0_198, %c0_199] : memref<32x128xbf16, #tpu.memory_space<vmem>>, vector<32x128xbf16>
    %cst_200 = arith.constant dense<0.000000e+00> : vector<8x128xf32>
    %412 = tpu.matmul %410, %411, %cst_200 {dimension_numbers = #tpu.dot_dimension_numbers<[1], [0], [0], [1], [0, 0, 1, 1], [], []>} : vector<8x32xbf16>, vector<32x128xbf16>, vector<8x128xf32> -> vector<8x128xf32>
    %413 = arith.addf %409, %412 : vector<8x128xf32>
    %c0_201 = arith.constant 0 : index
    %c0_202 = arith.constant 0 : index
    %414 = vector.load %arg20[%c0_201, %c0_202] : memref<1x128xf32, #tpu.memory_space<vmem>>, vector<1x128xf32>
    %415 = vector.broadcast %414 : vector<1x128xf32> to vector<8x128xf32>
    %416 = arith.addf %413, %415 : vector<8x128xf32>
    %417 = arith.truncf %342 : vector<8x32xf32> to vector<8x32xbf16>
    %c0_203 = arith.constant 0 : index
    %c0_204 = arith.constant 0 : index
    %418 = vector.load %arg19[%c0_203, %c0_204] : memref<32x128xbf16, #tpu.memory_space<vmem>>, vector<32x128xbf16>
    %cst_205 = arith.constant dense<0.000000e+00> : vector<8x128xf32>
    %419 = tpu.matmul %417, %418, %cst_205 {dimension_numbers = #tpu.dot_dimension_numbers<[1], [0], [0], [1], [0, 0, 1, 1], [], []>} : vector<8x32xbf16>, vector<32x128xbf16>, vector<8x128xf32> -> vector<8x128xf32>
    %420 = arith.addf %416, %419 : vector<8x128xf32>
    %c0_206 = arith.constant 0 : index
    %c0_207 = arith.constant 0 : index
    %421 = vector.load %arg21[%c0_206, %c0_207] : memref<1x128xf32, #tpu.memory_space<vmem>>, vector<1x128xf32>
    %422 = vector.broadcast %421 : vector<1x128xf32> to vector<8x128xf32>
    %423 = arith.addf %420, %422 : vector<8x128xf32>
    %424 = vector.extract_strided_slice %423 {offsets = [0, 0], sizes = [8, 32], strides = [1, 1]} : vector<8x128xf32> to vector<8x32xf32>
    %425 = arith.negf %424 : vector<8x32xf32>
    %426 = math.exp %425 : vector<8x32xf32>
    %cst_208 = arith.constant 1.000000e+00 : f32
    %427 = vector.broadcast %cst_208 : f32 to vector<8x32xf32>
    %428 = arith.addf %427, %426 : vector<8x32xf32>
    %429 = arith.divf %427, %428 : vector<8x32xf32>
    %430 = vector.extract_strided_slice %423 {offsets = [0, 32], sizes = [8, 32], strides = [1, 1]} : vector<8x128xf32> to vector<8x32xf32>
    %431 = arith.negf %430 : vector<8x32xf32>
    %432 = math.exp %431 : vector<8x32xf32>
    %cst_209 = arith.constant 1.000000e+00 : f32
    %433 = vector.broadcast %cst_209 : f32 to vector<8x32xf32>
    %434 = arith.addf %433, %432 : vector<8x32xf32>
    %435 = arith.divf %433, %434 : vector<8x32xf32>
    %436 = vector.extract_strided_slice %423 {offsets = [0, 64], sizes = [8, 32], strides = [1, 1]} : vector<8x128xf32> to vector<8x32xf32>
    %437 = math.tanh %436 : vector<8x32xf32>
    %438 = vector.extract_strided_slice %423 {offsets = [0, 96], sizes = [8, 32], strides = [1, 1]} : vector<8x128xf32> to vector<8x32xf32>
    %439 = arith.negf %438 : vector<8x32xf32>
    %440 = math.exp %439 : vector<8x32xf32>
    %cst_210 = arith.constant 1.000000e+00 : f32
    %441 = vector.broadcast %cst_210 : f32 to vector<8x32xf32>
    %442 = arith.addf %441, %440 : vector<8x32xf32>
    %443 = arith.divf %441, %442 : vector<8x32xf32>
    %444 = arith.mulf %435, %345 : vector<8x32xf32>
    %445 = arith.mulf %429, %437 : vector<8x32xf32>
    %446 = arith.addf %444, %445 : vector<8x32xf32>
    %447 = math.tanh %446 : vector<8x32xf32>
    %448 = arith.mulf %443, %447 : vector<8x32xf32>
    %449 = arith.truncf %448 : vector<8x32xf32> to vector<8x32xbf16>
    %c0_211 = arith.constant 0 : index
    %c0_212 = arith.constant 0 : index
    %450 = vector.load %arg22[%c0_211, %c0_212] : memref<32x128xbf16, #tpu.memory_space<vmem>>, vector<32x128xbf16>
    %cst_213 = arith.constant dense<0.000000e+00> : vector<8x128xf32>
    %451 = tpu.matmul %449, %450, %cst_213 {dimension_numbers = #tpu.dot_dimension_numbers<[1], [0], [0], [1], [0, 0, 1, 1], [], []>} : vector<8x32xbf16>, vector<32x128xbf16>, vector<8x128xf32> -> vector<8x128xf32>
    %c0_214 = arith.constant 0 : index
    %c0_215 = arith.constant 0 : index
    %452 = vector.load %arg23[%c0_214, %c0_215] : memref<1x128xf32, #tpu.memory_space<vmem>>, vector<1x128xf32>
    %453 = vector.broadcast %452 : vector<1x128xf32> to vector<8x128xf32>
    %454 = arith.addf %451, %453 : vector<8x128xf32>
    %455 = vector.broadcast %361 : i32 to vector<8x1xi32>
    %456 = arith.cmpi sgt, %7, %455 : vector<8x1xi32>
    %457 = vector.shape_cast %456 : vector<8x1xi1> to vector<8x1xi1>
    %458 = vector.broadcast %457 : vector<8x1xi1> to vector<8x32xi1>
    %459 = arith.select %458, %448, %342 : vector<8x32xi1>, vector<8x32xf32>
    %460 = vector.shape_cast %456 : vector<8x1xi1> to vector<8x1xi1>
    %461 = vector.broadcast %460 : vector<8x1xi1> to vector<8x32xi1>
    %462 = arith.select %461, %446, %345 : vector<8x32xi1>, vector<8x32xf32>
    %cst_216 = arith.constant 0.000000e+00 : f32
    %463 = vector.shape_cast %456 : vector<8x1xi1> to vector<8x1xi1>
    %464 = vector.broadcast %463 : vector<8x1xi1> to vector<8x128xi1>
    %465 = vector.broadcast %cst_216 : f32 to vector<8x128xf32>
    %466 = arith.select %464, %454, %465 : vector<8x128xi1>, vector<8x128xf32>
    %c0_217 = arith.constant 0 : index
    %c0_218 = arith.constant 0 : index
    %c3_219 = arith.constant 3 : index
    %c0_220 = arith.constant 0 : index
    %467 = vector.load %arg24[%c0_217, %c0_218, %c3_219, %c0_220] : memref<8x1x4x128xf32, #tpu.memory_space<vmem>>, vector<8x1x1x128xf32>
    %468 = vector.shape_cast %467 : vector<8x1x1x128xf32> to vector<8x128xf32>
    %469 = vector.shape_cast %466 : vector<8x128xf32> to vector<8x1x1x128xf32>
    tpu.vector_store %arg24[%c0_217, %c0_218, %c3_219, %c0_220], %469 {strides = array<i32>} : memref<8x1x4x128xf32, #tpu.memory_space<vmem>>, vector<8x1x1x128xf32>,
    %cst_221 = arith.constant 0.000000e+00 : f32
    %470 = vector.shape_cast %456 : vector<8x1xi1> to vector<8x1xi1>
    %471 = vector.broadcast %470 : vector<8x1xi1> to vector<8x16xi1>
    %472 = vector.broadcast %cst_221 : f32 to vector<8x16xf32>
    %473 = arith.select %471, %389, %472 : vector<8x16xi1>, vector<8x16xf32>
    %c0_222 = arith.constant 0 : index
    %c0_223 = arith.constant 0 : index
    %c3_224 = arith.constant 3 : index
    %c0_225 = arith.constant 0 : index
    %474 = vector.load %arg25[%c0_222, %c0_223, %c3_224, %c0_225] : memref<8x1x4x16xf32, #tpu.memory_space<vmem>>, vector<8x1x1x16xf32>
    %475 = vector.shape_cast %474 : vector<8x1x1x16xf32> to vector<8x16xf32>
    %476 = vector.shape_cast %473 : vector<8x16xf32> to vector<8x1x1x16xf32>
    tpu.vector_store %arg25[%c0_222, %c0_223, %c3_224, %c0_225], %476 {strides = array<i32>} : memref<8x1x4x16xf32, #tpu.memory_space<vmem>>, vector<8x1x1x16xf32>,
    %c0_226 = arith.constant 0 : index
    %c0_227 = arith.constant 0 : index
    %477 = vector.load %arg26[%c0_226, %c0_227] : memref<8x32xf32, #tpu.memory_space<vmem>>, vector<8x32xf32>
    tpu.vector_store %arg26[%c0_226, %c0_227], %459 {strides = array<i32>} : memref<8x32xf32, #tpu.memory_space<vmem>>, vector<8x32xf32>,
    %c0_228 = arith.constant 0 : index
    %c0_229 = arith.constant 0 : index
    %478 = vector.load %arg27[%c0_228, %c0_229] : memref<8x32xf32, #tpu.memory_space<vmem>>, vector<8x32xf32>
    tpu.vector_store %arg27[%c0_228, %c0_229], %462 {strides = array<i32>} : memref<8x32xf32, #tpu.memory_space<vmem>>, vector<8x32xf32>,
    return
  }
  func.func @transform_0(%arg0: i32, %arg1: i32) -> (i32, i32, i32) {
    %c0_i32 = arith.constant 0 : i32
    %c0_i32_0 = arith.constant 0 : i32
    %c0_i32_1 = arith.constant 0 : i32
    return %arg0, %c0_i32, %c0_i32_0 : i32, i32, i32
  }
  func.func @transform_1(%arg0: i32, %arg1: i32) -> (i32, i32, i32, i32) {
    %c0_i32 = arith.constant 0 : i32
    %c0_i32_0 = arith.constant 0 : i32
    %c0_i32_1 = arith.constant 0 : i32
    return %arg1, %c0_i32, %arg0, %c0_i32_0 : i32, i32, i32, i32
  }
  func.func @transform_2(%arg0: i32, %arg1: i32) -> (i32, i32) {
    %c0_i32 = arith.constant 0 : i32
    %c0_i32_0 = arith.constant 0 : i32
    return %arg0, %c0_i32 : i32, i32
  }
  func.func @transform_3(%arg0: i32, %arg1: i32) -> (i32, i32) {
    %c0_i32 = arith.constant 0 : i32
    %c0_i32_0 = arith.constant 0 : i32
    %c0_i32_1 = arith.constant 0 : i32
    return %c0_i32, %c0_i32_0 : i32, i32
  }
  func.func @transform_4(%arg0: i32, %arg1: i32) -> (i32, i32) {
    %c0_i32 = arith.constant 0 : i32
    %c0_i32_0 = arith.constant 0 : i32
    %c0_i32_1 = arith.constant 0 : i32
    return %c0_i32, %c0_i32_0 : i32, i32
  }
  func.func @transform_5(%arg0: i32, %arg1: i32) -> (i32, i32) {
    %c0_i32 = arith.constant 0 : i32
    %c0_i32_0 = arith.constant 0 : i32
    %c0_i32_1 = arith.constant 0 : i32
    return %c0_i32, %c0_i32_0 : i32, i32
  }
  func.func @transform_6(%arg0: i32, %arg1: i32) -> (i32, i32) {
    %c0_i32 = arith.constant 0 : i32
    %c0_i32_0 = arith.constant 0 : i32
    %c0_i32_1 = arith.constant 0 : i32
    return %c0_i32, %c0_i32_0 : i32, i32
  }
  func.func @transform_7(%arg0: i32, %arg1: i32) -> (i32, i32) {
    %c0_i32 = arith.constant 0 : i32
    %c0_i32_0 = arith.constant 0 : i32
    %c0_i32_1 = arith.constant 0 : i32
    return %c0_i32, %c0_i32_0 : i32, i32
  }
  func.func @transform_8(%arg0: i32, %arg1: i32) -> (i32, i32) {
    %c0_i32 = arith.constant 0 : i32
    %c0_i32_0 = arith.constant 0 : i32
    %c0_i32_1 = arith.constant 0 : i32
    return %c0_i32, %c0_i32_0 : i32, i32
  }
  func.func @transform_9(%arg0: i32, %arg1: i32) -> (i32, i32) {
    %c0_i32 = arith.constant 0 : i32
    %c0_i32_0 = arith.constant 0 : i32
    %c0_i32_1 = arith.constant 0 : i32
    return %c0_i32, %c0_i32_0 : i32, i32
  }
  func.func @transform_10(%arg0: i32, %arg1: i32) -> (i32, i32) {
    %c0_i32 = arith.constant 0 : i32
    %c0_i32_0 = arith.constant 0 : i32
    %c0_i32_1 = arith.constant 0 : i32
    return %c0_i32, %c0_i32_0 : i32, i32
  }
  func.func @transform_11(%arg0: i32, %arg1: i32) -> (i32, i32) {
    %c0_i32 = arith.constant 0 : i32
    %c0_i32_0 = arith.constant 0 : i32
    %c0_i32_1 = arith.constant 0 : i32
    return %c0_i32, %c0_i32_0 : i32, i32
  }
  func.func @transform_12(%arg0: i32, %arg1: i32) -> (i32, i32) {
    %c0_i32 = arith.constant 0 : i32
    %c0_i32_0 = arith.constant 0 : i32
    %c0_i32_1 = arith.constant 0 : i32
    return %c0_i32, %c0_i32_0 : i32, i32
  }
  func.func @transform_13(%arg0: i32, %arg1: i32) -> (i32, i32) {
    %c0_i32 = arith.constant 0 : i32
    %c0_i32_0 = arith.constant 0 : i32
    %c0_i32_1 = arith.constant 0 : i32
    return %c0_i32, %c0_i32_0 : i32, i32
  }
  func.func @transform_14(%arg0: i32, %arg1: i32) -> (i32, i32) {
    %c0_i32 = arith.constant 0 : i32
    %c0_i32_0 = arith.constant 0 : i32
    %c0_i32_1 = arith.constant 0 : i32
    return %c0_i32, %c0_i32_0 : i32, i32
  }
  func.func @transform_15(%arg0: i32, %arg1: i32) -> (i32, i32) {
    %c0_i32 = arith.constant 0 : i32
    %c0_i32_0 = arith.constant 0 : i32
    %c0_i32_1 = arith.constant 0 : i32
    return %c0_i32, %c0_i32_0 : i32, i32
  }
  func.func @transform_16(%arg0: i32, %arg1: i32) -> (i32, i32) {
    %c0_i32 = arith.constant 0 : i32
    %c0_i32_0 = arith.constant 0 : i32
    %c0_i32_1 = arith.constant 0 : i32
    return %c0_i32, %c0_i32_0 : i32, i32
  }
  func.func @transform_17(%arg0: i32, %arg1: i32) -> (i32, i32) {
    %c0_i32 = arith.constant 0 : i32
    %c0_i32_0 = arith.constant 0 : i32
    %c0_i32_1 = arith.constant 0 : i32
    return %c0_i32, %c0_i32_0 : i32, i32
  }
  func.func @transform_18(%arg0: i32, %arg1: i32) -> (i32, i32) {
    %c0_i32 = arith.constant 0 : i32
    %c0_i32_0 = arith.constant 0 : i32
    %c0_i32_1 = arith.constant 0 : i32
    return %c0_i32, %c0_i32_0 : i32, i32
  }
  func.func @transform_19(%arg0: i32, %arg1: i32) -> (i32, i32) {
    %c0_i32 = arith.constant 0 : i32
    %c0_i32_0 = arith.constant 0 : i32
    %c0_i32_1 = arith.constant 0 : i32
    return %c0_i32, %c0_i32_0 : i32, i32
  }
  func.func @transform_20(%arg0: i32, %arg1: i32) -> (i32, i32) {
    %c0_i32 = arith.constant 0 : i32
    %c0_i32_0 = arith.constant 0 : i32
    %c0_i32_1 = arith.constant 0 : i32
    return %c0_i32, %c0_i32_0 : i32, i32
  }
  func.func @transform_21(%arg0: i32, %arg1: i32) -> (i32, i32) {
    %c0_i32 = arith.constant 0 : i32
    %c0_i32_0 = arith.constant 0 : i32
    %c0_i32_1 = arith.constant 0 : i32
    return %c0_i32, %c0_i32_0 : i32, i32
  }
  func.func @transform_22(%arg0: i32, %arg1: i32) -> (i32, i32, i32, i32) {
    %c0_i32 = arith.constant 0 : i32
    %c0_i32_0 = arith.constant 0 : i32
    %c0_i32_1 = arith.constant 0 : i32
    return %arg0, %arg1, %c0_i32, %c0_i32_0 : i32, i32, i32, i32
  }
  func.func @transform_23(%arg0: i32, %arg1: i32) -> (i32, i32, i32, i32) {
    %c0_i32 = arith.constant 0 : i32
    %c0_i32_0 = arith.constant 0 : i32
    %c0_i32_1 = arith.constant 0 : i32
    return %arg0, %arg1, %c0_i32, %c0_i32_0 : i32, i32, i32, i32
  }
}

</mosaic_0001>

<bundles_post_ra>
// kernel: tpu_custom_call.1
= control target key start
LH: loop header
LB: loop body
LE: loop exit
PB: predicated region body
PF: predicated region fallthrough
CT: control target
= control target key end

     0   :  { %s14684_s0 = inlined_call_operand.hbm [shape: bf16[8,16,32], index: 0, kind: input, shape index: {}]   ;;  %s14685_s1 = inlined_call_operand.hbm [shape: bf16[2,4,8,16], index: 1, kind: input, shape index: {}]   ;;  %s14686_s2 = inlined_call_operand.hbm [shape: s32[8,1], index: 2, kind: input, shape index: {}]   ;;  %s14687_s3 = inlined_call_operand.hbm [shape: bf16[32,32], index: 3, kind: input, shape index: {}]   ;;  %s14688_s4 = inlined_call_operand.hbm [shape: f32[1,32], index: 4, kind: input, shape index: {}]   ;;  %s14689_s5 = inlined_call_operand.hbm [shape: bf16[32,32], index: 5, kind: input, shape index: {}]   ;;  %s14690_s6 = inlined_call_operand.hbm [shape: f32[1,32], index: 6, kind: input, shape index: {}]   ;;  %s14691_s7 = inlined_call_operand.hbm [shape: f32[1,32], index: 7, kind: input, shape index: {}]   ;;  %s14692_s8 = inlined_call_operand.<no memory space> [shape: f32[1,1], index: 8, kind: input, shape index: {}]   ;;  %s14693_s9 = inlined_call_operand.hbm [shape: bf16[32,32], index: 9, kind: input, shape index: {}]   ;;  %s14694_s10 = inlined_call_operand.hbm [shape: f32[1,32], index: 10, kind: input, shape index: {}]   ;;  %s14695_s11 = inlined_call_operand.hbm [shape: bf16[32,32], index: 11, kind: input, shape index: {}]   ;;  %s14696_s12 = inlined_call_operand.hbm [shape: f32[1,32], index: 12, kind: input, shape index: {}]   ;;  %s14697_s13 = inlined_call_operand.hbm [shape: bf16[32,32], index: 13, kind: input, shape index: {}]   ;;  %s14698_s14 = inlined_call_operand.hbm [shape: f32[1,32], index: 14, kind: input, shape index: {}]   ;;  %s14699_s15 = inlined_call_operand.hbm [shape: bf16[16,128], index: 15, kind: input, shape index: {}]   ;;  %s14700_s16 = inlined_call_operand.hbm [shape: bf16[32,128], index: 16, kind: input, shape index: {}]   ;;  %s14701_s17 = inlined_call_operand.hbm [shape: bf16[32,128], index: 17, kind: input, shape index: {}]   ;;  %s14702_s18 = inlined_call_operand.hbm [shape: f32[1,128], index: 18, kind: input, shape index: {}]   ;;  %s14703_s19 = inlined_call_operand.hbm [shape: f32[1,128], index: 19, kind: input, shape index: {}]   ;;  %s14704_s20 = inlined_call_operand.hbm [shape: bf16[32,128], index: 20, kind: input, shape index: {}]   ;;  %s14705_s21 = inlined_call_operand.hbm [shape: f32[1,128], index: 21, kind: input, shape index: {}]   ;;  %s14706_s22 = inlined_call_operand.hbm [shape: f32[8,2,4,128], index: 22, kind: output, shape index: {0}]   ;;  %s14707_s23 = inlined_call_operand.hbm [shape: f32[8,2,4,16], index: 23, kind: output, shape index: {1}]  }
   0x1   :  { %14807 = sst [smem:[#allocation115_spill]] %s14684_s0  ;;  %v29_v0 = vstv %s14692_s8 }
   0x2   :  { %14808 = sst [smem:[#allocation116_spill]] %s14685_s1  ;;  %30 = vst [vmem:[#allocation5] sm:$0x1] %v29_v0 }
   0x3   :  { %14809 = sst [smem:[#allocation117_spill]] %s14686_s2 }
   0x4   :  { %14810 = sst [smem:[#allocation118_spill]] %s14687_s3 }
   0x5   :  { %14811 = sst [smem:[#allocation119_spill]] %s14688_s4 }
   0x6   :  { %14812 = sst [smem:[#allocation120_spill]] %s14689_s5 }
   0x7   :  { %14813 = sst [smem:[#allocation121_spill]] %s14690_s6 }
   0x8   :  { %14814 = sst [smem:[#allocation122_spill]] %s14691_s7 }
   0x9   :  { %14815 = sst [smem:[#allocation123_spill]] %s14693_s9 }
   0xa   :  { %14816 = sst [smem:[#allocation124_spill]] %s14694_s10 }
   0xb   :  { %14817 = sst [smem:[#allocation125_spill]] %s14695_s11 }
   0xc   :  { %14818 = sst [smem:[#allocation126_spill]] %s14696_s12 }
   0xd   :  { %14819 = sst [smem:[#allocation127_spill]] %s14697_s13 }
   0xe   :  { %14820 = sst [smem:[#allocation128_spill]] %s14698_s14 }
   0xf   :  { %14821 = sst [smem:[#allocation129_spill]] %s14705_s21 }
  0x10   :  { %14822 = sst [smem:[#allocation130_spill]] %s14706_s22 }
  0x11   :  { %14823 = sst [smem:[#allocation131_spill]] %s14707_s23 }
  0x12   :  { %31 = vsyncpa [#allocation7], 0 }
  0x13   :  { %32 = vsyncpa [#allocation10], 0 }
  0x14   :  { %34 = vsyncpa [#allocation10 + $0x1], 0 }
  0x15   :  { %35 = vsyncpa [#allocation13], 0 }
  0x16   :  { %36 = vsyncpa [#allocation16], 0 }
  0x17   :  { %37 = vsyncpa [#allocation19], 0 }
  0x18   :  { %38 = vsyncpa [#allocation22], 0 }
  0x19   :  { %39 = vsyncpa [#allocation25], 0 }
  0x1a   :  { %40 = vsyncpa [#allocation28], 0 }
  0x1b   :  { %41 = vsyncpa [#allocation31], 0 }
  0x1c   :  { %42 = vsyncpa [#allocation34], 0 }
  0x1d   :  { %43 = vsyncpa [#allocation37], 0 }
  0x1e   :  { %44 = vsyncpa [#allocation8], 0 }
  0x1f   :  { %46 = vsyncpa [#allocation8 + $0x1], 0 }
  0x20   :  { %47 = vsyncpa [#allocation41], 0 }
  0x21   :  { %49 = vsyncpa [#allocation41 + $0x1], 0  ;;  %s11615_s24 = smov 0   ;;  %s11617_s8 = smov 0  }
  0x22   :  { %s11619_s25 = smov 0   ;;  %s11621_s5 = smov 0  }
  0x23   :  { %s11623_s1 = smov 0   ;;  %s11625_s26 = smov 0  }
  0x24 LB: > { %14824 = sst [smem:[#allocation56_spill]] %s11434_s24  ;;  %s11456_s2 = smov [#allocation11]   ;;  %s11454_s26 = sphi %s11625_s26, %s55_s26   ;;  %s11450_s1 = sphi %s11623_s1, %s15023_s1   ;;  %s11446_s5 = sphi %s11621_s5, %s15021_s5   ;;  %s11442_s25 = sphi %s11619_s25, %s15022_s25   ;;  %s11438_s8 = sphi %s11617_s8, %s15020_s8   ;;  %s11434_s24 = sphi %s11615_s24, %s15019_s24  }
  0x25   : > { %14825 = sst [smem:[#allocation57_spill]] %s11438_s8  ;;  %s639_s6 = sshll.u32 %s11456_s2, 4  ;;  %s640_s6 = int_to_ptr.vmem [resolvable:$true] %s639_s6 }
  0x26   : > { %14826 = sst [smem:[#allocation58_spill]] %s11442_s25  ;;  %s11646_s27 = sadd.s32 4294967295, %s11454_s26  }
  0x27   : > { %14827 = sst [smem:[#allocation59_spill]] %s11446_s5  ;;  %p9325_p0 = scmp.ge.s32.totalorder %s11454_s26, 1 }
  0x28   : > { %14828 = sst [smem:[#allocation60_spill]] %s11450_s1  ;;  %p14723_p1 = scmp.eq.s32.totalorder %s11646_s27, 0 }
  0x29   : > { %14829 = sst [smem:[#allocation61_spill]] %s11454_s26  ;;  %p607_p2 = scmp.lt.s32.totalorder %s11454_s26, 3 }
  0x2a   : > { %14830 = sst [smem:[#allocation62_spill]] %s11646_s27  ;;  %s11457_s28 = smov [#allocation12]  }
  0x2b   : > { %p11651_p3 = pnand %p9325_p0, %p607_p2  ;;  %s649_s29 = sshll.u32 %s11457_s28, 4  ;;  %s11664_s29 = int_to_ptr.vmem [resolvable:$true] %s649_s29 }
  0x2c   : > { %s11458_s0 = smov [#allocation15]   ;;  %s14834_s22 = sld [smem:[#allocation117_spill]] }
  0x2d   : > { %s14831_s7 = scalar_select %p11651_p3, 1, 0 }
  0x2e   : > { %p10220_p5 = pneg %p11651_p3  ;;  %s673_s4 = sshll.u32 %s11458_s0, 4  ;;  %s11666_s4 = int_to_ptr.vmem [resolvable:$true] %s673_s4 }
  0x2f   : > { %14832 = sst [smem:[#allocation63_spill]] %s14831_s7 }
  0x30   : > { %p11660_p6 = pnand %p10220_p5, %p14723_p1 }
  0x32   : > { %s10706_s23 = scalar_lea.hbm %s14834_s22, 128  ;;  %p11676_p8 = pneg %p11660_p6 }
  0x33   : > { %p10707_p7 = scmp.ne.s32.totalorder %s14834_s22, %s10706_s23  ;;  %p10713_p11 = scmp.lt.u32.totalorder %s10706_s23, %s14834_s22 }
  0x35   : > { %p10709_p9 = pnand %p11676_p8, %p10707_p7 }
  0x37   : > { %p10710_p10 = pneg %p10709_p9 }
  0x39   : > { %p10715_p12 = pnand %p10713_p11, %p10710_p10 }
  0x3b   : > { %10718 = shalt.err (!%p10715_p12)
}
  0x3c   : > { %s10719_s30 = scalar_lea.vmem %s640_s6, 128  ;;  %p10727_p5 = scmp.lt.s32.totalorder %s640_s6, %s640_s6 }
  0x3d   : > { %p10720_p13 = scmp.ne.s32.totalorder %s640_s6, %s10719_s30  ;;  %p10728_p4 = scmp.lt.s32.totalorder %s10719_s30, %s10719_s30 }
  0x3f   : > { %p10722_p0 = pnand %p10720_p13, %p11676_p8  ;;  %p10729_p1 = por %p10728_p4, %p10727_p5 }
  0x41   : > { %p10723_p2 = pneg %p10722_p0 }
  0x43   : > { %p10730_p3 = pnand %p10729_p1, %p10723_p2 }
  0x45   : > { %10733 = shalt.err (!%p10730_p3)
}
  0x46   : > { %10226 = dma.hbm_to_vmem [thread:$0]  (!%p11660_p6), %s14834_s22, 128, %s640_s6, [#allocation10]  }
  0x47   : > { %s14836_s2 = sld [smem:[#allocation118_spill]] }
  0x4d   : > { %s10734_s0 = scalar_lea.hbm %s14836_s2, 256 }
  0x4e   : > { %p10735_p7 = scmp.ne.s32.totalorder %s14836_s2, %s10734_s0  ;;  %p10741_p1 = scmp.lt.u32.totalorder %s10734_s0, %s14836_s2 }
  0x50   : > { %p10737_p9 = pnand %p10735_p7, %p11676_p8 }
  0x52   : > { %p10738_p4 = pneg %p10737_p9 }
  0x54   : > { %p10743_p3 = pnand %p10741_p1, %p10738_p4 }
  0x56   : > { %10746 = shalt.err (!%p10743_p3)
}
  0x57   : > { %s10747_s6 = scalar_lea.vmem %s11664_s29, 256  ;;  %p10755_p13 = scmp.lt.s32.totalorder %s11664_s29, %s11664_s29 }
  0x58   : > { %p10748_p10 = scmp.ne.s32.totalorder %s11664_s29, %s10747_s6  ;;  %p10756_p0 = scmp.lt.s32.totalorder %s10747_s6, %s10747_s6 }
  0x5a   : > { %p10750_p11 = pnand %p10748_p10, %p11676_p8  ;;  %p10757_p2 = por %p10756_p0, %p10755_p13 }
  0x5c   : > { %p10751_p12 = pneg %p10750_p11 }
  0x5e   : > { %p10758_p5 = pnand %p10757_p2, %p10751_p12 }
  0x60   : > { %10761 = shalt.err (!%p10758_p5)
}
  0x61   : > { %s14734_s24 = smov 64   ;;  %s14736_s8 = smov 4  }
  0x62   : > { %10229 = dma.hbm_to_vmem [thread:$0]  (!%p11660_p6), %s14836_s2, 256, %s11664_s29, [#allocation13], %s14734_s24, %s14734_s24, %s14736_s8  }
  0x63   : > { %s14837_s27 = sld [smem:[#allocation120_spill]] }
  0x69   : > { %s10762_s0 = scalar_lea.hbm %s14837_s27, 256 }
  0x6a   : > { %p10763_p7 = scmp.ne.s32.totalorder %s14837_s27, %s10762_s0  ;;  %p10769_p1 = scmp.lt.u32.totalorder %s10762_s0, %s14837_s27 }
  0x6c   : > { %p10765_p9 = pnand %p10763_p7, %p11676_p8 }
  0x6e   : > { %p10766_p4 = pneg %p10765_p9 }
  0x70   : > { %p10771_p3 = pnand %p10769_p1, %p10766_p4 }
  0x72   : > { %10774 = shalt.err (!%p10771_p3)
}
  0x73   : > { %s10775_s29 = scalar_lea.vmem %s11666_s4, 256  ;;  %p10783_p13 = scmp.lt.s32.totalorder %s11666_s4, %s11666_s4 }
  0x74   : > { %p10776_p10 = scmp.ne.s32.totalorder %s11666_s4, %s10775_s29  ;;  %p10784_p0 = scmp.lt.s32.totalorder %s10775_s29, %s10775_s29 }
  0x76   : > { %p10778_p11 = pnand %p10776_p10, %p11676_p8  ;;  %p10785_p2 = por %p10784_p0, %p10783_p13 }
  0x78   : > { %p10779_p12 = pneg %p10778_p11 }
  0x7a   : > { %p10786_p5 = pnand %p10785_p2, %p10779_p12 }
  0x7c   : > { %10789 = shalt.err (!%p10786_p5)
}
  0x7d   : > { %10235 = dma.hbm_to_vmem [thread:$0]  (!%p11660_p6), %s14837_s27, 256, %s11666_s4, [#allocation16], %s14734_s24, %s14734_s24, %s14736_s8  }
  0x7e   : > { %s11461_s25 = smov [#allocation18]   ;;  %s11462_s7 = smov [#allocation21]  }
  0x7f   : > { %s698_s5 = sshll.u32 %s11461_s25, 4  ;;  %s725_s23 = sshll.u32 %s11462_s7, 4  ;;  %s699_s5 = int_to_ptr.vmem [resolvable:$true] %s698_s5  ;;  %s726_s23 = int_to_ptr.vmem [resolvable:$true] %s725_s23 }
  0x80   : > { %s14838_s6 = sld [smem:[#allocation122_spill]] }
  0x86   : > { %s10790_s29 = scalar_lea.hbm %s14838_s6, 16 }
  0x87   : > { %p10791_p7 = scmp.ne.s32.totalorder %s14838_s6, %s10790_s29  ;;  %p10797_p1 = scmp.lt.u32.totalorder %s10790_s29, %s14838_s6 }
  0x89   : > { %p10793_p9 = pnand %p10791_p7, %p11676_p8 }
  0x8b   : > { %p10794_p4 = pneg %p10793_p9 }
  0x8d   : > { %p10799_p3 = pnand %p10797_p1, %p10794_p4 }
  0x8f   : > { %10802 = shalt.err (!%p10799_p3)
}
  0x90   : > { %s10803_s4 = scalar_lea.vmem %s699_s5, 16  ;;  %s10810_s1 = scalar_lea.vmem %s699_s5, 32 }
  0x91   : > { %p10804_p10 = scmp.ne.s32.totalorder %s699_s5, %s10803_s4  ;;  %p10811_p13 = scmp.lt.s32.totalorder %s699_s5, %s699_s5 }
  0x92   : > { %p10812_p0 = scmp.lt.s32.totalorder %s10810_s1, %s10803_s4 }
  0x93   : > { %p10806_p11 = pnand %p10804_p10, %p11676_p8 }
  0x94   : > { %p10813_p2 = por %p10812_p0, %p10811_p13 }
  0x95   : > { %p10807_p12 = pneg %p10806_p11 }
  0x97   : > { %p10814_p5 = pnand %p10813_p2, %p10807_p12 }
  0x99   : > { %10817 = shalt.err (!%p10814_p5)
}
  0x9a   : > { %10241 = dma.hbm_to_vmem [thread:$0]  (!%p11660_p6), %s14838_s6, 16, %s699_s5, [#allocation19]  }
  0x9b   : > { %s14839_s10 = sld [smem:[#allocation124_spill]] }
  0xa1   : > { %s10818_s7 = scalar_lea.hbm %s14839_s10, 16 }
  0xa2   : > { %p10819_p7 = scmp.ne.s32.totalorder %s14839_s10, %s10818_s7  ;;  %p10825_p1 = scmp.lt.u32.totalorder %s10818_s7, %s14839_s10 }
  0xa4   : > { %p10821_p9 = pnand %p10819_p7, %p11676_p8 }
  0xa6   : > { %p10822_p4 = pneg %p10821_p9 }
  0xa8   : > { %p10827_p3 = pnand %p10825_p1, %p10822_p4 }
  0xaa   : > { %10830 = shalt.err (!%p10827_p3)
}
  0xab   : > { %s10831_s4 = scalar_lea.vmem %s726_s23, 16  ;;  %s10838_s5 = scalar_lea.vmem %s726_s23, 32 }
  0xac   : > { %p10832_p10 = scmp.ne.s32.totalorder %s726_s23, %s10831_s4  ;;  %p10839_p13 = scmp.lt.s32.totalorder %s726_s23, %s726_s23 }
  0xad   : > { %p10840_p0 = scmp.lt.s32.totalorder %s10838_s5, %s10831_s4 }
  0xae   : > { %p10834_p11 = pnand %p10832_p10, %p11676_p8 }
  0xaf   : > { %p10841_p2 = por %p10840_p0, %p10839_p13 }
  0xb0   : > { %p10835_p12 = pneg %p10834_p11 }
  0xb2   : > { %p10842_p5 = pnand %p10841_p2, %p10835_p12 }
  0xb4   : > { %10845 = shalt.err (!%p10842_p5)
}
  0xb5   : > { %10247 = dma.hbm_to_vmem [thread:$0]  (!%p11660_p6), %s14839_s10, 16, %s726_s23, [#allocation22]  }
  0xb6   : > { %s11463_s2 = smov [#allocation24]   ;;  %s11464_s25 = smov [#allocation27]  }
  0xb7   : > { %s749_s21 = sshll.u32 %s11463_s2, 4  ;;  %s773_s7 = sshll.u32 %s11464_s25, 4  ;;  %s750_s21 = int_to_ptr.vmem [resolvable:$true] %s749_s21  ;;  %s774_s7 = int_to_ptr.vmem [resolvable:$true] %s773_s7 }
  0xb8   : > { %s14840_s12 = sld [smem:[#allocation126_spill]] }
  0xbe   : > { %s10846_s29 = scalar_lea.hbm %s14840_s12, 16 }
  0xbf   : > { %p10847_p7 = scmp.ne.s32.totalorder %s14840_s12, %s10846_s29  ;;  %p10853_p1 = scmp.lt.u32.totalorder %s10846_s29, %s14840_s12 }
  0xc1   : > { %p10849_p9 = pnand %p10847_p7, %p11676_p8 }
  0xc3   : > { %p10850_p4 = pneg %p10849_p9 }
  0xc5   : > { %p10855_p3 = pnand %p10853_p1, %p10850_p4 }
  0xc7   : > { %10858 = shalt.err (!%p10855_p3)
}
  0xc8   : > { %s10859_s23 = scalar_lea.vmem %s750_s21, 16  ;;  %s10866_s26 = scalar_lea.vmem %s750_s21, 32 }
  0xc9   : > { %p10860_p10 = scmp.ne.s32.totalorder %s750_s21, %s10859_s23  ;;  %p10867_p13 = scmp.lt.s32.totalorder %s750_s21, %s750_s21 }
  0xca   : > { %p10868_p0 = scmp.lt.s32.totalorder %s10866_s26, %s10859_s23 }
  0xcb   : > { %p10862_p11 = pnand %p10860_p10, %p11676_p8 }
  0xcc   : > { %p10869_p2 = por %p10868_p0, %p10867_p13 }
  0xcd   : > { %p10863_p12 = pneg %p10862_p11 }
  0xcf   : > { %p10870_p5 = pnand %p10869_p2, %p10863_p12 }
  0xd1   : > { %10873 = shalt.err (!%p10870_p5)
}
  0xd2   : > { %10253 = dma.hbm_to_vmem [thread:$0]  (!%p11660_p6), %s14840_s12, 16, %s750_s21, [#allocation25]  }
  0xd3   : > { %s14841_s14 = sld [smem:[#allocation128_spill]] }
  0xd9   : > { %s10874_s29 = scalar_lea.hbm %s14841_s14, 16 }
  0xda   : > { %p10875_p7 = scmp.ne.s32.totalorder %s14841_s14, %s10874_s29  ;;  %p10881_p1 = scmp.lt.u32.totalorder %s10874_s29, %s14841_s14 }
  0xdc   : > { %p10877_p9 = pnand %p10875_p7, %p11676_p8 }
  0xde   : > { %p10878_p4 = pneg %p10877_p9 }
  0xe0   : > { %p10883_p3 = pnand %p10881_p1, %p10878_p4 }
  0xe2   : > { %10886 = shalt.err (!%p10883_p3)
}
  0xe3   : > { %s10887_s23 = scalar_lea.vmem %s774_s7, 16  ;;  %s10894_s21 = scalar_lea.vmem %s774_s7, 32 }
  0xe4   : > { %p10888_p10 = scmp.ne.s32.totalorder %s774_s7, %s10887_s23  ;;  %p10895_p13 = scmp.lt.s32.totalorder %s774_s7, %s774_s7 }
  0xe5   : > { %p10896_p0 = scmp.lt.s32.totalorder %s10894_s21, %s10887_s23 }
  0xe6   : > { %p10890_p11 = pnand %p10888_p10, %p11676_p8 }
  0xe7   : > { %p10897_p2 = por %p10896_p0, %p10895_p13 }
  0xe8   : > { %p10891_p12 = pneg %p10890_p11 }
  0xea   : > { %p10898_p5 = pnand %p10897_p2, %p10891_p12 }
  0xec   : > { %10901 = shalt.err (!%p10898_p5)
}
  0xed   : > { %10259 = dma.hbm_to_vmem [thread:$0]  (!%p11660_p6), %s14841_s14, 16, %s774_s7, [#allocation28]  }
  0xee   : > { %s11465_s25 = smov [#allocation30]   ;;  %s11466_s30 = smov [#allocation33]  }
  0xef   : > { %s796_s0 = sshll.u32 %s11465_s25, 4  ;;  %s823_s29 = sshll.u32 %s11466_s30, 4  ;;  %s797_s0 = int_to_ptr.vmem [resolvable:$true] %s796_s0  ;;  %s824_s29 = int_to_ptr.vmem [resolvable:$true] %s823_s29 }
  0xf0   : > { %s10902_s5 = scalar_lea.hbm %s14700_s16, 256 }
  0xf1   : > { %p10903_p7 = scmp.ne.s32.totalorder %s14700_s16, %s10902_s5  ;;  %p10909_p1 = scmp.lt.u32.totalorder %s10902_s5, %s14700_s16 }
  0xf3   : > { %p10905_p9 = pnand %p10903_p7, %p11676_p8 }
  0xf5   : > { %p10906_p4 = pneg %p10905_p9 }
  0xf7   : > { %p10911_p3 = pnand %p10909_p1, %p10906_p4 }
  0xf9   : > { %10914 = shalt.err (!%p10911_p3)
}
  0xfa   : > { %s10915_s7 = scalar_lea.vmem %s797_s0, 256  ;;  %p10923_p13 = scmp.lt.s32.totalorder %s797_s0, %s797_s0 }
  0xfb   : > { %p10916_p10 = scmp.ne.s32.totalorder %s797_s0, %s10915_s7  ;;  %p10924_p0 = scmp.lt.s32.totalorder %s10915_s7, %s10915_s7 }
  0xfd   : > { %p10918_p11 = pnand %p10916_p10, %p11676_p8  ;;  %p10925_p2 = por %p10924_p0, %p10923_p13 }
  0xff   : > { %p10919_p12 = pneg %p10918_p11 }
 0x101   : > { %p10926_p5 = pnand %p10925_p2, %p10919_p12 }
 0x103   : > { %10929 = shalt.err (!%p10926_p5)
}
 0x104   : > { %10265 = dma.hbm_to_vmem [thread:$0]  (!%p11660_p6), %s14700_s16, 256, %s797_s0, [#allocation31], %s14734_s24, %s14734_s24, %s14736_s8  }
 0x105   : > { %s10930_s4 = scalar_lea.hbm %s14702_s18, 16 }
 0x106   : > { %p10931_p7 = scmp.ne.s32.totalorder %s14702_s18, %s10930_s4  ;;  %p10937_p1 = scmp.lt.u32.totalorder %s10930_s4, %s14702_s18 }
 0x108   : > { %p10933_p9 = pnand %p10931_p7, %p11676_p8 }
 0x10a   : > { %p10934_p4 = pneg %p10933_p9 }
 0x10c   : > { %p10939_p3 = pnand %p10937_p1, %p10934_p4 }
 0x10e   : > { %10942 = shalt.err (!%p10939_p3)
}
 0x10f   : > { %s10943_s26 = scalar_lea.vmem %s824_s29, 16  ;;  %s10950_s0 = scalar_lea.vmem %s824_s29, 32 }
 0x110   : > { %p10944_p10 = scmp.ne.s32.totalorder %s824_s29, %s10943_s26  ;;  %p10951_p13 = scmp.lt.s32.totalorder %s824_s29, %s824_s29 }
 0x111   : > { %p10952_p0 = scmp.lt.s32.totalorder %s10950_s0, %s10943_s26 }
 0x112   : > { %p10946_p11 = pnand %p10944_p10, %p11676_p8 }
 0x113   : > { %p10953_p2 = por %p10952_p0, %p10951_p13 }
 0x114   : > { %p10947_p12 = pneg %p10946_p11 }
 0x116   : > { %p10954_p5 = pnand %p10953_p2, %p10947_p12 }
 0x118   : > { %10957 = shalt.err (!%p10954_p5)
}
 0x119   : > { %10271 = dma.hbm_to_vmem [thread:$0]  (!%p11660_p6), %s14702_s18, 16, %s824_s29, [#allocation34]  }
 0x11a   : > { %s11467_s25 = smov [#allocation36]   ;;  %s10958_s5 = scalar_lea.hbm %s14704_s20, 256 }
 0x11b   : > { %s844_s30 = sshll.u32 %s11467_s25, 4  ;;  %p10959_p7 = scmp.ne.s32.totalorder %s14704_s20, %s10958_s5  ;;  %s845_s30 = int_to_ptr.vmem [resolvable:$true] %s844_s30 }
 0x11c   : > { %p10965_p1 = scmp.lt.u32.totalorder %s10958_s5, %s14704_s20 }
 0x11d   : > { %p10961_p9 = pnand %p10959_p7, %p11676_p8 }
 0x11f   : > { %p10962_p4 = pneg %p10961_p9 }
 0x121   : > { %p10967_p3 = pnand %p10965_p1, %p10962_p4 }
 0x123   : > { %10970 = shalt.err (!%p10967_p3)
}
 0x124   : > { %s10971_s29 = scalar_lea.vmem %s845_s30, 256  ;;  %p10979_p13 = scmp.lt.s32.totalorder %s845_s30, %s845_s30 }
 0x125   : > { %p10972_p10 = scmp.ne.s32.totalorder %s845_s30, %s10971_s29  ;;  %p10980_p0 = scmp.lt.s32.totalorder %s10971_s29, %s10971_s29 }
 0x127   : > { %p10974_p11 = pnand %p10972_p10, %p11676_p8  ;;  %p10981_p2 = por %p10980_p0, %p10979_p13 }
 0x129   : > { %p10975_p12 = pneg %p10974_p11 }
 0x12b   : > { %p10982_p5 = pnand %p10981_p2, %p10975_p12 }
 0x12d   : > { %10985 = shalt.err (!%p10982_p5)
}
 0x12e   : > { %10277 = dma.hbm_to_vmem [thread:$0]  (!%p11660_p6), %s14704_s20, 256, %s845_s30, [#allocation37], %s14734_s24, %s14734_s24, %s14736_s8  }
 0x12f   : > { %s11468_s2 = smov [#allocation6]   ;;  %s11469_s22 = smov [#allocation14]  }
 0x130   : > { %s623_s25 = sshll.u32 %s11468_s2, 4  ;;  %s663_s4 = sshll.u32 %s11469_s22, 4  ;;  %s624_s25 = int_to_ptr.vmem [resolvable:$true] %s623_s25  ;;  %s11876_s4 = int_to_ptr.vmem [resolvable:$true] %s663_s4 }
 0x131   : > { %s14842_s23 = sld [smem:[#allocation115_spill]] }
 0x137   : > { %s10986_s21 = scalar_lea.hbm %s14842_s23, 1024 }
 0x138   : > { %p10987_p7 = scmp.ne.s32.totalorder %s14842_s23, %s10986_s21  ;;  %p10993_p1 = scmp.lt.u32.totalorder %s10986_s21, %s14842_s23 }
 0x13a   : > { %p10989_p9 = pnand %p10987_p7, %p11676_p8 }
 0x13c   : > { %p10990_p4 = pneg %p10989_p9 }
 0x13e   : > { %p10995_p3 = pnand %p10993_p1, %p10990_p4 }
 0x140   : > { %10998 = shalt.err (!%p10995_p3)
}
 0x141   : > { %s10999_s7 = scalar_lea.vmem %s624_s25, 1024  ;;  %p11007_p13 = scmp.lt.s32.totalorder %s624_s25, %s624_s25 }
 0x142   : > { %p11000_p10 = scmp.ne.s32.totalorder %s624_s25, %s10999_s7  ;;  %p11008_p0 = scmp.lt.s32.totalorder %s10999_s7, %s10999_s7 }
 0x144   : > { %p11002_p11 = pnand %p11000_p10, %p11676_p8  ;;  %p11009_p2 = por %p11008_p0, %p11007_p13 }
 0x146   : > { %p11003_p12 = pneg %p11002_p11 }
 0x148   : > { %p11010_p5 = pnand %p11009_p2, %p11003_p12 }
 0x14a   : > { %11013 = shalt.err (!%p11010_p5)
}
 0x14b   : > { %10223 = dma.hbm_to_vmem [thread:$0]  (!%p11660_p6), %s14842_s23, 1024, %s624_s25, [#allocation7], %s14734_s24, %s14734_s24, %s14736_s8  }
 0x14c   : > { %s14843_s21 = sld [smem:[#allocation119_spill]] }
 0x152   : > { %s11014_s26 = scalar_lea.hbm %s14843_s21, 16 }
 0x153   : > { %p11015_p7 = scmp.ne.s32.totalorder %s14843_s21, %s11014_s26  ;;  %p11021_p1 = scmp.lt.u32.totalorder %s11014_s26, %s14843_s21 }
 0x155   : > { %p11017_p9 = pnand %p11015_p7, %p11676_p8 }
 0x157   : > { %p11018_p4 = pneg %p11017_p9 }
 0x159   : > { %p11023_p3 = pnand %p11021_p1, %p11018_p4 }
 0x15b   : > { %11026 = shalt.err (!%p11023_p3)
}
 0x15c   : > { %s11027_s25 = scalar_lea.vmem %s11876_s4, 16  ;;  %s11034_s2 = scalar_lea.vmem %s11876_s4, 32 }
 0x15d   : > { %p11028_p10 = scmp.ne.s32.totalorder %s11876_s4, %s11027_s25  ;;  %p11035_p13 = scmp.lt.s32.totalorder %s11876_s4, %s11876_s4 }
 0x15e   : > { %p11036_p0 = scmp.lt.s32.totalorder %s11034_s2, %s11027_s25 }
 0x15f   : > { %p11030_p11 = pnand %p11028_p10, %p11676_p8 }
 0x160   : > { %p11037_p2 = por %p11036_p0, %p11035_p13 }
 0x161   : > { %p11031_p12 = pneg %p11030_p11 }
 0x163   : > { %p11038_p5 = pnand %p11037_p2, %p11031_p12 }
 0x165   : > { %11041 = shalt.err (!%p11038_p5)
}
 0x166   : > { %10232 = dma.hbm_to_vmem [thread:$0]  (!%p11660_p6), %s14843_s21, 16, %s11876_s4, [#allocation13]  }
 0x167   : > { %s11470_s1 = smov [#allocation17]   ;;  %s11471_s29 = smov [#allocation20]  }
 0x168   : > { %s687_s26 = sshll.u32 %s11470_s1, 4  ;;  %s711_s0 = sshll.u32 %s11471_s29, 4  ;;  %s688_s26 = int_to_ptr.vmem [resolvable:$true] %s687_s26  ;;  %s11923_s0 = int_to_ptr.vmem [resolvable:$true] %s711_s0 }
 0x169   : > { %s14844_s25 = sld [smem:[#allocation121_spill]] }
 0x16f   : > { %s14845_s2 = smov %s14844_s25  ;;  %s11042_s24 = scalar_lea.hbm %s14844_s25, 16 }
 0x170   : > { %p11043_p7 = scmp.ne.s32.totalorder %s14845_s2, %s11042_s24  ;;  %p11049_p1 = scmp.lt.u32.totalorder %s11042_s24, %s14845_s2 }
 0x172   : > { %p11045_p9 = pnand %p11043_p7, %p11676_p8 }
 0x174   : > { %p11046_p4 = pneg %p11045_p9 }
 0x176   : > { %p11051_p3 = pnand %p11049_p1, %p11046_p4 }
 0x178   : > { %11054 = shalt.err (!%p11051_p3)
}
 0x179   : > { %s11055_s5 = scalar_lea.vmem %s688_s26, 16  ;;  %s11062_s1 = scalar_lea.vmem %s688_s26, 32 }
 0x17a   : > { %p11056_p10 = scmp.ne.s32.totalorder %s688_s26, %s11055_s5  ;;  %p11063_p13 = scmp.lt.s32.totalorder %s688_s26, %s688_s26 }
 0x17b   : > { %p11064_p0 = scmp.lt.s32.totalorder %s11062_s1, %s11055_s5 }
 0x17c   : > { %p11058_p11 = pnand %p11056_p10, %p11676_p8 }
 0x17d   : > { %p11065_p2 = por %p11064_p0, %p11063_p13 }
 0x17e   : > { %p11059_p12 = pneg %p11058_p11 }
 0x180   : > { %p11066_p5 = pnand %p11065_p2, %p11059_p12 }
 0x182   : > { %11069 = shalt.err (!%p11066_p5)
}
 0x183   : > { %10238 = dma.hbm_to_vmem [thread:$0]  (!%p11660_p6), %s14845_s2, 16, %s688_s26, [#allocation16]  }
 0x184   : > { %s14846_s9 = sld [smem:[#allocation123_spill]] }
 0x18a   : > { %s11070_s30 = scalar_lea.hbm %s14846_s9, 256 }
 0x18b   : > { %p11071_p7 = scmp.ne.s32.totalorder %s14846_s9, %s11070_s30  ;;  %p11077_p1 = scmp.lt.u32.totalorder %s11070_s30, %s14846_s9 }
 0x18d   : > { %p11073_p9 = pnand %p11071_p7, %p11676_p8 }
 0x18f   : > { %p11074_p4 = pneg %p11073_p9 }
 0x191   : > { %p11079_p3 = pnand %p11077_p1, %p11074_p4 }
 0x193   : > { %11082 = shalt.err (!%p11079_p3)
}
 0x194   : > { %s11083_s26 = scalar_lea.vmem %s11923_s0, 256  ;;  %p11091_p13 = scmp.lt.s32.totalorder %s11923_s0, %s11923_s0 }
 0x195   : > { %p11084_p10 = scmp.ne.s32.totalorder %s11923_s0, %s11083_s26  ;;  %p11092_p0 = scmp.lt.s32.totalorder %s11083_s26, %s11083_s26 }
 0x197   : > { %p11086_p11 = pnand %p11084_p10, %p11676_p8  ;;  %p11093_p2 = por %p11092_p0, %p11091_p13 }
 0x199   : > { %p11087_p12 = pneg %p11086_p11 }
 0x19b   : > { %p11094_p5 = pnand %p11093_p2, %p11087_p12 }
 0x19d   : > { %11097 = shalt.err (!%p11094_p5)
}
 0x19e   : > { %s14847_s5 = smov 4   ;;  %s14848_s1 = smov 64  }
 0x19f   : > { %10244 = dma.hbm_to_vmem [thread:$0]  (!%p11660_p6), %s14846_s9, 256, %s11923_s0, [#allocation19], %s14848_s1, %s14848_s1, %s14847_s5  }
 0x1a0   : > { %s11472_s24 = smov [#allocation23]   ;;  %s11473_s30 = smov [#allocation26]  }
 0x1a1   : > { %s735_s29 = sshll.u32 %s11472_s24, 4  ;;  %s759_s7 = sshll.u32 %s11473_s30, 4  ;;  %s736_s29 = int_to_ptr.vmem [resolvable:$true] %s735_s29  ;;  %s11969_s7 = int_to_ptr.vmem [resolvable:$true] %s759_s7 }
 0x1a2   : > { %s14849_s11 = sld [smem:[#allocation125_spill]] }
 0x1a8   : > { %s11098_s4 = scalar_lea.hbm %s14849_s11, 256 }
 0x1a9   : > { %p11099_p7 = scmp.ne.s32.totalorder %s14849_s11, %s11098_s4  ;;  %p11105_p1 = scmp.lt.u32.totalorder %s11098_s4, %s14849_s11 }
 0x1ab   : > { %p11101_p9 = pnand %p11099_p7, %p11676_p8 }
 0x1ad   : > { %p11102_p4 = pneg %p11101_p9 }
 0x1af   : > { %p11107_p3 = pnand %p11105_p1, %p11102_p4 }
 0x1b1   : > { %11110 = shalt.err (!%p11107_p3)
}
 0x1b2   : > { %s11111_s6 = scalar_lea.vmem %s736_s29, 256  ;;  %p11119_p13 = scmp.lt.s32.totalorder %s736_s29, %s736_s29 }
 0x1b3   : > { %p11112_p10 = scmp.ne.s32.totalorder %s736_s29, %s11111_s6  ;;  %p11120_p0 = scmp.lt.s32.totalorder %s11111_s6, %s11111_s6 }
 0x1b5   : > { %p11114_p11 = pnand %p11112_p10, %p11676_p8  ;;  %p11121_p2 = por %p11120_p0, %p11119_p13 }
 0x1b7   : > { %p11115_p12 = pneg %p11114_p11 }
 0x1b9   : > { %p11122_p5 = pnand %p11121_p2, %p11115_p12 }
 0x1bb   : > { %11125 = shalt.err (!%p11122_p5)
}
 0x1bc   : > { %10250 = dma.hbm_to_vmem [thread:$0]  (!%p11660_p6), %s14849_s11, 256, %s736_s29, [#allocation22], %s14848_s1, %s14848_s1, %s14847_s5  }
 0x1bd   : > { %s14850_s13 = sld [smem:[#allocation127_spill]] }
 0x1c3   : > { %s11126_s22 = scalar_lea.hbm %s14850_s13, 256 }
 0x1c4   : > { %p11127_p7 = scmp.ne.s32.totalorder %s14850_s13, %s11126_s22  ;;  %p11133_p1 = scmp.lt.u32.totalorder %s11126_s22, %s14850_s13 }
 0x1c6   : > { %p11129_p9 = pnand %p11127_p7, %p11676_p8 }
 0x1c8   : > { %p11130_p4 = pneg %p11129_p9 }
 0x1ca   : > { %p11135_p3 = pnand %p11133_p1, %p11130_p4 }
 0x1cc   : > { %11138 = shalt.err (!%p11135_p3)
}
 0x1cd   : > { %s11139_s29 = scalar_lea.vmem %s11969_s7, 256  ;;  %p11147_p13 = scmp.lt.s32.totalorder %s11969_s7, %s11969_s7 }
 0x1ce   : > { %p11140_p10 = scmp.ne.s32.totalorder %s11969_s7, %s11139_s29  ;;  %p11148_p0 = scmp.lt.s32.totalorder %s11139_s29, %s11139_s29 }
 0x1d0   : > { %p11142_p11 = pnand %p11140_p10, %p11676_p8  ;;  %p11149_p2 = por %p11148_p0, %p11147_p13 }
 0x1d2   : > { %p11143_p12 = pneg %p11142_p11 }
 0x1d4   : > { %p11150_p5 = pnand %p11149_p2, %p11143_p12 }
 0x1d6   : > { %11153 = shalt.err (!%p11150_p5)
}
 0x1d7   : > { %10256 = dma.hbm_to_vmem [thread:$0]  (!%p11660_p6), %s14850_s13, 256, %s11969_s7, [#allocation25], %s14848_s1, %s14848_s1, %s14847_s5  }
 0x1d8   : > { %s11474_s24 = smov [#allocation29]   ;;  %s11475_s25 = smov [#allocation32]  }
 0x1d9   : > { %s783_s30 = sshll.u32 %s11474_s24, 4  ;;  %s809_s22 = sshll.u32 %s11475_s25, 4  ;;  %s784_s30 = int_to_ptr.vmem [resolvable:$true] %s783_s30  ;;  %s12018_s22 = int_to_ptr.vmem [resolvable:$true] %s809_s22 }
 0x1da   : > { %s11154_s8 = scalar_lea.hbm %s14699_s15, 128 }
 0x1db   : > { %p11155_p7 = scmp.ne.s32.totalorder %s14699_s15, %s11154_s8  ;;  %p11161_p1 = scmp.lt.u32.totalorder %s11154_s8, %s14699_s15 }
 0x1dd   : > { %p11157_p9 = pnand %p11155_p7, %p11676_p8 }
 0x1df   : > { %p11158_p4 = pneg %p11157_p9 }
 0x1e1   : > { %p11163_p3 = pnand %p11161_p1, %p11158_p4 }
 0x1e3   : > { %11166 = shalt.err (!%p11163_p3)
}
 0x1e4   : > { %s11167_s2 = scalar_lea.vmem %s784_s30, 128  ;;  %p11175_p13 = scmp.lt.s32.totalorder %s784_s30, %s784_s30 }
 0x1e5   : > { %p11168_p10 = scmp.ne.s32.totalorder %s784_s30, %s11167_s2  ;;  %p11176_p0 = scmp.lt.s32.totalorder %s11167_s2, %s11167_s2 }
 0x1e7   : > { %p11170_p11 = pnand %p11168_p10, %p11676_p8  ;;  %p11177_p2 = por %p11176_p0, %p11175_p13 }
 0x1e9   : > { %p11171_p12 = pneg %p11170_p11 }
 0x1eb   : > { %p11178_p5 = pnand %p11177_p2, %p11171_p12 }
 0x1ed   : > { %11181 = shalt.err (!%p11178_p5)
}
 0x1ee   : > { %10262 = dma.hbm_to_vmem [thread:$0]  (!%p11660_p6), %s14699_s15, 128, %s784_s30, [#allocation28], %s14848_s1, %s14848_s1, %s14847_s5  }
 0x1ef   : > { %s11182_s8 = scalar_lea.hbm %s14701_s17, 256 }
 0x1f0   : > { %p11183_p7 = scmp.ne.s32.totalorder %s14701_s17, %s11182_s8  ;;  %p11189_p1 = scmp.lt.u32.totalorder %s11182_s8, %s14701_s17 }
 0x1f2   : > { %p11185_p9 = pnand %p11183_p7, %p11676_p8 }
 0x1f4   : > { %p11186_p4 = pneg %p11185_p9 }
 0x1f6   : > { %p11191_p3 = pnand %p11189_p1, %p11186_p4 }
 0x1f8   : > { %11194 = shalt.err (!%p11191_p3)
}
 0x1f9   : > { %s11195_s30 = scalar_lea.vmem %s12018_s22, 256  ;;  %p11203_p13 = scmp.lt.s32.totalorder %s12018_s22, %s12018_s22 }
 0x1fa   : > { %p11196_p10 = scmp.ne.s32.totalorder %s12018_s22, %s11195_s30  ;;  %p11204_p0 = scmp.lt.s32.totalorder %s11195_s30, %s11195_s30 }
 0x1fc   : > { %p11198_p11 = pnand %p11196_p10, %p11676_p8  ;;  %p11205_p2 = por %p11204_p0, %p11203_p13 }
 0x1fe   : > { %p11199_p12 = pneg %p11198_p11 }
 0x200   : > { %p11206_p5 = pnand %p11205_p2, %p11199_p12 }
 0x202   : > { %11209 = shalt.err (!%p11206_p5)
}
 0x203   : > { %10268 = dma.hbm_to_vmem [thread:$0]  (!%p11660_p6), %s14701_s17, 256, %s12018_s22, [#allocation31], %s14848_s1, %s14848_s1, %s14847_s5  }
 0x204   : > { %s11476_s25 = smov [#allocation35]   ;;  %s11477_s26 = smov [#allocation38]  }
 0x205   : > { %s834_s4 = sshll.u32 %s11476_s25, 4  ;;  %s858_s8 = sshll.u32 %s11477_s26, 4  ;;  %s835_s4 = int_to_ptr.vmem [resolvable:$true] %s834_s4  ;;  %s12067_s8 = int_to_ptr.vmem [resolvable:$true] %s858_s8 }
 0x206   : > { %s11210_s6 = scalar_lea.hbm %s14703_s19, 16 }
 0x207   : > { %p11211_p7 = scmp.ne.s32.totalorder %s14703_s19, %s11210_s6  ;;  %p11217_p1 = scmp.lt.u32.totalorder %s11210_s6, %s14703_s19 }
 0x209   : > { %p11213_p9 = pnand %p11211_p7, %p11676_p8 }
 0x20b   : > { %p11214_p4 = pneg %p11213_p9 }
 0x20d   : > { %p11219_p3 = pnand %p11217_p1, %p11214_p4 }
 0x20f   : > { %11222 = shalt.err (!%p11219_p3)
}
 0x210   : > { %s11223_s24 = scalar_lea.vmem %s835_s4, 16  ;;  %s11230_s25 = scalar_lea.vmem %s835_s4, 32 }
 0x211   : > { %p11224_p10 = scmp.ne.s32.totalorder %s835_s4, %s11223_s24  ;;  %p11231_p13 = scmp.lt.s32.totalorder %s835_s4, %s835_s4 }
 0x212   : > { %p11232_p0 = scmp.lt.s32.totalorder %s11230_s25, %s11223_s24 }
 0x213   : > { %p11226_p11 = pnand %p11224_p10, %p11676_p8 }
 0x214   : > { %p11233_p2 = por %p11232_p0, %p11231_p13 }
 0x215   : > { %p11227_p12 = pneg %p11226_p11 }
 0x217   : > { %p11234_p5 = pnand %p11233_p2, %p11227_p12 }
 0x219   : > { %11237 = shalt.err (!%p11234_p5)
}
 0x21a   : > { %10274 = dma.hbm_to_vmem [thread:$0]  (!%p11660_p6), %s14703_s19, 16, %s835_s4, [#allocation34]  }
 0x21b   : > { %s14851_s7 = sld [smem:[#allocation129_spill]] }
 0x221   : > { %s11238_s30 = scalar_lea.hbm %s14851_s7, 16 }
 0x222   : > { %p11239_p7 = scmp.ne.s32.totalorder %s14851_s7, %s11238_s30  ;;  %p11245_p1 = scmp.lt.u32.totalorder %s11238_s30, %s14851_s7 }
 0x224   : > { %p11241_p9 = pnand %p11239_p7, %p11676_p8 }
 0x226   : > { %p11242_p4 = pneg %p11241_p9 }
 0x228   : > { %p11247_p3 = pnand %p11245_p1, %p11242_p4 }
 0x22a   : > { %11250 = shalt.err (!%p11247_p3)
}
 0x22b   : > { %s11251_s4 = scalar_lea.vmem %s12067_s8, 16  ;;  %s11258_s26 = scalar_lea.vmem %s12067_s8, 32 }
 0x22c   : > { %p11252_p10 = scmp.ne.s32.totalorder %s12067_s8, %s11251_s4  ;;  %p11259_p13 = scmp.lt.s32.totalorder %s12067_s8, %s12067_s8 }
 0x22d   : > { %p11260_p0 = scmp.lt.s32.totalorder %s11258_s26, %s11251_s4 }
 0x22e   : > { %p11254_p11 = pnand %p11252_p10, %p11676_p8 }
 0x22f   : > { %p11261_p2 = por %p11260_p0, %p11259_p13 }
 0x230   : > { %p11255_p12 = pneg %p11254_p11 }
 0x232   : > { %p11262_p5 = pnand %p11261_p2, %p11255_p12 }
 0x234   : > { %11265 = shalt.err (!%p11262_p5)
}
 0x235   : > { %s14852_s6 = sld [smem:[#allocation61_spill]]  ;;  %s14853_s30 = sld [smem:[#allocation60_spill]] }
 0x236   : > { %s14854_s2 = sld [smem:[#allocation58_spill]]  ;;  %s14855_s22 = sld [smem:[#allocation57_spill]] }
 0x237   : > { %s14856_s28 = sld [smem:[#allocation56_spill]]  ;;  %s14857_s24 = sld [smem:[#allocation62_spill]] }
 0x238   : > { %10280 = dma.hbm_to_vmem [thread:$0]  (!%p11660_p6), %s14851_s7, 16, %s12067_s8, [#allocation37]  }
 0x239   : > { %s14863_s12 = sld [smem:[#allocation116_spill]] }
 0x23b   : > { %s9324_s25 = sadd.s32 4294967294, %s14852_s6   ;;  %s64_s4 = sadd.s32 1, %s14853_s30 }
 0x23c   : > { %p65_p8 = scmp.ge.s32.totalorder %s64_s4, 2  ;;  %s102_s3 = sadd.s32 1, %s14854_s2 }
 0x23d   : > { %p109_p7 = scmp.ne.s32.totalorder %s14854_s2, %s14855_s22  ;;  %p110_p9 = scmp.eq.s32.totalorder %s14852_s6, 0 }
 0x23e   : > { %s15025_s4 = smov (%p65_p8, %s64_s4), 0  ;;  %p115_p1 = scmp.ne.s32.totalorder %s14855_s22, %s14856_s28 }
 0x23f   : > { %p12119_p4 = por %p110_p9, %p109_p7  ;;  %s97_s8 = ssub.s32 %s14853_s30, %s15025_s4 }
 0x240   : > { %p566_p6 = scmp.eq.s32.totalorder %s14857_s24, 1  ;;  %p100_p3 = scmp.eq.s32.totalorder %s97_s8, 0 }
 0x241   : > { %p14859_p10 = scmp.eq.s32.totalorder %s14857_s24, 0  ;;  %p572_p13 = scmp.eq.s32.totalorder %s9324_s25, 1 }
 0x242   : > { %p12134_p12 = por %p566_p6, %p109_p7  ;;  %p10312_p2 = scmp.lt.s32.totalorder %s14852_s6, 2 }
 0x243   : > { %p12130_p11 = por %p14859_p10, %p115_p1  ;;  %p12141_p0 = por %p572_p13, %p115_p1 }
 0x244   : > { %s14861_s29 = scalar_select %p12134_p12, 1, 0 }
 0x245   : > { %s12139_s7 = scalar_select %p100_p3, %s14854_s2, %s102_s3  }
 0x246   : > { %s14862_s9 = scalar_select %p12141_p0, 1, 0 }
 0x247   : > { %s869_s22 = sand.u32 1, %s14852_s6   ;;  %s871_s28 = sand.u32 1, %s14854_s2  }
 0x248   : > { %s9347_s8 = sshll.u32 %s871_s28, 4  ;;  %s9569_s24 = sshll.u32 %s14853_s30, 8 }
 0x249   : > { %s12152_s13 = scalar_lea.hbm %s14863_s12, %s9569_s24  ;;  %s873_s25 = scalar_lea.vmem [#allocation9], %s9347_s8 }
 0x24a   : > { %s881_s3 = sshll.u32 %s873_s25, 4  ;;  %p12158_p5 = pnand %p10312_p2, %p12119_p4  ;;  %s12154_s3 = int_to_ptr.vmem [resolvable:$true] %s881_s3 }
 0x24b   : > { %s12162_s6 = scalar_lea.sflag [#allocation10], %s869_s22  ;;  %s11266_s10 = scalar_lea.hbm %s12152_s13, 256 }
 0x24c   : > { %p11267_p8 = scmp.ne.s32.totalorder %s12152_s13, %s11266_s10  ;;  %p11268_p7 = pneg %p12158_p5 }
 0x24d   : > { %s11271_s2 = scalar_lea.hbm %s14863_s12, 512  ;;  %p11272_p4 = scmp.lt.u32.totalorder %s12152_s13, %s14863_s12 }
 0x24e   : > { %p11269_p9 = pnand %p11268_p7, %p11267_p8  ;;  %p11273_p6 = scmp.lt.u32.totalorder %s11271_s2, %s11266_s10 }
 0x24f   : > { %p11275_p10 = scmp.lt.u32.totalorder %s11266_s10, %s12152_s13 }
 0x250   : > { %p11270_p1 = pneg %p11269_p9  ;;  %p11274_p3 = por %p11273_p6, %p11272_p4 }
 0x252   : > { %p11276_p13 = por %p11275_p10, %p11274_p3 }
 0x254   : > { %p11277_p2 = pnand %p11276_p13, %p11270_p1 }
 0x256   : > { %11280 = shalt.err (!%p11277_p2)
}
 0x257   : > { %s11281_s22 = scalar_lea.vmem %s12154_s3, 256  ;;  %s11478_s8 = smov [#allocation9]  }
 0x258   : > { %p11282_p8 = scmp.ne.s32.totalorder %s12154_s3, %s11281_s22  ;;  %s11286_s24 = sshll.u32 %s11478_s8, 4  ;;  %s11287_s24 = int_to_ptr.vmem [resolvable:$false] %s11286_s24 }
 0x259   : > { %s11288_s25 = scalar_lea.vmem %s11287_s24, 512  ;;  %p11289_p12 = scmp.lt.s32.totalorder %s12154_s3, %s11287_s24 }
 0x25a   : > { %p11284_p9 = pnand %p11282_p8, %p11268_p7  ;;  %p11290_p4 = scmp.lt.s32.totalorder %s11288_s25, %s11281_s22 }
 0x25c   : > { %p11285_p0 = pneg %p11284_p9  ;;  %p11291_p6 = por %p11290_p4, %p11289_p12 }
 0x25e   : > { %p11292_p3 = pnand %p11291_p6, %p11285_p0 }
 0x260   : > { %11295 = shalt.err (!%p11292_p3)
}
 0x261   : > { %10284 = dma.hbm_to_vmem [thread:$0]  (!%p12158_p5), %s12152_s13, 256, %s12154_s3, %s12162_s6, %s14848_s1, %s14848_s1, %s14847_s5  }
 0x262   : > { %s14865_s10 = sld [smem:[#allocation63_spill]] }
 0x268   : > { %p14866_p7 = scmp.ne.s32.totalorder %s14865_s10, 0 }
 0x26a   : > { %893 = sbr.rel (%p14866_p7) target bundleno = 9328 (0x2470), region = 108 }
 0x271   : > { %s14867_s11 = sld [smem:[#allocation62_spill]] }
 0x277   : > { %p14868_p1 = scmp.eq.s32.totalorder %s14867_s11, 0 }
 0x279   : > { %11377 = dma.done.wait (%p14868_p1), [#allocation7], 1024   ;;  %p14869_p10 = pmov %p14868_p1 }
 0x27a   : > { %s14870_s30 = sld [smem:[#allocation57_spill]]  ;;  %s899_s14 = sand.u32 1, %s14867_s11  }
 0x27b   : > { %11379 = vsyncadd (%p14869_p10), [#allocation7], 4294966272  ;;  %s900_s28 = scalar_lea.sflag [#allocation10], %s899_s14 }
 0x280   : > { %s12201_s2 = sand.u32 1, %s14870_s30  }
 0x281   : > { %s9352_s26 = sshll.u32 %s12201_s2, 4 }
 0x282   : > { %s12204_s22 = scalar_lea.vmem [#allocation9], %s9352_s26 }
 0x283   : > { %11381 = dma.done.wait (%p12130_p11), %s900_s28, 256  }
 0x284   : > { %11383 = vsyncadd (%p12130_p11), %s900_s28, 4294967040  ;;  %p14871_p12 = pmov %p14868_p1 }
 0x285   : > { %p14872_p0 = pmov %p14868_p1 }
 0x286   : > { %11385 = dma.done.wait (%p14871_p12), [#allocation10], 128  }
 0x287   : > { %11387 = vsyncadd (%p14872_p0), [#allocation10], 4294967168  ;;  %p14873_p5 = pmov %p14872_p0 }
 0x288   : > { %p14874_p13 = pmov %p14872_p0 }
 0x289   : > { %11389 = dma.done.wait (%p14873_p5), [#allocation13], 272  }
 0x28a   : > { %11391 = vsyncadd (%p14874_p13), [#allocation13], 4294967024  ;;  %p14875_p2 = pmov %p14872_p0 }
 0x28b   : > { %p14876_p8 = pmov %p14872_p0 }
 0x28c   : > { %11393 = dma.done.wait (%p14875_p2), [#allocation16], 272  }
 0x28d   : > { %11395 = vsyncadd (%p14876_p8), [#allocation16], 4294967024  ;;  %p14877_p11 = pmov %p14872_p0 }
 0x28e   : > { %p14878_p9 = pmov %p14872_p0 }
 0x28f   : > { %11397 = dma.done.wait (%p14877_p11), [#allocation19], 272  }
 0x290   : > { %11399 = vsyncadd (%p14878_p9), [#allocation19], 4294967024  ;;  %p14879_p4 = pmov %p14872_p0 }
 0x291   : > { %p14880_p6 = pmov %p14872_p0 }
 0x292   : > { %11401 = dma.done.wait (%p14879_p4), [#allocation22], 272  }
 0x293   : > { %11403 = vsyncadd (%p14880_p6), [#allocation22], 4294967024  ;;  %p14881_p3 = pmov %p14872_p0 }
 0x294   : > { %p14882_p7 = pmov %p14872_p0 }
 0x295   : > { %11405 = dma.done.wait (%p14881_p3), [#allocation25], 272  }
 0x296   : > { %11407 = vsyncadd (%p14882_p7), [#allocation25], 4294967024  ;;  %p14883_p1 = pmov %p14872_p0 }
 0x297   : > { %p14884_p10 = pmov %p14872_p0 }
 0x298   : > { %11409 = dma.done.wait (%p14883_p1), [#allocation28], 144  }
 0x299   : > { %11411 = vsyncadd (%p14884_p10), [#allocation28], 4294967152  ;;  %p14885_p12 = pmov %p14872_p0 }
 0x29b   : > { %11413 = dma.done.wait (%p14885_p12), [#allocation31], 512  }
 0x29c   : > { %11415 = vsyncadd (%p14872_p0), [#allocation31], 4294966784  ;;  %p14886_p5 = pmov %p14872_p0 }
 0x29d   : > { %p14887_p13 = pmov %p14872_p0 }
 0x29e   : > { %11417 = dma.done.wait (%p14886_p5), [#allocation34], 32  }
 0x29f   : > { %11419 = vsyncadd (%p14887_p13), [#allocation34], 4294967264  ;;  %p14888_p2 = pmov %p14872_p0 }
 0x2a0   : > { %p14889_p8 = pmov %p14872_p0 }
 0x2a1   : > { %11421 = dma.done.wait (%p14888_p2), [#allocation37], 272  }
 0x2a2   : > { %11423 = vsyncadd (%p14889_p8), [#allocation37], 4294967024  ;;  %s9372_s13 = sshll.u32 %s12201_s2, 5  ;;  %v12251_v1 = vld [vmem:[#allocation6] sm:$0xf]  ;;  %s14893_s0 = sld [smem:[#allocation59_spill]] }
 0x2a3   : > { %v12253_v2 = vld [vmem:[#allocation6 + $0x4] sm:$0xf]  ;;  %v12255_v3 = vld [vmem:[#allocation6 + $0x8] sm:$0xf]  ;;  %v12257_v4 = vld [vmem:[#allocation6 + $0xc] sm:$0xf] }
 0x2a4   : > { %v12259_v5 = vld [vmem:[#allocation6 + $0x10] sm:$0xf]  ;;  %v12261_v6 = vld [vmem:[#allocation6 + $0x14] sm:$0xf]  ;;  %v12263_v7 = vld [vmem:[#allocation6 + $0x18] sm:$0xf] }
 0x2a5   : > { %v12265_v8 = vld [vmem:[#allocation6 + $0x1c] sm:$0xf]  ;;  %v12267_v9 = vld [vmem:[#allocation6 + $0x20] sm:$0xf]  ;;  %v12269_v10 = vld [vmem:[#allocation6 + $0x24] sm:$0xf] }
 0x2a6   : > { %v12271_v11 = vld [vmem:[#allocation6 + $0x28] sm:$0xf]  ;;  %v12273_v12 = vld [vmem:[#allocation6 + $0x2c] sm:$0xf]  ;;  %v12275_v13 = vld [vmem:[#allocation6 + $0x30] sm:$0xf] }
 0x2a7   : > { %14890 = vst [vmem:[#allocation64_spill] sm:$0xff] %v12271_v11  ;;  %v12277_v14 = vld [vmem:[#allocation6 + $0x34] sm:$0xf]  ;;  %v12279_v15 = vld [vmem:[#allocation6 + $0x38] sm:$0xf]  ;;  %s12283_s5 = scalar_lea.vmem [#allocation39], %s9372_s13 }
 0x2a8   : > { %14891 = vst [vmem:[#allocation65_spill] sm:$0xff] %v12279_v15  ;;  %v12281_v16 = vld [vmem:[#allocation6 + $0x3c] sm:$0xf]  ;;  %s12285_s1 = scalar_lea.vmem [#allocation40], %s9372_s13  ;;  %p9374_p11 = scmp.ne.s32.totalorder %s14893_s0, 0 }
 0x2a9   : > { %14892 = vst [vmem:[#allocation66_spill] sm:$0xff] %v12281_v16  ;;  %v10415_v17 = vld [vmem:[#allocation20] sm:$0xff] (!%p9374_p11)   ;;  %v1071_v18 = vunpack.c.l.bf16 (!%p9374_p11), %v12251_v1  ;;  %v1072_v19 = vunpack.c.l.bf16 (!%p9374_p11), %v12253_v2  ;;  %v11479_v20 = vmov (!%p9374_p11), 0.0   ;;  %v10416_v21 = vld [vmem:[#allocation23] sm:$0xff] (!%p9374_p11)   ;;  %v1073_v22 = vunpack.c.l.bf16 (!%p9374_p11), %v12255_v3  ;;  %v10417_v25 = vld [vmem:[#allocation20 + $0x8] sm:$0xff] (!%p9374_p11)  }
 0x2aa   : > { %1070 = sbr.rel (%p9374_p11) target bundleno = 955 (0x3bb), region = 196  ;;  %9718 = vmatprep.subr.bf16.mxu0 (!%p9374_p11), %v11479_v20  ;;  %9726 = vmatprep.subr.bf16.mxu1 (!%p9374_p11), %v11479_v20  ;;  %v1074_v23 = vunpack.c.l.bf16 (!%p9374_p11), %v12257_v4  ;;  %v1075_v24 = vunpack.c.l.bf16 (!%p9374_p11), %v12259_v5  ;;  %vm11480_vm0 = vmmov (!%p9374_p11), 0   ;;  %v1076_v26 = vunpack.c.l.bf16 (!%p9374_p11), %v12261_v6  ;;  %v10418_v30 = vld [vmem:[#allocation23 + $0x8] sm:$0xff] (!%p9374_p11)  }
 0x2ab   : > { %9719 = vmatpush3.bf16.msra.mxu0 (!%p9374_p11), %v10415_v17  ;;  %9722 = vmatprep.mubr.msk.bf16.mxu0 (!%p9374_p11), %vm11480_vm0, %v11479_v20  ;;  %v1077_v27 = vunpack.c.l.bf16 (!%p9374_p11), %v12263_v7  ;;  %v1078_v28 = vunpack.c.l.bf16 (!%p9374_p11), %v12265_v8  ;;  %v1079_v29 = vunpack.c.l.bf16 (!%p9374_p11), %v12267_v9  ;;  %v1080_v31 = vunpack.c.l.bf16 (!%p9374_p11), %v12269_v10  ;;  %v12301_v35 = vld [vmem:[#allocation12] sm:$0xff] (!%p9374_p11)  }
 0x2ac   : > { %9727 = vmatpush3.bf16.msra.mxu1 (!%p9374_p11), %v10416_v21  ;;  %9720 = vmatprep.subr.bf16.mxu0 (!%p9374_p11), %v11479_v20  ;;  %v1081_v32 = vunpack.c.l.bf16 (!%p9374_p11), %v12271_v11  ;;  %v1082_v33 = vunpack.c.l.bf16 (!%p9374_p11), %v12273_v12  ;;  %v1083_v34 = vunpack.c.l.bf16 (!%p9374_p11), %v12275_v13  ;;  %v1084_v36 = vunpack.c.l.bf16 (!%p9374_p11), %v12277_v14 }
 0x2ad   : > { %9728 = vmatprep.subr.bf16.mxu1 (!%p9374_p11), %v11479_v20  ;;  %9730 = vmatprep.mubr.msk.bf16.mxu1 (!%p9374_p11), %vm11480_vm0, %v11479_v20  ;;  %v1085_v37 = vunpack.c.l.bf16 (!%p9374_p11), %v12279_v15  ;;  %v1086_v38 = vunpack.c.l.bf16 (!%p9374_p11), %v12281_v16  ;;  %vm1087_vm1 = vcmask (!%p9374_p11), 261120   ;;  %vm1204_vm2 = vcmask (!%p9374_p11), 1041409  }
 0x2ae   : > { %v1088_v39 = vsel (!%p9374_p11), %vm1087_vm1, %v1071_v18, 0.0  ;;  %v1089_v40 = vsel (!%p9374_p11), %vm1087_vm1, %v1072_v19, 0.0  ;;  %v1097_v41 = vsel (!%p9374_p11), %vm1087_vm1, %v1073_v22, 0.0  ;;  %v1098_v42 = vsel (!%p9374_p11), %vm1087_vm1, %v1074_v23, 0.0 }
 0x2af   : > { %9721 = vmatpush3.bf16.msra.mxu0 (!%p9374_p11), %v10417_v25  ;;  %v1090_v43 = vadd.f32 (!%p9374_p11), %v1089_v40, %v1088_v39  ;;  %v1099_v44 = vadd.f32 (!%p9374_p11), %v1098_v42, %v1097_v41  ;;  %v1106_v45 = vsel (!%p9374_p11), %vm1087_vm1, %v1075_v24, 0.0  ;;  %v1107_v46 = vsel (!%p9374_p11), %vm1087_vm1, %v1076_v26, 0.0 }
 0x2b0   : > { %9729 = vmatpush3.bf16.msra.mxu1 (!%p9374_p11), %v10418_v30  ;;  %9734 = vmatprep.subr.bf16.mxu0 (!%p9374_p11), %v12301_v35  ;;  %v1108_v47 = vadd.f32 (!%p9374_p11), %v1107_v46, %v1106_v45  ;;  %v1115_v48 = vsel (!%p9374_p11), %vm1087_vm1, %v1077_v27, 0.0  ;;  %v1116_v49 = vsel (!%p9374_p11), %vm1087_vm1, %v1078_v28, 0.0  ;;  %v1124_v50 = vsel (!%p9374_p11), %vm1087_vm1, %v1079_v29, 0.0 }
 0x2b1   : > { %10130 = vmatprep.subr.bf16.mxu1 %v12301_v35  ;;  %v1091_v51 = vrot.slane %v1090_v43, 4  ;;  %v1100_v52 = vrot.slane %v1099_v44, 4  ;;  %v1117_v53 = vadd.f32 %v1116_v49, %v1115_v48  ;;  %v1125_v54 = vsel %vm1087_vm1, %v1080_v31, 0.0 }
 0x2b2   : > { %v1109_v55 = vrot.slane %v1108_v47, 4  ;;  %v1126_v56 = vadd.f32 %v1125_v54, %v1124_v50  ;;  %v1133_v57 = vsel %vm1087_vm1, %v1081_v32, 0.0  ;;  %v1134_v58 = vsel %vm1087_vm1, %v1082_v33, 0.0 }
 0x2b3   : > { %v1092_v59 = vadd.f32 %v1091_v51, %v1090_v43  ;;  %v1101_v60 = vadd.f32 %v1100_v52, %v1099_v44  ;;  %v1118_v61 = vrot.slane %v1117_v53, 4  ;;  %v1135_v62 = vadd.f32 %v1134_v58, %v1133_v57 }
 0x2b4   : > { %v1110_v63 = vadd.f32 %v1109_v55, %v1108_v47  ;;  %v1127_v0 = vrot.slane %v1126_v56, 4  ;;  %v1142_v17 = vsel %vm1087_vm1, %v1083_v34, 0.0  ;;  %v1143_v18 = vsel %vm1087_vm1, %v1084_v36, 0.0 }
 0x2b5   : > { %v1093_v19 = vrot.slane %v1092_v59, 2  ;;  %v1102_v20 = vrot.slane %v1101_v60, 2  ;;  %v1119_v21 = vadd.f32 %v1118_v61, %v1117_v53  ;;  %v1136_v22 = vrot.slane %v1135_v62, 4 }
 0x2b6   : > { %v1111_v23 = vrot.slane %v1110_v63, 2  ;;  %v1128_v24 = vadd.f32 %v1127_v0, %v1126_v56  ;;  %v1144_v25 = vadd.f32 %v1143_v18, %v1142_v17  ;;  %v1151_v26 = vsel %vm1087_vm1, %v1085_v37, 0.0 }
 0x2b7   : > { %v1094_v27 = vadd.f32 %v1093_v19, %v1092_v59  ;;  %v1103_v28 = vadd.f32 %v1102_v20, %v1101_v60  ;;  %v1120_v29 = vrot.slane %v1119_v21, 2  ;;  %v1137_v30 = vadd.f32 %v1136_v22, %v1135_v62 }
 0x2b8   : > { %v1112_v31 = vadd.f32 %v1111_v23, %v1110_v63  ;;  %v1129_v32 = vrot.slane %v1128_v24, 2  ;;  %v1145_v33 = vrot.slane %v1144_v25, 4  ;;  %v1152_v34 = vsel %vm1087_vm1, %v1086_v38, 0.0 }
 0x2b9   : > { %v1095_v39 = vrot.slane %v1094_v27, 1  ;;  %v1104_v36 = vrot.slane %v1103_v28, 1  ;;  %v1121_v40 = vadd.f32 %v1120_v29, %v1119_v21  ;;  %v1138_v41 = vrot.slane %v1137_v30, 2 }
 0x2ba   : > { %v1113_v42 = vrot.slane %v1112_v31, 1  ;;  %v1130_v43 = vadd.f32 %v1129_v32, %v1128_v24  ;;  %v1146_v44 = vadd.f32 %v1145_v33, %v1144_v25  ;;  %v1153_v45 = vadd.f32 %v1152_v34, %v1151_v26 }
 0x2bb   : > { %v1096_v46 = vadd.f32 %v1095_v39, %v1094_v27  ;;  %v1105_v47 = vadd.f32 %v1104_v36, %v1103_v28  ;;  %v1122_v37 = vrot.slane %v1121_v40, 1  ;;  %v1139_v48 = vadd.f32 %v1138_v41, %v1137_v30 }
 0x2bc   : > { %v1114_v49 = vadd.f32 %v1113_v42, %v1112_v31  ;;  %v1131_v50 = vrot.slane %v1130_v43, 1  ;;  %v1147_v51 = vrot.slane %v1146_v44, 2  ;;  %v1154_v52 = vrot.slane %v1153_v45, 4 }
 0x2bd   : > { %v1123_v53 = vadd.f32 %v1122_v37, %v1121_v40  ;;  %v1140_v54 = vrot.slane %v1139_v48, 1  ;;  %v1161_v55 = vmul.f32 0.0625, %v1096_v46  ;;  %v1162_v38 = vmul.f32 0.0625, %v1105_v47 }
 0x2be   : > { %v1132_v56 = vadd.f32 %v1131_v50, %v1130_v43  ;;  %v1148_v57 = vadd.f32 %v1147_v51, %v1146_v44  ;;  %v1155_v58 = vadd.f32 %v1154_v52, %v1153_v45  ;;  %v1163_v59 = vmul.f32 0.0625, %v1114_v49  ;;  %v10420_v50 = vld [vmem:[#allocation12 + $0x8] sm:$0xff]  }
 0x2bf   : > { %v1141_v60 = vadd.f32 %v1140_v54, %v1139_v48  ;;  %v1164_v61 = vmul.f32 0.0625, %v1123_v53  ;;  %v1169_v62 = vpack.c.bf16 %v1161_v55, %v1161_v55  ;;  %v1170_v63 = vpack.c.bf16 %v1162_v38, %v1162_v38 }
 0x2c0   : > { %v1149_v0 = vrot.slane %v1148_v57, 1  ;;  %v1156_v17 = vrot.slane %v1155_v58, 2  ;;  %v1165_v18 = vmul.f32 0.0625, %v1132_v56  ;;  %v1171_v19 = vpack.c.bf16 %v1163_v59, %v1163_v59 }
 0x2c1   : > { %v1166_v20 = vmul.f32 0.0625, %v1141_v60  ;;  %v1172_v21 = vpack.c.bf16 %v1164_v61, %v1164_v61  ;;  %v1196_v22 = vunpack.c.l.b16 %v1169_v62  ;;  %v1197_v23 = vunpack.c.l.b16 %v1170_v63 }
 0x2c2   : > { %v1150_v24 = vadd.f32 %v1149_v0, %v1148_v57  ;;  %v1157_v25 = vadd.f32 %v1156_v17, %v1155_v58  ;;  %v1173_v26 = vpack.c.bf16 %v1165_v18, %v1165_v18  ;;  %v1198_v27 = vunpack.c.l.b16 %v1171_v19  ;;  %v9375_v57 = vld [vmem:[#allocation21] ss:$0 sm:$0xff]  ;;  %v9379_v58 = vld [vmem:[#allocation24] ss:$0 sm:$0xff] }
 0x2c3   : > { %v1174_v28 = vpack.c.bf16 %v1166_v20, %v1166_v20  ;;  %v1199_v29 = vunpack.c.l.b16 %v1172_v21  ;;  %vm1206_vm3 = vcmask 1042434   ;;  %v1205_v33 = vsel %vm1204_vm2, %v1197_v23, %v1196_v22  ;;  %v9391_v21 = vld [vmem:[#allocation14] ss:$0 sm:$0xff] }
 0x2c4   : > { %v1158_v30 = vrot.slane %v1157_v25, 1  ;;  %v1167_v31 = vmul.f32 0.0625, %v1150_v24  ;;  %v1200_v32 = vunpack.c.l.b16 %v1173_v26  ;;  %v1207_v39 = vsel %vm1206_vm3, %v1198_v27, %v1205_v33 }
 0x2c5   : > { %v1201_v34 = vunpack.c.l.b16 %v1174_v28  ;;  %vm1208_vm4 = vcmask 1043459   ;;  %vm1210_vm5 = vcmask 1044484   ;;  %vm1212_vm6 = vcmask 1045509  }
 0x2c6   : > { %v1159_v36 = vadd.f32 %v1158_v30, %v1157_v25  ;;  %v1175_v40 = vpack.c.bf16 %v1167_v31, %v1167_v31  ;;  %v1209_v41 = vsel %vm1208_vm4, %v1199_v29, %v1207_v39  ;;  %vm1214_vm7 = vcmask 1046534  }
 0x2c7   : > { %v1211_v42 = vsel %vm1210_vm5, %v1200_v32, %v1209_v41  ;;  %vm1216_vm8 = vcmask 1047559   ;;  %v9383_v51 = vcombine.low %v12251_v1, %v12253_v2  ;;  %v9387_v52 = vcombine.low %v12267_v9, %v12269_v10 }
 0x2c8   : > { %v1168_v43 = vmul.f32 0.0625, %v1159_v36  ;;  %v1202_v44 = vunpack.c.l.b16 %v1175_v40  ;;  %v1213_v45 = vsel %vm1212_vm6, %v1201_v34, %v1211_v42  ;;  %v9384_v53 = vcombine.low %v12255_v3, %v12257_v4 }
 0x2c9   : > { %v9388_v54 = vcombine.low %v12271_v11, %v12273_v12  ;;  %v9385_v55 = vcombine.low %v12259_v5, %v12261_v6  ;;  %v9386_v38 = vcombine.low %v12263_v7, %v12265_v8  ;;  %v9390_v56 = vcombine.low %v12279_v15, %v12281_v16 }
 0x2ca   : > { %v1176_v46 = vpack.c.bf16 %v1168_v43, %v1168_v43  ;;  %v1215_v47 = vsel %vm1214_vm7, %v1202_v44, %v1213_v45 }
 0x2cc   : > { %v1203_v37 = vunpack.c.l.b16 %v1176_v46 }
 0x2ce   : > { %v1217_v48 = vsel %vm1216_vm8, %v1203_v37, %v1215_v47 }
 0x2cf   : > { %v1218_v49 = vpack.c.b16 %v1217_v48, %v1217_v48 }
 0x2d1   : > { %9723 = vmatmul.mubr.msk.bf16.vlgmr.msra.gmra.mrb[0].mxu0 %vm1087_vm1, %v1218_v49  ;;  %9731 = vmatmul.mubr.msk.bf16.vlgmr.msra.gmra.mrb[0].mxu1 %vm1087_vm1, %v1218_v49 }
 0x2d2   : > { %9735 = vmatpush3.bf16.msra.mxu0 %v12301_v35  ;;  %10132 = vmatpush3.bf16.msra.mxu1 %v12301_v35  ;;  %v9389_v35 = vcombine.low %v12275_v13, %v12277_v14 }
 0x2d3   : > { %9736 = vmatprep.subr.bf16.mxu0 %v10420_v50  ;;  %10131 = vmatprep.subr.bf16.mxu1 %v10420_v50 }
 0x2d4   : > { %9738 = vmatprep.mubr.msk.bf16.mxu0 %vm1087_vm1, %v9383_v51  ;;  %9746 = vmatprep.mubr.msk.bf16.mxu1 %vm1087_vm1, %v9387_v52 }
 0x2d6   : > { %9737 = vmatpush3.bf16.msra.mxu0 %v10420_v50  ;;  %10133 = vmatpush3.bf16.msra.mxu1 %v10420_v50 }
 0x2d9   : > { %9739 = vmatmul.mubr.msk.bf16.vlgmr.msra.gmra.mrb[4].mxu0 %vm1087_vm1, %v9384_v53  ;;  %9747 = vmatmul.mubr.msk.bf16.vlgmr.msra.gmra.mrb[4].mxu1 %vm1087_vm1, %v9388_v54 }
 0x2da   : > { %9742 = vmatprep.mubr.msk.bf16.mxu0 %vm1087_vm1, %v9385_v55  ;;  %9750 = vmatprep.mubr.msk.bf16.mxu1 %vm1087_vm1, %v9389_v35 }
 0x2e1   : > { %9743 = vmatmul.mubr.msk.bf16.gmra.mrb[8].mxu0 %vm1087_vm1, %v9386_v38  ;;  %9751 = vmatmul.mubr.msk.bf16.gmra.mrb[8].mxu1 %vm1087_vm1, %v9390_v56 }
 0x3a4   : > { %v1268_v59 = vpop.f32.mrb[0].mxu0  ;;  %v1332_v60 = vpop.f32.mrb[0].mxu1 }
 0x3a5   : > { %v1269_v61 = vadd.f32 %v9375_v57, %v1268_v59  ;;  %v1333_v62 = vadd.f32 %v9379_v58, %v1332_v60  ;;  %v9724_v63 = vpop.f32.mrb[1].mxu0  ;;  %v9732_v0 = vpop.f32.mrb[1].mxu1 }
 0x3a6   : > { %v1271_v17 = vpop.f32.mrb[2].mxu0  ;;  %v1335_v18 = vpop.f32.mrb[2].mxu1 }
 0x3a7   : > { %1274 = vst.msk [vmem:[#allocation2] sm:$0xff] %vm1087_vm1, %v1269_v61  ;;  %1338 = vst.msk [vmem:[#allocation3] sm:$0xff] %vm1087_vm1, %v1333_v62  ;;  %v9725_v19 = vpop.f32.mrb[3].mxu0  ;;  %v9733_v20 = vpop.f32.mrb[3].mxu1 }
 0x3ac   : > { %v9740_v22 = vpop.f32.mrb[4].mxu0  ;;  %v9748_v23 = vpop.f32.mrb[4].mxu1 }
 0x3ad   : > { %v1437_v24 = vadd.f32 %v9740_v22, %v9391_v21  ;;  %v1469_v25 = vadd.f32 %v9748_v23, %v9391_v21  ;;  %v1428_v26 = vpop.f32.mrb[5].mxu0  ;;  %v1460_v27 = vpop.f32.mrb[5].mxu1 }
 0x3ae   : > { %v1429_v28 = vadd.f32 %v9391_v21, %v1428_v26  ;;  %v1461_v29 = vadd.f32 %v9391_v21, %v1460_v27  ;;  %v9741_v30 = vpop.f32.mrb[6].mxu0  ;;  %v9749_v31 = vpop.f32.mrb[6].mxu1 }
 0x3af   : > { %1493 = vst.msk [vmem:[#allocation4 + $0x10] sm:$0xff] %vm1087_vm1, %v1437_v24  ;;  %1501 = vst.msk [vmem:[#allocation4 + $0x50] sm:$0xff] %vm1087_vm1, %v1469_v25  ;;  %v1440_v32 = vadd.f32 %v9741_v30, %v9391_v21  ;;  %v1472_v33 = vadd.f32 %v9749_v31, %v9391_v21  ;;  %v1431_v34 = vpop.f32.mrb[7].mxu0  ;;  %v1463_v39 = vpop.f32.mrb[7].mxu1 }
 0x3b0   : > { %1491 = vst.msk [vmem:[#allocation4] sm:$0xff] %vm1087_vm1, %v1429_v28  ;;  %1499 = vst.msk [vmem:[#allocation4 + $0x40] sm:$0xff] %vm1087_vm1, %v1461_v29  ;;  %v1432_v36 = vadd.f32 %v9391_v21, %v1431_v34  ;;  %v1464_v40 = vadd.f32 %v9391_v21, %v1463_v39 }
 0x3b1   : > { %1494 = vst.msk [vmem:[#allocation4 + $0x18] sm:$0xff] %vm1087_vm1, %v1440_v32  ;;  %1502 = vst.msk [vmem:[#allocation4 + $0x58] sm:$0xff] %vm1087_vm1, %v1472_v33 }
 0x3b2   : > { %1492 = vst.msk [vmem:[#allocation4 + $0x8] sm:$0xff] %vm1087_vm1, %v1432_v36  ;;  %1500 = vst.msk [vmem:[#allocation4 + $0x48] sm:$0xff] %vm1087_vm1, %v1464_v40 }
 0x3b4   : > { %v9744_v41 = vpop.f32.mrb[8].mxu0  ;;  %v9752_v42 = vpop.f32.mrb[8].mxu1 }
 0x3b5   : > { %v1453_v43 = vadd.f32 %v9744_v41, %v9391_v21  ;;  %v1485_v44 = vadd.f32 %v9752_v42, %v9391_v21  ;;  %v1444_v45 = vpop.f32.mrb[9].mxu0  ;;  %v1476_v46 = vpop.f32.mrb[9].mxu1 }
 0x3b6   : > { %v1445_v47 = vadd.f32 %v9391_v21, %v1444_v45  ;;  %v1477_v37 = vadd.f32 %v9391_v21, %v1476_v46  ;;  %v9745_v48 = vpop.f32.mrb[10].mxu0  ;;  %v9753_v49 = vpop.f32.mrb[10].mxu1 }
 0x3b7   : > { %1497 = vst.msk [vmem:[#allocation4 + $0x30] sm:$0xff] %vm1087_vm1, %v1453_v43  ;;  %1505 = vst.msk [vmem:[#allocation4 + $0x70] sm:$0xff] %vm1087_vm1, %v1485_v44  ;;  %v1456_v50 = vadd.f32 %v9745_v48, %v9391_v21  ;;  %v1488_v51 = vadd.f32 %v9753_v49, %v9391_v21  ;;  %v1447_v52 = vpop.f32.mrb[11].mxu0  ;;  %v1479_v53 = vpop.f32.mrb[11].mxu1 }
 0x3b8   : > { %1495 = vst.msk [vmem:[#allocation4 + $0x20] sm:$0xff] %vm1087_vm1, %v1445_v47  ;;  %1503 = vst.msk [vmem:[#allocation4 + $0x60] sm:$0xff] %vm1087_vm1, %v1477_v37  ;;  %v1448_v54 = vadd.f32 %v9391_v21, %v1447_v52  ;;  %v1480_v55 = vadd.f32 %v9391_v21, %v1479_v53 }
 0x3b9   : > { %1498 = vst.msk [vmem:[#allocation4 + $0x38] sm:$0xff] %vm1087_vm1, %v1456_v50  ;;  %1506 = vst.msk [vmem:[#allocation4 + $0x78] sm:$0xff] %vm1087_vm1, %v1488_v51 }
 0x3ba   : > { %1496 = vst.msk [vmem:[#allocation4 + $0x28] sm:$0xff] %vm1087_vm1, %v1448_v54  ;;  %1504 = vst.msk [vmem:[#allocation4 + $0x68] sm:$0xff] %vm1087_vm1, %v1480_v55 }
 0x3bb PF: > { %v10423_v35 = vld [vmem:[#allocation15] sm:$0xff]   ;;  %v14744_v38 = vmov 0.0   ;;  %v10424_v56 = vld [vmem:[#allocation15 + $0x8] sm:$0xff]   ;;  %vm11482_vm9 = vmmov 0   ;;  %v1507_v57 = vld [vmem:[#allocation2] sm:$0xff]  ;;  %vm1552_vm10 = vcmask 261120   ;;  %v1601_v62 = vlaneseq }
 0x3bc   : > { %9754 = vmatprep.subr.bf16.mxu0 %v14744_v38  ;;  %9762 = vmatprep.subr.bf16.mxu1 %v14744_v38  ;;  %v12377_v58 = vpack.c.bf16 %v1507_v57, %v1507_v57  ;;  %v14742_v59 = vmov 0   ;;  %v11484_v60 = vmov 1966171168   ;;  %v9403_v17 = vld [vmem:[#allocation17] ss:$0 sm:$0xff]  ;;  %v1509_v33 = vld [vmem:[#allocation4] sm:$0xff] }
 0x3bd   : > { %9755 = vmatpush3.bf16.msra.mxu0 %v10423_v35  ;;  %9758 = vmatprep.mubr.msk.bf16.mxu0 %vm11482_vm9, %v14744_v38  ;;  %v1599_v61 = vunpack.c.l.s4 %v11484_v60  ;;  %v12387_v0 = vshrl.u32 %v1601_v62, 7  ;;  %v1510_v34 = vld [vmem:[#allocation4 + $0x8] sm:$0xff]  ;;  %v1511_v36 = vld [vmem:[#allocation4 + $0x10] sm:$0xff]  ;;  %v1512_v40 = vld [vmem:[#allocation4 + $0x18] sm:$0xff]  ;;  %vm1841_vm11 = vcmask 130112   ;;  %vm1906_vm12 = vcmask 1041409  }
 0x3be   : > { %9756 = vmatprep.subr.bf16.mxu0 %v14744_v38  ;;  %9764 = vmatprep.mubr.msk.bf16.mxu1 %vm11482_vm9, %v14744_v38  ;;  %v12405_v37 = vld [vmem:[#allocation18] ss:$0 sm:$0xff]  ;;  %v1517_v55 = vld [vmem:[#allocation4 + $0x40] sm:$0xff]  ;;  %vm1908_vm13 = vcmask 1042434   ;;  %vm1910_vm14 = vcmask 1043459   ;;  %vm1912_vm15 = vcmask 1044484  }
 0x3bf   : > { %10421 = vset.pattern.permute.xlu0 %v14742_v59  ;;  %10422 = vset.pattern.permute.xlu1 %v14742_v59  ;;  %v1600_v63 = vunpack.c.0.s8 %v1599_v61  ;;  %v12394_v26 = vsub.s32 0, %v12387_v0  ;;  %v1513_v42 = vld [vmem:[#allocation4 + $0x20] sm:$0xff]  ;;  %v1518_v61 = vld [vmem:[#allocation4 + $0x48] sm:$0xff]  ;;  %vm1914_vm0 = vcmask 1045509   ;;  %vm1916_vm1 = vcmask 1046534   ;;  %s14910_s3 = sld [smem:[#allocation59_spill]] }
 0x3c0   : > { %vm1918_vm2 = vcmask 1047559   ;;  %vm1921_vm3 = vcmask 130048   ;;  %s11485_s8 = smov 32   ;;  %s14806_s24 = smov 64  }
 0x3c1   : > { %9757 = vmatpush3.bf16.msra.mxu0 %v10424_v56  ;;  %v12390_v18 = vsub.s32 %v1600_v63, %v12387_v0  ;;  %v1514_v46 = vld [vmem:[#allocation4 + $0x28] sm:$0xff]  ;;  %s11487_s25 = smov 96   ;;  %s9008_s26 = sshll.u32 %s12285_s1, 4  ;;  %s14575_s26 = int_to_ptr.vmem [resolvable:$true] %s9008_s26 }
 0x3c2   : > { %9774 = vmatprep.subr.bf16.mxu0 %v14744_v38  ;;  %s15010_s13 = sld [smem:[#allocation131_spill]]  ;;  %p15011_p4 = scmp.ne.s32.totalorder %s14861_s29, 0 }
 0x3c3   : > { %14894 = vst [vmem:[#allocation67_spill] sm:$0xff] %v12390_v18 }
 0x3c4   : > { %9759 = vmatmul.mubr.msk.bf16.vlgmr.msra.gmra.mrb[0].mxu0 %vm1552_vm10, %v12377_v58 }
 0x3c5   : > { %9776 = vmatprep.mubr.msk.bf16.mxu0 %vm11482_vm9, %v14744_v38  ;;  %s12749_s6 = sshll.u32 %s14910_s3, 2  ;;  %s9565_s14 = sshll.u32 %s14910_s3, 6 }
 0x3c6   : > { %s3439_s10 = sadd.s32 1, %s12749_s6  ;;  %s5279_s11 = sadd.s32 2, %s12749_s6 }
 0x3c7   : > { %s7119_s30 = sadd.s32 3, %s12749_s6 }
 0x3c8   : > { %s14573_s0 = scalar_lea.hbm %s15010_s13, %s9565_s14 }
 0x497   : > { %v1590_v19 = vpop.f32.mrb[0].mxu0 }
 0x498   : > { %v1591_v20 = vadd.f32 %v9403_v17, %v1590_v19  ;;  %v9760_v21 = vpop.f32.mrb[1].mxu0 }
 0x499   : > { %v1593_v22 = vpop.f32.mrb[2].mxu0 }
 0x49a   : > { %v1597_v23 = vcombine.high %v1591_v20, %v1591_v20  ;;  %v1604_v24 = vrot.slane %v1591_v20, %v12390_v18  ;;  %v9761_v25 = vpop.f32.mrb[3].mxu0 }
 0x49c   : > { %v1611_v27 = vrot.slane %v1597_v23, %v12390_v18  ;;  %v1612_v28 = vcombine.high %v1604_v24, %v1604_v24  ;;  %v1620_v29 = vrot.slane %v1604_v24, %v12390_v18 }
 0x49e   : > { %v12399_v30 = vrot.slane %v1611_v27, %v12390_v18  ;;  %v1634_v31 = vrot.slane %v1612_v28, %v12390_v18  ;;  %v1642_v32 = vcombine.high %v1620_v29, %v1620_v29  ;;  %v1649_v39 = vrot.slane %v1620_v29, %v12394_v26  ;;  %v1515_v29 = vld [vmem:[#allocation4 + $0x30] sm:$0xff] }
 0x49f   : > { %v1613_v47 = vcombine.high %v1611_v27, %v1611_v27 }
 0x4a0   : > { %v1653_v41 = vrot.slane %v1634_v31, %v12394_v26  ;;  %v1686_v43 = vadd.f32 %v1649_v39, %v1509_v33  ;;  %v1687_v44 = vadd.f32 %v1649_v39, %v1510_v34  ;;  %v1657_v45 = vrot.slane %v1642_v32, %v12394_v26 }
 0x4a1   : > { %v1665_v50 = vrot.slane %v12399_v30, %v12394_v26  ;;  %v1644_v51 = vcombine.high %v1634_v31, %v1634_v31  ;;  %v1641_v20 = vrot.slane %v1613_v47, %v12390_v18  ;;  %v1516_v31 = vld [vmem:[#allocation4 + $0x38] sm:$0xff]  ;;  %v1643_v34 = vcombine.high %v12399_v30, %v12399_v30 }
 0x4a2   : > { %v1688_v48 = vadd.f32 %v1653_v41, %v1511_v36  ;;  %v1689_v49 = vadd.f32 %v1653_v41, %v1512_v40  ;;  %v1702_v52 = vmax.f32 %v1686_v43, 0.0  ;;  %v1703_v53 = vmax.f32 %v1687_v44, 0.0 }
 0x4a3   : > { %v1690_v54 = vadd.f32 %v1657_v45, %v1513_v42  ;;  %v1691_v57 = vadd.f32 %v1657_v45, %v1514_v46  ;;  %v1694_v19 = vadd.f32 %v1665_v50, %v1517_v55  ;;  %v1661_v23 = vrot.slane %v1644_v51, %v12394_v26  ;;  %v1519_v45 = vld [vmem:[#allocation4 + $0x50] sm:$0xff]  ;;  %v1520_v46 = vld [vmem:[#allocation4 + $0x58] sm:$0xff] }
 0x4a4   : > { %v1704_v35 = vmax.f32 %v1688_v48, 0.0  ;;  %v1705_v56 = vmax.f32 %v1689_v49, 0.0  ;;  %v1724_v60 = vmul.f32 %v12405_v37, %v1702_v52  ;;  %v1725_v22 = vmul.f32 %v12405_v37, %v1703_v53 }
 0x4a5   : > { %v1706_v17 = vmax.f32 %v1690_v54, 0.0  ;;  %v1707_v27 = vmax.f32 %v1691_v57, 0.0  ;;  %v1695_v28 = vadd.f32 %v1665_v50, %v1518_v61  ;;  %v1710_v33 = vmax.f32 %v1694_v19, 0.0 }
 0x4a6   : > { %v1726_v63 = vmul.f32 %v12405_v37, %v1704_v35  ;;  %v1740_v21 = vsel %vm1552_vm10, %v1724_v60, 0.0  ;;  %v1727_v25 = vmul.f32 %v12405_v37, %v1705_v56  ;;  %v1743_v39 = vsel %vm1552_vm10, %v1725_v22, 0.0  ;;  %v1521_v35 = vld [vmem:[#allocation4 + $0x60] sm:$0xff]  ;;  %v1522_v56 = vld [vmem:[#allocation4 + $0x68] sm:$0xff] }
 0x4a7   : > { %1741 = vadd.xlane.f32.xlu0 %v1740_v21  ;;  %v1728_v32 = vmul.f32 %v12405_v37, %v1706_v17  ;;  %v1692_v36 = vadd.f32 %v1661_v23, %v1515_v29  ;;  %v1669_v40 = vrot.slane %v1641_v20, %v12394_v26  ;;  %v1729_v42 = vmul.f32 %v12405_v37, %v1707_v27 }
 0x4a8   : > { %v1746_v24 = vsel %vm1552_vm10, %v1726_v63, 0.0  ;;  %v1749_v41 = vsel %vm1552_vm10, %v1727_v25, 0.0  ;;  %v1711_v43 = vmax.f32 %v1695_v28, 0.0  ;;  %v1693_v44 = vadd.f32 %v1661_v23, %v1516_v31  ;;  %v1523_v23 = vld [vmem:[#allocation4 + $0x70] sm:$0xff] }
 0x4a9   : > { %1747 = vadd.xlane.f32.xlu1 %v1746_v24  ;;  %v1752_v47 = vsel %vm1552_vm10, %v1728_v32, 0.0  ;;  %v1732_v48 = vmul.f32 %v12405_v37, %v1710_v33  ;;  %v1708_v30 = vmax.f32 %v1692_v36, 0.0  ;;  %v1696_v49 = vadd.f32 %v1669_v40, %v1519_v45  ;;  %v1524_v24 = vld [vmem:[#allocation4 + $0x78] sm:$0xff] }
 0x4aa   : > { %v1673_v50 = vrot.slane %v1643_v34, %v12394_v26  ;;  %v1645_v51 = vcombine.high %v1641_v20, %v1641_v20  ;;  %v1755_v52 = vsel %vm1552_vm10, %v1729_v42, 0.0  ;;  %v1733_v53 = vmul.f32 %v12405_v37, %v1711_v43 }
 0x4ab   : > { %1744 = vadd.xlane.f32.xlu0 %v1743_v39  ;;  %v1709_v54 = vmax.f32 %v1693_v44, 0.0  ;;  %v1697_v55 = vadd.f32 %v1669_v40, %v1520_v46  ;;  %v1764_v57 = vsel %vm1552_vm10, %v1732_v48, 0.0  ;;  %v1730_v60 = vmul.f32 %v12405_v37, %v1708_v30 }
 0x4ac   : > { %v1712_v61 = vmax.f32 %v1696_v49, 0.0  ;;  %v1698_v63 = vadd.f32 %v1673_v50, %v1521_v35  ;;  %v1677_v17 = vrot.slane %v1645_v51, %v12394_v26  ;;  %v1767_v19 = vsel %vm1552_vm10, %v1733_v53, 0.0  ;;  %v9408_v49 = vld [vmem:[#allocation5] ss:$0 sm:$0xff] }
 0x4ad   : > { %1750 = vadd.xlane.f32.xlu1 %v1749_v41  ;;  %v1731_v20 = vmul.f32 %v12405_v37, %v1709_v54  ;;  %v1713_v21 = vmax.f32 %v1697_v55, 0.0  ;;  %v1699_v22 = vadd.f32 %v1673_v50, %v1522_v56  ;;  %v1758_v25 = vsel %vm1552_vm10, %v1730_v60, 0.0 }
 0x4ae   : > { %v1734_v27 = vmul.f32 %v12405_v37, %v1712_v61  ;;  %v1714_v28 = vmax.f32 %v1698_v63, 0.0  ;;  %v1700_v29 = vadd.f32 %v1677_v17, %v1523_v23  ;;  %v1701_v34 = vadd.f32 %v1677_v17, %v1524_v24 }
 0x4af   : > { %1753 = vadd.xlane.f32.xlu0 %v1752_v47  ;;  %v1761_v31 = vsel %vm1552_vm10, %v1731_v20, 0.0  ;;  %v1735_v32 = vmul.f32 %v12405_v37, %v1713_v21  ;;  %v1715_v33 = vmax.f32 %v1699_v22, 0.0  ;;  %v1831_v63 = vand.u32 127, %v1601_v62 }
 0x4b0   : > { %v1770_v39 = vsel %vm1552_vm10, %v1734_v27, 0.0  ;;  %v1736_v36 = vmul.f32 %v12405_v37, %v1714_v28  ;;  %v1716_v40 = vmax.f32 %v1700_v29, 0.0  ;;  %v1717_v43 = vmax.f32 %v1701_v34, 0.0 }
 0x4b1   : > { %1756 = vadd.xlane.f32.xlu1 %v1755_v52  ;;  %v1773_v41 = vsel %vm1552_vm10, %v1735_v32, 0.0  ;;  %v1737_v42 = vmul.f32 %v12405_v37, %v1715_v33  ;;  %v12450_v22 = vsub.s32 %v1831_v63, %v12387_v0 }
 0x4b2   : > { %v1776_v44 = vsel %vm1552_vm10, %v1736_v36, 0.0  ;;  %v1738_v45 = vmul.f32 %v12405_v37, %v1716_v40  ;;  %v1739_v47 = vmul.f32 %v12405_v37, %v1717_v43 }
 0x4b3   : > { %1765 = vadd.xlane.f32.xlu0 %v1764_v57  ;;  %v1779_v46 = vsel %vm1552_vm10, %v1737_v42, 0.0 }
 0x4b4   : > { %v1782_v48 = vsel %vm1552_vm10, %v1738_v45, 0.0  ;;  %v1785_v30 = vsel %vm1552_vm10, %v1739_v47, 0.0 }
 0x4b5   : > { %1768 = vadd.xlane.f32.xlu1 %v1767_v19  ;;  %v1836_v19 = vadd.s32 4294967288, %v1831_v63 }
 0x4b7   : > { %1759 = vadd.xlane.f32.xlu0 %v1758_v25  ;;  %v12453_v23 = vsub.s32 %v1836_v19, %v12387_v0 }
 0x4b9   : > { %1762 = vadd.xlane.f32.xlu1 %v1761_v31 }
 0x4bb   : > { %1771 = vadd.xlane.f32.xlu0 %v1770_v39 }
 0x4bd   : > { %1774 = vadd.xlane.f32.xlu1 %v1773_v41 }
 0x4bf   : > { %1777 = vadd.xlane.f32.xlu0 %v1776_v44 }
 0x4c1   : > { %1780 = vadd.xlane.f32.xlu1 %v1779_v46 }
 0x4c3   : > { %1783 = vadd.xlane.f32.xlu0 %v1782_v48 }
 0x4c5   : > { %1786 = vadd.xlane.f32.xlu1 %v1785_v30 }
 0x4d9   : > { %1795 = vperm.xlu0 %10421, %v9408_v49  }
 0x534   : > { %v1742_v50 = vpop.xlane.xlu0 %1741 }
 0x536   : > { %v1748_v51 = vpop.xlane.xlu1 %1747 }
 0x538   : > { %v1745_v52 = vpop.xlane.xlu0 %1744 }
 0x53a   : > { %v1751_v53 = vpop.xlane.xlu1 %1750 }
 0x53c   : > { %v1754_v54 = vpop.xlane.xlu0 %1753 }
 0x53e   : > { %v1757_v55 = vpop.xlane.xlu1 %1756 }
 0x540   : > { %v1766_v35 = vpop.xlane.xlu0 %1765 }
 0x542   : > { %v1769_v57 = vpop.xlane.xlu1 %1768 }
 0x544   : > { %v1760_v56 = vpop.xlane.xlu0 %1759 }
 0x546   : > { %v1763_v37 = vpop.xlane.xlu1 %1762 }
 0x548   : > { %v1772_v60 = vpop.xlane.xlu0 %1771 }
 0x54a   : > { %v1775_v17 = vpop.xlane.xlu1 %1774 }
 0x54c   : > { %v1778_v61 = vpop.xlane.xlu0 %1777 }
 0x54e   : > { %v1781_v21 = vpop.xlane.xlu1 %1780 }
 0x550   : > { %v1784_v20 = vpop.xlane.xlu0 %1783 }
 0x552   : > { %v1787_v43 = vpop.xlane.xlu1 %1786 }
 0x558   : > { %v1796_v24 = vpop.permute.xlu0 %1795 }
 0x559   : > { %v12455_v25 = vadd.f32 %v1796_v24, %v1742_v50  ;;  %v12457_v27 = vadd.f32 %v1796_v24, %v1745_v52  ;;  %v12459_v28 = vadd.f32 %v1796_v24, %v1748_v51  ;;  %v12461_v29 = vadd.f32 %v1796_v24, %v1751_v53 }
 0x55a   : > { %v12463_v62 = vadd.f32 %v1796_v24, %v1754_v54  ;;  %v12465_v31 = vadd.f32 %v1796_v24, %v1757_v55  ;;  %v12467_v32 = vadd.f32 %v1796_v24, %v1760_v56  ;;  %v12469_v33 = vadd.f32 %v1796_v24, %v1763_v37 }
 0x55b   : > { %v12471_v34 = vadd.f32 %v1796_v24, %v1766_v35  ;;  %v12473_v39 = vadd.f32 %v1796_v24, %v1769_v57  ;;  %v12475_v36 = vadd.f32 %v1796_v24, %v1772_v60  ;;  %v12477_v40 = vadd.f32 %v1796_v24, %v1775_v17 }
 0x55c   : > { %v12479_v41 = vadd.f32 %v1796_v24, %v1778_v61  ;;  %v12481_v42 = vadd.f32 %v1796_v24, %v1781_v21  ;;  %v1835_v44 = vrot.slane %v12455_v25, %v12450_v22  ;;  %v1840_v45 = vrot.slane %v12457_v27, %v12453_v23 }
 0x55d   : > { %v1846_v46 = vrot.slane %v12459_v28, %v12450_v22  ;;  %v1850_v47 = vrot.slane %v12461_v29, %v12453_v23  ;;  %v12491_v48 = vadd.f32 %v1796_v24, %v1784_v20  ;;  %v12493_v30 = vadd.f32 %v1796_v24, %v1787_v43 }
 0x55e   : > { %v1855_v49 = vrot.slane %v12463_v62, %v12450_v22  ;;  %v1859_v50 = vrot.slane %v12465_v31, %v12453_v23  ;;  %v1842_v51 = vsel %vm1841_vm11, %v1840_v45, %v1835_v44  ;;  %v1864_v53 = vrot.slane %v12467_v32, %v12450_v22 }
 0x55f   : > { %v1851_v52 = vsel %vm1841_vm11, %v1850_v47, %v1846_v46  ;;  %v1868_v54 = vrot.slane %v12469_v33, %v12453_v23  ;;  %v1873_v35 = vrot.slane %v12471_v34, %v12450_v22  ;;  %v1877_v56 = vrot.slane %v12473_v39, %v12453_v23 }
 0x560   : > { %v1860_v55 = vsel %vm1841_vm11, %v1859_v50, %v1855_v49  ;;  %v1882_v57 = vrot.slane %v12475_v36, %v12450_v22  ;;  %v1886_v60 = vrot.slane %v12477_v40, %v12453_v23  ;;  %v1891_v37 = vrot.slane %v12479_v41, %v12450_v22 }
 0x561   : > { %v1895_v61 = vrot.slane %v12481_v42, %v12453_v23  ;;  %v1907_v63 = vsel %vm1906_vm12, %v1851_v52, %v1842_v51  ;;  %v1869_v17 = vsel %vm1841_vm11, %v1868_v54, %v1864_v53  ;;  %v1900_v19 = vrot.slane %v12491_v48, %v12450_v22 }
 0x562   : > { %v1904_v20 = vrot.slane %v12493_v30, %v12453_v23  ;;  %v1909_v21 = vsel %vm1908_vm13, %v1860_v55, %v1907_v63  ;;  %v1878_v24 = vsel %vm1841_vm11, %v1877_v56, %v1873_v35  ;;  %v1887_v44 = vsel %vm1841_vm11, %v1886_v60, %v1882_v57 }
 0x563   : > { %v1911_v43 = vsel %vm1910_vm14, %v1869_v17, %v1909_v21  ;;  %v1896_v46 = vsel %vm1841_vm11, %v1895_v61, %v1891_v37  ;;  %v12536_v53 = vsub.s32 3, %v12387_v0  ;;  %v12539_v54 = vsub.s32 4, %v12387_v0 }
 0x564   : > { %v1913_v45 = vsel %vm1912_vm15, %v1878_v24, %v1911_v43  ;;  %v1905_v49 = vsel %vm1841_vm11, %v1904_v20, %v1900_v19  ;;  %v12542_v55 = vsub.s32 5, %v12387_v0  ;;  %v12545_v35 = vsub.s32 1, %v12387_v0 }
 0x565   : > { %v1915_v47 = vsel %vm1914_vm0, %v1887_v44, %v1913_v45  ;;  %v12551_v61 = vsub.s32 6, %v12387_v0  ;;  %v12562_v45 = vsub.s32 7, %v12387_v0 }
 0x566   : > { %v1917_v50 = vsel %vm1916_vm1, %v1896_v46, %v1915_v47 }
 0x567   : > { %v1919_v51 = vsel %vm1918_vm2, %v1905_v49, %v1917_v50 }
 0x568   : > { %v1922_v52 = vsel %vm1921_vm3, %v1919_v51, -inf }
 0x569   : > { %1923 = vmax.xlane.f32.xlu1 %v1922_v52 }
 0x5f6   : > { %v1924_v56 = vpop.xlane.xlu1 %1923 }
 0x5f7   : > { %v1929_v57 = vrot.slane %v1924_v56, %v12394_v26  ;;  %v1941_v60 = vrot.slane %v1924_v56, %v12536_v53  ;;  %v1945_v37 = vrot.slane %v1924_v56, %v12539_v54  ;;  %v12554_v63 = vrot.slane %v1924_v56, %v12542_v55 }
 0x5f8   : > { %v1933_v20 = vrot.slane %v1924_v56, %v12545_v35  ;;  %v12565_v46 = vrot.slane %v1924_v56, %v12551_v61  ;;  %v1957_v49 = vrot.slane %v1924_v56, %v12562_v45 }
 0x5f9   : > { %v1973_v17 = vsub.f32 %v12469_v33, %v1941_v60  ;;  %v1966_v19 = vsub.f32 %v12455_v25, %v1929_v57  ;;  %v1975_v21 = vsub.f32 %v12473_v39, %v1945_v37  ;;  %v1967_v24 = vsub.f32 %v12457_v27, %v1929_v57 }
 0x5fa   : > { %v1977_v33 = vsub.f32 %v12477_v40, %v12554_v63  ;;  %v12570_v25 = vsub.s32 2, %v12387_v0  ;;  %v1968_v27 = vsub.f32 %v12459_v28, %v1933_v20  ;;  %v1979_v51 = vsub.f32 %v12481_v42, %v12565_v46 }
 0x5fb   : > { %v1996_v43 = vmul.f32 1.442695, %v1973_v17  ;;  %v1982_v44 = vmul.f32 1.442695, %v1966_v19  ;;  %v2000_v47 = vmul.f32 1.442695, %v1975_v21  ;;  %v1969_v40 = vsub.f32 %v12461_v29, %v1933_v20 }
 0x5fc   : > { %v1984_v39 = vmul.f32 1.442695, %v1967_v24  ;;  %v2004_v50 = vmul.f32 1.442695, %v1977_v33  ;;  %v1937_v52 = vrot.slane %v1924_v56, %v12570_v25  ;;  %v1986_v57 = vmul.f32 1.442695, %v1968_v27 }
 0x5fd   : > { %10467 = vpow2.f32 %v1996_v43  ;;  %v2008_v0 = vmul.f32 1.442695, %v1979_v51  ;;  %v1981_v17 = vsub.f32 %v12493_v30, %v1957_v49  ;;  %v1988_v19 = vmul.f32 1.442695, %v1969_v40 }
 0x5fe   : > { %10469 = vpow2.f32 %v1982_v44  ;;  %v1970_v28 = vsub.f32 %v12463_v62, %v1937_v52  ;;  %v1971_v56 = vsub.f32 %v12465_v31, %v1937_v52  ;;  %v1972_v43 = vsub.f32 %v12467_v32, %v1941_v60 }
 0x5ff   : > { %10471 = vpow2.f32 %v2000_v47  ;;  %v2012_v42 = vmul.f32 1.442695, %v1981_v17  ;;  %v1974_v33 = vsub.f32 %v12471_v34, %v1945_v37  ;;  %v1976_v60 = vsub.f32 %v12475_v36, %v12554_v63 }
 0x600   : > { %10473 = vpow2.f32 %v1984_v39  ;;  %v1990_v29 = vmul.f32 1.442695, %v1970_v28  ;;  %v1992_v62 = vmul.f32 1.442695, %v1971_v56  ;;  %v1994_v31 = vmul.f32 1.442695, %v1972_v43 }
 0x601   : > { %10475 = vpow2.f32 %v2004_v50  ;;  %v1998_v32 = vmul.f32 1.442695, %v1974_v33  ;;  %v2002_v34 = vmul.f32 1.442695, %v1976_v60  ;;  %v1978_v37 = vsub.f32 %v12479_v41, %v12565_v46 }
 0x602   : > { %10477 = vpow2.f32 %v1986_v57  ;;  %v1980_v36 = vsub.f32 %v12491_v48, %v1957_v49 }
 0x603   : > { %10479 = vpow2.f32 %v2008_v0  ;;  %v2006_v57 = vmul.f32 1.442695, %v1978_v37 }
 0x604   : > { %10481 = vpow2.f32 %v1988_v19  ;;  %v2010_v40 = vmul.f32 1.442695, %v1980_v36 }
 0x605   : > { %10483 = vpow2.f32 %v2012_v42 }
 0x606   : > { %10485 = vpow2.f32 %v1990_v29 }
 0x607   : > { %v12580_v21 = vpop.eup %10467  ;;  %10487 = vpow2.f32 %v1992_v62 }
 0x608   : > { %v12582_v24 = vpop.eup %10469  ;;  %2052 = vperm.xlu0 %10421, %v12580_v21   ;;  %10489 = vpow2.f32 %v1994_v31 }
 0x609   : > { %2031 = vperm.xlu1 %10422, %v12582_v24   ;;  %v12587_v20 = vpop.eup %10471  ;;  %10491 = vpow2.f32 %v1998_v32 }
 0x60a   : > { %v12589_v30 = vpop.eup %10473  ;;  %10493 = vpow2.f32 %v2002_v34 }
 0x60b   : > { %v12594_v44 = vpop.eup %10475  ;;  %10495 = vpow2.f32 %v2006_v57 }
 0x60c   : > { %2058 = vperm.xlu0 %10421, %v12587_v20   ;;  %v12596_v47 = vpop.eup %10477  ;;  %10497 = vpow2.f32 %v2010_v40 }
 0x60d   : > { %2034 = vperm.xlu1 %10422, %v12589_v30   ;;  %v12601_v39 = vpop.eup %10479 }
 0x60e   : > { %v12603_v27 = vpop.eup %10481 }
 0x60f   : > { %v12609_v50 = vpop.eup %10483 }
 0x610   : > { %2064 = vperm.xlu0 %10421, %v12594_v44   ;;  %v12611_v51 = vpop.eup %10485 }
 0x611   : > { %2037 = vperm.xlu1 %10422, %v12596_v47   ;;  %v12617_v52 = vpop.eup %10487 }
 0x612   : > { %v12621_v63 = vpop.eup %10489 }
 0x613   : > { %v12624_v0 = vpop.eup %10491 }
 0x614   : > { %2070 = vperm.xlu0 %10421, %v12601_v39   ;;  %v12627_v41 = vpop.eup %10493 }
 0x615   : > { %2040 = vperm.xlu1 %10422, %v12603_v27   ;;  %v12630_v46 = vpop.eup %10495 }
 0x616   : > { %v10498_v48 = vpop.eup %10497 }
 0x618   : > { %2076 = vperm.xlu0 %10421, %v12609_v50  }
 0x619   : > { %2043 = vperm.xlu1 %10422, %v12611_v51  }
 0x61d   : > { %2046 = vperm.xlu1 %10422, %v12617_v52  }
 0x621   : > { %2049 = vperm.xlu1 %10422, %v12621_v63  }
 0x625   : > { %2055 = vperm.xlu1 %10422, %v12624_v0  }
 0x629   : > { %2061 = vperm.xlu1 %10422, %v12627_v41  }
 0x62d   : > { %2067 = vperm.xlu1 %10422, %v12630_v46  }
 0x631   : > { %2073 = vperm.xlu1 %10422, %v10498_v48  }
 0x687   : > { %v2053_v42 = vpop.permute.xlu0 %2052 }
 0x688   : > { %v2032_v49 = vpop.permute.xlu1 %2031  ;;  %v2112_v18 = vrot.slane %v2053_v42, %v12453_v23 }
 0x689   : > { %v2081_v15 = vrot.slane %v2032_v49, %v12450_v22 }
 0x68b   : > { %v2059_v56 = vpop.permute.xlu0 %2058 }
 0x68c   : > { %v2035_v17 = vpop.permute.xlu1 %2034 }
 0x68d   : > { %v2085_v57 = vrot.slane %v2035_v17, %v12453_v23 }
 0x68f   : > { %v2065_v31 = vpop.permute.xlu0 %2064 }
 0x690   : > { %v2038_v19 = vpop.permute.xlu1 %2037 }
 0x691   : > { %v2090_v36 = vrot.slane %v2038_v19, %v12450_v22  ;;  %v2086_v19 = vsel %vm1841_vm11, %v2085_v57, %v2081_v15 }
 0x693   : > { %v2071_v60 = vpop.permute.xlu0 %2070 }
 0x694   : > { %v2041_v28 = vpop.permute.xlu1 %2040  ;;  %v2139_v42 = vrot.slane %v2071_v60, %v12453_v23 }
 0x695   : > { %v2094_v32 = vrot.slane %v2041_v28, %v12453_v23 }
 0x697   : > { %v2095_v28 = vsel %vm1841_vm11, %v2094_v32, %v2090_v36  ;;  %v2077_v32 = vpop.permute.xlu0 %2076 }
 0x698   : > { %v2044_v29 = vpop.permute.xlu1 %2043  ;;  %v2150_v49 = vsel %vm1906_vm12, %v2095_v28, %v2086_v19 }
 0x699   : > { %v2099_v59 = vrot.slane %v2044_v29, %v12450_v22 }
 0x69c   : > { %v2047_v62 = vpop.permute.xlu1 %2046 }
 0x69d   : > { %v2103_v34 = vrot.slane %v2047_v62, %v12453_v23  ;;  %v2121_v62 = vrot.slane %v2059_v56, %v12453_v23 }
 0x69f   : > { %v2104_v17 = vsel %vm1841_vm11, %v2103_v34, %v2099_v59 }
 0x6a0   : > { %v2050_v43 = vpop.permute.xlu1 %2049  ;;  %v2151_v56 = vsel %vm1908_vm13, %v2104_v17, %v2150_v49 }
 0x6a1   : > { %v2108_v40 = vrot.slane %v2050_v43, %v12450_v22  ;;  %v2130_v43 = vrot.slane %v2065_v31, %v12453_v23 }
 0x6a3   : > { %v2113_v29 = vsel %vm1841_vm11, %v2112_v18, %v2108_v40  ;;  %v2148_v18 = vrot.slane %v2077_v32, %v12453_v23 }
 0x6a4   : > { %v2056_v33 = vpop.permute.xlu1 %2055  ;;  %v2152_v34 = vsel %vm1910_vm14, %v2113_v29, %v2151_v56 }
 0x6a5   : > { %v2117_v38 = vrot.slane %v2056_v33, %v12450_v22 }
 0x6a8   : > { %v2062_v37 = vpop.permute.xlu1 %2061 }
 0x6a9   : > { %v2126_v16 = vrot.slane %v2062_v37, %v12450_v22  ;;  %v2122_v37 = vsel %vm1841_vm11, %v2121_v62, %v2117_v38 }
 0x6aa   : > { %v2153_v60 = vsel %vm1912_vm15, %v2122_v37, %v2152_v34 }
 0x6ab   : > { %v2131_v59 = vsel %vm1841_vm11, %v2130_v43, %v2126_v16 }
 0x6ac   : > { %v2068_v11 = vpop.permute.xlu1 %2067  ;;  %v2154_v57 = vsel %vm1914_vm0, %v2131_v59, %v2153_v60 }
 0x6ad   : > { %v2135_v33 = vrot.slane %v2068_v11, %v12450_v22 }
 0x6af   : > { %v2140_v31 = vsel %vm1841_vm11, %v2139_v42, %v2135_v33 }
 0x6b0   : > { %v2074_v15 = vpop.permute.xlu1 %2073  ;;  %v2155_v38 = vsel %vm1916_vm1, %v2140_v31, %v2154_v57 }
 0x6b1   : > { %v2144_v11 = vrot.slane %v2074_v15, %v12450_v22 }
 0x6b3   : > { %v2149_v36 = vsel %vm1841_vm11, %v2148_v18, %v2144_v11 }
 0x6b4   : > { %v2156_v40 = vsel %vm1918_vm2, %v2149_v36, %v2155_v38 }
 0x6b5   : > { %v2158_v16 = vsel %vm1921_vm3, %v2156_v40, 0.0  ;;  %v14905_v40 = vmov 0.0  }
 0x6b6   : > { %2159 = vadd.xlane.f32.xlu1 %v2158_v16 }
 0x743   : > { %v2160_v28 = vpop.xlane.xlu1 %2159 }
 0x744   : > { %10499 = vrcp.f32 %v2160_v28 }
 0x74e   : > { %v10500_v62 = vpop.eup %10499 }
 0x74f   : > { %v2174_v17 = vrot.slane %v10500_v62, %v12570_v25  ;;  %v2170_v19 = vrot.slane %v10500_v62, %v12545_v35  ;;  %v2194_v43 = vrot.slane %v10500_v62, %v12562_v45  ;;  %v2182_v29 = vrot.slane %v10500_v62, %v12539_v54 }
 0x750   : > { %v2190_v18 = vrot.slane %v10500_v62, %v12551_v61  ;;  %v2166_v38 = vrot.slane %v10500_v62, %v12394_v26 }
 0x751   : > { %v12670_v33 = vmul.f32 %v12611_v51, %v2174_v17  ;;  %v12673_v42 = vmul.f32 %v12617_v52, %v2174_v17  ;;  %v12676_v49 = vmul.f32 %v12596_v47, %v2170_v19  ;;  %v12679_v32 = vmul.f32 %v12603_v27, %v2170_v19 }
 0x752   : > { %v12681_v37 = vmul.f32 %v10498_v48, %v2194_v43  ;;  %v12684_v56 = vmul.f32 %v12609_v50, %v2194_v43  ;;  %v12691_v52 = vmul.f32 %v12624_v0, %v2182_v29  ;;  %v12696_v48 = vmul.f32 %v12587_v20, %v2182_v29 }
 0x753   : > { %14895 = vst [vmem:[#allocation68_spill] sm:$0xff] %v12670_v33  ;;  %14896 = vst [vmem:[#allocation69_spill] sm:$0xff] %v12673_v42  ;;  %v2221_v59 = vpack.c.bf16 %v12673_v42, %v12670_v33  ;;  %v2220_v51 = vpack.c.bf16 %v12679_v32, %v12676_v49  ;;  %v12702_v11 = vmul.f32 %v12630_v46, %v2190_v18 }
 0x754   : > { %14897 = vst [vmem:[#allocation70_spill] sm:$0xff] %v12676_v49  ;;  %14898 = vst [vmem:[#allocation71_spill] sm:$0xff] %v12679_v32  ;;  %v2226_v27 = vpack.c.bf16 %v12684_v56, %v12681_v37  ;;  %v2223_v31 = vpack.c.bf16 %v12696_v48, %v12691_v52  ;;  %v12705_v60 = vmul.f32 %v12601_v39, %v2190_v18 }
 0x755   : > { %14899 = vst [vmem:[#allocation72_spill] sm:$0xff] %v12681_v37  ;;  %14900 = vst [vmem:[#allocation73_spill] sm:$0xff] %v12684_v56  ;;  %v2364_v34 = vunpack.c.l.b16 %v2221_v59  ;;  %v2297_v47 = vunpack.c.h.b16 %v2220_v51  ;;  %v2365_v50 = vunpack.c.h.b16 %v2221_v59  ;;  %v12709_v20 = vcombine.low %v12259_v5, %v12261_v6  ;;  %v10656_v56 = vld [vmem:[#allocation4 + $0x18] sm:$0xff] }
 0x756   : > { %14901 = vst [vmem:[#allocation74_spill] sm:$0xff] %v12691_v52  ;;  %14902 = vst [vmem:[#allocation75_spill] sm:$0xff] %v12696_v48  ;;  %v2704_v15 = vunpack.c.l.b16 %v2226_v27  ;;  %v2500_v0 = vunpack.c.l.b16 %v2223_v31  ;;  %v2501_v57 = vunpack.c.h.b16 %v2223_v31  ;;  %v2225_v36 = vpack.c.bf16 %v12705_v60, %v12702_v11 }
 0x757   : > { %2367 = vperm.xlu0 %10421, %v2364_v34   ;;  %2302 = vperm.xlu1 %10422, %v2297_v47   ;;  %14903 = vst [vmem:[#allocation76_spill] sm:$0xff] %v12702_v11  ;;  %14904 = vst [vmem:[#allocation77_spill] sm:$0xff] %v12705_v60  ;;  %v12717_v39 = vmul.f32 %v12582_v24, %v2166_v38  ;;  %v12720_v16 = vmul.f32 %v12589_v30, %v2166_v38  ;;  %v2296_v30 = vunpack.c.l.b16 %v2220_v51  ;;  %v14913_v31 = vmov 0  }
 0x758   : > { %9775 = vmatpush3.bf16.msra.mxu0 %v12709_v20  ;;  %v2636_v46 = vunpack.c.l.b16 %v2225_v36  ;;  %v2637_v5 = vunpack.c.h.b16 %v2225_v36  ;;  %v2178_v17 = vrot.slane %v10500_v62, %v12536_v53  ;;  %v2186_v59 = vrot.slane %v10500_v62, %v12542_v55 }
 0x759   : > { %9786 = vmatprep.subr.bf16.mxu0 %v14905_v40  ;;  %14906 = vst [vmem:[#allocation78_spill] sm:$0xff] %v12717_v39  ;;  %14907 = vst [vmem:[#allocation79_spill] sm:$0xff] %v12720_v16  ;;  %v2219_v6 = vpack.c.bf16 %v12720_v16, %v12717_v39  ;;  %v12736_v34 = vcombine.low %v12251_v1, %v12253_v2 }
 0x75a   : > { %v12726_v43 = vmul.f32 %v12621_v63, %v2178_v17  ;;  %v12729_v24 = vmul.f32 %v12580_v21, %v2178_v17  ;;  %v12740_v47 = vmul.f32 %v12627_v41, %v2186_v59  ;;  %v12743_v21 = vmul.f32 %v12594_v44, %v2186_v59  ;;  %v1508_v44 = vld [vmem:[#allocation3] sm:$0xff] }
 0x75b   : > { %2370 = vperm.xlu0 %10421, %v2365_v50   ;;  %2707 = vperm.xlu1 %10422, %v2704_v15   ;;  %v2228_v28 = vunpack.c.l.b16 %v2219_v6  ;;  %v2229_v19 = vunpack.c.h.b16 %v2219_v6  ;;  %v2705_v41 = vunpack.c.h.b16 %v2226_v27  ;;  %v1525_v50 = vld [vmem:[#allocation11] sm:$0xff]  ;;  %v3147_v15 = vstv %s12749_s6  ;;  %s8975_s6 = scalar_lea.sflag [#allocation41], %s12201_s2 }
 0x75c   : > { %14908 = vst [vmem:[#allocation80_spill] sm:$0xff] %v12726_v43  ;;  %14909 = vst [vmem:[#allocation81_spill] sm:$0xff] %v12729_v24  ;;  %v2222_v29 = vpack.c.bf16 %v12729_v24, %v12726_v43  ;;  %9763 = vmatpush3.bf16.msra.mxu1 %v12736_v34  ;;  %v2224_v62 = vpack.c.bf16 %v12743_v21, %v12740_v47  ;;  %vm3148_vm4 = vcmp.gt.s32.totalorder %v1525_v50, %v3147_v15  ;;  %v10660_v24 = vld [vmem:[#allocation4 + $0x30] sm:$0xff] }
 0x75d   : > { %14911 = vst [vmem:[#allocation82_spill] sm:$0xff] %v12740_v47  ;;  %14912 = vst [vmem:[#allocation83_spill] sm:$0xff] %v12743_v21  ;;  %9768 = vmatprep.subr.bf16.mxu1 %v14905_v40  ;;  %v3149_v18 = vsel %vm3148_vm4, 1, %v14913_v31  ;;  %v12759_v27 = vcombine.low %v12267_v9, %v12269_v10  ;;  %v12771_v9 = vcombine.low %v12275_v13, %v12277_v14  ;;  %v10425_v13 = vld [vmem:[#allocation26] sm:$0xff]  }
 0x75e   : > { %v2432_v63 = vunpack.c.l.b16 %v2222_v29  ;;  %v2433_v51 = vunpack.c.h.b16 %v2222_v29  ;;  %v2568_v1 = vunpack.c.l.b16 %v2224_v62  ;;  %v2569_v2 = vunpack.c.h.b16 %v2224_v62 }
 0x75f   : > { %2503 = vperm.xlu0 %10421, %v2500_v0  }
 0x763   : > { %2506 = vperm.xlu0 %10421, %v2501_v57  }
 0x767   : > { %2639 = vperm.xlu0 %10421, %v2636_v46  }
 0x76b   : > { %2642 = vperm.xlu0 %10421, %v2637_v5  }
 0x76f   : > { %2231 = vperm.xlu0 %10421, %v2228_v28  }
 0x773   : > { %2234 = vperm.xlu0 %10421, %v2229_v19  }
 0x777   : > { %2299 = vperm.xlu0 %10421, %v2296_v30  }
 0x77b   : > { %2435 = vperm.xlu0 %10421, %v2432_v63  }
 0x77f   : > { %2438 = vperm.xlu0 %10421, %v2433_v51  }
 0x783   : > { %2571 = vperm.xlu0 %10421, %v2568_v1  }
 0x787   : > { %2574 = vperm.xlu0 %10421, %v2569_v2   ;;  %v10426_v2 = vld [vmem:[#allocation26 + $0x8] sm:$0xff]  }
 0x78b   : > { %2710 = vperm.xlu0 %10421, %v2705_v41  }
 0x78f   : > { %3057 = vrot.lane.b32.xlu0 %v1508_v44, %s11485_s8 }
 0x793   : > { %3151 = vperm.xlu0 %10421, %v3149_v18   ;;  %v12790_v18 = vcombine.low %v12255_v3, %v12257_v4 }
 0x795   : > { %14914 = vst [vmem:[#allocation84_spill] sm:$0xff] %v12790_v18 }
 0x7d6   : > { %v2368_v0 = vpop.permute.xlu0 %2367 }
 0x7d7   : > { %v2375_v36 = vrot.slane %v2368_v0, %v12450_v22  ;;  %v2303_v0 = vpop.permute.xlu1 %2302 }
 0x7da   : > { %v2371_v57 = vpop.permute.xlu0 %2370 }
 0x7db   : > { %v2379_v38 = vrot.slane %v2371_v57, %v12453_v23 }
 0x7dd   : > { %v2380_v46 = vsel %vm1841_vm11, %v2379_v38, %v2375_v36 }
 0x7de   : > { %v2381_v5 = vpack.c.b16 %v2380_v46, %v2380_v46  ;;  %v2504_v6 = vpop.permute.xlu0 %2503  ;;  %v2311_v46 = vrot.slane %v2303_v0, %v12453_v23 }
 0x7df   : > { %v2511_v17 = vrot.slane %v2504_v6, %v12450_v22 }
 0x7e0   : > { %9777 = vmatmul.mubr.msk.bf16.vlgmr.msra.gmra.mrb[4].mxu0 %vm1921_vm3, %v2381_v5  ;;  %v12807_v5 = vcombine.low %v12263_v7, %v12265_v8  ;;  %v14915_v7 = vld [vmem:[#allocation64_spill] sm:$0xff] }
 0x7e1   : > { %9787 = vmatpush3.bf16.msra.mxu0 %v12759_v27  ;;  %9788 = vmatprep.mubr.msk.bf16.mxu0 %vm11482_vm9, %v14905_v40  ;;  %v12819_v8 = vcombine.low %v14915_v7, %v12273_v12  ;;  %v14916_v12 = vld [vmem:[#allocation66_spill] sm:$0xff] }
 0x7e2   : > { %v2507_v28 = vpop.permute.xlu0 %2506  ;;  %9798 = vmatprep.subr.bf16.mxu0 %v14905_v40 }
 0x7e3   : > { %v2515_v19 = vrot.slane %v2507_v28, %v12453_v23 }
 0x7e5   : > { %v2516_v30 = vsel %vm1841_vm11, %v2515_v19, %v2511_v17 }
 0x7e6   : > { %v2517_v10 = vpack.c.b16 %v2516_v30, %v2516_v30  ;;  %v2640_v29 = vpop.permute.xlu0 %2639 }
 0x7e7   : > { %v2647_v63 = vrot.slane %v2640_v29, %v12450_v22 }
 0x7e8   : > { %9789 = vmatmul.mubr.msk.bf16.vlgmr.msra.gmra.mrb[8].mxu0 %vm1921_vm3, %v2517_v10 }
 0x7e9   : > { %9799 = vmatpush3.bf16.msra.mxu0 %v12771_v9  ;;  %9800 = vmatprep.mubr.msk.bf16.mxu0 %vm11482_vm9, %v14905_v40 }
 0x7ea   : > { %v2643_v59 = vpop.permute.xlu0 %2642  ;;  %9810 = vmatprep.subr.bf16.mxu0 %v14905_v40 }
 0x7eb   : > { %v2651_v51 = vrot.slane %v2643_v59, %v12453_v23 }
 0x7ed   : > { %v2652_v62 = vsel %vm1841_vm11, %v2651_v51, %v2647_v63 }
 0x7ee   : > { %v2653_v14 = vpack.c.b16 %v2652_v62, %v2652_v62  ;;  %v2232_v1 = vpop.permute.xlu0 %2231 }
 0x7ef   : > { %v2239_v50 = vrot.slane %v2232_v1, %v12450_v22 }
 0x7f0   : > { %9801 = vmatmul.mubr.msk.bf16.vlgmr.msra.gmra.mrb[12].mxu0 %vm1921_vm3, %v2653_v14  ;;  %v14917_v14 = vld [vmem:[#allocation65_spill] sm:$0xff] }
 0x7f1   : > { %9811 = vmatpush3.bf16.msra.mxu0 %v10425_v13  ;;  %9814 = vmatprep.mubr.msk.bf16.mxu0 %vm11482_vm9, %v14905_v40  ;;  %v12831_v1 = vcombine.low %v14917_v14, %v14916_v12 }
 0x7f2   : > { %v2235_v41 = vpop.permute.xlu0 %2234  ;;  %9812 = vmatprep.subr.bf16.mxu0 %v14905_v40 }
 0x7f3   : > { %v2243_v15 = vrot.slane %v2235_v41, %v12453_v23 }
 0x7f5   : > { %v2244_v44 = vsel %vm1841_vm11, %v2243_v15, %v2239_v50  ;;  %9813 = vmatpush3.bf16.msra.mxu0 %v10426_v2  ;;  %v2708_v2 = vpop.permute.xlu1 %2707 }
 0x7f6   : > { %v2245_v57 = vpack.c.b16 %v2244_v44, %v2244_v44  ;;  %v2300_v36 = vpop.permute.xlu0 %2299  ;;  %9826 = vmatprep.subr.bf16.mxu0 %v14905_v40  ;;  %v2715_v15 = vrot.slane %v2708_v2, %v12450_v22 }
 0x7f7   : > { %v2307_v38 = vrot.slane %v2300_v36, %v12450_v22  ;;  %v10429_v36 = vld [vmem:[#allocation29] sm:$0xff]  }
 0x7f8   : > { %9765 = vmatmul.mubr.msk.bf16.vlgmr.msra.gmra.mrb[0].mxu1 %vm1921_vm3, %v2245_v57  ;;  %9815 = vmatmul.mubr.msk.bf16.vlgmr.msra.gmra.mrb[16].mxu0 %vm1552_vm10, %v12377_v58  ;;  %v10427_v57 = vld [vmem:[#allocation30] sm:$0xff]  }
 0x7f9   : > { %9769 = vmatpush3.bf16.msra.mxu1 %v12790_v18  ;;  %9770 = vmatprep.mubr.msk.bf16.mxu1 %vm11482_vm9, %v14905_v40  ;;  %v2312_v4 = vsel %vm1841_vm11, %v2311_v46, %v2307_v38  ;;  %v10428_v38 = vld [vmem:[#allocation30 + $0x8] sm:$0xff]   ;;  %v2864_v46 = vld [vmem:[%s12204_s22] sm:$0xf] }
 0x7fa   : > { %v2436_v3 = vpop.permute.xlu0 %2435  ;;  %9780 = vmatprep.subr.bf16.mxu1 %v14905_v40  ;;  %9828 = vmatprep.mubr.msk.bf16.mxu0 %vm11482_vm9, %v14905_v40  ;;  %v2313_v6 = vpack.c.b16 %v2312_v4, %v2312_v4 }
 0x7fb   : > { %v2443_v19 = vrot.slane %v2436_v3, %v12450_v22  ;;  %9827 = vmatpush3.bf16.msra.mxu0 %v10429_v36 }
 0x7fc   : > { %9840 = vmatprep.subr.bf16.mxu0 %v14905_v40 }
 0x7fe   : > { %v2439_v28 = vpop.permute.xlu0 %2438 }
 0x7ff   : > { %v2447_v17 = vrot.slane %v2439_v28, %v12453_v23 }
 0x800   : > { %9771 = vmatmul.mubr.msk.bf16.vlgmr.msra.gmra.mrb[4].mxu1 %vm1921_vm3, %v2313_v6  ;;  %9829 = vmatmul.mubr.msk.bf16.vlgmr.msra.gmra.mrb[20].mxu0 %vm1921_vm3, %v2864_v46 }
 0x801   : > { %9781 = vmatpush3.bf16.msra.mxu1 %v12807_v5  ;;  %9782 = vmatprep.mubr.msk.bf16.mxu1 %vm11482_vm9, %v14905_v40  ;;  %v2448_v10 = vsel %vm1841_vm11, %v2447_v17, %v2443_v19 }
 0x802   : > { %v2572_v30 = vpop.permute.xlu0 %2571  ;;  %9792 = vmatprep.subr.bf16.mxu1 %v14905_v40  ;;  %v2449_v29 = vpack.c.b16 %v2448_v10, %v2448_v10  ;;  %9844 = vmatprep.mubr.msk.bf16.mxu0 %vm11482_vm9, %v14905_v40 }
 0x803   : > { %v2579_v51 = vrot.slane %v2572_v30, %v12450_v22 }
 0x806   : > { %v2575_v59 = vpop.permute.xlu0 %2574 }
 0x807   : > { %v2583_v63 = vrot.slane %v2575_v59, %v12453_v23 }
 0x808   : > { %9783 = vmatmul.mubr.msk.bf16.vlgmr.msra.gmra.mrb[8].mxu1 %vm1921_vm3, %v2449_v29 }
 0x809   : > { %9793 = vmatpush3.bf16.msra.mxu1 %v12819_v8  ;;  %9794 = vmatprep.mubr.msk.bf16.mxu1 %vm11482_vm9, %v14905_v40  ;;  %v2584_v62 = vsel %vm1841_vm11, %v2583_v63, %v2579_v51  ;;  %v9425_v51 = vld [vmem:[#allocation27] ss:$0 sm:$0xff] }
 0x80a   : > { %9804 = vmatprep.subr.bf16.mxu1 %v14905_v40  ;;  %v2711_v13 = vpop.permute.xlu0 %2710  ;;  %v2585_v41 = vpack.c.b16 %v2584_v62, %v2584_v62 }
 0x80b   : > { %v2719_v50 = vrot.slane %v2711_v13, %v12453_v23 }
 0x80d   : > { %v2720_v44 = vsel %vm1841_vm11, %v2719_v50, %v2715_v15 }
 0x80e   : > { %v2721_v0 = vpack.c.b16 %v2720_v44, %v2720_v44 }
 0x810   : > { %9795 = vmatmul.mubr.msk.bf16.vlgmr.msra.gmra.mrb[12].mxu1 %vm1921_vm3, %v2585_v41 }
 0x811   : > { %9805 = vmatpush3.bf16.msra.mxu1 %v12831_v1  ;;  %9806 = vmatprep.mubr.msk.bf16.mxu1 %vm11482_vm9, %v14905_v40 }
 0x812   : > { %9818 = vmatprep.subr.bf16.mxu1 %v14905_v40 }
 0x818   : > { %9807 = vmatmul.mubr.msk.bf16.vlgmr.msra.gmra.mrb[16].mxu1 %vm1921_vm3, %v2721_v0 }
 0x819   : > { %9822 = vmatprep.mubr.msk.bf16.mxu1 %vm11482_vm9, %v14905_v40  ;;  %9819 = vmatpush3.bf16.msra.mxu1 %v10427_v57 }
 0x81a   : > { %9820 = vmatprep.subr.bf16.mxu1 %v14905_v40 }
 0x81d   : > { %9821 = vmatpush3.bf16.msra.mxu1 %v10428_v38 }
 0x81e   : > { %9832 = vmatprep.subr.bf16.mxu1 %v14905_v40 }
 0x8b3   : > { %v2425_v3 = vpop.f32.mrb[4].mxu0 }
 0x8b4   : > { %v9778_v4 = vpop.f32.mrb[5].mxu0  ;;  %v2850_v46 = vrot.slane %v2425_v3, 6 }
 0x8b5   : > { %v2428_v6 = vpop.f32.mrb[6].mxu0 }
 0x8b6   : > { %v9779_v28 = vpop.f32.mrb[7].mxu0 }
 0x8bb   : > { %v2561_v17 = vpop.f32.mrb[8].mxu0 }
 0x8bc   : > { %v9790_v19 = vpop.f32.mrb[9].mxu0 }
 0x8bd   : > { %v2564_v30 = vpop.f32.mrb[10].mxu0 }
 0x8be   : > { %v9791_v10 = vpop.f32.mrb[11].mxu0 }
 0x8c3   : > { %v2697_v7 = vpop.f32.mrb[12].mxu0 }
 0x8c4   : > { %v9802_v29 = vpop.f32.mrb[13].mxu0 }
 0x8c5   : > { %v2700_v59 = vpop.f32.mrb[14].mxu0 }
 0x8c6   : > { %v9803_v63 = vpop.f32.mrb[15].mxu0 }
 0x8c7   : > { %v2854_v63 = vrot.slane %v2561_v17, 4 }
 0x8cb   : > { %v2289_v62 = vpop.f32.mrb[0].mxu1  ;;  %v2828_v13 = vpop.f32.mrb[16].mxu0 }
 0x8cc   : > { %v9766_v12 = vpop.f32.mrb[1].mxu1  ;;  %v2829_v14 = vadd.f32 %v9425_v51, %v2828_v13  ;;  %v9816_v2 = vpop.f32.mrb[17].mxu0 }
 0x8cd   : > { %v2292_v41 = vpop.f32.mrb[2].mxu1  ;;  %v2831_v50 = vpop.f32.mrb[18].mxu0 }
 0x8ce   : > { %v9767_v15 = vpop.f32.mrb[3].mxu1  ;;  %v9429_v44 = vmul.f32 -1.442695, %v2829_v14  ;;  %v9817_v0 = vpop.f32.mrb[19].mxu0 }
 0x8d0   : > { %10501 = vpow2.f32 %v9429_v44 }
 0x8d3   : > { %v2357_v57 = vpop.f32.mrb[4].mxu1 }
 0x8d4   : > { %v2848_v36 = vrot.slane %v2357_v57, 7  ;;  %v9772_v38 = vpop.f32.mrb[5].mxu1 }
 0x8d5   : > { %v2360_v4 = vpop.f32.mrb[6].mxu1 }
 0x8d6   : > { %v2849_v6 = vsel %vm1906_vm12, %v2848_v36, %v2289_v62  ;;  %v9773_v28 = vpop.f32.mrb[7].mxu1  ;;  %v2858_v62 = vrot.slane %v2697_v7, 2  ;;  %v10431_v7 = vld [vmem:[#allocation32 + $0x8] sm:$0xff]  }
 0x8d7   : > { %v2851_v19 = vsel %vm1908_vm13, %v2850_v46, %v2849_v6 }
 0x8da   : > { %v10502_v30 = vpop.eup %10501 }
 0x8db   : > { %v2493_v10 = vpop.f32.mrb[8].mxu1  ;;  %v2837_v13 = vadd.f32 1.0, %v10502_v30  ;;  %v10430_v30 = vld [vmem:[#allocation32] sm:$0xff]  }
 0x8dc   : > { %v2852_v29 = vrot.slane %v2493_v10, 5  ;;  %v9784_v59 = vpop.f32.mrb[9].mxu1 }
 0x8dd   : > { %v2496_v51 = vpop.f32.mrb[10].mxu1  ;;  %10503 = vrcp.f32 %v2837_v13 }
 0x8de   : > { %v2853_v12 = vsel %vm1910_vm14, %v2852_v29, %v2851_v19  ;;  %v9785_v14 = vpop.f32.mrb[11].mxu1  ;;  %v2970_v29 = vpop.f32.mrb[20].mxu0 }
 0x8df   : > { %v2855_v2 = vsel %vm1912_vm15, %v2854_v63, %v2853_v12  ;;  %v9830_v59 = vpop.f32.mrb[21].mxu0 }
 0x8e0   : > { %v2973_v63 = vpop.f32.mrb[22].mxu0 }
 0x8e1   : > { %v9831_v51 = vpop.f32.mrb[23].mxu0  ;;  %v10432_v63 = vld [vmem:[#allocation15] sm:$0xff]  }
 0x8e2   : > { %v10433_v51 = vld [vmem:[#allocation15 + $0x8] sm:$0xff]  }
 0x8e3   : > { %v2629_v3 = vpop.f32.mrb[12].mxu1 }
 0x8e4   : > { %v2856_v41 = vrot.slane %v2629_v3, 3  ;;  %v9796_v50 = vpop.f32.mrb[13].mxu1 }
 0x8e5   : > { %v2632_v15 = vpop.f32.mrb[14].mxu1 }
 0x8e6   : > { %v2857_v44 = vsel %vm1914_vm0, %v2856_v41, %v2855_v2  ;;  %v9797_v0 = vpop.f32.mrb[15].mxu1  ;;  %v9435_v41 = vld [vmem:[#allocation33] ss:$0 sm:$0xff]  ;;  %v9439_v15 = vld [vmem:[#allocation35] ss:$0 sm:$0xff] }
 0x8e7   : > { %v2859_v57 = vsel %vm1916_vm1, %v2858_v62, %v2857_v44  ;;  %v10504_v17 = vpop.eup %10503 }
 0x8eb   : > { %v2765_v36 = vpop.f32.mrb[16].mxu1 }
 0x8ec   : > { %v2860_v38 = vrot.slane %v2765_v36, 1  ;;  %v9808_v46 = vpop.f32.mrb[17].mxu1 }
 0x8ed   : > { %v2768_v4 = vpop.f32.mrb[18].mxu1 }
 0x8ee   : > { %v2861_v6 = vsel %vm1918_vm2, %v2860_v38, %v2859_v57  ;;  %v9809_v28 = vpop.f32.mrb[19].mxu1 }
 0x8ef   : > { %v2863_v19 = vadd.f32 %v10504_v17, %v2861_v6 }
 0x8f1   : > { %v2867_v10 = vpack.c.bf16 %v2863_v19, %v2863_v19 }
 0x8f3   : > { %9823 = vmatmul.mubr.msk.bf16.vlgmr.msra.gmra.mrb[20].mxu1 %vm1552_vm10, %v2867_v10  ;;  %v12870_v10 = vpop.permute.xlu0 %3057 }
 0x8f4   : > { %9833 = vmatpush3.bf16.msra.mxu1 %v10430_v30  ;;  %9836 = vmatprep.mubr.msk.bf16.mxu1 %vm11482_vm9, %v14905_v40  ;;  %v10651_v30 = vld [vmem:[#allocation2] sm:$0xff] }
 0x8f5   : > { %9834 = vmatprep.subr.bf16.mxu1 %v14905_v40  ;;  %3155 = vrot.lane.b32.xlu0 %v10651_v30, %s11487_s25 }
 0x8f8   : > { %9835 = vmatpush3.bf16.msra.mxu1 %v10431_v7 }
 0x8f9   : > { %9848 = vmatprep.subr.bf16.mxu1 %v14905_v40 }
 0x8fb   : > { %9837 = vmatmul.mubr.msk.bf16.vlgmr.msra.gmra.mrb[24].mxu1 %vm1552_vm10, %v12377_v58 }
 0x8fc   : > { %9852 = vmatprep.mubr.msk.bf16.mxu1 %vm11482_vm9, %v14905_v40  ;;  %9849 = vmatpush3.bf16.msra.mxu1 %v10432_v63 }
 0x8fd   : > { %9850 = vmatprep.subr.bf16.mxu1 %v14905_v40 }
 0x900   : > { %9851 = vmatpush3.bf16.msra.mxu1 %v10433_v51 }
 0x901   : > { %9862 = vmatprep.subr.bf16.mxu1 %v14905_v40 }
 0x9c6   : > { %v2921_v13 = vpop.f32.mrb[20].mxu1 }
 0x9c7   : > { %v2971_v12 = vadd.f32 %v2970_v29, %v2921_v13  ;;  %v9824_v14 = vpop.f32.mrb[21].mxu1 }
 0x9c8   : > { %v2924_v2 = vpop.f32.mrb[22].mxu1 }
 0x9c9   : > { %v9825_v3 = vpop.f32.mrb[23].mxu1  ;;  %v2983_v50 = vadd.f32 %v9435_v41, %v2971_v12  ;;  %v12879_v12 = vpop.permute.xlu0 %3151 }
 0x9ca   : > { %14918 = vst [vmem:[#allocation64_spill] sm:$0xff] %v12879_v12  ;;  %vm3153_vm5 = vcmp.eq.s32.totalorder %v12879_v12, 1 }
 0x9cd   : > { %v3156_v2 = vpop.permute.xlu0 %3155 }
 0x9ce   : > { %v3034_v62 = vpop.f32.mrb[24].mxu1 }
 0x9cf   : > { %v3040_v44 = vadd.f32 %v3034_v62, %v2983_v50  ;;  %v9838_v0 = vpop.f32.mrb[25].mxu1 }
 0x9d0   : > { %v3037_v57 = vpop.f32.mrb[26].mxu1 }
 0x9d1   : > { %v3048_v58 = vadd.f32 %v9439_v15, %v3040_v44  ;;  %v9839_v36 = vpop.f32.mrb[27].mxu1  ;;  %v9449_v15 = vld [vmem:[#allocation17] ss:$0 sm:$0xff] }
 0x9d3   : > { %10505 = vtanh.f32 %v3048_v58  ;;  %v9440_v38 = vmul.f32 -1.442695, %v3048_v58 }
 0x9d5   : > { %10507 = vpow2.f32 %v9440_v38 }
 0x9dd   : > { %v10506_v17 = vpop.eup %10505 }
 0x9de   : > { %3062 = vrot.lane.b32.xlu1 %v10506_v17, %s14806_s24  ;;  %v14920_v17 = vld [vmem:[#allocation67_spill] sm:$0xff] }
 0x9df   : > { %v10508_v46 = vpop.eup %10507 }
 0x9e0   : > { %v3052_v4 = vadd.f32 1.0, %v10508_v46 }
 0x9e2   : > { %10509 = vrcp.f32 %v3052_v4 }
 0x9ec   : > { %v10510_v6 = vpop.eup %10509 }
 0x9ed   : > { %v3060_v7 = vmul.f32 %v10510_v6, %v12870_v10 }
 0xa50   : > { %v3063_v28 = vpop.permute.xlu1 %3062 }
 0xa51   : > { %v3065_v19 = vmul.f32 %v10510_v6, %v3063_v28 }
 0xa53   : > { %3067 = vrot.lane.b32.xlu1 %v3065_v19, %s11485_s8 }
 0xac5   : > { %v3068_v29 = vpop.permute.xlu1 %3067 }
 0xac6   : > { %v12873_v59 = vadd.f32 %v3068_v29, %v3060_v7 }
 0xac8   : > { %10511 = vtanh.f32 %v12873_v59 }
 0xad2   : > { %v10512_v13 = vpop.eup %10511 }
 0xad3   : > { %3073 = vrot.lane.b32.xlu1 %v10512_v13, %s14806_s24 }
 0xb45   : > { %v3074_v14 = vpop.permute.xlu1 %3073 }
 0xb46   : > { %v12881_v3 = vmul.f32 %v10510_v6, %v3074_v14  ;;  %v10652_v14 = vld [vmem:[#allocation4 + $0x8] sm:$0xff] }
 0xb48   : > { %v12887_v41 = vsel %vm3153_vm5, %v12881_v3, %v3156_v2 }
 0xb49   : > { %14919 = vst [vmem:[#allocation66_spill] sm:$0xff] %v12887_v41  ;;  %v3440_v50 = vpack.c.bf16 %v12887_v41, %v12887_v41 }
 0xb4b   : > { %3453 = vrot.lane.b32.xlu1 %v3440_v50, %s11485_s8  ;;  %v10653_v50 = vld [vmem:[#allocation4] sm:$0xff] }
 0xbbd   : > { %v12892_v62 = vpop.permute.xlu1 %3453 }
 0xbbe   : > { %9853 = vmatmul.mubr.msk.bf16.vlgmr.msra.gmra.mrb[28].mxu1 %vm1552_vm10, %v12892_v62 }
 0xbbf   : > { %9863 = vmatpush3.bf16.msra.mxu1 %v12790_v18  ;;  %9864 = vmatprep.mubr.msk.bf16.mxu1 %vm11482_vm9, %v14905_v40 }
 0xbc0   : > { %9874 = vmatprep.subr.bf16.mxu1 %v14905_v40 }
 0xc91   : > { %v3504_v44 = vpop.f32.mrb[28].mxu1 }
 0xc92   : > { %v3505_v0 = vadd.f32 %v9449_v15, %v3504_v44  ;;  %v9854_v57 = vpop.f32.mrb[29].mxu1 }
 0xc93   : > { %v3507_v58 = vpop.f32.mrb[30].mxu1 }
 0xc94   : > { %v3511_v36 = vcombine.high %v3505_v0, %v3505_v0  ;;  %v3518_v38 = vrot.slane %v3505_v0, %v14920_v17  ;;  %v9855_v46 = vpop.f32.mrb[31].mxu1  ;;  %v10654_v58 = vld [vmem:[#allocation4 + $0x20] sm:$0xff] }
 0xc96   : > { %v3525_v4 = vrot.slane %v3511_v36, %v14920_v17  ;;  %v3526_v6 = vcombine.high %v3518_v38, %v3518_v38  ;;  %v3534_v28 = vrot.slane %v3518_v38, %v14920_v17 }
 0xc98   : > { %v3527_v19 = vcombine.high %v3525_v4, %v3525_v4  ;;  %v3541_v30 = vrot.slane %v3525_v4, %v14920_v17  ;;  %v3548_v7 = vrot.slane %v3526_v6, %v14920_v17  ;;  %v3556_v29 = vcombine.high %v3534_v28, %v3534_v28  ;;  %v10655_v6 = vld [vmem:[#allocation4 + $0x10] sm:$0xff] }
 0xc99   : > { %v3563_v63 = vrot.slane %v3534_v28, %v12394_v26 }
 0xc9a   : > { %v3558_v51 = vcombine.high %v3548_v7, %v3548_v7  ;;  %v3571_v13 = vrot.slane %v3556_v29, %v12394_v26  ;;  %v3567_v44 = vrot.slane %v3548_v7, %v12394_v26  ;;  %v3579_v0 = vrot.slane %v3541_v30, %v12394_v26  ;;  %v12911_v7 = vld [vmem:[#allocation18] ss:$0 sm:$0xff] }
 0xc9b   : > { %v3601_v2 = vadd.f32 %v10652_v14, %v3563_v63  ;;  %v3600_v15 = vadd.f32 %v10653_v50, %v3563_v63  ;;  %v3555_v57 = vrot.slane %v3527_v19, %v14920_v17  ;;  %v10657_v14 = vld [vmem:[#allocation4 + $0x40] sm:$0xff]  ;;  %v10658_v63 = vld [vmem:[#allocation4 + $0x28] sm:$0xff] }
 0xc9c   : > { %v3604_v36 = vadd.f32 %v10654_v58, %v3571_v13  ;;  %v3575_v38 = vrot.slane %v3558_v51, %v12394_v26  ;;  %v3602_v28 = vadd.f32 %v10655_v6, %v3567_v44  ;;  %v3603_v29 = vadd.f32 %v10656_v56, %v3567_v44 }
 0xc9d   : > { %v3617_v46 = vmax.f32 %v3601_v2, 0.0  ;;  %v3616_v4 = vmax.f32 %v3600_v15, 0.0  ;;  %v3608_v21 = vadd.f32 %v10657_v14, %v3579_v0  ;;  %v3605_v50 = vadd.f32 %v10658_v63, %v3571_v13 }
 0xc9e   : > { %v3620_v60 = vmax.f32 %v3604_v36, 0.0  ;;  %v3618_v58 = vmax.f32 %v3602_v28, 0.0  ;;  %v3606_v51 = vadd.f32 %v10660_v24, %v3575_v38  ;;  %v3557_v2 = vcombine.high %v3541_v30, %v3541_v30  ;;  %v10661_v30 = vld [vmem:[#allocation4 + $0x48] sm:$0xff] }
 0xc9f   : > { %v3633_v48 = vmul.f32 %v12911_v7, %v3617_v46  ;;  %v3632_v19 = vmul.f32 %v12911_v7, %v3616_v4  ;;  %v3619_v6 = vmax.f32 %v3603_v29, 0.0  ;;  %v3624_v42 = vmax.f32 %v3608_v21, 0.0  ;;  %v10662_v29 = vld [vmem:[#allocation4 + $0x50] sm:$0xff] }
 0xca0   : > { %v3636_v15 = vmul.f32 %v12911_v7, %v3620_v60  ;;  %v3634_v13 = vmul.f32 %v12911_v7, %v3618_v58  ;;  %v3583_v36 = vrot.slane %v3555_v57, %v12394_v26  ;;  %v3621_v46 = vmax.f32 %v3605_v50, 0.0 }
 0xca1   : > { %v3651_v56 = vsel %vm1552_vm10, %v3633_v48, 0.0  ;;  %v3648_v44 = vsel %vm1552_vm10, %v3632_v19, 0.0  ;;  %v3622_v4 = vmax.f32 %v3606_v51, 0.0  ;;  %v3635_v60 = vmul.f32 %v12911_v7, %v3619_v6  ;;  %v10663_v6 = vld [vmem:[#allocation4 + $0x38] sm:$0xff] }
 0xca2   : > { %3652 = vadd.xlane.f32.xlu1 %v3651_v56  ;;  %3649 = vadd.xlane.f32.xlu0 %v3648_v44  ;;  %v3660_v28 = vsel %vm1552_vm10, %v3636_v15, 0.0  ;;  %v3654_v24 = vsel %vm1552_vm10, %v3634_v13, 0.0  ;;  %v3640_v21 = vmul.f32 %v12911_v7, %v3624_v42  ;;  %v3609_v48 = vadd.f32 %v10661_v30, %v3579_v0  ;;  %v10664_v0 = vld [vmem:[#allocation4 + $0x60] sm:$0xff] }
 0xca3   : > { %v3610_v14 = vadd.f32 %v10662_v29, %v3583_v36  ;;  %v3587_v63 = vrot.slane %v3557_v2, %v12394_v26  ;;  %v3559_v19 = vcombine.high %v3555_v57, %v3555_v57  ;;  %v3637_v50 = vmul.f32 %v12911_v7, %v3621_v46 }
 0xca4   : > { %v3657_v58 = vsel %vm1552_vm10, %v3635_v60, 0.0  ;;  %v3672_v51 = vsel %vm1552_vm10, %v3640_v21, 0.0  ;;  %v3638_v15 = vmul.f32 %v12911_v7, %v3622_v4  ;;  %v3607_v56 = vadd.f32 %v10663_v6, %v3575_v38  ;;  %v10666_v21 = vld [vmem:[#allocation4 + $0x70] sm:$0xff] }
 0xca5   : > { %v3625_v42 = vmax.f32 %v3609_v48, 0.0  ;;  %v3626_v44 = vmax.f32 %v3610_v14, 0.0  ;;  %v3612_v13 = vadd.f32 %v10664_v0, %v3587_v63  ;;  %v3591_v30 = vrot.slane %v3559_v19, %v12394_v26  ;;  %v10667_v19 = vld [vmem:[#allocation4 + $0x68] sm:$0xff] }
 0xca6   : > { %3661 = vadd.xlane.f32.xlu1 %v3660_v28  ;;  %3655 = vadd.xlane.f32.xlu0 %v3654_v24  ;;  %v3663_v57 = vsel %vm1552_vm10, %v3637_v50, 0.0  ;;  %v3666_v2 = vsel %vm1552_vm10, %v3638_v15, 0.0  ;;  %v3623_v46 = vmax.f32 %v3607_v56, 0.0  ;;  %v10665_v28 = vld [vmem:[#allocation4 + $0x58] sm:$0xff] }
 0xca7   : > { %v3611_v24 = vadd.f32 %v10665_v28, %v3583_v36  ;;  %v3641_v60 = vmul.f32 %v12911_v7, %v3625_v42  ;;  %v3642_v4 = vmul.f32 %v12911_v7, %v3626_v44  ;;  %v3628_v38 = vmax.f32 %v3612_v13, 0.0  ;;  %v10668_v13 = vld [vmem:[#allocation4 + $0x78] sm:$0xff] }
 0xca8   : > { %v3614_v48 = vadd.f32 %v10666_v21, %v3591_v30  ;;  %v3639_v29 = vmul.f32 %v12911_v7, %v3623_v46 }
 0xca9   : > { %v3627_v14 = vmax.f32 %v3611_v24, 0.0  ;;  %v3675_v50 = vsel %vm1552_vm10, %v3641_v60, 0.0  ;;  %v3644_v36 = vmul.f32 %v12911_v7, %v3628_v38 }
 0xcaa   : > { %3658 = vadd.xlane.f32.xlu0 %v3657_v58  ;;  %3673 = vadd.xlane.f32.xlu1 %v3672_v51  ;;  %v3613_v58 = vadd.f32 %v10667_v19, %v3587_v63  ;;  %v3678_v51 = vsel %vm1552_vm10, %v3642_v4, 0.0  ;;  %v3630_v15 = vmax.f32 %v3614_v48, 0.0  ;;  %v3669_v42 = vsel %vm1552_vm10, %v3639_v29, 0.0 }
 0xcab   : > { %v3643_v6 = vmul.f32 %v12911_v7, %v3627_v14  ;;  %v3684_v44 = vsel %vm1552_vm10, %v3644_v36, 0.0  ;;  %v3615_v63 = vadd.f32 %v10668_v13, %v3591_v30  ;;  %v9453_v30 = vld [vmem:[#allocation5] ss:$0 sm:$0xff] }
 0xcac   : > { %v3629_v56 = vmax.f32 %v3613_v58, 0.0  ;;  %v3646_v0 = vmul.f32 %v12911_v7, %v3630_v15 }
 0xcad   : > { %v3631_v28 = vmax.f32 %v3615_v63, 0.0 }
 0xcae   : > { %3664 = vadd.xlane.f32.xlu0 %v3663_v57  ;;  %3667 = vadd.xlane.f32.xlu1 %v3666_v2  ;;  %v3681_v57 = vsel %vm1552_vm10, %v3643_v6, 0.0  ;;  %v3690_v2 = vsel %vm1552_vm10, %v3646_v0, 0.0  ;;  %v3645_v46 = vmul.f32 %v12911_v7, %v3629_v56 }
 0xcaf   : > { %v3647_v60 = vmul.f32 %v12911_v7, %v3631_v28 }
 0xcb0   : > { %v3687_v24 = vsel %vm1552_vm10, %v3645_v46, 0.0 }
 0xcb1   : > { %v3693_v4 = vsel %vm1552_vm10, %v3647_v60, 0.0 }
 0xcb2   : > { %3676 = vadd.xlane.f32.xlu0 %v3675_v50  ;;  %3679 = vadd.xlane.f32.xlu1 %v3678_v51 }
 0xcb6   : > { %3670 = vadd.xlane.f32.xlu0 %v3669_v42  ;;  %3685 = vadd.xlane.f32.xlu1 %v3684_v44 }
 0xcba   : > { %3682 = vadd.xlane.f32.xlu0 %v3681_v57  ;;  %3691 = vadd.xlane.f32.xlu1 %v3690_v2 }
 0xcbe   : > { %3688 = vadd.xlane.f32.xlu0 %v3687_v24 }
 0xcc2   : > { %3694 = vadd.xlane.f32.xlu0 %v3693_v4 }
 0xccb   : > { %3703 = vperm.xlu1 %10422, %v9453_v30  }
 0xd2f   : > { %v3653_v38 = vpop.xlane.xlu1 %3652  ;;  %v3650_v21 = vpop.xlane.xlu0 %3649 }
 0xd33   : > { %v3662_v48 = vpop.xlane.xlu1 %3661  ;;  %v3656_v29 = vpop.xlane.xlu0 %3655 }
 0xd37   : > { %v3659_v14 = vpop.xlane.xlu0 %3658  ;;  %v3674_v19 = vpop.xlane.xlu1 %3673 }
 0xd3b   : > { %v3665_v58 = vpop.xlane.xlu0 %3664  ;;  %v3668_v50 = vpop.xlane.xlu1 %3667 }
 0xd3f   : > { %v3677_v51 = vpop.xlane.xlu0 %3676  ;;  %v3680_v36 = vpop.xlane.xlu1 %3679 }
 0xd43   : > { %v3671_v15 = vpop.xlane.xlu0 %3670  ;;  %v3686_v6 = vpop.xlane.xlu1 %3685 }
 0xd47   : > { %v3683_v56 = vpop.xlane.xlu0 %3682  ;;  %v3692_v7 = vpop.xlane.xlu1 %3691 }
 0xd4b   : > { %v3689_v42 = vpop.xlane.xlu0 %3688  ;;  %v3704_v44 = vpop.permute.xlu1 %3703 }
 0xd4c   : > { %v3706_v0 = vadd.f32 %v3704_v44, %v3650_v21  ;;  %v3707_v13 = vadd.f32 %v3704_v44, %v3653_v38  ;;  %v3708_v63 = vadd.f32 %v3704_v44, %v3656_v29  ;;  %v12948_v57 = vadd.f32 %v3704_v44, %v3659_v14 }
 0xd4d   : > { %v3710_v2 = vadd.f32 %v3704_v44, %v3662_v48  ;;  %v12950_v46 = vadd.f32 %v3704_v44, %v3665_v58  ;;  %v12952_v28 = vadd.f32 %v3704_v44, %v3668_v50  ;;  %v12954_v24 = vadd.f32 %v3704_v44, %v3671_v15 }
 0xd4e   : > { %v12956_v60 = vadd.f32 %v3704_v44, %v3674_v19  ;;  %v12958_v30 = vadd.f32 %v3704_v44, %v3677_v51  ;;  %v12960_v32 = vadd.f32 %v3704_v44, %v3680_v36  ;;  %v12962_v16 = vadd.f32 %v3704_v44, %v3683_v56 }
 0xd4f   : > { %v3695_v4 = vpop.xlane.xlu0 %3694  ;;  %v3741_v38 = vrot.slane %v3706_v0, %v12450_v22  ;;  %v12965_v21 = vadd.f32 %v3704_v44, %v3686_v6  ;;  %v3745_v48 = vrot.slane %v3707_v13, %v12453_v23  ;;  %v3750_v29 = vrot.slane %v3708_v63, %v12450_v22 }
 0xd50   : > { %v3754_v14 = vrot.slane %v12948_v57, %v12453_v23  ;;  %v12971_v19 = vadd.f32 %v3704_v44, %v3695_v4  ;;  %v12973_v58 = vadd.f32 %v3704_v44, %v3689_v42  ;;  %v3759_v50 = vrot.slane %v3710_v2, %v12450_v22 }
 0xd51   : > { %v3763_v51 = vrot.slane %v12950_v46, %v12453_v23  ;;  %v3746_v36 = vsel %vm1841_vm11, %v3745_v48, %v3741_v38  ;;  %v3768_v6 = vrot.slane %v12952_v28, %v12450_v22  ;;  %v3772_v56 = vrot.slane %v12954_v24, %v12453_v23 }
 0xd52   : > { %v3755_v15 = vsel %vm1841_vm11, %v3754_v14, %v3750_v29  ;;  %v3777_v42 = vrot.slane %v12956_v60, %v12450_v22  ;;  %v3781_v37 = vrot.slane %v12958_v30, %v12453_v23  ;;  %v12989_v11 = vadd.f32 %v3704_v44, %v3692_v7 }
 0xd53   : > { %v3764_v4 = vsel %vm1841_vm11, %v3763_v51, %v3759_v50  ;;  %v3786_v38 = vrot.slane %v12960_v32, %v12450_v22  ;;  %v3790_v48 = vrot.slane %v12962_v16, %v12453_v23  ;;  %v3795_v29 = vrot.slane %v12965_v21, %v12450_v22 }
 0xd54   : > { %v3799_v14 = vrot.slane %v12973_v58, %v12453_v23  ;;  %v3810_v50 = vsel %vm1906_vm12, %v3755_v15, %v3746_v36  ;;  %v3808_v51 = vrot.slane %v12971_v19, %v12453_v23  ;;  %v3773_v7 = vsel %vm1841_vm11, %v3772_v56, %v3768_v6 }
 0xd55   : > { %v3811_v44 = vsel %vm1908_vm13, %v3764_v4, %v3810_v50  ;;  %v3782_v47 = vsel %vm1841_vm11, %v3781_v37, %v3777_v42  ;;  %v3791_v43 = vsel %vm1841_vm11, %v3790_v48, %v3786_v38  ;;  %v3804_v33 = vrot.slane %v12989_v11, %v12450_v22 }
 0xd56   : > { %v3812_v52 = vsel %vm1910_vm14, %v3773_v7, %v3811_v44  ;;  %v3800_v36 = vsel %vm1841_vm11, %v3799_v14, %v3795_v29 }
 0xd57   : > { %v3813_v49 = vsel %vm1912_vm15, %v3782_v47, %v3812_v52  ;;  %v3809_v39 = vsel %vm1841_vm11, %v3808_v51, %v3804_v33 }
 0xd58   : > { %v3814_v15 = vsel %vm1914_vm0, %v3791_v43, %v3813_v49 }
 0xd59   : > { %v3815_v6 = vsel %vm1916_vm1, %v3800_v36, %v3814_v15 }
 0xd5a   : > { %v3816_v56 = vsel %vm1918_vm2, %v3809_v39, %v3815_v6 }
 0xd5b   : > { %v3818_v37 = vsel %vm1921_vm3, %v3816_v56, -inf }
 0xd5c   : > { %3819 = vmax.xlane.f32.xlu0 %v3818_v37 }
 0xde9   : > { %v3820_v4 = vpop.xlane.xlu0 %3819 }
 0xdea   : > { %v3825_v42 = vrot.slane %v3820_v4, %v12394_v26  ;;  %v3829_v38 = vrot.slane %v3820_v4, %v12545_v35  ;;  %v3833_v52 = vrot.slane %v3820_v4, %v12570_v25  ;;  %v3837_v49 = vrot.slane %v3820_v4, %v12536_v53 }
 0xdeb   : > { %v3841_v51 = vrot.slane %v3820_v4, %v12539_v54  ;;  %v3849_v6 = vrot.slane %v3820_v4, %v12551_v61 }
 0xdec   : > { %v3863_v47 = vsub.f32 %v3707_v13, %v3825_v42  ;;  %v3862_v48 = vsub.f32 %v3706_v0, %v3825_v42  ;;  %v3864_v29 = vsub.f32 %v3708_v63, %v3829_v38  ;;  %v3866_v33 = vsub.f32 %v3710_v2, %v3833_v52 }
 0xded   : > { %v3865_v50 = vsub.f32 %v12948_v57, %v3829_v38  ;;  %v3868_v44 = vsub.f32 %v12952_v28, %v3837_v49  ;;  %v3867_v0 = vsub.f32 %v12950_v46, %v3833_v52  ;;  %v3845_v13 = vrot.slane %v3820_v4, %v12542_v55 }
 0xdee   : > { %v3880_v43 = vmul.f32 1.442695, %v3863_v47  ;;  %v3878_v14 = vmul.f32 1.442695, %v3862_v48  ;;  %v3882_v39 = vmul.f32 1.442695, %v3864_v29  ;;  %v3870_v2 = vsub.f32 %v12956_v60, %v3841_v51 }
 0xdef   : > { %v3886_v7 = vmul.f32 1.442695, %v3866_v33  ;;  %v3884_v36 = vmul.f32 1.442695, %v3865_v50  ;;  %v3890_v63 = vmul.f32 1.442695, %v3868_v44  ;;  %v3869_v57 = vsub.f32 %v12954_v24, %v3837_v49 }
 0xdf0   : > { %10513 = vpow2.f32 %v3880_v43  ;;  %v3888_v15 = vmul.f32 1.442695, %v3867_v0  ;;  %v3894_v56 = vmul.f32 1.442695, %v3870_v2  ;;  %v3872_v28 = vsub.f32 %v12960_v32, %v3845_v13 }
 0xdf1   : > { %10515 = vpow2.f32 %v3878_v14  ;;  %v3892_v46 = vmul.f32 1.442695, %v3869_v57  ;;  %v3871_v60 = vsub.f32 %v12958_v30, %v3841_v51  ;;  %v3853_v24 = vrot.slane %v3820_v4, %v12562_v45 }
 0xdf2   : > { %10517 = vpow2.f32 %v3882_v39  ;;  %v3898_v38 = vmul.f32 1.442695, %v3872_v28  ;;  %v3874_v52 = vsub.f32 %v12965_v21, %v3849_v6  ;;  %v3873_v29 = vsub.f32 %v12962_v16, %v3845_v13 }
 0xdf3   : > { %10519 = vpow2.f32 %v3886_v7  ;;  %v3896_v48 = vmul.f32 1.442695, %v3871_v60  ;;  %v3876_v4 = vsub.f32 %v12989_v11, %v3853_v24  ;;  %v3875_v43 = vsub.f32 %v12973_v58, %v3849_v6 }
 0xdf4   : > { %10521 = vpow2.f32 %v3884_v36  ;;  %v3902_v30 = vmul.f32 1.442695, %v3874_v52  ;;  %v3900_v21 = vmul.f32 1.442695, %v3873_v29  ;;  %v3877_v50 = vsub.f32 %v12971_v19, %v3853_v24 }
 0xdf5   : > { %10523 = vpow2.f32 %v3890_v63  ;;  %v3906_v14 = vmul.f32 1.442695, %v3876_v4  ;;  %v3904_v11 = vmul.f32 1.442695, %v3875_v43  ;;  %v10434_v63 = vld [vmem:[#allocation36] sm:$0xff]   ;;  %v3077_v57 = vpack.c.bf16 %v12881_v3, %v12881_v3 }
 0xdf6   : > { %10525 = vpow2.f32 %v3888_v15  ;;  %v3908_v58 = vmul.f32 1.442695, %v3877_v50  ;;  %9841 = vmatpush3.bf16.msra.mxu0 %v10434_v63  ;;  %v10435_v15 = vld [vmem:[#allocation36 + $0x8] sm:$0xff]  }
 0xdf7   : > { %10527 = vpow2.f32 %v3894_v56  ;;  %9842 = vmatprep.subr.bf16.mxu0 %v14905_v40 }
 0xdf8   : > { %10529 = vpow2.f32 %v3892_v46 }
 0xdf9   : > { %10531 = vpow2.f32 %v3898_v38 }
 0xdfa   : > { %v13029_v37 = vpop.eup %10513  ;;  %10533 = vpow2.f32 %v3896_v48  ;;  %9843 = vmatpush3.bf16.msra.mxu0 %v10435_v15 }
 0xdfb   : > { %v13031_v42 = vpop.eup %10515  ;;  %3930 = vperm.xlu1 %10422, %v13029_v37   ;;  %10535 = vpow2.f32 %v3902_v30  ;;  %9856 = vmatprep.subr.bf16.mxu0 %v14905_v40 }
 0xdfc   : > { %3927 = vperm.xlu0 %10421, %v13031_v42   ;;  %v13038_v47 = vpop.eup %10517  ;;  %10537 = vpow2.f32 %v3900_v21 }
 0xdfd   : > { %v13040_v32 = vpop.eup %10519  ;;  %10539 = vpow2.f32 %v3906_v14 }
 0xdfe   : > { %v13046_v49 = vpop.eup %10521  ;;  %10541 = vpow2.f32 %v3904_v11 }
 0xdff   : > { %3933 = vperm.xlu1 %10422, %v13038_v47   ;;  %v13048_v33 = vpop.eup %10523  ;;  %10543 = vpow2.f32 %v3908_v58 }
 0xe00   : > { %3939 = vperm.xlu0 %10421, %v13040_v32   ;;  %v13053_v39 = vpop.eup %10525 }
 0xe01   : > { %v13055_v16 = vpop.eup %10527 }
 0xe02   : > { %v13060_v51 = vpop.eup %10529 }
 0xe03   : > { %3936 = vperm.xlu1 %10422, %v13046_v49   ;;  %v13062_v7 = vpop.eup %10531 }
 0xe04   : > { %3945 = vperm.xlu0 %10421, %v13048_v33   ;;  %v13066_v44 = vpop.eup %10533 }
 0xe05   : > { %v13068_v36 = vpop.eup %10535 }
 0xe06   : > { %v13072_v19 = vpop.eup %10537 }
 0xe07   : > { %3942 = vperm.xlu1 %10422, %v13053_v39   ;;  %v13074_v0 = vpop.eup %10539 }
 0xe08   : > { %3951 = vperm.xlu0 %10421, %v13055_v16   ;;  %v13078_v13 = vpop.eup %10541 }
 0xe09   : > { %v13081_v2 = vpop.eup %10543 }
 0xe0b   : > { %3948 = vperm.xlu1 %10422, %v13060_v51  }
 0xe0c   : > { %3957 = vperm.xlu0 %10421, %v13062_v7  }
 0xe0f   : > { %3954 = vperm.xlu1 %10422, %v13066_v44  }
 0xe10   : > { %3963 = vperm.xlu0 %10421, %v13068_v36  }
 0xe13   : > { %3960 = vperm.xlu1 %10422, %v13072_v19  }
 0xe14   : > { %3969 = vperm.xlu0 %10421, %v13074_v0  }
 0xe17   : > { %3966 = vperm.xlu1 %10422, %v13078_v13  }
 0xe1b   : > { %3972 = vperm.xlu1 %10422, %v13081_v2  }
 0xe1f   : > { %3090 = vrot.lane.b32.xlu1 %v3077_v57, %s11485_s8 }
 0xe7a   : > { %v3931_v6 = vpop.permute.xlu1 %3930 }
 0xe7b   : > { %v3928_v56 = vpop.permute.xlu0 %3927  ;;  %v3981_v14 = vrot.slane %v3931_v6, %v12453_v23 }
 0xe7c   : > { %v3977_v11 = vrot.slane %v3928_v56, %v12450_v22 }
 0xe7e   : > { %v3934_v28 = vpop.permute.xlu1 %3933  ;;  %v3982_v56 = vsel %vm1841_vm11, %v3981_v14, %v3977_v11 }
 0xe7f   : > { %v3940_v46 = vpop.permute.xlu0 %3939  ;;  %v3986_v50 = vrot.slane %v3934_v28, %v12450_v22 }
 0xe80   : > { %v3995_v63 = vrot.slane %v3940_v46, %v12450_v22 }
 0xe82   : > { %v3937_v60 = vpop.permute.xlu1 %3936 }
 0xe83   : > { %v3946_v24 = vpop.permute.xlu0 %3945  ;;  %v3990_v4 = vrot.slane %v3937_v60, %v12453_v23 }
 0xe84   : > { %v4004_v60 = vrot.slane %v3946_v24, %v12450_v22 }
 0xe85   : > { %v3991_v57 = vsel %vm1841_vm11, %v3990_v4, %v3986_v50 }
 0xe86   : > { %v3943_v38 = vpop.permute.xlu1 %3942 }
 0xe87   : > { %v3952_v52 = vpop.permute.xlu0 %3951  ;;  %v3999_v3 = vrot.slane %v3943_v38, %v12453_v23 }
 0xe88   : > { %v4013_v6 = vrot.slane %v3952_v52, %v12450_v22 }
 0xe89   : > { %v4000_v18 = vsel %vm1841_vm11, %v3999_v3, %v3995_v63 }
 0xe8a   : > { %v3949_v48 = vpop.permute.xlu1 %3948 }
 0xe8b   : > { %v3958_v29 = vpop.permute.xlu0 %3957  ;;  %v4008_v58 = vrot.slane %v3949_v48, %v12453_v23 }
 0xe8c   : > { %v4022_v48 = vrot.slane %v3958_v29, %v12450_v22 }
 0xe8d   : > { %v4009_v28 = vsel %vm1841_vm11, %v4008_v58, %v4004_v60 }
 0xe8e   : > { %v3955_v30 = vpop.permute.xlu1 %3954 }
 0xe8f   : > { %v3964_v21 = vpop.permute.xlu0 %3963  ;;  %v4017_v15 = vrot.slane %v3955_v30, %v12453_v23  ;;  %v4046_v30 = vsel %vm1906_vm12, %v3991_v57, %v3982_v56 }
 0xe90   : > { %v4031_v24 = vrot.slane %v3964_v21, %v12450_v22  ;;  %v4047_v3 = vsel %vm1908_vm13, %v4000_v18, %v4046_v30 }
 0xe91   : > { %v4018_v4 = vsel %vm1841_vm11, %v4017_v15, %v4013_v6  ;;  %v4048_v50 = vsel %vm1910_vm14, %v4009_v28, %v4047_v3 }
 0xe92   : > { %v3961_v43 = vpop.permute.xlu1 %3960  ;;  %v4049_v58 = vsel %vm1912_vm15, %v4018_v4, %v4048_v50 }
 0xe93   : > { %v4026_v38 = vrot.slane %v3961_v43, %v12453_v23  ;;  %v3970_v43 = vpop.permute.xlu0 %3969 }
 0xe94   : > { %v4040_v29 = vrot.slane %v3970_v43, %v12450_v22 }
 0xe95   : > { %v4027_v52 = vsel %vm1841_vm11, %v4026_v38, %v4022_v48 }
 0xe96   : > { %v3967_v41 = vpop.permute.xlu1 %3966  ;;  %v4050_v63 = vsel %vm1914_vm0, %v4027_v52, %v4049_v58 }
 0xe97   : > { %v4035_v46 = vrot.slane %v3967_v41, %v12453_v23 }
 0xe99   : > { %v4036_v11 = vsel %vm1841_vm11, %v4035_v46, %v4031_v24 }
 0xe9a   : > { %v3973_v14 = vpop.permute.xlu1 %3972  ;;  %v4051_v15 = vsel %vm1916_vm1, %v4036_v11, %v4050_v63 }
 0xe9b   : > { %v4044_v41 = vrot.slane %v3973_v14, %v12453_v23 }
 0xe9d   : > { %v4045_v21 = vsel %vm1841_vm11, %v4044_v41, %v4040_v29 }
 0xe9e   : > { %v3091_v18 = vpop.permute.xlu1 %3090  ;;  %v4052_v57 = vsel %vm1918_vm2, %v4045_v21, %v4051_v15 }
 0xe9f   : > { %9845 = vmatmul.mubr.msk.bf16.vlgmr.msra.gmra.mrb[24].mxu0 %vm1552_vm10, %v3091_v18  ;;  %v4054_v60 = vsel %vm1921_vm3, %v4052_v57, 0.0 }
 0xea0   : > { %4055 = vadd.xlane.f32.xlu0 %v4054_v60  ;;  %9857 = vmatpush3.bf16.msra.mxu0 %v12736_v34 }
 0xea1   : > { %9858 = vmatprep.mubr.msk.bf16.mxu0 %vm11482_vm9, %v14905_v40  ;;  %9868 = vmatprep.subr.bf16.mxu0 %v14905_v40 }
 0xf2d   : > { %v4056_v38 = vpop.xlane.xlu0 %4055 }
 0xf2e   : > { %10545 = vrcp.f32 %v4056_v38 }
 0xf38   : > { %v10546_v6 = vpop.eup %10545 }
 0xf39   : > { %v4086_v56 = vrot.slane %v10546_v6, %v12551_v61  ;;  %v4062_v28 = vrot.slane %v10546_v6, %v12394_v26  ;;  %v4082_v48 = vrot.slane %v10546_v6, %v12542_v55  ;;  %v4090_v46 = vrot.slane %v10546_v6, %v12562_v45 }
 0xf3a   : > { %v4070_v30 = vrot.slane %v10546_v6, %v12570_v25  ;;  %v4078_v41 = vrot.slane %v10546_v6, %v12539_v54  ;;  %v4066_v38 = vrot.slane %v10546_v6, %v12545_v35 }
 0xf3b   : > { %v13132_v4 = vmul.f32 %v13068_v36, %v4086_v56  ;;  %v13135_v24 = vmul.f32 %v13078_v13, %v4086_v56  ;;  %v13138_v43 = vmul.f32 %v13031_v42, %v4062_v28  ;;  %v13141_v3 = vmul.f32 %v13029_v37, %v4062_v28 }
 0xf3c   : > { %v13144_v52 = vmul.f32 %v13062_v7, %v4082_v48  ;;  %v13147_v50 = vmul.f32 %v13072_v19, %v4082_v48  ;;  %v13154_v13 = vmul.f32 %v13074_v0, %v4090_v46  ;;  %v13157_v42 = vmul.f32 %v13081_v2, %v4090_v46 }
 0xf3d   : > { %14921 = vst [vmem:[#allocation65_spill] sm:$0xff] %v13132_v4  ;;  %14922 = vst [vmem:[#allocation67_spill] sm:$0xff] %v13135_v24  ;;  %v4121_v14 = vpack.c.bf16 %v13135_v24, %v13132_v4  ;;  %v4115_v36 = vpack.c.bf16 %v13141_v3, %v13138_v43  ;;  %v13160_v37 = vmul.f32 %v13040_v32, %v4070_v30 }
 0xf3e   : > { %14923 = vst [vmem:[#allocation85_spill] sm:$0xff] %v13138_v43  ;;  %14924 = vst [vmem:[#allocation86_spill] sm:$0xff] %v13141_v3  ;;  %v4120_v19 = vpack.c.bf16 %v13147_v50, %v13144_v52  ;;  %v13165_v29 = vmul.f32 %v13053_v39, %v4070_v30  ;;  %v4122_v2 = vpack.c.bf16 %v13157_v42, %v13154_v13 }
 0xf3f   : > { %14925 = vst [vmem:[#allocation87_spill] sm:$0xff] %v13144_v52  ;;  %14926 = vst [vmem:[#allocation88_spill] sm:$0xff] %v13147_v50  ;;  %v4497_v7 = vunpack.c.h.b16 %v4121_v14  ;;  %v4124_v11 = vunpack.c.l.b16 %v4115_v36  ;;  %v4125_v58 = vunpack.c.h.b16 %v4115_v36  ;;  %v13173_v15 = vmul.f32 %v13055_v16, %v4078_v41 }
 0xf40   : > { %14927 = vst [vmem:[#allocation89_spill] sm:$0xff] %v13154_v13  ;;  %14928 = vst [vmem:[#allocation90_spill] sm:$0xff] %v13157_v42  ;;  %v4435_v0 = vunpack.c.h.b16 %v4120_v19  ;;  %v4117_v32 = vpack.c.bf16 %v13165_v29, %v13160_v37  ;;  %v4559_v63 = vunpack.c.h.b16 %v4122_v2  ;;  %v13176_v39 = vmul.f32 %v13066_v44, %v4078_v41  ;;  %v10674_v42 = vld [vmem:[#allocation4 + $0x18] sm:$0xff] }
 0xf41   : > { %14929 = vst [vmem:[#allocation91_spill] sm:$0xff] %v13160_v37  ;;  %14930 = vst [vmem:[#allocation92_spill] sm:$0xff] %v13165_v29  ;;  %4502 = vperm.xlu0 %10421, %v4497_v7   ;;  %4127 = vperm.xlu1 %10422, %v4124_v11   ;;  %v13182_v28 = vmul.f32 %v13038_v47, %v4066_v38  ;;  %v13185_v16 = vmul.f32 %v13046_v49, %v4066_v38  ;;  %v4496_v44 = vunpack.c.l.b16 %v4121_v14 }
 0xf42   : > { %v4248_v21 = vunpack.c.l.b16 %v4117_v32  ;;  %14931 = vst [vmem:[#allocation93_spill] sm:$0xff] %v13173_v15  ;;  %14932 = vst [vmem:[#allocation94_spill] sm:$0xff] %v13176_v39  ;;  %v4249_v18 = vunpack.c.h.b16 %v4117_v32  ;;  %v4119_v57 = vpack.c.bf16 %v13176_v39, %v13173_v15  ;;  %v4074_v46 = vrot.slane %v10546_v6, %v12536_v53 }
 0xf43   : > { %14933 = vst [vmem:[#allocation95_spill] sm:$0xff] %v13182_v28  ;;  %14934 = vst [vmem:[#allocation96_spill] sm:$0xff] %v13185_v16  ;;  %v4116_v48 = vpack.c.bf16 %v13185_v16, %v13182_v28  ;;  %v4434_v41 = vunpack.c.l.b16 %v4120_v19  ;;  %v4558_v6 = vunpack.c.l.b16 %v4122_v2 }
 0xf44   : > { %v4372_v60 = vunpack.c.l.b16 %v4119_v57  ;;  %v4373_v56 = vunpack.c.h.b16 %v4119_v57  ;;  %v13191_v36 = vmul.f32 %v13048_v33, %v4074_v46  ;;  %v13194_v7 = vmul.f32 %v13060_v51, %v4074_v46 }
 0xf45   : > { %4440 = vperm.xlu0 %10421, %v4435_v0   ;;  %4130 = vperm.xlu1 %10422, %v4125_v58   ;;  %v4186_v30 = vunpack.c.l.b16 %v4116_v48  ;;  %v4187_v47 = vunpack.c.h.b16 %v4116_v48  ;;  %v9441_v0 = vld [vmem:[#allocation38] ss:$0 sm:$0xff] }
 0xf46   : > { %14935 = vst [vmem:[#allocation97_spill] sm:$0xff] %v13191_v36  ;;  %14936 = vst [vmem:[#allocation98_spill] sm:$0xff] %v13194_v7  ;;  %v4118_v49 = vpack.c.bf16 %v13194_v7, %v13191_v36  ;;  %v10678_v7 = vld [vmem:[#allocation4 + $0x30] sm:$0xff] }
 0xf48   : > { %v4310_v14 = vunpack.c.l.b16 %v4118_v49  ;;  %v4311_v11 = vunpack.c.h.b16 %v4118_v49 }
 0xf49   : > { %4564 = vperm.xlu0 %10421, %v4559_v63   ;;  %4251 = vperm.xlu1 %10422, %v4248_v21  }
 0xf4d   : > { %4254 = vperm.xlu1 %10422, %v4249_v18  }
 0xf51   : > { %4375 = vperm.xlu1 %10422, %v4372_v60  }
 0xf55   : > { %4378 = vperm.xlu1 %10422, %v4373_v56  }
 0xf59   : > { %4499 = vperm.xlu1 %10422, %v4496_v44  }
 0xf5d   : > { %4189 = vperm.xlu1 %10422, %v4186_v30  }
 0xf61   : > { %4192 = vperm.xlu1 %10422, %v4187_v47  }
 0xf65   : > { %4313 = vperm.xlu1 %10422, %v4310_v14  }
 0xf69   : > { %4316 = vperm.xlu1 %10422, %v4311_v11  }
 0xf6d   : > { %4437 = vperm.xlu1 %10422, %v4434_v41  }
 0xf71   : > { %4561 = vperm.xlu1 %10422, %v4558_v6  }
 0xf72   : > { %v3141_v33 = vpop.f32.mrb[24].mxu0 }
 0xf73   : > { %v3142_v51 = vadd.f32 %v9441_v0, %v3141_v33  ;;  %v9846_v58 = vpop.f32.mrb[25].mxu0 }
 0xf74   : > { %v3144_v32 = vpop.f32.mrb[26].mxu0 }
 0xf75   : > { %v3160_v63 = vsel %vm3153_vm5, %v3142_v51, 0.0  ;;  %v9847_v21 = vpop.f32.mrb[27].mxu0 }
 0xf76   : > { %v3162_v18 = vcombine.high %v3160_v63, %v3160_v63  ;;  %v3169_v19 = vrot.slane %v3160_v63, %v14920_v17 }
 0xf78   : > { %v3176_v57 = vrot.slane %v3162_v18, %v14920_v17  ;;  %v3177_v2 = vcombine.high %v3169_v19, %v3169_v19  ;;  %v3185_v60 = vrot.slane %v3169_v19, %v14920_v17  ;;  %9445 = vst.sshfl [vmem:[%s12283_s5] sm:$0x1 pattern:$0x73625140] %v3169_v19 }
 0xf7a   : > { %v3178_v38 = vcombine.high %v3176_v57, %v3176_v57  ;;  %v3192_v56 = vrot.slane %v3176_v57, %v14920_v17  ;;  %v3199_v44 = vrot.slane %v3177_v2, %v14920_v17  ;;  %v3207_v48 = vcombine.high %v3185_v60, %v3185_v60  ;;  %9446 = vst.sshfl [vmem:[%s12283_s5 + $0x4] sm:$0x1 pattern:$0x73625140] %v3177_v2 }
 0xf7b   : > { %9447 = vst.sshfl [vmem:[%s12283_s5 + $0x10] sm:$0x1 pattern:$0x73625140] %v3176_v57 }
 0xf7c   : > { %v3206_v46 = vrot.slane %v3178_v38, %v14920_v17  ;;  %v3208_v30 = vcombine.high %v3192_v56, %v3192_v56  ;;  %v3209_v47 = vcombine.high %v3199_v44, %v3199_v44  ;;  %3221 = vst [vmem:[%s12283_s5 + $0x8] sm:$0x1] %v3207_v48  ;;  %9448 = vst.sshfl [vmem:[%s12283_s5 + $0x14] sm:$0x1 pattern:$0x73625140] %v3178_v38 }
 0xf7e   : > { %v3210_v49 = vcombine.high %v3206_v46, %v3206_v46  ;;  %3222 = vst [vmem:[%s12283_s5 + $0xc] sm:$0x1] %v3209_v47  ;;  %3225 = vst [vmem:[%s12283_s5 + $0x18] sm:$0x1] %v3208_v30 }
 0xf80   : > { %3226 = vst [vmem:[%s12283_s5 + $0x1c] sm:$0x1] %v3210_v49 }
 0xfc0   : > { %v4128_v14 = vpop.permute.xlu1 %4127  ;;  %v4503_v56 = vpop.permute.xlu0 %4502 }
 0xfc1   : > { %v4135_v41 = vrot.slane %v4128_v14, %v12450_v22  ;;  %v4511_v30 = vrot.slane %v4503_v56, %v12453_v23  ;;  %v10436_v14 = vld [vmem:[#allocation26] sm:$0xff]  }
 0xfc4   : > { %v4131_v11 = vpop.permute.xlu1 %4130 }
 0xfc5   : > { %v4139_v6 = vrot.slane %v4131_v11, %v12453_v23 }
 0xfc7   : > { %v4140_v0 = vsel %vm1841_vm11, %v4139_v6, %v4135_v41 }
 0xfc8   : > { %v4141_v33 = vpack.c.b16 %v4140_v0, %v4140_v0  ;;  %v4252_v51 = vpop.permute.xlu1 %4251 }
 0xfc9   : > { %v4259_v32 = vrot.slane %v4252_v51, %v12450_v22  ;;  %v10437_v51 = vld [vmem:[#allocation26 + $0x8] sm:$0xff]  }
 0xfca   : > { %9859 = vmatmul.mubr.msk.bf16.vlgmr.msra.gmra.mrb[28].mxu0 %vm1921_vm3, %v4141_v33 }
 0xfcb   : > { %9869 = vmatpush3.bf16.msra.mxu0 %v12709_v20  ;;  %9870 = vmatprep.mubr.msk.bf16.mxu0 %vm11482_vm9, %v14905_v40 }
 0xfcc   : > { %v4255_v58 = vpop.permute.xlu1 %4254  ;;  %9880 = vmatprep.subr.bf16.mxu0 %v14905_v40 }
 0xfcd   : > { %v4263_v63 = vrot.slane %v4255_v58, %v12453_v23 }
 0xfcf   : > { %v4264_v21 = vsel %vm1841_vm11, %v4263_v63, %v4259_v32 }
 0xfd0   : > { %v4265_v18 = vpack.c.b16 %v4264_v21, %v4264_v21  ;;  %v4376_v19 = vpop.permute.xlu1 %4375 }
 0xfd1   : > { %v4383_v2 = vrot.slane %v4376_v19, %v12450_v22 }
 0xfd2   : > { %9871 = vmatmul.mubr.msk.bf16.vlgmr.msra.gmra.mrb[32].mxu0 %vm1921_vm3, %v4265_v18 }
 0xfd3   : > { %9881 = vmatpush3.bf16.msra.mxu0 %v12759_v27  ;;  %9882 = vmatprep.mubr.msk.bf16.mxu0 %vm11482_vm9, %v14905_v40 }
 0xfd4   : > { %v4379_v57 = vpop.permute.xlu1 %4378  ;;  %9892 = vmatprep.subr.bf16.mxu0 %v14905_v40 }
 0xfd5   : > { %v4387_v60 = vrot.slane %v4379_v57, %v12453_v23  ;;  %v4441_v57 = vpop.permute.xlu0 %4440 }
 0xfd6   : > { %v4449_v56 = vrot.slane %v4441_v57, %v12453_v23 }
 0xfd7   : > { %v4388_v38 = vsel %vm1841_vm11, %v4387_v60, %v4383_v2 }
 0xfd8   : > { %v4389_v44 = vpack.c.b16 %v4388_v38, %v4388_v38  ;;  %v4500_v48 = vpop.permute.xlu1 %4499 }
 0xfd9   : > { %v4507_v46 = vrot.slane %v4500_v48, %v12450_v22 }
 0xfda   : > { %9883 = vmatmul.mubr.msk.bf16.vlgmr.msra.gmra.mrb[36].mxu0 %vm1921_vm3, %v4389_v44 }
 0xfdb   : > { %9893 = vmatpush3.bf16.msra.mxu0 %v12771_v9  ;;  %9894 = vmatprep.mubr.msk.bf16.mxu0 %vm11482_vm9, %v14905_v40  ;;  %v4512_v49 = vsel %vm1841_vm11, %v4511_v30, %v4507_v46  ;;  %v4565_v46 = vpop.permute.xlu0 %4564 }
 0xfdc   : > { %v4190_v47 = vpop.permute.xlu1 %4189  ;;  %9904 = vmatprep.subr.bf16.mxu0 %v14905_v40  ;;  %v4513_v11 = vpack.c.b16 %v4512_v49, %v4512_v49  ;;  %v4573_v49 = vrot.slane %v4565_v46, %v12453_v23 }
 0xfdd   : > { %v4197_v6 = vrot.slane %v4190_v47, %v12450_v22 }
 0xfe0   : > { %v4193_v41 = vpop.permute.xlu1 %4192 }
 0xfe1   : > { %v4201_v0 = vrot.slane %v4193_v41, %v12453_v23  ;;  %v10438_v41 = vld [vmem:[#allocation30] sm:$0xff]  }
 0xfe2   : > { %9895 = vmatmul.mubr.msk.bf16.vlgmr.msra.gmra.mrb[40].mxu0 %vm1921_vm3, %v4513_v11 }
 0xfe3   : > { %v4202_v33 = vsel %vm1841_vm11, %v4201_v0, %v4197_v6  ;;  %9905 = vmatpush3.bf16.msra.mxu0 %v10436_v14  ;;  %9908 = vmatprep.mubr.msk.bf16.mxu0 %vm11482_vm9, %v14905_v40  ;;  %v10440_v6 = vld [vmem:[#allocation29] sm:$0xff]   ;;  %v10439_v0 = vld [vmem:[#allocation30 + $0x8] sm:$0xff]  }
 0xfe4   : > { %v4203_v58 = vpack.c.b16 %v4202_v33, %v4202_v33  ;;  %v4314_v32 = vpop.permute.xlu1 %4313  ;;  %9906 = vmatprep.subr.bf16.mxu0 %v14905_v40  ;;  %v9467_v33 = vld [vmem:[%s12204_s22 + $0x4] sm:$0xf] }
 0xfe5   : > { %v4321_v21 = vrot.slane %v4314_v32, %v12450_v22 }
 0xfe6   : > { %9865 = vmatmul.mubr.msk.bf16.vlgmr.msra.gmra.mrb[32].mxu1 %vm1921_vm3, %v4203_v58 }
 0xfe7   : > { %9907 = vmatpush3.bf16.msra.mxu0 %v10437_v51  ;;  %9875 = vmatpush3.bf16.msra.mxu1 %v12807_v5 }
 0xfe8   : > { %v4317_v63 = vpop.permute.xlu1 %4316  ;;  %9876 = vmatprep.mubr.msk.bf16.mxu1 %vm11482_vm9, %v14905_v40  ;;  %9886 = vmatprep.subr.bf16.mxu1 %v14905_v40 }
 0xfe9   : > { %v4325_v18 = vrot.slane %v4317_v63, %v12453_v23  ;;  %9920 = vmatprep.subr.bf16.mxu0 %v14905_v40 }
 0xfea   : > { %9909 = vmatmul.mubr.msk.bf16.vlgmr.msra.gmra.mrb[44].mxu0 %vm1552_vm10, %v12892_v62 }
 0xfeb   : > { %v4326_v19 = vsel %vm1841_vm11, %v4325_v18, %v4321_v21  ;;  %9922 = vmatprep.mubr.msk.bf16.mxu0 %vm11482_vm9, %v14905_v40  ;;  %9921 = vmatpush3.bf16.msra.mxu0 %v10440_v6  ;;  %v9462_v6 = vld [vmem:[#allocation27] ss:$0 sm:$0xff] }
 0xfec   : > { %v4327_v2 = vpack.c.b16 %v4326_v19, %v4326_v19  ;;  %v4438_v60 = vpop.permute.xlu1 %4437  ;;  %9934 = vmatprep.subr.bf16.mxu0 %v14905_v40 }
 0xfed   : > { %v4445_v38 = vrot.slane %v4438_v60, %v12450_v22 }
 0xfee   : > { %9877 = vmatmul.mubr.msk.bf16.vlgmr.msra.gmra.mrb[36].mxu1 %vm1921_vm3, %v4327_v2 }
 0xfef   : > { %9887 = vmatpush3.bf16.msra.mxu1 %v12819_v8  ;;  %9888 = vmatprep.mubr.msk.bf16.mxu1 %vm11482_vm9, %v14905_v40  ;;  %v4450_v44 = vsel %vm1841_vm11, %v4449_v56, %v4445_v38 }
 0xff0   : > { %9898 = vmatprep.subr.bf16.mxu1 %v14905_v40  ;;  %v4562_v48 = vpop.permute.xlu1 %4561  ;;  %v4451_v30 = vpack.c.b16 %v4450_v44, %v4450_v44 }
 0xff1   : > { %v4569_v47 = vrot.slane %v4562_v48, %v12450_v22 }
 0xff2   : > { %9923 = vmatmul.mubr.msk.bf16.vlgmr.msra.gmra.mrb[48].mxu0 %vm1921_vm3, %v9467_v33 }
 0xff3   : > { %v4574_v14 = vsel %vm1841_vm11, %v4573_v49, %v4569_v47  ;;  %9938 = vmatprep.mubr.msk.bf16.mxu0 %vm11482_vm9, %v14905_v40 }
 0xff4   : > { %v4575_v11 = vpack.c.b16 %v4574_v14, %v4574_v14 }
 0xff6   : > { %9889 = vmatmul.mubr.msk.bf16.vlgmr.msra.gmra.mrb[40].mxu1 %vm1921_vm3, %v4451_v30 }
 0xff7   : > { %9899 = vmatpush3.bf16.msra.mxu1 %v12831_v1  ;;  %9900 = vmatprep.mubr.msk.bf16.mxu1 %vm11482_vm9, %v14905_v40 }
 0xff8   : > { %9912 = vmatprep.subr.bf16.mxu1 %v14905_v40 }
 0xffe   : > { %9901 = vmatmul.mubr.msk.bf16.vlgmr.msra.gmra.mrb[44].mxu1 %vm1921_vm3, %v4575_v11 }
 0xfff   : > { %9916 = vmatprep.mubr.msk.bf16.mxu1 %vm11482_vm9, %v14905_v40  ;;  %9913 = vmatpush3.bf16.msra.mxu1 %v10438_v41 }
0x1000   : > { %9914 = vmatprep.subr.bf16.mxu1 %v14905_v40 }
0x1003   : > { %9915 = vmatpush3.bf16.msra.mxu1 %v10439_v0 }
0x1004   : > { %9926 = vmatprep.subr.bf16.mxu1 %v14905_v40 }
0x109d   : > { %v4179_v51 = vpop.f32.mrb[28].mxu0 }
0x109e   : > { %v9860_v58 = vpop.f32.mrb[29].mxu0 }
0x109f   : > { %v4182_v32 = vpop.f32.mrb[30].mxu0 }
0x10a0   : > { %v9861_v63 = vpop.f32.mrb[31].mxu0 }
0x10a5   : > { %v4303_v21 = vpop.f32.mrb[32].mxu0 }
0x10a6   : > { %v9872_v18 = vpop.f32.mrb[33].mxu0  ;;  %v4698_v11 = vrot.slane %v4303_v21, 6 }
0x10a7   : > { %v4306_v19 = vpop.f32.mrb[34].mxu0 }
0x10a8   : > { %v9873_v57 = vpop.f32.mrb[35].mxu0 }
0x10ad   : > { %v4427_v2 = vpop.f32.mrb[36].mxu0 }
0x10ae   : > { %v9884_v60 = vpop.f32.mrb[37].mxu0 }
0x10af   : > { %v4430_v38 = vpop.f32.mrb[38].mxu0 }
0x10b0   : > { %v9885_v56 = vpop.f32.mrb[39].mxu0 }
0x10b5   : > { %v4551_v44 = vpop.f32.mrb[40].mxu0 }
0x10b6   : > { %v9896_v48 = vpop.f32.mrb[41].mxu0 }
0x10b7   : > { %v4554_v46 = vpop.f32.mrb[42].mxu0 }
0x10b8   : > { %v9897_v30 = vpop.f32.mrb[43].mxu0  ;;  %v4702_v46 = vrot.slane %v4427_v2, 4 }
0x10b9   : > { %v4241_v47 = vpop.f32.mrb[32].mxu1 }
0x10ba   : > { %v4696_v49 = vrot.slane %v4241_v47, 7  ;;  %v9866_v14 = vpop.f32.mrb[33].mxu1 }
0x10bb   : > { %v4244_v41 = vpop.f32.mrb[34].mxu1 }
0x10bc   : > { %v4697_v0 = vsel %vm1906_vm12, %v4696_v49, %v4179_v51  ;;  %v9867_v33 = vpop.f32.mrb[35].mxu1 }
0x10bd   : > { %v4676_v58 = vpop.f32.mrb[44].mxu0  ;;  %v4699_v32 = vsel %vm1908_vm13, %v4698_v11, %v4697_v0  ;;  %v4706_v11 = vrot.slane %v4551_v44, 2 }
0x10be   : > { %v4677_v63 = vadd.f32 %v9462_v6, %v4676_v58  ;;  %v9910_v18 = vpop.f32.mrb[45].mxu0 }
0x10bf   : > { %v4679_v19 = vpop.f32.mrb[46].mxu0 }
0x10c0   : > { %v9466_v57 = vmul.f32 -1.442695, %v4677_v63  ;;  %v9911_v60 = vpop.f32.mrb[47].mxu0 }
0x10c1   : > { %v4365_v38 = vpop.f32.mrb[36].mxu1 }
0x10c2   : > { %10547 = vpow2.f32 %v9466_v57  ;;  %v4700_v56 = vrot.slane %v4365_v38, 5  ;;  %v9878_v48 = vpop.f32.mrb[37].mxu1 }
0x10c3   : > { %v4368_v30 = vpop.f32.mrb[38].mxu1 }
0x10c4   : > { %v4701_v21 = vsel %vm1910_vm14, %v4700_v56, %v4699_v32  ;;  %v9879_v47 = vpop.f32.mrb[39].mxu1  ;;  %v10442_v30 = vld [vmem:[#allocation32 + $0x8] sm:$0xff]  }
0x10c5   : > { %v4703_v51 = vsel %vm1912_vm15, %v4702_v46, %v4701_v21  ;;  %v10441_v46 = vld [vmem:[#allocation32] sm:$0xff]   ;;  %v4819_v21 = vpop.f32.mrb[48].mxu0 }
0x10c6   : > { %v9924_v47 = vpop.f32.mrb[49].mxu0 }
0x10c9   : > { %v4489_v49 = vpop.f32.mrb[40].mxu1 }
0x10ca   : > { %v4704_v14 = vrot.slane %v4489_v49, 3  ;;  %v9890_v41 = vpop.f32.mrb[41].mxu1 }
0x10cb   : > { %v4492_v6 = vpop.f32.mrb[42].mxu1 }
0x10cc   : > { %v10548_v0 = vpop.eup %10547  ;;  %v4705_v33 = vsel %vm1914_vm0, %v4704_v14, %v4703_v51  ;;  %v9891_v58 = vpop.f32.mrb[43].mxu1 }
0x10cd   : > { %v4685_v63 = vadd.f32 1.0, %v10548_v0  ;;  %v4707_v18 = vsel %vm1916_vm1, %v4706_v11, %v4705_v33  ;;  %v4822_v51 = vpop.f32.mrb[50].mxu0  ;;  %v9473_v33 = vld [vmem:[#allocation33] ss:$0 sm:$0xff] }
0x10ce   : > { %v9925_v49 = vpop.f32.mrb[51].mxu0 }
0x10cf   : > { %10549 = vrcp.f32 %v4685_v63  ;;  %v13311_v49 = vsel %vm3153_vm5, %v12873_v59, %v12870_v10 }
0x10d1   : > { %v4613_v2 = vpop.f32.mrb[44].mxu1 }
0x10d2   : > { %v4708_v19 = vrot.slane %v4613_v2, 1  ;;  %v9902_v57 = vpop.f32.mrb[45].mxu1 }
0x10d3   : > { %v4616_v32 = vpop.f32.mrb[46].mxu1 }
0x10d4   : > { %v4709_v60 = vsel %vm1918_vm2, %v4708_v19, %v4707_v18  ;;  %v9903_v38 = vpop.f32.mrb[47].mxu1  ;;  %v9477_v18 = vld [vmem:[#allocation35] ss:$0 sm:$0xff] }
0x10d5   : > { %v10669_v38 = vld [vmem:[#allocation11] sm:$0xff] }
0x10d9   : > { %v10550_v56 = vpop.eup %10549 }
0x10da   : > { %v4711_v48 = vadd.f32 %v10550_v56, %v4709_v60  ;;  %v4992_v60 = vstv %s3439_s10 }
0x10db   : > { %vm4993_vm6 = vcmp.gt.s32.totalorder %v10669_v38, %v4992_v60 }
0x10dc   : > { %v4716_v44 = vpack.c.bf16 %v4711_v48, %v4711_v48  ;;  %v4994_v48 = vsel %vm4993_vm6, 1, %v14913_v31 }
0x10de   : > { %9917 = vmatmul.mubr.msk.bf16.vlgmr.msra.gmra.mrb[48].mxu1 %vm1552_vm10, %v4716_v44 }
0x10df   : > { %9927 = vmatpush3.bf16.msra.mxu1 %v10441_v46  ;;  %9930 = vmatprep.mubr.msk.bf16.mxu1 %vm11482_vm9, %v14905_v40 }
0x10e0   : > { %9928 = vmatprep.subr.bf16.mxu1 %v14905_v40 }
0x10e3   : > { %9929 = vmatpush3.bf16.msra.mxu1 %v10442_v30 }
0x10e4   : > { %9942 = vmatprep.subr.bf16.mxu1 %v14905_v40 }
0x10e6   : > { %9931 = vmatmul.mubr.msk.bf16.vlgmr.msra.gmra.mrb[52].mxu1 %vm1552_vm10, %v12892_v62 }
0x10e7   : > { %9946 = vmatprep.mubr.msk.bf16.mxu1 %vm11482_vm9, %v14905_v40 }
0x11b1   : > { %v4770_v14 = vpop.f32.mrb[48].mxu1 }
0x11b2   : > { %v4820_v41 = vadd.f32 %v4819_v21, %v4770_v14  ;;  %v9918_v11 = vpop.f32.mrb[49].mxu1 }
0x11b3   : > { %v4773_v6 = vpop.f32.mrb[50].mxu1 }
0x11b4   : > { %v9919_v0 = vpop.f32.mrb[51].mxu1  ;;  %v4832_v58 = vadd.f32 %v9473_v33, %v4820_v41  ;;  %v10443_v6 = vld [vmem:[#allocation15] sm:$0xff]  }
0x11b5   : > { %9943 = vmatpush3.bf16.msra.mxu1 %v10443_v6  ;;  %v10444_v0 = vld [vmem:[#allocation15 + $0x8] sm:$0xff]  }
0x11b6   : > { %9944 = vmatprep.subr.bf16.mxu1 %v14905_v40 }
0x11b9   : > { %v4883_v63 = vpop.f32.mrb[52].mxu1  ;;  %9945 = vmatpush3.bf16.msra.mxu1 %v10444_v0 }
0x11ba   : > { %v4889_v2 = vadd.f32 %v4883_v63, %v4832_v58  ;;  %v9932_v19 = vpop.f32.mrb[53].mxu1  ;;  %9956 = vmatprep.subr.bf16.mxu1 %v14905_v40  ;;  %v14938_v63 = vld [vmem:[#allocation66_spill] sm:$0xff] }
0x11bb   : > { %v4886_v62 = vpop.f32.mrb[54].mxu1 }
0x11bc   : > { %v4897_v57 = vadd.f32 %v9477_v18, %v4889_v2  ;;  %v9933_v32 = vpop.f32.mrb[55].mxu1  ;;  %v14940_v62 = vld [vmem:[#allocation84_spill] sm:$0xff] }
0x11be   : > { %10551 = vtanh.f32 %v4897_v57  ;;  %v9478_v46 = vmul.f32 -1.442695, %v4897_v57  ;;  %v9487_v57 = vld [vmem:[#allocation17] ss:$0 sm:$0xff] }
0x11c0   : > { %10553 = vpow2.f32 %v9478_v46 }
0x11c8   : > { %v10552_v56 = vpop.eup %10551 }
0x11c9   : > { %4907 = vrot.lane.b32.xlu1 %v10552_v56, %s14806_s24 }
0x11ca   : > { %v10554_v44 = vpop.eup %10553 }
0x11cb   : > { %v4901_v30 = vadd.f32 1.0, %v10554_v44 }
0x11cd   : > { %4996 = vperm.xlu1 %10422, %v4994_v48   ;;  %10555 = vrcp.f32 %v4901_v30 }
0x11d7   : > { %v10556_v21 = vpop.eup %10555 }
0x11d8   : > { %v4905_v14 = vmul.f32 %v10556_v21, %v13311_v49 }
0x123b   : > { %v4908_v47 = vpop.permute.xlu1 %4907 }
0x123c   : > { %v4910_v51 = vmul.f32 %v10556_v21, %v4908_v47 }
0x123e   : > { %4912 = vrot.lane.b32.xlu0 %v4910_v51, %s11485_s8 }
0x124c   : > { %v13320_v10 = vpop.permute.xlu1 %4996 }
0x124d   : > { %14937 = vst [vmem:[#allocation99_spill] sm:$0xff] %v13320_v10  ;;  %vm4998_vm7 = vcmp.eq.s32.totalorder %v13320_v10, 1 }
0x12b0   : > { %v4913_v41 = vpop.permute.xlu0 %4912 }
0x12b1   : > { %v13314_v11 = vadd.f32 %v4913_v41, %v4905_v14 }
0x12b3   : > { %10557 = vtanh.f32 %v13314_v11 }
0x12bd   : > { %v10558_v33 = vpop.eup %10557 }
0x12be   : > { %4918 = vrot.lane.b32.xlu0 %v10558_v33, %s14806_s24 }
0x1330   : > { %v4919_v59 = vpop.permute.xlu0 %4918 }
0x1331   : > { %v13322_v58 = vmul.f32 %v10556_v21, %v4919_v59 }
0x1333   : > { %v13329_v18 = vsel %vm4998_vm7, %v13322_v58, %v14938_v63  ;;  %v10670_v63 = vld [vmem:[#allocation4 + $0x8] sm:$0xff] }
0x1334   : > { %14939 = vst [vmem:[#allocation66_spill] sm:$0xff] %v13329_v18  ;;  %v5280_v2 = vpack.c.bf16 %v13329_v18, %v13329_v18 }
0x1336   : > { %5293 = vrot.lane.b32.xlu1 %v5280_v2, %s11485_s8 }
0x13a8   : > { %v13334_v19 = vpop.permute.xlu1 %5293 }
0x13a9   : > { %9947 = vmatmul.mubr.msk.bf16.vlgmr.msra.gmra.mrb[56].mxu1 %vm1552_vm10, %v13334_v19 }
0x13aa   : > { %9957 = vmatpush3.bf16.msra.mxu1 %v14940_v62  ;;  %9958 = vmatprep.mubr.msk.bf16.mxu1 %vm11482_vm9, %v14905_v40 }
0x13ab   : > { %9968 = vmatprep.subr.bf16.mxu1 %v14905_v40 }
0x147c   : > { %v5344_v32 = vpop.f32.mrb[56].mxu1 }
0x147d   : > { %v5345_v60 = vadd.f32 %v9487_v57, %v5344_v32  ;;  %v9948_v38 = vpop.f32.mrb[57].mxu1  ;;  %v10671_v57 = vld [vmem:[#allocation4] sm:$0xff] }
0x147e   : > { %v5347_v56 = vpop.f32.mrb[58].mxu1 }
0x147f   : > { %v5351_v48 = vcombine.high %v5345_v60, %v5345_v60  ;;  %v5358_v46 = vrot.slane %v5345_v60, %v14920_v17  ;;  %v9949_v44 = vpop.f32.mrb[59].mxu1 }
0x1481   : > { %v5365_v30 = vrot.slane %v5351_v48, %v14920_v17  ;;  %v5366_v21 = vcombine.high %v5358_v46, %v5358_v46  ;;  %v5374_v47 = vrot.slane %v5358_v46, %v14920_v17  ;;  %v10672_v48 = vld [vmem:[#allocation4 + $0x20] sm:$0xff] }
0x1483   : > { %v5367_v51 = vcombine.high %v5365_v30, %v5365_v30  ;;  %v5381_v14 = vrot.slane %v5365_v30, %v14920_v17  ;;  %v5388_v41 = vrot.slane %v5366_v21, %v14920_v17  ;;  %v5396_v6 = vcombine.high %v5374_v47, %v5374_v47 }
0x1484   : > { %v5403_v0 = vrot.slane %v5374_v47, %v12394_v26  ;;  %v10673_v47 = vld [vmem:[#allocation4 + $0x10] sm:$0xff] }
0x1485   : > { %v5398_v33 = vcombine.high %v5388_v41, %v5388_v41  ;;  %v5411_v59 = vrot.slane %v5396_v6, %v12394_v26  ;;  %v5407_v60 = vrot.slane %v5388_v41, %v12394_v26  ;;  %v5419_v38 = vrot.slane %v5381_v14, %v12394_v26  ;;  %v13353_v41 = vld [vmem:[#allocation18] ss:$0 sm:$0xff] }
0x1486   : > { %v5441_v2 = vadd.f32 %v10670_v63, %v5403_v0  ;;  %v5440_v32 = vadd.f32 %v10671_v57, %v5403_v0  ;;  %v5395_v56 = vrot.slane %v5367_v51, %v14920_v17  ;;  %v10675_v63 = vld [vmem:[#allocation4 + $0x40] sm:$0xff]  ;;  %v10676_v0 = vld [vmem:[#allocation4 + $0x28] sm:$0xff] }
0x1487   : > { %v5444_v46 = vadd.f32 %v10672_v48, %v5411_v59  ;;  %v5415_v44 = vrot.slane %v5398_v33, %v12394_v26  ;;  %v5442_v12 = vadd.f32 %v10673_v47, %v5407_v60  ;;  %v5443_v6 = vadd.f32 %v10674_v42, %v5407_v60 }
0x1488   : > { %v5457_v30 = vmax.f32 %v5441_v2, 0.0  ;;  %v5456_v21 = vmax.f32 %v5440_v32, 0.0  ;;  %v5448_v50 = vadd.f32 %v10675_v63, %v5419_v38  ;;  %v5445_v57 = vadd.f32 %v10676_v0, %v5411_v59 }
0x1489   : > { %v5460_v24 = vmax.f32 %v5444_v46, 0.0  ;;  %v5458_v48 = vmax.f32 %v5442_v12, 0.0  ;;  %v5446_v33 = vadd.f32 %v10678_v7, %v5415_v44  ;;  %v5397_v2 = vcombine.high %v5381_v14, %v5381_v14  ;;  %v10679_v14 = vld [vmem:[#allocation4 + $0x48] sm:$0xff] }
0x148a   : > { %v5473_v39 = vmul.f32 %v13353_v41, %v5457_v30  ;;  %v5472_v51 = vmul.f32 %v13353_v41, %v5456_v21  ;;  %v5459_v47 = vmax.f32 %v5443_v6, 0.0  ;;  %v5464_v29 = vmax.f32 %v5448_v50, 0.0  ;;  %v10680_v6 = vld [vmem:[#allocation4 + $0x50] sm:$0xff] }
0x148b   : > { %v5476_v32 = vmul.f32 %v13353_v41, %v5460_v24  ;;  %v5474_v59 = vmul.f32 %v13353_v41, %v5458_v48  ;;  %v5423_v46 = vrot.slane %v5395_v56, %v12394_v26  ;;  %v5461_v30 = vmax.f32 %v5445_v57, 0.0 }
0x148c   : > { %v5491_v42 = vsel %vm1552_vm10, %v5473_v39, 0.0  ;;  %v5488_v60 = vsel %vm1552_vm10, %v5472_v51, 0.0  ;;  %v5462_v21 = vmax.f32 %v5446_v33, 0.0  ;;  %v5475_v24 = vmul.f32 %v13353_v41, %v5459_v47  ;;  %v10681_v47 = vld [vmem:[#allocation4 + $0x38] sm:$0xff] }
0x148d   : > { %5492 = vadd.xlane.f32.xlu1 %v5491_v42  ;;  %5489 = vadd.xlane.f32.xlu0 %v5488_v60  ;;  %v5500_v12 = vsel %vm1552_vm10, %v5476_v32, 0.0  ;;  %v5494_v7 = vsel %vm1552_vm10, %v5474_v59, 0.0  ;;  %v5480_v50 = vmul.f32 %v13353_v41, %v5464_v29  ;;  %v5449_v39 = vadd.f32 %v10679_v14, %v5419_v38  ;;  %v10682_v38 = vld [vmem:[#allocation4 + $0x60] sm:$0xff] }
0x148e   : > { %v5450_v63 = vadd.f32 %v10680_v6, %v5423_v46  ;;  %v5427_v0 = vrot.slane %v5397_v2, %v12394_v26  ;;  %v5399_v51 = vcombine.high %v5395_v56, %v5395_v56  ;;  %v5477_v57 = vmul.f32 %v13353_v41, %v5461_v30 }
0x148f   : > { %v5497_v48 = vsel %vm1552_vm10, %v5475_v24, 0.0  ;;  %v5512_v33 = vsel %vm1552_vm10, %v5480_v50, 0.0  ;;  %v5478_v32 = vmul.f32 %v13353_v41, %v5462_v21  ;;  %v5447_v42 = vadd.f32 %v10681_v47, %v5415_v44  ;;  %v10684_v50 = vld [vmem:[#allocation4 + $0x70] sm:$0xff] }
0x1490   : > { %v5465_v29 = vmax.f32 %v5449_v39, 0.0  ;;  %v5466_v60 = vmax.f32 %v5450_v63, 0.0  ;;  %v5452_v59 = vadd.f32 %v10682_v38, %v5427_v0  ;;  %v5431_v14 = vrot.slane %v5399_v51, %v12394_v26  ;;  %v10685_v51 = vld [vmem:[#allocation4 + $0x68] sm:$0xff] }
0x1491   : > { %5501 = vadd.xlane.f32.xlu1 %v5500_v12  ;;  %5495 = vadd.xlane.f32.xlu0 %v5494_v7  ;;  %v5503_v56 = vsel %vm1552_vm10, %v5477_v57, 0.0  ;;  %v5506_v2 = vsel %vm1552_vm10, %v5478_v32, 0.0  ;;  %v5463_v30 = vmax.f32 %v5447_v42, 0.0  ;;  %v10683_v12 = vld [vmem:[#allocation4 + $0x58] sm:$0xff] }
0x1492   : > { %v5451_v7 = vadd.f32 %v10683_v12, %v5423_v46  ;;  %v5481_v24 = vmul.f32 %v13353_v41, %v5465_v29  ;;  %v5482_v21 = vmul.f32 %v13353_v41, %v5466_v60  ;;  %v5468_v44 = vmax.f32 %v5452_v59, 0.0  ;;  %v10686_v59 = vld [vmem:[#allocation4 + $0x78] sm:$0xff] }
0x1493   : > { %v5454_v39 = vadd.f32 %v10684_v50, %v5431_v14  ;;  %v5479_v6 = vmul.f32 %v13353_v41, %v5463_v30 }
0x1494   : > { %v5467_v63 = vmax.f32 %v5451_v7, 0.0  ;;  %v5515_v57 = vsel %vm1552_vm10, %v5481_v24, 0.0  ;;  %v5484_v46 = vmul.f32 %v13353_v41, %v5468_v44 }
0x1495   : > { %5498 = vadd.xlane.f32.xlu0 %v5497_v48  ;;  %5513 = vadd.xlane.f32.xlu1 %v5512_v33  ;;  %v5453_v48 = vadd.f32 %v10685_v51, %v5427_v0  ;;  %v5518_v33 = vsel %vm1552_vm10, %v5482_v21, 0.0  ;;  %v5470_v32 = vmax.f32 %v5454_v39, 0.0  ;;  %v5509_v29 = vsel %vm1552_vm10, %v5479_v6, 0.0 }
0x1496   : > { %v5483_v47 = vmul.f32 %v13353_v41, %v5467_v63  ;;  %v5524_v60 = vsel %vm1552_vm10, %v5484_v46, 0.0  ;;  %v5455_v0 = vadd.f32 %v10686_v59, %v5431_v14  ;;  %v9491_v14 = vld [vmem:[#allocation5] ss:$0 sm:$0xff] }
0x1497   : > { %v5469_v42 = vmax.f32 %v5453_v48, 0.0  ;;  %v5486_v38 = vmul.f32 %v13353_v41, %v5470_v32 }
0x1498   : > { %v5471_v12 = vmax.f32 %v5455_v0, 0.0 }
0x1499   : > { %5504 = vadd.xlane.f32.xlu0 %v5503_v56  ;;  %5507 = vadd.xlane.f32.xlu1 %v5506_v2  ;;  %v5521_v56 = vsel %vm1552_vm10, %v5483_v47, 0.0  ;;  %v5530_v2 = vsel %vm1552_vm10, %v5486_v38, 0.0  ;;  %v5485_v30 = vmul.f32 %v13353_v41, %v5469_v42 }
0x149a   : > { %v5487_v24 = vmul.f32 %v13353_v41, %v5471_v12 }
0x149b   : > { %v5527_v7 = vsel %vm1552_vm10, %v5485_v30, 0.0 }
0x149c   : > { %v5533_v21 = vsel %vm1552_vm10, %v5487_v24, 0.0 }
0x149d   : > { %5516 = vadd.xlane.f32.xlu0 %v5515_v57  ;;  %5519 = vadd.xlane.f32.xlu1 %v5518_v33 }
0x14a1   : > { %5510 = vadd.xlane.f32.xlu0 %v5509_v29  ;;  %5525 = vadd.xlane.f32.xlu1 %v5524_v60 }
0x14a5   : > { %5522 = vadd.xlane.f32.xlu0 %v5521_v56  ;;  %5531 = vadd.xlane.f32.xlu1 %v5530_v2 }
0x14a9   : > { %5528 = vadd.xlane.f32.xlu0 %v5527_v7 }
0x14ad   : > { %5534 = vadd.xlane.f32.xlu0 %v5533_v21 }
0x14b6   : > { %5543 = vperm.xlu1 %10422, %v9491_v14  }
0x151a   : > { %v5493_v44 = vpop.xlane.xlu1 %5492  ;;  %v5490_v50 = vpop.xlane.xlu0 %5489 }
0x151e   : > { %v5502_v39 = vpop.xlane.xlu1 %5501  ;;  %v5496_v6 = vpop.xlane.xlu0 %5495 }
0x1522   : > { %v5499_v63 = vpop.xlane.xlu0 %5498  ;;  %v5514_v51 = vpop.xlane.xlu1 %5513 }
0x1526   : > { %v5505_v48 = vpop.xlane.xlu0 %5504  ;;  %v5508_v57 = vpop.xlane.xlu1 %5507 }
0x152a   : > { %v5517_v33 = vpop.xlane.xlu0 %5516  ;;  %v5520_v46 = vpop.xlane.xlu1 %5519 }
0x152e   : > { %v5511_v32 = vpop.xlane.xlu0 %5510  ;;  %v5526_v47 = vpop.xlane.xlu1 %5525 }
0x1532   : > { %v5523_v42 = vpop.xlane.xlu0 %5522  ;;  %v5532_v41 = vpop.xlane.xlu1 %5531 }
0x1536   : > { %v5529_v29 = vpop.xlane.xlu0 %5528  ;;  %v5544_v60 = vpop.permute.xlu1 %5543 }
0x1537   : > { %v5546_v38 = vadd.f32 %v5544_v60, %v5490_v50  ;;  %v5547_v59 = vadd.f32 %v5544_v60, %v5493_v44  ;;  %v13390_v0 = vadd.f32 %v5544_v60, %v5496_v6  ;;  %v13392_v56 = vadd.f32 %v5544_v60, %v5499_v63 }
0x1538   : > { %v5550_v2 = vadd.f32 %v5544_v60, %v5502_v39  ;;  %v13394_v30 = vadd.f32 %v5544_v60, %v5505_v48  ;;  %v13396_v12 = vadd.f32 %v5544_v60, %v5508_v57  ;;  %v13398_v7 = vadd.f32 %v5544_v60, %v5511_v32 }
0x1539   : > { %v13400_v24 = vadd.f32 %v5544_v60, %v5514_v51  ;;  %v13402_v14 = vadd.f32 %v5544_v60, %v5517_v33  ;;  %v13404_v16 = vadd.f32 %v5544_v60, %v5520_v46  ;;  %v13406_v50 = vadd.f32 %v5544_v60, %v5523_v42 }
0x153a   : > { %v5535_v21 = vpop.xlane.xlu0 %5534  ;;  %v5581_v44 = vrot.slane %v5546_v38, %v12450_v22  ;;  %v13409_v6 = vadd.f32 %v5544_v60, %v5526_v47  ;;  %v5585_v39 = vrot.slane %v5547_v59, %v12453_v23  ;;  %v5590_v63 = vrot.slane %v13390_v0, %v12450_v22 }
0x153b   : > { %v5594_v51 = vrot.slane %v13392_v56, %v12453_v23  ;;  %v13416_v48 = vadd.f32 %v5544_v60, %v5535_v21  ;;  %v13418_v57 = vadd.f32 %v5544_v60, %v5529_v29  ;;  %v5599_v33 = vrot.slane %v5550_v2, %v12450_v22 }
0x153c   : > { %v5603_v46 = vrot.slane %v13394_v30, %v12453_v23  ;;  %v5586_v32 = vsel %vm1841_vm11, %v5585_v39, %v5581_v44  ;;  %v5608_v42 = vrot.slane %v13396_v12, %v12450_v22  ;;  %v5612_v3 = vrot.slane %v13398_v7, %v12453_v23 }
0x153d   : > { %v5595_v47 = vsel %vm1841_vm11, %v5594_v51, %v5590_v63  ;;  %v5617_v29 = vrot.slane %v13400_v24, %v12450_v22  ;;  %v5621_v13 = vrot.slane %v13402_v14, %v12453_v23  ;;  %v13434_v4 = vadd.f32 %v5544_v60, %v5532_v41 }
0x153e   : > { %v5604_v21 = vsel %vm1841_vm11, %v5603_v46, %v5599_v33  ;;  %v5626_v44 = vrot.slane %v13404_v16, %v12450_v22  ;;  %v5630_v39 = vrot.slane %v13406_v50, %v12453_v23  ;;  %v5635_v63 = vrot.slane %v13409_v6, %v12450_v22 }
0x153f   : > { %v5639_v51 = vrot.slane %v13418_v57, %v12453_v23  ;;  %v5650_v33 = vsel %vm1906_vm12, %v5595_v47, %v5586_v32  ;;  %v5648_v46 = vrot.slane %v13416_v48, %v12453_v23  ;;  %v5613_v41 = vsel %vm1841_vm11, %v5612_v3, %v5608_v42 }
0x1540   : > { %v5651_v60 = vsel %vm1908_vm13, %v5604_v21, %v5650_v33  ;;  %v5622_v52 = vsel %vm1841_vm11, %v5621_v13, %v5617_v29  ;;  %v5631_v36 = vsel %vm1841_vm11, %v5630_v39, %v5626_v44  ;;  %v5644_v37 = vrot.slane %v13434_v4, %v12450_v22 }
0x1541   : > { %v5652_v15 = vsel %vm1910_vm14, %v5613_v41, %v5651_v60  ;;  %v5640_v32 = vsel %vm1841_vm11, %v5639_v51, %v5635_v63 }
0x1542   : > { %v5653_v28 = vsel %vm1912_vm15, %v5622_v52, %v5652_v15  ;;  %v5649_v43 = vsel %vm1841_vm11, %v5648_v46, %v5644_v37 }
0x1543   : > { %v5654_v47 = vsel %vm1914_vm0, %v5631_v36, %v5653_v28 }
0x1544   : > { %v5655_v3 = vsel %vm1916_vm1, %v5640_v32, %v5654_v47 }
0x1545   : > { %v5656_v42 = vsel %vm1918_vm2, %v5649_v43, %v5655_v3 }
0x1546   : > { %v5658_v13 = vsel %vm1921_vm3, %v5656_v42, -inf }
0x1547   : > { %5659 = vmax.xlane.f32.xlu0 %v5658_v13 }
0x15d4   : > { %v5660_v21 = vpop.xlane.xlu0 %5659 }
0x15d5   : > { %v5665_v29 = vrot.slane %v5660_v21, %v12394_v26  ;;  %v5673_v44 = vrot.slane %v5660_v21, %v12570_v25  ;;  %v5669_v52 = vrot.slane %v5660_v21, %v12545_v35  ;;  %v5677_v28 = vrot.slane %v5660_v21, %v12536_v53 }
0x15d6   : > { %v5681_v43 = vrot.slane %v5660_v21, %v12539_v54  ;;  %v5689_v47 = vrot.slane %v5660_v21, %v12551_v61 }
0x15d7   : > { %v5702_v15 = vsub.f32 %v5546_v38, %v5665_v29  ;;  %v5703_v39 = vsub.f32 %v5547_v59, %v5665_v29  ;;  %v5706_v36 = vsub.f32 %v5550_v2, %v5673_v44  ;;  %v5704_v37 = vsub.f32 %v13390_v0, %v5669_v52 }
0x15d8   : > { %v5708_v33 = vsub.f32 %v13396_v12, %v5677_v28  ;;  %v5705_v41 = vsub.f32 %v13392_v56, %v5669_v52  ;;  %v5685_v38 = vrot.slane %v5660_v21, %v12542_v55  ;;  %v5710_v59 = vsub.f32 %v13400_v24, %v5681_v43 }
0x15d9   : > { %v5718_v63 = vmul.f32 1.442695, %v5702_v15  ;;  %v5720_v51 = vmul.f32 1.442695, %v5703_v39  ;;  %v5726_v46 = vmul.f32 1.442695, %v5706_v36  ;;  %v5707_v0 = vsub.f32 %v13394_v30, %v5673_v44 }
0x15da   : > { %v5722_v60 = vmul.f32 1.442695, %v5704_v37  ;;  %v5730_v2 = vmul.f32 1.442695, %v5708_v33  ;;  %v5724_v32 = vmul.f32 1.442695, %v5705_v41  ;;  %v5712_v12 = vsub.f32 %v13404_v16, %v5685_v38 }
0x15db   : > { %10559 = vpow2.f32 %v5718_v63  ;;  %v5734_v3 = vmul.f32 1.442695, %v5710_v59  ;;  %v5709_v56 = vsub.f32 %v13398_v7, %v5677_v28  ;;  %v5728_v42 = vmul.f32 1.442695, %v5707_v0  ;;  %v10445_v0 = vld [vmem:[#allocation36] sm:$0xff]  }
0x15dc   : > { %10561 = vpow2.f32 %v5720_v51  ;;  %v5693_v30 = vrot.slane %v5660_v21, %v12562_v45  ;;  %v5714_v24 = vsub.f32 %v13409_v6, %v5689_v47  ;;  %v5738_v44 = vmul.f32 1.442695, %v5712_v12  ;;  %9935 = vmatpush3.bf16.msra.mxu0 %v10445_v0 }
0x15dd   : > { %10563 = vpow2.f32 %v5726_v46  ;;  %v5711_v16 = vsub.f32 %v13402_v14, %v5681_v43  ;;  %v5732_v7 = vmul.f32 1.442695, %v5709_v56  ;;  %v5713_v6 = vsub.f32 %v13406_v50, %v5685_v38  ;;  %9936 = vmatprep.subr.bf16.mxu0 %v14905_v40 }
0x15de   : > { %10565 = vpow2.f32 %v5722_v60  ;;  %v5716_v39 = vsub.f32 %v13434_v4, %v5693_v30  ;;  %v5742_v21 = vmul.f32 1.442695, %v5714_v24  ;;  %v5715_v4 = vsub.f32 %v13418_v57, %v5689_v47  ;;  %v10446_v47 = vld [vmem:[#allocation36 + $0x8] sm:$0xff]  }
0x15df   : > { %10567 = vpow2.f32 %v5730_v2  ;;  %v5736_v28 = vmul.f32 1.442695, %v5711_v16  ;;  %v5740_v63 = vmul.f32 1.442695, %v5713_v6  ;;  %v5717_v50 = vsub.f32 %v13416_v48, %v5693_v30 }
0x15e0   : > { %10569 = vpow2.f32 %v5724_v32  ;;  %v5746_v37 = vmul.f32 1.442695, %v5716_v39  ;;  %v5744_v33 = vmul.f32 1.442695, %v5715_v4  ;;  %v4922_v12 = vpack.c.bf16 %v13322_v58, %v13322_v58  ;;  %9937 = vmatpush3.bf16.msra.mxu0 %v10446_v47 }
0x15e1   : > { %10571 = vpow2.f32 %v5734_v3  ;;  %v5748_v57 = vmul.f32 1.442695, %v5717_v50  ;;  %9950 = vmatprep.subr.bf16.mxu0 %v14905_v40 }
0x15e2   : > { %10573 = vpow2.f32 %v5728_v42 }
0x15e3   : > { %10575 = vpow2.f32 %v5738_v44 }
0x15e4   : > { %10577 = vpow2.f32 %v5732_v7 }
0x15e5   : > { %v13475_v13 = vpop.eup %10559  ;;  %10579 = vpow2.f32 %v5742_v21 }
0x15e6   : > { %v13477_v29 = vpop.eup %10561  ;;  %5767 = vperm.xlu0 %10421, %v13475_v13   ;;  %10581 = vpow2.f32 %v5736_v28 }
0x15e7   : > { %5770 = vperm.xlu1 %10422, %v13477_v29   ;;  %v13484_v52 = vpop.eup %10563  ;;  %10583 = vpow2.f32 %v5746_v37 }
0x15e8   : > { %v13486_v15 = vpop.eup %10565  ;;  %10585 = vpow2.f32 %v5740_v63 }
0x15e9   : > { %v13492_v36 = vpop.eup %10567  ;;  %10587 = vpow2.f32 %v5744_v33 }
0x15ea   : > { %5779 = vperm.xlu0 %10421, %v13484_v52   ;;  %v13494_v14 = vpop.eup %10569  ;;  %10589 = vpow2.f32 %v5748_v57 }
0x15eb   : > { %5773 = vperm.xlu1 %10422, %v13486_v15   ;;  %v13499_v51 = vpop.eup %10571 }
0x15ec   : > { %v13501_v43 = vpop.eup %10573 }
0x15ed   : > { %v13506_v46 = vpop.eup %10575 }
0x15ee   : > { %5785 = vperm.xlu0 %10421, %v13492_v36   ;;  %v13508_v41 = vpop.eup %10577 }
0x15ef   : > { %5776 = vperm.xlu1 %10422, %v13494_v14   ;;  %v13512_v60 = vpop.eup %10579 }
0x15f0   : > { %v13514_v38 = vpop.eup %10581 }
0x15f1   : > { %v13518_v48 = vpop.eup %10583 }
0x15f2   : > { %5791 = vperm.xlu0 %10421, %v13499_v51   ;;  %v13520_v59 = vpop.eup %10585 }
0x15f3   : > { %5782 = vperm.xlu1 %10422, %v13501_v43   ;;  %v13524_v2 = vpop.eup %10587 }
0x15f4   : > { %v13527_v32 = vpop.eup %10589 }
0x15f6   : > { %5797 = vperm.xlu0 %10421, %v13506_v46  }
0x15f7   : > { %5788 = vperm.xlu1 %10422, %v13508_v41  }
0x15fa   : > { %5803 = vperm.xlu0 %10421, %v13512_v60  }
0x15fb   : > { %5794 = vperm.xlu1 %10422, %v13514_v38  }
0x15fe   : > { %5809 = vperm.xlu0 %10421, %v13518_v48  }
0x15ff   : > { %5800 = vperm.xlu1 %10422, %v13520_v59  }
0x1603   : > { %5806 = vperm.xlu1 %10422, %v13524_v2  }
0x1607   : > { %5812 = vperm.xlu1 %10422, %v13527_v32  }
0x160b   : > { %4935 = vrot.lane.b32.xlu1 %v4922_v12, %s11485_s8 }
0x1665   : > { %v5768_v3 = vpop.permute.xlu0 %5767 }
0x1666   : > { %v5771_v56 = vpop.permute.xlu1 %5770  ;;  %v5817_v50 = vrot.slane %v5768_v3, %v12450_v22 }
0x1667   : > { %v5821_v63 = vrot.slane %v5771_v56, %v12453_v23 }
0x1669   : > { %v5780_v42 = vpop.permute.xlu0 %5779  ;;  %v5822_v3 = vsel %vm1841_vm11, %v5821_v63, %v5817_v50 }
0x166a   : > { %v5774_v30 = vpop.permute.xlu1 %5773  ;;  %v5835_v0 = vrot.slane %v5780_v42, %v12450_v22 }
0x166b   : > { %v5826_v33 = vrot.slane %v5774_v30, %v12450_v22 }
0x166d   : > { %v5786_v24 = vpop.permute.xlu0 %5785 }
0x166e   : > { %v5777_v44 = vpop.permute.xlu1 %5776 }
0x166f   : > { %v5830_v28 = vrot.slane %v5777_v44, %v12453_v23  ;;  %v5844_v44 = vrot.slane %v5786_v24, %v12450_v22 }
0x1671   : > { %v5792_v7 = vpop.permute.xlu0 %5791  ;;  %v5831_v12 = vsel %vm1841_vm11, %v5830_v28, %v5826_v33 }
0x1672   : > { %v5783_v16 = vpop.permute.xlu1 %5782  ;;  %v5853_v56 = vrot.slane %v5792_v7, %v12450_v22 }
0x1673   : > { %v5839_v58 = vrot.slane %v5783_v16, %v12453_v23 }
0x1675   : > { %v5798_v21 = vpop.permute.xlu0 %5797  ;;  %v5840_v62 = vsel %vm1841_vm11, %v5839_v58, %v5835_v0 }
0x1676   : > { %v5789_v39 = vpop.permute.xlu1 %5788 }
0x1677   : > { %v5848_v57 = vrot.slane %v5789_v39, %v12453_v23  ;;  %v5862_v39 = vrot.slane %v5798_v21, %v12450_v22 }
0x1679   : > { %v5804_v37 = vpop.permute.xlu0 %5803  ;;  %v5849_v30 = vsel %vm1841_vm11, %v5848_v57, %v5844_v44 }
0x167a   : > { %v5795_v6 = vpop.permute.xlu1 %5794  ;;  %v5871_v24 = vrot.slane %v5804_v37, %v12450_v22 }
0x167b   : > { %v5857_v47 = vrot.slane %v5795_v6, %v12453_v23  ;;  %v5886_v6 = vsel %vm1906_vm12, %v5831_v12, %v5822_v3 }
0x167c   : > { %v5887_v58 = vsel %vm1908_vm13, %v5840_v62, %v5886_v6 }
0x167d   : > { %v5858_v28 = vsel %vm1841_vm11, %v5857_v47, %v5853_v56  ;;  %v5888_v33 = vsel %vm1910_vm14, %v5849_v30, %v5887_v58 }
0x167e   : > { %v5801_v4 = vpop.permute.xlu1 %5800  ;;  %v5889_v21 = vsel %vm1912_vm15, %v5858_v28, %v5888_v33 }
0x167f   : > { %v5866_v16 = vrot.slane %v5801_v4, %v12453_v23  ;;  %v5810_v4 = vpop.permute.xlu0 %5809 }
0x1681   : > { %v5867_v7 = vsel %vm1841_vm11, %v5866_v16, %v5862_v39 }
0x1682   : > { %v5807_v18 = vpop.permute.xlu1 %5806  ;;  %v5890_v0 = vsel %vm1914_vm0, %v5867_v7, %v5889_v21 }
0x1683   : > { %v5875_v42 = vrot.slane %v5807_v18, %v12453_v23  ;;  %v5880_v18 = vrot.slane %v5810_v4, %v12450_v22 }
0x1685   : > { %v5876_v63 = vsel %vm1841_vm11, %v5875_v42, %v5871_v24 }
0x1686   : > { %v5813_v50 = vpop.permute.xlu1 %5812  ;;  %v5891_v47 = vsel %vm1916_vm1, %v5876_v63, %v5890_v0 }
0x1687   : > { %v5884_v57 = vrot.slane %v5813_v50, %v12453_v23 }
0x1689   : > { %v5885_v37 = vsel %vm1841_vm11, %v5884_v57, %v5880_v18 }
0x168a   : > { %v4936_v62 = vpop.permute.xlu1 %4935  ;;  %v5892_v12 = vsel %vm1918_vm2, %v5885_v37, %v5891_v47 }
0x168b   : > { %9939 = vmatmul.mubr.msk.bf16.vlgmr.msra.gmra.mrb[52].mxu0 %vm1552_vm10, %v4936_v62  ;;  %v5894_v44 = vsel %vm1921_vm3, %v5892_v12, 0.0 }
0x168c   : > { %5895 = vadd.xlane.f32.xlu0 %v5894_v44  ;;  %9951 = vmatpush3.bf16.msra.mxu0 %v12736_v34 }
0x168d   : > { %9952 = vmatprep.mubr.msk.bf16.mxu0 %vm11482_vm9, %v14905_v40  ;;  %9962 = vmatprep.subr.bf16.mxu0 %v14905_v40 }
0x1719   : > { %v5896_v16 = vpop.xlane.xlu0 %5895 }
0x171a   : > { %10591 = vrcp.f32 %v5896_v16 }
0x1724   : > { %v10592_v56 = vpop.eup %10591 }
0x1725   : > { %v5926_v3 = vrot.slane %v10592_v56, %v12551_v61  ;;  %v5902_v30 = vrot.slane %v10592_v56, %v12394_v26  ;;  %v5922_v39 = vrot.slane %v10592_v56, %v12542_v55  ;;  %v5930_v42 = vrot.slane %v10592_v56, %v12562_v45 }
0x1726   : > { %v5910_v6 = vrot.slane %v10592_v56, %v12570_v25  ;;  %v5918_v18 = vrot.slane %v10592_v56, %v12539_v54  ;;  %v5906_v16 = vrot.slane %v10592_v56, %v12545_v35 }
0x1727   : > { %v13578_v28 = vmul.f32 %v13512_v60, %v5926_v3  ;;  %v13581_v24 = vmul.f32 %v13524_v2, %v5926_v3  ;;  %v13584_v4 = vmul.f32 %v13475_v13, %v5902_v30  ;;  %v13587_v58 = vmul.f32 %v13477_v29, %v5902_v30 }
0x1728   : > { %v13590_v7 = vmul.f32 %v13506_v46, %v5922_v39  ;;  %v13593_v33 = vmul.f32 %v13520_v59, %v5922_v39  ;;  %v13600_v2 = vmul.f32 %v13518_v48, %v5930_v42  ;;  %v13603_v13 = vmul.f32 %v13527_v32, %v5930_v42 }
0x1729   : > { %14941 = vst [vmem:[#allocation100_spill] sm:$0xff] %v13578_v28  ;;  %14942 = vst [vmem:[#allocation101_spill] sm:$0xff] %v13581_v24  ;;  %v5961_v63 = vpack.c.bf16 %v13581_v24, %v13578_v28  ;;  %v5955_v60 = vpack.c.bf16 %v13587_v58, %v13584_v4  ;;  %v13606_v29 = vmul.f32 %v13484_v52, %v5910_v6 }
0x172a   : > { %14943 = vst [vmem:[#allocation102_spill] sm:$0xff] %v13587_v58  ;;  %14944 = vst [vmem:[#allocation103_spill] sm:$0xff] %v13590_v7  ;;  %v5960_v59 = vpack.c.bf16 %v13593_v33, %v13590_v7  ;;  %v13611_v21 = vmul.f32 %v13501_v43, %v5910_v6  ;;  %v5962_v32 = vpack.c.bf16 %v13603_v13, %v13600_v2  ;;  %v10696_v7 = vld [vmem:[#allocation4 + $0x30] sm:$0xff] }
0x172b   : > { %14945 = vst [vmem:[#allocation104_spill] sm:$0xff] %v13593_v33  ;;  %14946 = vst [vmem:[#allocation105_spill] sm:$0xff] %v13600_v2  ;;  %v6337_v46 = vunpack.c.h.b16 %v5961_v63  ;;  %v5964_v50 = vunpack.c.l.b16 %v5955_v60  ;;  %v5965_v57 = vunpack.c.h.b16 %v5955_v60  ;;  %v13619_v47 = vmul.f32 %v13499_v51, %v5918_v18 }
0x172c   : > { %14947 = vst [vmem:[#allocation106_spill] sm:$0xff] %v13603_v13  ;;  %14948 = vst [vmem:[#allocation107_spill] sm:$0xff] %v13606_v29  ;;  %v6275_v48 = vunpack.c.h.b16 %v5960_v59  ;;  %v5957_v52 = vpack.c.bf16 %v13611_v21, %v13606_v29  ;;  %v6399_v0 = vunpack.c.h.b16 %v5962_v32  ;;  %v13622_v43 = vmul.f32 %v13514_v38, %v5918_v18 }
0x172d   : > { %14949 = vst [vmem:[#allocation108_spill] sm:$0xff] %v13611_v21  ;;  %6342 = vperm.xlu0 %10421, %v6337_v46   ;;  %5967 = vperm.xlu1 %10422, %v5964_v50   ;;  %14950 = vst [vmem:[#allocation109_spill] sm:$0xff] %v13619_v47  ;;  %v13628_v30 = vmul.f32 %v13486_v15, %v5906_v16  ;;  %v13631_v51 = vmul.f32 %v13494_v14, %v5906_v16  ;;  %v6336_v38 = vunpack.c.l.b16 %v5961_v63 }
0x172e   : > { %v6088_v37 = vunpack.c.l.b16 %v5957_v52  ;;  %14951 = vst [vmem:[#allocation110_spill] sm:$0xff] %v13622_v43  ;;  %v6089_v62 = vunpack.c.h.b16 %v5957_v52  ;;  %v5959_v12 = vpack.c.bf16 %v13622_v43, %v13619_v47  ;;  %v5914_v42 = vrot.slane %v10592_v56, %v12536_v53 }
0x172f   : > { %14952 = vst [vmem:[#allocation111_spill] sm:$0xff] %v13628_v30  ;;  %14953 = vst [vmem:[#allocation112_spill] sm:$0xff] %v13631_v51  ;;  %v5956_v39 = vpack.c.bf16 %v13631_v51, %v13628_v30  ;;  %v6274_v18 = vunpack.c.l.b16 %v5960_v59  ;;  %v6398_v56 = vunpack.c.l.b16 %v5962_v32 }
0x1730   : > { %v6212_v44 = vunpack.c.l.b16 %v5959_v12  ;;  %v6213_v3 = vunpack.c.h.b16 %v5959_v12  ;;  %v13637_v60 = vmul.f32 %v13492_v36, %v5914_v42  ;;  %v13640_v46 = vmul.f32 %v13508_v41, %v5914_v42 }
0x1731   : > { %6280 = vperm.xlu0 %10421, %v6275_v48   ;;  %5970 = vperm.xlu1 %10422, %v5965_v57   ;;  %v6026_v6 = vunpack.c.l.b16 %v5956_v39  ;;  %v6027_v15 = vunpack.c.h.b16 %v5956_v39  ;;  %v9479_v48 = vld [vmem:[#allocation38] ss:$0 sm:$0xff] }
0x1732   : > { %14954 = vst [vmem:[#allocation113_spill] sm:$0xff] %v13637_v60  ;;  %14955 = vst [vmem:[#allocation114_spill] sm:$0xff] %v13640_v46  ;;  %v5958_v14 = vpack.c.bf16 %v13640_v46, %v13637_v60 }
0x1734   : > { %v6150_v63 = vunpack.c.l.b16 %v5958_v14  ;;  %v6151_v50 = vunpack.c.h.b16 %v5958_v14 }
0x1735   : > { %6404 = vperm.xlu0 %10421, %v6399_v0   ;;  %6091 = vperm.xlu1 %10422, %v6088_v37  }
0x1739   : > { %6094 = vperm.xlu1 %10422, %v6089_v62  }
0x173d   : > { %6215 = vperm.xlu1 %10422, %v6212_v44  }
0x1741   : > { %6218 = vperm.xlu1 %10422, %v6213_v3  }
0x1745   : > { %6339 = vperm.xlu1 %10422, %v6336_v38  }
0x1749   : > { %6029 = vperm.xlu1 %10422, %v6026_v6  }
0x174d   : > { %6032 = vperm.xlu1 %10422, %v6027_v15  }
0x1751   : > { %6153 = vperm.xlu1 %10422, %v6150_v63  }
0x1755   : > { %6156 = vperm.xlu1 %10422, %v6151_v50  }
0x1759   : > { %6277 = vperm.xlu1 %10422, %v6274_v18  }
0x175d   : > { %6401 = vperm.xlu1 %10422, %v6398_v56  }
0x175e   : > { %v4986_v36 = vpop.f32.mrb[52].mxu0 }
0x175f   : > { %v4987_v41 = vadd.f32 %v9479_v48, %v4986_v36  ;;  %v9940_v57 = vpop.f32.mrb[53].mxu0 }
0x1760   : > { %v4989_v52 = vpop.f32.mrb[54].mxu0 }
0x1761   : > { %v5001_v0 = vsel %vm4998_vm7, %v4987_v41, 0.0  ;;  %v9941_v37 = vpop.f32.mrb[55].mxu0 }
0x1762   : > { %v5003_v62 = vcombine.high %v5001_v0, %v5001_v0  ;;  %v5010_v59 = vrot.slane %v5001_v0, %v14920_v17 }
0x1764   : > { %v5017_v12 = vrot.slane %v5003_v62, %v14920_v17  ;;  %v5018_v32 = vcombine.high %v5010_v59, %v5010_v59  ;;  %v5026_v44 = vrot.slane %v5010_v59, %v14920_v17  ;;  %9483 = vst.sshfl [vmem:[%s12283_s5 + $0x1] sm:$0x1 pattern:$0x73625140] %v5010_v59 }
0x1766   : > { %v5019_v16 = vcombine.high %v5017_v12, %v5017_v12  ;;  %v5033_v3 = vrot.slane %v5017_v12, %v14920_v17  ;;  %v5040_v38 = vrot.slane %v5018_v32, %v14920_v17  ;;  %v5048_v39 = vcombine.high %v5026_v44, %v5026_v44  ;;  %9484 = vst.sshfl [vmem:[%s12283_s5 + $0x5] sm:$0x1 pattern:$0x73625140] %v5018_v32 }
0x1767   : > { %9485 = vst.sshfl [vmem:[%s12283_s5 + $0x11] sm:$0x1 pattern:$0x73625140] %v5017_v12 }
0x1768   : > { %v5047_v42 = vrot.slane %v5019_v16, %v14920_v17  ;;  %v5049_v6 = vcombine.high %v5033_v3, %v5033_v3  ;;  %v5050_v15 = vcombine.high %v5040_v38, %v5040_v38  ;;  %5062 = vst [vmem:[%s12283_s5 + $0x9] sm:$0x1] %v5048_v39  ;;  %9486 = vst.sshfl [vmem:[%s12283_s5 + $0x15] sm:$0x1 pattern:$0x73625140] %v5019_v16 }
0x176a   : > { %v5051_v14 = vcombine.high %v5047_v42, %v5047_v42  ;;  %5063 = vst [vmem:[%s12283_s5 + $0xd] sm:$0x1] %v5050_v15  ;;  %5066 = vst [vmem:[%s12283_s5 + $0x19] sm:$0x1] %v5049_v6 }
0x176c   : > { %5067 = vst [vmem:[%s12283_s5 + $0x1d] sm:$0x1] %v5051_v14 }
0x17ac   : > { %v5968_v63 = vpop.permute.xlu1 %5967  ;;  %v6343_v3 = vpop.permute.xlu0 %6342 }
0x17ad   : > { %v5975_v18 = vrot.slane %v5968_v63, %v12450_v22  ;;  %v6351_v6 = vrot.slane %v6343_v3, %v12453_v23  ;;  %v10447_v63 = vld [vmem:[#allocation26] sm:$0xff]  }
0x17b0   : > { %v5971_v50 = vpop.permute.xlu1 %5970 }
0x17b1   : > { %v5979_v56 = vrot.slane %v5971_v50, %v12453_v23 }
0x17b3   : > { %v5980_v48 = vsel %vm1841_vm11, %v5979_v56, %v5975_v18 }
0x17b4   : > { %v5981_v36 = vpack.c.b16 %v5980_v48, %v5980_v48  ;;  %v6092_v41 = vpop.permute.xlu1 %6091 }
0x17b5   : > { %v6099_v52 = vrot.slane %v6092_v41, %v12450_v22  ;;  %v10448_v41 = vld [vmem:[#allocation26 + $0x8] sm:$0xff]  }
0x17b6   : > { %9953 = vmatmul.mubr.msk.bf16.vlgmr.msra.gmra.mrb[56].mxu0 %vm1921_vm3, %v5981_v36 }
0x17b7   : > { %9963 = vmatpush3.bf16.msra.mxu0 %v12709_v20  ;;  %9964 = vmatprep.mubr.msk.bf16.mxu0 %vm11482_vm9, %v14905_v40 }
0x17b8   : > { %v6095_v57 = vpop.permute.xlu1 %6094  ;;  %9974 = vmatprep.subr.bf16.mxu0 %v14905_v40 }
0x17b9   : > { %v6103_v0 = vrot.slane %v6095_v57, %v12453_v23 }
0x17bb   : > { %v6104_v37 = vsel %vm1841_vm11, %v6103_v0, %v6099_v52 }
0x17bc   : > { %v6105_v62 = vpack.c.b16 %v6104_v37, %v6104_v37  ;;  %v6216_v59 = vpop.permute.xlu1 %6215 }
0x17bd   : > { %v6223_v32 = vrot.slane %v6216_v59, %v12450_v22 }
0x17be   : > { %9965 = vmatmul.mubr.msk.bf16.vlgmr.msra.gmra.mrb[60].mxu0 %vm1921_vm3, %v6105_v62 }
0x17bf   : > { %9975 = vmatpush3.bf16.msra.mxu0 %v12759_v27  ;;  %9976 = vmatprep.mubr.msk.bf16.mxu0 %vm11482_vm9, %v14905_v40 }
0x17c0   : > { %v6219_v12 = vpop.permute.xlu1 %6218  ;;  %9986 = vmatprep.subr.bf16.mxu0 %v14905_v40 }
0x17c1   : > { %v6227_v44 = vrot.slane %v6219_v12, %v12453_v23  ;;  %v6281_v12 = vpop.permute.xlu0 %6280 }
0x17c2   : > { %v6289_v3 = vrot.slane %v6281_v12, %v12453_v23 }
0x17c3   : > { %v6228_v16 = vsel %vm1841_vm11, %v6227_v44, %v6223_v32 }
0x17c4   : > { %v6229_v38 = vpack.c.b16 %v6228_v16, %v6228_v16  ;;  %v6340_v39 = vpop.permute.xlu1 %6339 }
0x17c5   : > { %v6347_v42 = vrot.slane %v6340_v39, %v12450_v22 }
0x17c6   : > { %9977 = vmatmul.mubr.msk.bf16.vlgmr.msra.gmra.mrb[64].mxu0 %vm1921_vm3, %v6229_v38 }
0x17c7   : > { %9987 = vmatpush3.bf16.msra.mxu0 %v12771_v9  ;;  %9988 = vmatprep.mubr.msk.bf16.mxu0 %vm11482_vm9, %v14905_v40  ;;  %v6352_v14 = vsel %vm1841_vm11, %v6351_v6, %v6347_v42  ;;  %v6405_v42 = vpop.permute.xlu0 %6404 }
0x17c8   : > { %v6030_v15 = vpop.permute.xlu1 %6029  ;;  %9998 = vmatprep.subr.bf16.mxu0 %v14905_v40  ;;  %v6353_v50 = vpack.c.b16 %v6352_v14, %v6352_v14  ;;  %v6413_v14 = vrot.slane %v6405_v42, %v12453_v23 }
0x17c9   : > { %v6037_v56 = vrot.slane %v6030_v15, %v12450_v22 }
0x17cc   : > { %v6033_v18 = vpop.permute.xlu1 %6032 }
0x17cd   : > { %v6041_v48 = vrot.slane %v6033_v18, %v12453_v23  ;;  %v10449_v18 = vld [vmem:[#allocation30] sm:$0xff]  }
0x17ce   : > { %9989 = vmatmul.mubr.msk.bf16.vlgmr.msra.gmra.mrb[68].mxu0 %vm1921_vm3, %v6353_v50 }
0x17cf   : > { %v6042_v36 = vsel %vm1841_vm11, %v6041_v48, %v6037_v56  ;;  %9999 = vmatpush3.bf16.msra.mxu0 %v10447_v63  ;;  %10002 = vmatprep.mubr.msk.bf16.mxu0 %vm11482_vm9, %v14905_v40  ;;  %v10451_v56 = vld [vmem:[#allocation29] sm:$0xff]   ;;  %v10450_v48 = vld [vmem:[#allocation30 + $0x8] sm:$0xff]  }
0x17d0   : > { %v6043_v57 = vpack.c.b16 %v6042_v36, %v6042_v36  ;;  %v6154_v52 = vpop.permute.xlu1 %6153  ;;  %10000 = vmatprep.subr.bf16.mxu0 %v14905_v40  ;;  %v9505_v36 = vld [vmem:[%s12204_s22 + $0x8] sm:$0xf] }
0x17d1   : > { %v6161_v37 = vrot.slane %v6154_v52, %v12450_v22 }
0x17d2   : > { %9959 = vmatmul.mubr.msk.bf16.vlgmr.msra.gmra.mrb[60].mxu1 %vm1921_vm3, %v6043_v57 }
0x17d3   : > { %10001 = vmatpush3.bf16.msra.mxu0 %v10448_v41  ;;  %9969 = vmatpush3.bf16.msra.mxu1 %v12807_v5 }
0x17d4   : > { %v6157_v0 = vpop.permute.xlu1 %6156  ;;  %9970 = vmatprep.mubr.msk.bf16.mxu1 %vm11482_vm9, %v14905_v40  ;;  %9980 = vmatprep.subr.bf16.mxu1 %v14905_v40 }
0x17d5   : > { %v6165_v62 = vrot.slane %v6157_v0, %v12453_v23  ;;  %10014 = vmatprep.subr.bf16.mxu0 %v14905_v40 }
0x17d6   : > { %10003 = vmatmul.mubr.msk.bf16.vlgmr.msra.gmra.mrb[72].mxu0 %vm1552_vm10, %v13334_v19 }
0x17d7   : > { %v6166_v59 = vsel %vm1841_vm11, %v6165_v62, %v6161_v37  ;;  %10016 = vmatprep.mubr.msk.bf16.mxu0 %vm11482_vm9, %v14905_v40  ;;  %10015 = vmatpush3.bf16.msra.mxu0 %v10451_v56  ;;  %v9500_v56 = vld [vmem:[#allocation27] ss:$0 sm:$0xff] }
0x17d8   : > { %v6167_v32 = vpack.c.b16 %v6166_v59, %v6166_v59  ;;  %v6278_v44 = vpop.permute.xlu1 %6277  ;;  %10028 = vmatprep.subr.bf16.mxu0 %v14905_v40 }
0x17d9   : > { %v6285_v16 = vrot.slane %v6278_v44, %v12450_v22 }
0x17da   : > { %9971 = vmatmul.mubr.msk.bf16.vlgmr.msra.gmra.mrb[64].mxu1 %vm1921_vm3, %v6167_v32 }
0x17db   : > { %9981 = vmatpush3.bf16.msra.mxu1 %v12819_v8  ;;  %9982 = vmatprep.mubr.msk.bf16.mxu1 %vm11482_vm9, %v14905_v40  ;;  %v6290_v38 = vsel %vm1841_vm11, %v6289_v3, %v6285_v16 }
0x17dc   : > { %9992 = vmatprep.subr.bf16.mxu1 %v14905_v40  ;;  %v6402_v39 = vpop.permute.xlu1 %6401  ;;  %v6291_v6 = vpack.c.b16 %v6290_v38, %v6290_v38 }
0x17dd   : > { %v6409_v15 = vrot.slane %v6402_v39, %v12450_v22 }
0x17de   : > { %10017 = vmatmul.mubr.msk.bf16.vlgmr.msra.gmra.mrb[76].mxu0 %vm1921_vm3, %v9505_v36 }
0x17df   : > { %v6414_v63 = vsel %vm1841_vm11, %v6413_v14, %v6409_v15  ;;  %10032 = vmatprep.mubr.msk.bf16.mxu0 %vm11482_vm9, %v14905_v40 }
0x17e0   : > { %v6415_v50 = vpack.c.b16 %v6414_v63, %v6414_v63 }
0x17e2   : > { %9983 = vmatmul.mubr.msk.bf16.vlgmr.msra.gmra.mrb[68].mxu1 %vm1921_vm3, %v6291_v6 }
0x17e3   : > { %9993 = vmatpush3.bf16.msra.mxu1 %v12831_v1  ;;  %9994 = vmatprep.mubr.msk.bf16.mxu1 %vm11482_vm9, %v14905_v40 }
0x17e4   : > { %10006 = vmatprep.subr.bf16.mxu1 %v14905_v40 }
0x17ea   : > { %9995 = vmatmul.mubr.msk.bf16.vlgmr.msra.gmra.mrb[72].mxu1 %vm1921_vm3, %v6415_v50 }
0x17eb   : > { %10010 = vmatprep.mubr.msk.bf16.mxu1 %vm11482_vm9, %v14905_v40  ;;  %10007 = vmatpush3.bf16.msra.mxu1 %v10449_v18 }
0x17ec   : > { %10008 = vmatprep.subr.bf16.mxu1 %v14905_v40 }
0x17ef   : > { %10009 = vmatpush3.bf16.msra.mxu1 %v10450_v48 }
0x17f0   : > { %10020 = vmatprep.subr.bf16.mxu1 %v14905_v40 }
0x1889   : > { %v6019_v41 = vpop.f32.mrb[56].mxu0 }
0x188a   : > { %v9954_v57 = vpop.f32.mrb[57].mxu0 }
0x188b   : > { %v6022_v52 = vpop.f32.mrb[58].mxu0 }
0x188c   : > { %v9955_v0 = vpop.f32.mrb[59].mxu0 }
0x1891   : > { %v6143_v37 = vpop.f32.mrb[60].mxu0 }
0x1892   : > { %v9966_v62 = vpop.f32.mrb[61].mxu0  ;;  %v6538_v50 = vrot.slane %v6143_v37, 6 }
0x1893   : > { %v6146_v59 = vpop.f32.mrb[62].mxu0 }
0x1894   : > { %v9967_v12 = vpop.f32.mrb[63].mxu0 }
0x1899   : > { %v6267_v32 = vpop.f32.mrb[64].mxu0 }
0x189a   : > { %v9978_v44 = vpop.f32.mrb[65].mxu0 }
0x189b   : > { %v6270_v16 = vpop.f32.mrb[66].mxu0 }
0x189c   : > { %v9979_v3 = vpop.f32.mrb[67].mxu0 }
0x18a1   : > { %v6391_v38 = vpop.f32.mrb[68].mxu0 }
0x18a2   : > { %v9990_v39 = vpop.f32.mrb[69].mxu0 }
0x18a3   : > { %v6394_v42 = vpop.f32.mrb[70].mxu0 }
0x18a4   : > { %v9991_v6 = vpop.f32.mrb[71].mxu0  ;;  %v6542_v42 = vrot.slane %v6267_v32, 4 }
0x18a5   : > { %v6081_v15 = vpop.f32.mrb[60].mxu1 }
0x18a6   : > { %v6536_v14 = vrot.slane %v6081_v15, 7  ;;  %v9960_v63 = vpop.f32.mrb[61].mxu1 }
0x18a7   : > { %v6084_v18 = vpop.f32.mrb[62].mxu1 }
0x18a8   : > { %v6537_v48 = vsel %vm1906_vm12, %v6536_v14, %v6019_v41  ;;  %v9961_v36 = vpop.f32.mrb[63].mxu1 }
0x18a9   : > { %v6516_v57 = vpop.f32.mrb[72].mxu0  ;;  %v6539_v52 = vsel %vm1908_vm13, %v6538_v50, %v6537_v48  ;;  %v6546_v50 = vrot.slane %v6391_v38, 2 }
0x18aa   : > { %v6517_v0 = vadd.f32 %v9500_v56, %v6516_v57  ;;  %v10004_v62 = vpop.f32.mrb[73].mxu0 }
0x18ab   : > { %v6519_v59 = vpop.f32.mrb[74].mxu0 }
0x18ac   : > { %v9504_v12 = vmul.f32 -1.442695, %v6517_v0  ;;  %v10005_v44 = vpop.f32.mrb[75].mxu0 }
0x18ad   : > { %v6205_v16 = vpop.f32.mrb[64].mxu1 }
0x18ae   : > { %10593 = vpow2.f32 %v9504_v12  ;;  %v6540_v3 = vrot.slane %v6205_v16, 5  ;;  %v9972_v39 = vpop.f32.mrb[65].mxu1 }
0x18af   : > { %v6208_v6 = vpop.f32.mrb[66].mxu1 }
0x18b0   : > { %v6541_v37 = vsel %vm1910_vm14, %v6540_v3, %v6539_v52  ;;  %v9973_v15 = vpop.f32.mrb[67].mxu1  ;;  %v10453_v6 = vld [vmem:[#allocation32 + $0x8] sm:$0xff]  }
0x18b1   : > { %v6543_v41 = vsel %vm1912_vm15, %v6542_v42, %v6541_v37  ;;  %v10452_v42 = vld [vmem:[#allocation32] sm:$0xff]   ;;  %v6659_v37 = vpop.f32.mrb[76].mxu0 }
0x18b2   : > { %v10018_v15 = vpop.f32.mrb[77].mxu0 }
0x18b5   : > { %v6329_v14 = vpop.f32.mrb[68].mxu1 }
0x18b6   : > { %v6544_v63 = vrot.slane %v6329_v14, 3  ;;  %v9984_v18 = vpop.f32.mrb[69].mxu1 }
0x18b7   : > { %v6332_v56 = vpop.f32.mrb[70].mxu1 }
0x18b8   : > { %v10594_v48 = vpop.eup %10593  ;;  %v6545_v36 = vsel %vm1914_vm0, %v6544_v63, %v6543_v41  ;;  %v9985_v57 = vpop.f32.mrb[71].mxu1 }
0x18b9   : > { %v6525_v0 = vadd.f32 1.0, %v10594_v48  ;;  %v6547_v62 = vsel %vm1916_vm1, %v6546_v50, %v6545_v36  ;;  %v6662_v41 = vpop.f32.mrb[78].mxu0  ;;  %v9511_v36 = vld [vmem:[#allocation33] ss:$0 sm:$0xff] }
0x18ba   : > { %v10019_v14 = vpop.f32.mrb[79].mxu0 }
0x18bb   : > { %10595 = vrcp.f32 %v6525_v0  ;;  %v13757_v14 = vsel %vm4998_vm7, %v13314_v11, %v13311_v49 }
0x18bd   : > { %v6453_v32 = vpop.f32.mrb[72].mxu1 }
0x18be   : > { %v6548_v59 = vrot.slane %v6453_v32, 1  ;;  %v9996_v12 = vpop.f32.mrb[73].mxu1 }
0x18bf   : > { %v6456_v52 = vpop.f32.mrb[74].mxu1 }
0x18c0   : > { %v6549_v44 = vsel %vm1918_vm2, %v6548_v59, %v6547_v62  ;;  %v9997_v16 = vpop.f32.mrb[75].mxu1  ;;  %v9515_v62 = vld [vmem:[#allocation35] ss:$0 sm:$0xff] }
0x18c1   : > { %v10687_v16 = vld [vmem:[#allocation11] sm:$0xff] }
0x18c5   : > { %v10596_v3 = vpop.eup %10595 }
0x18c6   : > { %v6551_v39 = vadd.f32 %v10596_v3, %v6549_v44  ;;  %v6832_v44 = vstv %s5279_s11 }
0x18c7   : > { %vm6833_vm8 = vcmp.gt.s32.totalorder %v10687_v16, %v6832_v44 }
0x18c8   : > { %v6556_v38 = vpack.c.bf16 %v6551_v39, %v6551_v39  ;;  %v6834_v39 = vsel %vm6833_vm8, 1, %v14913_v31 }
0x18ca   : > { %10011 = vmatmul.mubr.msk.bf16.vlgmr.msra.gmra.mrb[76].mxu1 %vm1552_vm10, %v6556_v38 }
0x18cb   : > { %10021 = vmatpush3.bf16.msra.mxu1 %v10452_v42  ;;  %10024 = vmatprep.mubr.msk.bf16.mxu1 %vm11482_vm9, %v14905_v40 }
0x18cc   : > { %10022 = vmatprep.subr.bf16.mxu1 %v14905_v40 }
0x18cf   : > { %10023 = vmatpush3.bf16.msra.mxu1 %v10453_v6 }
0x18d0   : > { %10036 = vmatprep.subr.bf16.mxu1 %v14905_v40 }
0x18d2   : > { %10025 = vmatmul.mubr.msk.bf16.vlgmr.msra.gmra.mrb[80].mxu1 %vm1552_vm10, %v13334_v19 }
0x18d3   : > { %10040 = vmatprep.mubr.msk.bf16.mxu1 %vm11482_vm9, %v14905_v40 }
0x199d   : > { %v6610_v63 = vpop.f32.mrb[76].mxu1 }
0x199e   : > { %v6660_v18 = vadd.f32 %v6659_v37, %v6610_v63  ;;  %v10012_v50 = vpop.f32.mrb[77].mxu1 }
0x199f   : > { %v6613_v56 = vpop.f32.mrb[78].mxu1 }
0x19a0   : > { %v10013_v48 = vpop.f32.mrb[79].mxu1  ;;  %v6672_v57 = vadd.f32 %v9511_v36, %v6660_v18  ;;  %v10454_v56 = vld [vmem:[#allocation15] sm:$0xff]  }
0x19a1   : > { %10037 = vmatpush3.bf16.msra.mxu1 %v10454_v56  ;;  %v10455_v48 = vld [vmem:[#allocation15 + $0x8] sm:$0xff]  }
0x19a2   : > { %10038 = vmatprep.subr.bf16.mxu1 %v14905_v40 }
0x19a5   : > { %v6723_v0 = vpop.f32.mrb[80].mxu1  ;;  %10039 = vmatpush3.bf16.msra.mxu1 %v10455_v48 }
0x19a6   : > { %v6729_v32 = vadd.f32 %v6723_v0, %v6672_v57  ;;  %v10026_v59 = vpop.f32.mrb[81].mxu1  ;;  %10050 = vmatprep.subr.bf16.mxu1 %v14905_v40  ;;  %v14956_v0 = vld [vmem:[#allocation66_spill] sm:$0xff] }
0x19a7   : > { %v6726_v19 = vpop.f32.mrb[82].mxu1 }
0x19a8   : > { %v6737_v12 = vadd.f32 %v9515_v62, %v6729_v32  ;;  %v10027_v52 = vpop.f32.mrb[83].mxu1  ;;  %v14958_v19 = vld [vmem:[#allocation84_spill] sm:$0xff] }
0x19aa   : > { %10597 = vtanh.f32 %v6737_v12  ;;  %v9516_v42 = vmul.f32 -1.442695, %v6737_v12  ;;  %v9525_v12 = vld [vmem:[#allocation17] ss:$0 sm:$0xff] }
0x19ac   : > { %10599 = vpow2.f32 %v9516_v42 }
0x19b4   : > { %v10598_v3 = vpop.eup %10597 }
0x19b5   : > { %6747 = vrot.lane.b32.xlu1 %v10598_v3, %s14806_s24 }
0x19b6   : > { %v10600_v38 = vpop.eup %10599 }
0x19b7   : > { %v6741_v6 = vadd.f32 1.0, %v10600_v38 }
0x19b9   : > { %6836 = vperm.xlu1 %10422, %v6834_v39   ;;  %10601 = vrcp.f32 %v6741_v6 }
0x19c3   : > { %v10602_v37 = vpop.eup %10601 }
0x19c4   : > { %v6745_v63 = vmul.f32 %v10602_v37, %v13757_v14 }
0x1a27   : > { %v6748_v15 = vpop.permute.xlu1 %6747 }
0x1a28   : > { %v6750_v41 = vmul.f32 %v10602_v37, %v6748_v15 }
0x1a2a   : > { %6752 = vrot.lane.b32.xlu0 %v6750_v41, %s11485_s8 }
0x1a38   : > { %v13766_v49 = vpop.permute.xlu1 %6836 }
0x1a39   : > { %vm6838_vm4 = vcmp.eq.s32.totalorder %v13766_v49, 1 }
0x1a9c   : > { %v6753_v18 = vpop.permute.xlu0 %6752 }
0x1a9d   : > { %v13760_v50 = vadd.f32 %v6753_v18, %v6745_v63 }
0x1a9f   : > { %10603 = vtanh.f32 %v13760_v50 }
0x1aa9   : > { %v10604_v36 = vpop.eup %10603 }
0x1aaa   : > { %6758 = vrot.lane.b32.xlu0 %v10604_v36, %s14806_s24 }
0x1b1c   : > { %v6759_v11 = vpop.permute.xlu0 %6758 }
0x1b1d   : > { %v13768_v57 = vmul.f32 %v10602_v37, %v6759_v11 }
0x1b1f   : > { %v13775_v62 = vsel %vm6838_vm4, %v13768_v57, %v14956_v0  ;;  %v10688_v0 = vld [vmem:[#allocation4 + $0x8] sm:$0xff] }
0x1b20   : > { %14957 = vst [vmem:[#allocation66_spill] sm:$0xff] %v13775_v62  ;;  %v7120_v32 = vpack.c.bf16 %v13775_v62, %v13775_v62  ;;  %v10692_v62 = vld [vmem:[#allocation4 + $0x18] sm:$0xff] }
0x1b22   : > { %7133 = vrot.lane.b32.xlu1 %v7120_v32, %s11485_s8 }
0x1b94   : > { %v13780_v59 = vpop.permute.xlu1 %7133 }
0x1b95   : > { %10041 = vmatmul.mubr.msk.bf16.vlgmr.msra.gmra.mrb[84].mxu1 %vm1552_vm10, %v13780_v59 }
0x1b96   : > { %10051 = vmatpush3.bf16.msra.mxu1 %v14958_v19  ;;  %10052 = vmatprep.mubr.msk.bf16.mxu1 %vm11482_vm9, %v14905_v40  ;;  %v10689_v19 = vld [vmem:[#allocation4] sm:$0xff] }
0x1b97   : > { %10062 = vmatprep.subr.bf16.mxu1 %v14905_v40 }
0x1c68   : > { %v7184_v52 = vpop.f32.mrb[84].mxu1 }
0x1c69   : > { %v7185_v44 = vadd.f32 %v9525_v12, %v7184_v52  ;;  %v10042_v16 = vpop.f32.mrb[85].mxu1 }
0x1c6a   : > { %v7187_v3 = vpop.f32.mrb[86].mxu1 }
0x1c6b   : > { %v7191_v39 = vcombine.high %v7185_v44, %v7185_v44  ;;  %v7198_v42 = vrot.slane %v7185_v44, %v14920_v17  ;;  %v10043_v38 = vpop.f32.mrb[87].mxu1  ;;  %v10690_v3 = vld [vmem:[#allocation4 + $0x20] sm:$0xff] }
0x1c6d   : > { %v7205_v6 = vrot.slane %v7191_v39, %v14920_v17  ;;  %v7206_v37 = vcombine.high %v7198_v42, %v7198_v42  ;;  %v7214_v15 = vrot.slane %v7198_v42, %v14920_v17 }
0x1c6f   : > { %v7207_v41 = vcombine.high %v7205_v6, %v7205_v6  ;;  %v7221_v63 = vrot.slane %v7205_v6, %v14920_v17  ;;  %v7228_v18 = vrot.slane %v7206_v37, %v14920_v17  ;;  %v7236_v56 = vcombine.high %v7214_v15, %v7214_v15  ;;  %v10691_v37 = vld [vmem:[#allocation4 + $0x10] sm:$0xff] }
0x1c70   : > { %v7243_v48 = vrot.slane %v7214_v15, %v12394_v26 }
0x1c71   : > { %v7238_v36 = vcombine.high %v7228_v18, %v7228_v18  ;;  %v7251_v11 = vrot.slane %v7236_v56, %v12394_v26  ;;  %v7247_v52 = vrot.slane %v7228_v18, %v12394_v26  ;;  %v7259_v44 = vrot.slane %v7221_v63, %v12394_v26  ;;  %v13799_v18 = vld [vmem:[#allocation18] ss:$0 sm:$0xff] }
0x1c72   : > { %v7281_v32 = vadd.f32 %v10688_v0, %v7243_v48  ;;  %v7280_v12 = vadd.f32 %v10689_v19, %v7243_v48  ;;  %v7235_v16 = vrot.slane %v7207_v41, %v14920_v17  ;;  %v10693_v0 = vld [vmem:[#allocation4 + $0x40] sm:$0xff]  ;;  %v10694_v48 = vld [vmem:[#allocation4 + $0x28] sm:$0xff] }
0x1c73   : > { %v7284_v39 = vadd.f32 %v10690_v3, %v7251_v11  ;;  %v7255_v42 = vrot.slane %v7238_v36, %v12394_v26  ;;  %v7282_v15 = vadd.f32 %v10691_v37, %v7247_v52  ;;  %v7283_v56 = vadd.f32 %v10692_v62, %v7247_v52 }
0x1c74   : > { %v7297_v38 = vmax.f32 %v7281_v32, 0.0  ;;  %v7296_v6 = vmax.f32 %v7280_v12, 0.0  ;;  %v7288_v2 = vadd.f32 %v10693_v0, %v7259_v44  ;;  %v7285_v19 = vadd.f32 %v10694_v48, %v7251_v11 }
0x1c75   : > { %v7300_v10 = vmax.f32 %v7284_v39, 0.0  ;;  %v7298_v3 = vmax.f32 %v7282_v15, 0.0  ;;  %v7286_v36 = vadd.f32 %v10696_v7, %v7255_v42  ;;  %v7237_v32 = vcombine.high %v7221_v63, %v7221_v63  ;;  %v10697_v63 = vld [vmem:[#allocation4 + $0x48] sm:$0xff] }
0x1c76   : > { %v7313_v28 = vmul.f32 %v13799_v18, %v7297_v38  ;;  %v7312_v41 = vmul.f32 %v13799_v18, %v7296_v6  ;;  %v7299_v37 = vmax.f32 %v7283_v56, 0.0  ;;  %v7304_v47 = vmax.f32 %v7288_v2, 0.0  ;;  %v10698_v56 = vld [vmem:[#allocation4 + $0x50] sm:$0xff] }
0x1c77   : > { %v7316_v12 = vmul.f32 %v13799_v18, %v7300_v10  ;;  %v7314_v11 = vmul.f32 %v13799_v18, %v7298_v3  ;;  %v7263_v39 = vrot.slane %v7235_v16, %v12394_v26  ;;  %v7301_v38 = vmax.f32 %v7285_v19, 0.0 }
0x1c78   : > { %v7331_v62 = vsel %vm1552_vm10, %v7313_v28, 0.0  ;;  %v7328_v52 = vsel %vm1552_vm10, %v7312_v41, 0.0  ;;  %v7302_v6 = vmax.f32 %v7286_v36, 0.0  ;;  %v7315_v10 = vmul.f32 %v13799_v18, %v7299_v37  ;;  %v10699_v37 = vld [vmem:[#allocation4 + $0x38] sm:$0xff] }
0x1c79   : > { %7332 = vadd.xlane.f32.xlu1 %v7331_v62  ;;  %7329 = vadd.xlane.f32.xlu0 %v7328_v52  ;;  %v7340_v15 = vsel %vm1552_vm10, %v7316_v12, 0.0  ;;  %v7334_v7 = vsel %vm1552_vm10, %v7314_v11, 0.0  ;;  %v7320_v2 = vmul.f32 %v13799_v18, %v7304_v47  ;;  %v7289_v28 = vadd.f32 %v10697_v63, %v7259_v44  ;;  %v10700_v44 = vld [vmem:[#allocation4 + $0x60] sm:$0xff] }
0x1c7a   : > { %v7290_v0 = vadd.f32 %v10698_v56, %v7263_v39  ;;  %v7267_v48 = vrot.slane %v7237_v32, %v12394_v26  ;;  %v7239_v41 = vcombine.high %v7235_v16, %v7235_v16  ;;  %v7317_v19 = vmul.f32 %v13799_v18, %v7301_v38 }
0x1c7b   : > { %v7337_v3 = vsel %vm1552_vm10, %v7315_v10, 0.0  ;;  %v7352_v36 = vsel %vm1552_vm10, %v7320_v2, 0.0  ;;  %v7318_v12 = vmul.f32 %v13799_v18, %v7302_v6  ;;  %v7287_v62 = vadd.f32 %v10699_v37, %v7255_v42  ;;  %v10702_v2 = vld [vmem:[#allocation4 + $0x70] sm:$0xff] }
0x1c7c   : > { %v7305_v47 = vmax.f32 %v7289_v28, 0.0  ;;  %v7306_v52 = vmax.f32 %v7290_v0, 0.0  ;;  %v7292_v11 = vadd.f32 %v10700_v44, %v7267_v48  ;;  %v7271_v63 = vrot.slane %v7239_v41, %v12394_v26  ;;  %v10703_v41 = vld [vmem:[#allocation4 + $0x68] sm:$0xff] }
0x1c7d   : > { %7341 = vadd.xlane.f32.xlu1 %v7340_v15  ;;  %7335 = vadd.xlane.f32.xlu0 %v7334_v7  ;;  %v7343_v16 = vsel %vm1552_vm10, %v7317_v19, 0.0  ;;  %v7346_v32 = vsel %vm1552_vm10, %v7318_v12, 0.0  ;;  %v7303_v38 = vmax.f32 %v7287_v62, 0.0  ;;  %v10701_v15 = vld [vmem:[#allocation4 + $0x58] sm:$0xff] }
0x1c7e   : > { %v7291_v7 = vadd.f32 %v10701_v15, %v7263_v39  ;;  %v7321_v10 = vmul.f32 %v13799_v18, %v7305_v47  ;;  %v7322_v6 = vmul.f32 %v13799_v18, %v7306_v52  ;;  %v7308_v42 = vmax.f32 %v7292_v11, 0.0  ;;  %v10704_v11 = vld [vmem:[#allocation4 + $0x78] sm:$0xff] }
0x1c7f   : > { %v7294_v28 = vadd.f32 %v10702_v2, %v7271_v63  ;;  %v7319_v56 = vmul.f32 %v13799_v18, %v7303_v38 }
0x1c80   : > { %v7307_v0 = vmax.f32 %v7291_v7, 0.0  ;;  %v7355_v19 = vsel %vm1552_vm10, %v7321_v10, 0.0  ;;  %v7324_v39 = vmul.f32 %v13799_v18, %v7308_v42 }
0x1c81   : > { %7338 = vadd.xlane.f32.xlu0 %v7337_v3  ;;  %7353 = vadd.xlane.f32.xlu1 %v7352_v36  ;;  %v7293_v3 = vadd.f32 %v10703_v41, %v7267_v48  ;;  %v7358_v36 = vsel %vm1552_vm10, %v7322_v6, 0.0  ;;  %v7310_v12 = vmax.f32 %v7294_v28, 0.0  ;;  %v7349_v47 = vsel %vm1552_vm10, %v7319_v56, 0.0 }
0x1c82   : > { %v7323_v37 = vmul.f32 %v13799_v18, %v7307_v0  ;;  %v7364_v52 = vsel %vm1552_vm10, %v7324_v39, 0.0  ;;  %v7295_v48 = vadd.f32 %v10704_v11, %v7271_v63  ;;  %v9529_v63 = vld [vmem:[#allocation5] ss:$0 sm:$0xff] }
0x1c83   : > { %v7309_v62 = vmax.f32 %v7293_v3, 0.0  ;;  %v7326_v44 = vmul.f32 %v13799_v18, %v7310_v12 }
0x1c84   : > { %v7311_v15 = vmax.f32 %v7295_v48, 0.0 }
0x1c85   : > { %7344 = vadd.xlane.f32.xlu0 %v7343_v16  ;;  %7347 = vadd.xlane.f32.xlu1 %v7346_v32  ;;  %v7361_v16 = vsel %vm1552_vm10, %v7323_v37, 0.0  ;;  %v7370_v32 = vsel %vm1552_vm10, %v7326_v44, 0.0  ;;  %v7325_v38 = vmul.f32 %v13799_v18, %v7309_v62 }
0x1c86   : > { %v7327_v10 = vmul.f32 %v13799_v18, %v7311_v15 }
0x1c87   : > { %v7367_v7 = vsel %vm1552_vm10, %v7325_v38, 0.0 }
0x1c88   : > { %v7373_v6 = vsel %vm1552_vm10, %v7327_v10, 0.0 }
0x1c89   : > { %7356 = vadd.xlane.f32.xlu0 %v7355_v19  ;;  %7359 = vadd.xlane.f32.xlu1 %v7358_v36 }
0x1c8d   : > { %7350 = vadd.xlane.f32.xlu0 %v7349_v47  ;;  %7365 = vadd.xlane.f32.xlu1 %v7364_v52 }
0x1c91   : > { %7362 = vadd.xlane.f32.xlu0 %v7361_v16  ;;  %7371 = vadd.xlane.f32.xlu1 %v7370_v32 }
0x1c95   : > { %7368 = vadd.xlane.f32.xlu0 %v7367_v7 }
0x1c99   : > { %7374 = vadd.xlane.f32.xlu0 %v7373_v6 }
0x1ca2   : > { %7383 = vperm.xlu1 %10422, %v9529_v63  }
0x1d06   : > { %v7333_v42 = vpop.xlane.xlu1 %7332  ;;  %v7330_v2 = vpop.xlane.xlu0 %7329 }
0x1d0a   : > { %v7342_v28 = vpop.xlane.xlu1 %7341  ;;  %v7336_v56 = vpop.xlane.xlu0 %7335 }
0x1d0e   : > { %v7339_v0 = vpop.xlane.xlu0 %7338  ;;  %v7354_v41 = vpop.xlane.xlu1 %7353 }
0x1d12   : > { %v7345_v3 = vpop.xlane.xlu0 %7344  ;;  %v7348_v19 = vpop.xlane.xlu1 %7347 }
0x1d16   : > { %v7357_v36 = vpop.xlane.xlu0 %7356  ;;  %v7360_v39 = vpop.xlane.xlu1 %7359 }
0x1d1a   : > { %v7351_v12 = vpop.xlane.xlu0 %7350  ;;  %v7366_v37 = vpop.xlane.xlu1 %7365 }
0x1d1e   : > { %v7363_v62 = vpop.xlane.xlu0 %7362  ;;  %v7372_v18 = vpop.xlane.xlu1 %7371 }
0x1d22   : > { %v7369_v47 = vpop.xlane.xlu0 %7368  ;;  %v7384_v52 = vpop.permute.xlu1 %7383 }
0x1d23   : > { %v7386_v44 = vadd.f32 %v7384_v52, %v7330_v2  ;;  %v7387_v11 = vadd.f32 %v7384_v52, %v7333_v42  ;;  %v13836_v48 = vadd.f32 %v7384_v52, %v7336_v56  ;;  %v13838_v16 = vadd.f32 %v7384_v52, %v7339_v0 }
0x1d24   : > { %v7390_v32 = vadd.f32 %v7384_v52, %v7342_v28  ;;  %v13840_v38 = vadd.f32 %v7384_v52, %v7345_v3  ;;  %v13842_v15 = vadd.f32 %v7384_v52, %v7348_v19  ;;  %v13844_v7 = vadd.f32 %v7384_v52, %v7351_v12 }
0x1d25   : > { %v13846_v10 = vadd.f32 %v7384_v52, %v7354_v41  ;;  %v13848_v63 = vadd.f32 %v7384_v52, %v7357_v36  ;;  %v13850_v60 = vadd.f32 %v7384_v52, %v7360_v39  ;;  %v13852_v2 = vadd.f32 %v7384_v52, %v7363_v62 }
0x1d26   : > { %v7375_v6 = vpop.xlane.xlu0 %7374  ;;  %v7421_v42 = vrot.slane %v7386_v44, %v12450_v22  ;;  %v13855_v56 = vadd.f32 %v7384_v52, %v7366_v37  ;;  %v7425_v28 = vrot.slane %v7387_v11, %v12453_v23  ;;  %v7430_v0 = vrot.slane %v13836_v48, %v12450_v22 }
0x1d27   : > { %v7434_v41 = vrot.slane %v13838_v16, %v12453_v23  ;;  %v13862_v3 = vadd.f32 %v7384_v52, %v7375_v6  ;;  %v13864_v19 = vadd.f32 %v7384_v52, %v7369_v47  ;;  %v7439_v36 = vrot.slane %v7390_v32, %v12450_v22 }
0x1d28   : > { %v7443_v39 = vrot.slane %v13840_v38, %v12453_v23  ;;  %v7426_v12 = vsel %vm1841_vm11, %v7425_v28, %v7421_v42  ;;  %v7448_v62 = vrot.slane %v13842_v15, %v12450_v22  ;;  %v7452_v29 = vrot.slane %v13844_v7, %v12453_v23 }
0x1d29   : > { %v7435_v37 = vsel %vm1841_vm11, %v7434_v41, %v7430_v0  ;;  %v7457_v47 = vrot.slane %v13846_v10, %v12450_v22  ;;  %v7461_v31 = vrot.slane %v13848_v63, %v12453_v23  ;;  %v13880_v58 = vadd.f32 %v7384_v52, %v7372_v18 }
0x1d2a   : > { %v7444_v6 = vsel %vm1841_vm11, %v7443_v39, %v7439_v36  ;;  %v7466_v42 = vrot.slane %v13850_v60, %v12450_v22  ;;  %v7470_v28 = vrot.slane %v13852_v2, %v12453_v23  ;;  %v7475_v0 = vrot.slane %v13855_v56, %v12450_v22 }
0x1d2b   : > { %v7479_v41 = vrot.slane %v13864_v19, %v12453_v23  ;;  %v7490_v36 = vsel %vm1906_vm12, %v7435_v37, %v7426_v12  ;;  %v7488_v39 = vrot.slane %v13862_v3, %v12453_v23  ;;  %v7453_v18 = vsel %vm1841_vm11, %v7452_v29, %v7448_v62 }
0x1d2c   : > { %v7491_v52 = vsel %vm1908_vm13, %v7444_v6, %v7490_v36  ;;  %v7462_v13 = vsel %vm1841_vm11, %v7461_v31, %v7457_v47  ;;  %v7471_v33 = vsel %vm1841_vm11, %v7470_v28, %v7466_v42  ;;  %v7484_v43 = vrot.slane %v13880_v58, %v12450_v22 }
0x1d2d   : > { %v7492_v24 = vsel %vm1910_vm14, %v7453_v18, %v7491_v52  ;;  %v7480_v12 = vsel %vm1841_vm11, %v7479_v41, %v7475_v0 }
0x1d2e   : > { %v7493_v46 = vsel %vm1912_vm15, %v7462_v13, %v7492_v24  ;;  %v7489_v21 = vsel %vm1841_vm11, %v7488_v39, %v7484_v43 }
0x1d2f   : > { %v7494_v37 = vsel %vm1914_vm0, %v7471_v33, %v7493_v46 }
0x1d30   : > { %v7495_v29 = vsel %vm1916_vm1, %v7480_v12, %v7494_v37 }
0x1d31   : > { %v7496_v62 = vsel %vm1918_vm2, %v7489_v21, %v7495_v29 }
0x1d32   : > { %v7498_v31 = vsel %vm1921_vm3, %v7496_v62, -inf }
0x1d33   : > { %7499 = vmax.xlane.f32.xlu0 %v7498_v31 }
0x1dc0   : > { %v7500_v6 = vpop.xlane.xlu0 %7499 }
0x1dc1   : > { %v7505_v47 = vrot.slane %v7500_v6, %v12394_v26  ;;  %v7513_v42 = vrot.slane %v7500_v6, %v12570_v25  ;;  %v7509_v24 = vrot.slane %v7500_v6, %v12545_v35  ;;  %v7517_v33 = vrot.slane %v7500_v6, %v12536_v53 }
0x1dc2   : > { %v7521_v21 = vrot.slane %v7500_v6, %v12539_v54  ;;  %v7529_v37 = vrot.slane %v7500_v6, %v12551_v61 }
0x1dc3   : > { %v7542_v13 = vsub.f32 %v7386_v44, %v7505_v47  ;;  %v7543_v28 = vsub.f32 %v7387_v11, %v7505_v47  ;;  %v7546_v46 = vsub.f32 %v7390_v32, %v7513_v42  ;;  %v7544_v43 = vsub.f32 %v13836_v48, %v7509_v24 }
0x1dc4   : > { %v7548_v36 = vsub.f32 %v13842_v15, %v7517_v33  ;;  %v7545_v18 = vsub.f32 %v13838_v16, %v7509_v24  ;;  %v7525_v44 = vrot.slane %v7500_v6, %v12542_v55  ;;  %v7550_v11 = vsub.f32 %v13846_v10, %v7521_v21 }
0x1dc5   : > { %v7558_v0 = vmul.f32 1.442695, %v7542_v13  ;;  %v7560_v41 = vmul.f32 1.442695, %v7543_v28  ;;  %v7566_v39 = vmul.f32 1.442695, %v7546_v46  ;;  %v7547_v48 = vsub.f32 %v13840_v38, %v7513_v42 }
0x1dc6   : > { %v7562_v52 = vmul.f32 1.442695, %v7544_v43  ;;  %v7570_v32 = vmul.f32 1.442695, %v7548_v36  ;;  %v7564_v12 = vmul.f32 1.442695, %v7545_v18  ;;  %v7552_v15 = vsub.f32 %v13850_v60, %v7525_v44 }
0x1dc7   : > { %10605 = vpow2.f32 %v7558_v0  ;;  %v7574_v29 = vmul.f32 1.442695, %v7550_v11  ;;  %v7549_v16 = vsub.f32 %v13844_v7, %v7517_v33  ;;  %v7568_v62 = vmul.f32 1.442695, %v7547_v48  ;;  %v10456_v48 = vld [vmem:[#allocation36] sm:$0xff]  }
0x1dc8   : > { %10607 = vpow2.f32 %v7560_v41  ;;  %v7533_v38 = vrot.slane %v7500_v6, %v12562_v45  ;;  %v7554_v10 = vsub.f32 %v13855_v56, %v7529_v37  ;;  %v7578_v42 = vmul.f32 1.442695, %v7552_v15  ;;  %10029 = vmatpush3.bf16.msra.mxu0 %v10456_v48 }
0x1dc9   : > { %10609 = vpow2.f32 %v7566_v39  ;;  %v7551_v60 = vsub.f32 %v13848_v63, %v7521_v21  ;;  %v7572_v7 = vmul.f32 1.442695, %v7549_v16  ;;  %v7553_v56 = vsub.f32 %v13852_v2, %v7525_v44  ;;  %10030 = vmatprep.subr.bf16.mxu0 %v14905_v40 }
0x1dca   : > { %10611 = vpow2.f32 %v7562_v52  ;;  %v7556_v28 = vsub.f32 %v13880_v58, %v7533_v38  ;;  %v7582_v6 = vmul.f32 1.442695, %v7554_v10  ;;  %v7555_v58 = vsub.f32 %v13864_v19, %v7529_v37  ;;  %v10457_v37 = vld [vmem:[#allocation36 + $0x8] sm:$0xff]  }
0x1dcb   : > { %10613 = vpow2.f32 %v7570_v32  ;;  %v7576_v33 = vmul.f32 1.442695, %v7551_v60  ;;  %v7580_v0 = vmul.f32 1.442695, %v7553_v56  ;;  %v7557_v2 = vsub.f32 %v13862_v3, %v7533_v38 }
0x1dcc   : > { %10615 = vpow2.f32 %v7564_v12  ;;  %v7586_v43 = vmul.f32 1.442695, %v7556_v28  ;;  %v7584_v36 = vmul.f32 1.442695, %v7555_v58  ;;  %v6762_v15 = vpack.c.bf16 %v13768_v57, %v13768_v57  ;;  %10031 = vmatpush3.bf16.msra.mxu0 %v10457_v37 }
0x1dcd   : > { %10617 = vpow2.f32 %v7574_v29  ;;  %v7588_v19 = vmul.f32 1.442695, %v7557_v2  ;;  %10044 = vmatprep.subr.bf16.mxu0 %v14905_v40 }
0x1dce   : > { %10619 = vpow2.f32 %v7568_v62 }
0x1dcf   : > { %10621 = vpow2.f32 %v7578_v42 }
0x1dd0   : > { %10623 = vpow2.f32 %v7572_v7 }
0x1dd1   : > { %v13921_v31 = vpop.eup %10605  ;;  %10625 = vpow2.f32 %v7582_v6 }
0x1dd2   : > { %v13923_v47 = vpop.eup %10607  ;;  %7607 = vperm.xlu0 %10421, %v13921_v31   ;;  %10627 = vpow2.f32 %v7576_v33 }
0x1dd3   : > { %7610 = vperm.xlu1 %10422, %v13923_v47   ;;  %v13930_v24 = vpop.eup %10609  ;;  %10629 = vpow2.f32 %v7586_v43 }
0x1dd4   : > { %v13932_v13 = vpop.eup %10611  ;;  %10631 = vpow2.f32 %v7580_v0 }
0x1dd5   : > { %v13938_v46 = vpop.eup %10613  ;;  %10633 = vpow2.f32 %v7584_v36 }
0x1dd6   : > { %7619 = vperm.xlu0 %10421, %v13930_v24   ;;  %v13940_v63 = vpop.eup %10615  ;;  %10635 = vpow2.f32 %v7588_v19 }
0x1dd7   : > { %7613 = vperm.xlu1 %10422, %v13932_v13   ;;  %v13945_v41 = vpop.eup %10617 }
0x1dd8   : > { %v13947_v21 = vpop.eup %10619 }
0x1dd9   : > { %v13952_v39 = vpop.eup %10621 }
0x1dda   : > { %7625 = vperm.xlu0 %10421, %v13938_v46   ;;  %v13954_v18 = vpop.eup %10623 }
0x1ddb   : > { %7616 = vperm.xlu1 %10422, %v13940_v63   ;;  %v13958_v52 = vpop.eup %10625 }
0x1ddc   : > { %v13960_v44 = vpop.eup %10627 }
0x1ddd   : > { %v13964_v3 = vpop.eup %10629 }
0x1dde   : > { %7631 = vperm.xlu0 %10421, %v13945_v41   ;;  %v13966_v11 = vpop.eup %10631 }
0x1ddf   : > { %7622 = vperm.xlu1 %10422, %v13947_v21   ;;  %v13970_v32 = vpop.eup %10633 }
0x1de0   : > { %v13973_v12 = vpop.eup %10635 }
0x1de2   : > { %7637 = vperm.xlu0 %10421, %v13952_v39  }
0x1de3   : > { %7628 = vperm.xlu1 %10422, %v13954_v18  }
0x1de6   : > { %7643 = vperm.xlu0 %10421, %v13958_v52  }
0x1de7   : > { %7634 = vperm.xlu1 %10422, %v13960_v44  }
0x1dea   : > { %7649 = vperm.xlu0 %10421, %v13964_v3  }
0x1deb   : > { %7640 = vperm.xlu1 %10422, %v13966_v11  }
0x1def   : > { %7646 = vperm.xlu1 %10422, %v13970_v32  }
0x1df3   : > { %7652 = vperm.xlu1 %10422, %v13973_v12  }
0x1df7   : > { %6775 = vrot.lane.b32.xlu1 %v6762_v15, %s11485_s8 }
0x1e51   : > { %v7608_v29 = vpop.permute.xlu0 %7607 }
0x1e52   : > { %v7611_v16 = vpop.permute.xlu1 %7610  ;;  %v7657_v2 = vrot.slane %v7608_v29, %v12450_v22 }
0x1e53   : > { %v7661_v0 = vrot.slane %v7611_v16, %v12453_v23 }
0x1e55   : > { %v7620_v62 = vpop.permute.xlu0 %7619  ;;  %v7662_v29 = vsel %vm1841_vm11, %v7661_v0, %v7657_v2 }
0x1e56   : > { %v7614_v38 = vpop.permute.xlu1 %7613  ;;  %v7675_v48 = vrot.slane %v7620_v62, %v12450_v22 }
0x1e57   : > { %v7666_v36 = vrot.slane %v7614_v38, %v12450_v22 }
0x1e59   : > { %v7626_v10 = vpop.permute.xlu0 %7625 }
0x1e5a   : > { %v7617_v42 = vpop.permute.xlu1 %7616 }
0x1e5b   : > { %v7670_v33 = vrot.slane %v7617_v42, %v12453_v23  ;;  %v7684_v42 = vrot.slane %v7626_v10, %v12450_v22 }
0x1e5d   : > { %v7632_v7 = vpop.permute.xlu0 %7631  ;;  %v7671_v15 = vsel %vm1841_vm11, %v7670_v33, %v7666_v36 }
0x1e5e   : > { %v7623_v60 = vpop.permute.xlu1 %7622  ;;  %v7693_v16 = vrot.slane %v7632_v7, %v12450_v22 }
0x1e5f   : > { %v7679_v57 = vrot.slane %v7623_v60, %v12453_v23 }
0x1e61   : > { %v7638_v6 = vpop.permute.xlu0 %7637  ;;  %v7680_v51 = vsel %vm1841_vm11, %v7679_v57, %v7675_v48 }
0x1e62   : > { %v7629_v28 = vpop.permute.xlu1 %7628 }
0x1e63   : > { %v7688_v19 = vrot.slane %v7629_v28, %v12453_v23  ;;  %v7702_v28 = vrot.slane %v7638_v6, %v12450_v22 }
0x1e65   : > { %v7644_v43 = vpop.permute.xlu0 %7643  ;;  %v7689_v38 = vsel %vm1841_vm11, %v7688_v19, %v7684_v42 }
0x1e66   : > { %v7635_v56 = vpop.permute.xlu1 %7634  ;;  %v7711_v10 = vrot.slane %v7644_v43, %v12450_v22 }
0x1e67   : > { %v7697_v37 = vrot.slane %v7635_v56, %v12453_v23  ;;  %v7726_v56 = vsel %vm1906_vm12, %v7671_v15, %v7662_v29 }
0x1e68   : > { %v7727_v57 = vsel %vm1908_vm13, %v7680_v51, %v7726_v56 }
0x1e69   : > { %v7698_v33 = vsel %vm1841_vm11, %v7697_v37, %v7693_v16  ;;  %v7728_v36 = vsel %vm1910_vm14, %v7689_v38, %v7727_v57 }
0x1e6a   : > { %v7641_v58 = vpop.permute.xlu1 %7640  ;;  %v7729_v6 = vsel %vm1912_vm15, %v7698_v33, %v7728_v36 }
0x1e6b   : > { %v7706_v60 = vrot.slane %v7641_v58, %v12453_v23  ;;  %v7650_v58 = vpop.permute.xlu0 %7649 }
0x1e6d   : > { %v7707_v7 = vsel %vm1841_vm11, %v7706_v60, %v7702_v28 }
0x1e6e   : > { %v7647_v30 = vpop.permute.xlu1 %7646  ;;  %v7730_v48 = vsel %vm1914_vm0, %v7707_v7, %v7729_v6 }
0x1e6f   : > { %v7715_v62 = vrot.slane %v7647_v30, %v12453_v23  ;;  %v7720_v30 = vrot.slane %v7650_v58, %v12450_v22 }
0x1e71   : > { %v7716_v0 = vsel %vm1841_vm11, %v7715_v62, %v7711_v10 }
0x1e72   : > { %v7653_v2 = vpop.permute.xlu1 %7652  ;;  %v7731_v37 = vsel %vm1916_vm1, %v7716_v0, %v7730_v48 }
0x1e73   : > { %v7724_v19 = vrot.slane %v7653_v2, %v12453_v23 }
0x1e75   : > { %v7725_v43 = vsel %vm1841_vm11, %v7724_v19, %v7720_v30 }
0x1e76   : > { %v6776_v51 = vpop.permute.xlu1 %6775  ;;  %v7732_v15 = vsel %vm1918_vm2, %v7725_v43, %v7731_v37 }
0x1e77   : > { %10033 = vmatmul.mubr.msk.bf16.vlgmr.msra.gmra.mrb[80].mxu0 %vm1552_vm10, %v6776_v51  ;;  %v7734_v42 = vsel %vm1921_vm3, %v7732_v15, 0.0 }
0x1e78   : > { %7735 = vadd.xlane.f32.xlu0 %v7734_v42  ;;  %10045 = vmatpush3.bf16.msra.mxu0 %v12736_v34 }
0x1e79   : > { %10046 = vmatprep.mubr.msk.bf16.mxu0 %vm11482_vm9, %v14905_v40  ;;  %10056 = vmatprep.subr.bf16.mxu0 %v14905_v40 }
0x1f05   : > { %v7736_v60 = vpop.xlane.xlu0 %7735 }
0x1f06   : > { %10637 = vrcp.f32 %v7736_v60 }
0x1f10   : > { %v10638_v16 = vpop.eup %10637 }
0x1f11   : > { %v7766_v29 = vrot.slane %v10638_v16, %v12551_v61  ;;  %v7742_v38 = vrot.slane %v10638_v16, %v12394_v26  ;;  %v7770_v28 = vrot.slane %v10638_v16, %v12562_v45  ;;  %v7750_v62 = vrot.slane %v10638_v16, %v12570_v25 }
0x1f12   : > { %v7758_v7 = vrot.slane %v10638_v16, %v12539_v54  ;;  %v7746_v30 = vrot.slane %v10638_v16, %v12545_v35  ;;  %v7754_v43 = vrot.slane %v10638_v16, %v12536_v53  ;;  %v7762_v15 = vrot.slane %v10638_v16, %v12542_v55 }
0x1f13   : > { %v14023_v56 = vmul.f32 %v13958_v52, %v7766_v29  ;;  %v14026_v34 = vmul.f32 %v13970_v32, %v7766_v29  ;;  %v14029_v33 = vmul.f32 %v13921_v31, %v7742_v38  ;;  %v14032_v10 = vmul.f32 %v13923_v47, %v7742_v38 }
0x1f14   : > { %v14035_v61 = vmul.f32 %v13964_v3, %v7770_v28  ;;  %v14038_v26 = vmul.f32 %v13973_v12, %v7770_v28  ;;  %v14045_v52 = vmul.f32 %v13930_v24, %v7750_v62  ;;  %v14050_v3 = vmul.f32 %v13947_v21, %v7750_v62  ;;  %v9517_v28 = vld [vmem:[#allocation38] ss:$0 sm:$0xff] }
0x1f15   : > { %v7801_v45 = vpack.c.bf16 %v14026_v34, %v14023_v56  ;;  %v7795_v25 = vpack.c.bf16 %v14032_v10, %v14029_v33  ;;  %v14056_v36 = vmul.f32 %v13945_v41, %v7758_v7  ;;  %v14059_v0 = vmul.f32 %v13960_v44, %v7758_v7 }
0x1f16   : > { %v7802_v47 = vpack.c.bf16 %v14038_v26, %v14035_v61  ;;  %v7797_v57 = vpack.c.bf16 %v14050_v3, %v14045_v52  ;;  %v14065_v19 = vmul.f32 %v13932_v13, %v7746_v30  ;;  %v14068_v41 = vmul.f32 %v13940_v63, %v7746_v30 }
0x1f17   : > { %v8177_v31 = vunpack.c.h.b16 %v7801_v45  ;;  %v7804_v32 = vunpack.c.l.b16 %v7795_v25  ;;  %v7805_v58 = vunpack.c.h.b16 %v7795_v25  ;;  %v7799_v2 = vpack.c.bf16 %v14059_v0, %v14056_v36 }
0x1f18   : > { %v8238_v12 = vunpack.c.l.b16 %v7802_v47  ;;  %v7928_v24 = vunpack.c.l.b16 %v7797_v57  ;;  %v7929_v21 = vunpack.c.h.b16 %v7797_v57  ;;  %v8176_v44 = vunpack.c.l.b16 %v7801_v45 }
0x1f19   : > { %8182 = vperm.xlu0 %10421, %v8177_v31   ;;  %7807 = vperm.xlu1 %10422, %v7804_v32   ;;  %v8052_v6 = vunpack.c.l.b16 %v7799_v2  ;;  %v8053_v54 = vunpack.c.h.b16 %v7799_v2  ;;  %v7796_v48 = vpack.c.bf16 %v14068_v41, %v14065_v19  ;;  %v14074_v51 = vmul.f32 %v13938_v46, %v7754_v43 }
0x1f1a   : > { %v14077_v35 = vmul.f32 %v13954_v18, %v7754_v43  ;;  %v14083_v60 = vmul.f32 %v13952_v39, %v7762_v15  ;;  %v14086_v53 = vmul.f32 %v13966_v11, %v7762_v15  ;;  %v8239_v39 = vunpack.c.h.b16 %v7802_v47 }
0x1f1b   : > { %v7866_v37 = vunpack.c.l.b16 %v7796_v48  ;;  %v7867_v13 = vunpack.c.h.b16 %v7796_v48 }
0x1f1c   : > { %v7798_v63 = vpack.c.bf16 %v14077_v35, %v14074_v51  ;;  %v7800_v18 = vpack.c.bf16 %v14086_v53, %v14083_v60 }
0x1f1d   : > { %8241 = vperm.xlu0 %10421, %v8238_v12   ;;  %7810 = vperm.xlu1 %10422, %v7805_v58  }
0x1f1e   : > { %v7990_v42 = vunpack.c.l.b16 %v7798_v63  ;;  %v7991_v46 = vunpack.c.h.b16 %v7798_v63  ;;  %v8114_v29 = vunpack.c.l.b16 %v7800_v18  ;;  %v8115_v38 = vunpack.c.h.b16 %v7800_v18 }
0x1f21   : > { %7931 = vperm.xlu1 %10422, %v7928_v24  }
0x1f25   : > { %7934 = vperm.xlu1 %10422, %v7929_v21  }
0x1f29   : > { %8055 = vperm.xlu1 %10422, %v8052_v6  }
0x1f2d   : > { %8058 = vperm.xlu1 %10422, %v8053_v54  }
0x1f31   : > { %8179 = vperm.xlu1 %10422, %v8176_v44  }
0x1f35   : > { %7869 = vperm.xlu1 %10422, %v7866_v37  }
0x1f39   : > { %7872 = vperm.xlu1 %10422, %v7867_v13  }
0x1f3d   : > { %7993 = vperm.xlu1 %10422, %v7990_v42  }
0x1f41   : > { %7996 = vperm.xlu1 %10422, %v7991_v46  }
0x1f45   : > { %8117 = vperm.xlu1 %10422, %v8114_v29  }
0x1f49   : > { %8120 = vperm.xlu1 %10422, %v8115_v38  }
0x1f4a   : > { %v6826_v55 = vpop.f32.mrb[80].mxu0 }
0x1f4b   : > { %v6827_v16 = vadd.f32 %v9517_v28, %v6826_v55  ;;  %v10034_v62 = vpop.f32.mrb[81].mxu0 }
0x1f4c   : > { %v6829_v11 = vpop.f32.mrb[82].mxu0 }
0x1f4d   : > { %v6841_v45 = vsel %vm6838_vm4, %v6827_v16, 0.0  ;;  %8244 = vperm.xlu1 %10422, %v8239_v39   ;;  %v10035_v25 = vpop.f32.mrb[83].mxu0 }
0x1f4e   : > { %v6843_v31 = vcombine.high %v6841_v45, %v6841_v45  ;;  %v6850_v32 = vrot.slane %v6841_v45, %v14920_v17 }
0x1f50   : > { %v6857_v12 = vrot.slane %v6843_v31, %v14920_v17  ;;  %v6858_v58 = vcombine.high %v6850_v32, %v6850_v32  ;;  %v6866_v57 = vrot.slane %v6850_v32, %v14920_v17  ;;  %9521 = vst.sshfl [vmem:[%s12283_s5 + $0x2] sm:$0x1 pattern:$0x73625140] %v6850_v32 }
0x1f52   : > { %v6859_v47 = vcombine.high %v6857_v12, %v6857_v12  ;;  %v6873_v7 = vrot.slane %v6857_v12, %v14920_v17  ;;  %v6880_v24 = vrot.slane %v6858_v58, %v14920_v17  ;;  %v6888_v21 = vcombine.high %v6866_v57, %v6866_v57  ;;  %9522 = vst.sshfl [vmem:[%s12283_s5 + $0x6] sm:$0x1 pattern:$0x73625140] %v6858_v58 }
0x1f53   : > { %9523 = vst.sshfl [vmem:[%s12283_s5 + $0x12] sm:$0x1 pattern:$0x73625140] %v6857_v12  ;;  %v10458_v12 = vld [vmem:[#allocation26] sm:$0xff]  }
0x1f54   : > { %v6887_v2 = vrot.slane %v6859_v47, %v14920_v17  ;;  %v6889_v6 = vcombine.high %v6873_v7, %v6873_v7  ;;  %v6890_v30 = vcombine.high %v6880_v24, %v6880_v24  ;;  %6902 = vst [vmem:[%s12283_s5 + $0xa] sm:$0x1] %v6888_v21  ;;  %9524 = vst.sshfl [vmem:[%s12283_s5 + $0x16] sm:$0x1 pattern:$0x73625140] %v6859_v47 }
0x1f56   : > { %v6891_v54 = vcombine.high %v6887_v2, %v6887_v2  ;;  %6903 = vst [vmem:[%s12283_s5 + $0xe] sm:$0x1] %v6890_v30  ;;  %6906 = vst [vmem:[%s12283_s5 + $0x1a] sm:$0x1] %v6889_v6 }
0x1f58   : > { %6907 = vst [vmem:[%s12283_s5 + $0x1e] sm:$0x1] %v6891_v54 }
0x1f98   : > { %v7808_v44 = vpop.permute.xlu1 %7807  ;;  %v8183_v39 = vpop.permute.xlu0 %8182 }
0x1f99   : > { %v7815_v43 = vrot.slane %v7808_v44, %v12450_v22 }
0x1f9c   : > { %v7811_v48 = vpop.permute.xlu1 %7810 }
0x1f9d   : > { %v7819_v37 = vrot.slane %v7811_v48, %v12453_v23 }
0x1f9f   : > { %v7820_v13 = vsel %vm1841_vm11, %v7819_v37, %v7815_v43 }
0x1fa0   : > { %v7821_v63 = vpack.c.b16 %v7820_v13, %v7820_v13  ;;  %v7932_v15 = vpop.permute.xlu1 %7931 }
0x1fa1   : > { %v7939_v46 = vrot.slane %v7932_v15, %v12450_v22  ;;  %v8242_v15 = vpop.permute.xlu0 %8241 }
0x1fa2   : > { %10047 = vmatmul.mubr.msk.bf16.vlgmr.msra.gmra.mrb[84].mxu0 %vm1921_vm3, %v7821_v63 }
0x1fa3   : > { %10057 = vmatpush3.bf16.msra.mxu0 %v12709_v20  ;;  %10058 = vmatprep.mubr.msk.bf16.mxu0 %vm11482_vm9, %v14905_v40 }
0x1fa4   : > { %v7935_v42 = vpop.permute.xlu1 %7934  ;;  %10068 = vmatprep.subr.bf16.mxu0 %v14905_v40 }
0x1fa5   : > { %v7943_v18 = vrot.slane %v7935_v42, %v12453_v23 }
0x1fa7   : > { %v7944_v29 = vsel %vm1841_vm11, %v7943_v18, %v7939_v46 }
0x1fa8   : > { %v7945_v38 = vpack.c.b16 %v7944_v29, %v7944_v29  ;;  %v8056_v28 = vpop.permute.xlu1 %8055 }
0x1fa9   : > { %v8063_v55 = vrot.slane %v8056_v28, %v12450_v22  ;;  %v10460_v28 = vld [vmem:[#allocation30] sm:$0xff]  }
0x1faa   : > { %10059 = vmatmul.mubr.msk.bf16.vlgmr.msra.gmra.mrb[88].mxu0 %vm1921_vm3, %v7945_v38 }
0x1fab   : > { %10069 = vmatpush3.bf16.msra.mxu0 %v12759_v27  ;;  %10070 = vmatprep.mubr.msk.bf16.mxu0 %vm11482_vm9, %v14905_v40  ;;  %v8191_v27 = vrot.slane %v8183_v39, %v12453_v23 }
0x1fac   : > { %v8059_v20 = vpop.permute.xlu1 %8058  ;;  %10080 = vmatprep.subr.bf16.mxu0 %v14905_v40 }
0x1fad   : > { %v8067_v16 = vrot.slane %v8059_v20, %v12453_v23  ;;  %v10462_v20 = vld [vmem:[#allocation29] sm:$0xff]  }
0x1faf   : > { %v8068_v62 = vsel %vm1841_vm11, %v8067_v16, %v8063_v55  ;;  %v10461_v55 = vld [vmem:[#allocation30 + $0x8] sm:$0xff]   ;;  %v9543_v16 = vld [vmem:[%s12204_s22 + $0xc] sm:$0xf] }
0x1fb0   : > { %v8069_v11 = vpack.c.b16 %v8068_v62, %v8068_v62  ;;  %v8180_v45 = vpop.permute.xlu1 %8179 }
0x1fb1   : > { %v8187_v25 = vrot.slane %v8180_v45, %v12450_v22 }
0x1fb2   : > { %10071 = vmatmul.mubr.msk.bf16.vlgmr.msra.gmra.mrb[92].mxu0 %vm1921_vm3, %v8069_v11 }
0x1fb3   : > { %10081 = vmatpush3.bf16.msra.mxu0 %v12771_v9  ;;  %10082 = vmatprep.mubr.msk.bf16.mxu0 %vm11482_vm9, %v14905_v40  ;;  %v8192_v32 = vsel %vm1841_vm11, %v8191_v27, %v8187_v25  ;;  %v10459_v9 = vld [vmem:[#allocation26 + $0x8] sm:$0xff]  }
0x1fb4   : > { %v7870_v31 = vpop.permute.xlu1 %7869  ;;  %10092 = vmatprep.subr.bf16.mxu0 %v14905_v40  ;;  %v8193_v58 = vpack.c.b16 %v8192_v32, %v8192_v32 }
0x1fb5   : > { %v7877_v47 = vrot.slane %v7870_v31, %v12450_v22 }
0x1fb8   : > { %v7873_v57 = vpop.permute.xlu1 %7872 }
0x1fb9   : > { %v7881_v7 = vrot.slane %v7873_v57, %v12453_v23 }
0x1fba   : > { %10083 = vmatmul.mubr.msk.bf16.vlgmr.msra.gmra.mrb[96].mxu0 %vm1921_vm3, %v8193_v58 }
0x1fbb   : > { %v7882_v24 = vsel %vm1841_vm11, %v7881_v7, %v7877_v47  ;;  %10093 = vmatpush3.bf16.msra.mxu0 %v10458_v12  ;;  %10096 = vmatprep.mubr.msk.bf16.mxu0 %vm11482_vm9, %v14905_v40 }
0x1fbc   : > { %v7883_v21 = vpack.c.b16 %v7882_v24, %v7882_v24  ;;  %v7994_v2 = vpop.permute.xlu1 %7993  ;;  %10094 = vmatprep.subr.bf16.mxu0 %v14905_v40 }
0x1fbd   : > { %v8001_v30 = vrot.slane %v7994_v2, %v12450_v22 }
0x1fbe   : > { %10053 = vmatmul.mubr.msk.bf16.vlgmr.msra.gmra.mrb[88].mxu1 %vm1921_vm3, %v7883_v21 }
0x1fbf   : > { %10095 = vmatpush3.bf16.msra.mxu0 %v10459_v9  ;;  %10063 = vmatpush3.bf16.msra.mxu1 %v12807_v5 }
0x1fc0   : > { %v7997_v6 = vpop.permute.xlu1 %7996  ;;  %10064 = vmatprep.mubr.msk.bf16.mxu1 %vm11482_vm9, %v14905_v40  ;;  %10074 = vmatprep.subr.bf16.mxu1 %v14905_v40 }
0x1fc1   : > { %v8005_v54 = vrot.slane %v7997_v6, %v12453_v23  ;;  %10108 = vmatprep.subr.bf16.mxu0 %v14905_v40 }
0x1fc2   : > { %10097 = vmatmul.mubr.msk.bf16.vlgmr.msra.gmra.mrb[100].mxu0 %vm1552_vm10, %v13780_v59 }
0x1fc3   : > { %v8006_v44 = vsel %vm1841_vm11, %v8005_v54, %v8001_v30  ;;  %10110 = vmatprep.mubr.msk.bf16.mxu0 %vm11482_vm9, %v14905_v40  ;;  %10109 = vmatpush3.bf16.msra.mxu0 %v10462_v20 }
0x1fc4   : > { %v8007_v5 = vpack.c.b16 %v8006_v44, %v8006_v44  ;;  %v8118_v48 = vpop.permute.xlu1 %8117  ;;  %10122 = vmatprep.subr.bf16.mxu0 %v14905_v40  ;;  %v9538_v44 = vld [vmem:[#allocation27] ss:$0 sm:$0xff] }
0x1fc5   : > { %v8125_v37 = vrot.slane %v8118_v48, %v12450_v22 }
0x1fc6   : > { %10065 = vmatmul.mubr.msk.bf16.vlgmr.msra.gmra.mrb[92].mxu1 %vm1921_vm3, %v8007_v5 }
0x1fc7   : > { %10075 = vmatpush3.bf16.msra.mxu1 %v12819_v8  ;;  %10076 = vmatprep.mubr.msk.bf16.mxu1 %vm11482_vm9, %v14905_v40  ;;  %v8249_v8 = vrot.slane %v8242_v15, %v12450_v22 }
0x1fc8   : > { %v8121_v43 = vpop.permute.xlu1 %8120  ;;  %10086 = vmatprep.subr.bf16.mxu1 %v14905_v40 }
0x1fc9   : > { %v8129_v13 = vrot.slane %v8121_v43, %v12453_v23 }
0x1fca   : > { %10111 = vmatmul.mubr.msk.bf16.vlgmr.msra.gmra.mrb[104].mxu0 %vm1921_vm3, %v9543_v16 }
0x1fcb   : > { %v8130_v63 = vsel %vm1841_vm11, %v8129_v13, %v8125_v37  ;;  %10126 = vmatprep.mubr.msk.bf16.mxu0 %vm11482_vm9, %v14905_v40 }
0x1fcc   : > { %v8131_v42 = vpack.c.b16 %v8130_v63, %v8130_v63  ;;  %v8245_v46 = vpop.permute.xlu1 %8244 }
0x1fcd   : > { %v8253_v18 = vrot.slane %v8245_v46, %v12453_v23 }
0x1fce   : > { %10077 = vmatmul.mubr.msk.bf16.vlgmr.msra.gmra.mrb[96].mxu1 %vm1921_vm3, %v8131_v42 }
0x1fcf   : > { %10087 = vmatpush3.bf16.msra.mxu1 %v12831_v1  ;;  %10088 = vmatprep.mubr.msk.bf16.mxu1 %vm11482_vm9, %v14905_v40  ;;  %v8254_v29 = vsel %vm1841_vm11, %v8253_v18, %v8249_v8 }
0x1fd0   : > { %10100 = vmatprep.subr.bf16.mxu1 %v14905_v40  ;;  %v8255_v38 = vpack.c.b16 %v8254_v29, %v8254_v29 }
0x1fd6   : > { %10089 = vmatmul.mubr.msk.bf16.vlgmr.msra.gmra.mrb[100].mxu1 %vm1921_vm3, %v8255_v38  ;;  %vm3430_vm3 = vcmask 122880  }
0x1fd7   : > { %10104 = vmatprep.mubr.msk.bf16.mxu1 %vm11482_vm9, %v14905_v40  ;;  %10101 = vmatpush3.bf16.msra.mxu1 %v10460_v28 }
0x1fd8   : > { %10102 = vmatprep.subr.bf16.mxu1 %v14905_v40 }
0x1fdb   : > { %10103 = vmatpush3.bf16.msra.mxu1 %v10461_v55 }
0x1fdc   : > { %10114 = vmatprep.subr.bf16.mxu1 %v14905_v40 }
0x2075   : > { %v7859_v1 = vpop.f32.mrb[84].mxu0 }
0x2076   : > { %v10048_v62 = vpop.f32.mrb[85].mxu0 }
0x2077   : > { %v7862_v39 = vpop.f32.mrb[86].mxu0 }
0x2078   : > { %v10049_v11 = vpop.f32.mrb[87].mxu0 }
0x207d   : > { %v7983_v45 = vpop.f32.mrb[88].mxu0 }
0x207e   : > { %v10060_v25 = vpop.f32.mrb[89].mxu0  ;;  %v8378_v30 = vrot.slane %v7983_v45, 6 }
0x207f   : > { %v7986_v27 = vpop.f32.mrb[90].mxu0 }
0x2080   : > { %v10061_v31 = vpop.f32.mrb[91].mxu0 }
0x2085   : > { %v8107_v32 = vpop.f32.mrb[92].mxu0 }
0x2086   : > { %v10072_v12 = vpop.f32.mrb[93].mxu0  ;;  %v8382_v38 = vrot.slane %v8107_v32, 4 }
0x2087   : > { %v8110_v58 = vpop.f32.mrb[94].mxu0 }
0x2088   : > { %v10073_v57 = vpop.f32.mrb[95].mxu0 }
0x208d   : > { %v8231_v47 = vpop.f32.mrb[96].mxu0 }
0x208e   : > { %v10084_v7 = vpop.f32.mrb[97].mxu0  ;;  %v8386_v11 = vrot.slane %v8231_v47, 2 }
0x208f   : > { %v8234_v24 = vpop.f32.mrb[98].mxu0 }
0x2090   : > { %v10085_v9 = vpop.f32.mrb[99].mxu0 }
0x2091   : > { %v7921_v21 = vpop.f32.mrb[88].mxu1 }
0x2092   : > { %v8376_v2 = vrot.slane %v7921_v21, 7  ;;  %v10054_v6 = vpop.f32.mrb[89].mxu1 }
0x2093   : > { %v7924_v54 = vpop.f32.mrb[90].mxu1 }
0x2094   : > { %v8377_v5 = vsel %vm1906_vm12, %v8376_v2, %v7859_v1  ;;  %v10055_v48 = vpop.f32.mrb[91].mxu1  ;;  %v10464_v54 = vld [vmem:[#allocation32 + $0x8] sm:$0xff]  }
0x2095   : > { %v8356_v43 = vpop.f32.mrb[100].mxu0  ;;  %v8379_v37 = vsel %vm1908_vm13, %v8378_v30, %v8377_v5  ;;  %v10463_v30 = vld [vmem:[#allocation32] sm:$0xff]  }
0x2096   : > { %v8357_v13 = vadd.f32 %v9538_v44, %v8356_v43  ;;  %v10098_v63 = vpop.f32.mrb[101].mxu0 }
0x2097   : > { %v8359_v15 = vpop.f32.mrb[102].mxu0 }
0x2098   : > { %v9542_v42 = vmul.f32 -1.442695, %v8357_v13  ;;  %v10099_v46 = vpop.f32.mrb[103].mxu0 }
0x2099   : > { %v8045_v18 = vpop.f32.mrb[92].mxu1  ;;  %v9549_v46 = vld [vmem:[#allocation33] ss:$0 sm:$0xff] }
0x209a   : > { %10639 = vpow2.f32 %v9542_v42  ;;  %v8380_v8 = vrot.slane %v8045_v18, 5  ;;  %v10066_v29 = vpop.f32.mrb[93].mxu1 }
0x209b   : > { %v8048_v28 = vpop.f32.mrb[94].mxu1  ;;  %v9553_v29 = vld [vmem:[#allocation35] ss:$0 sm:$0xff] }
0x209c   : > { %v8381_v20 = vsel %vm1910_vm14, %v8380_v8, %v8379_v37  ;;  %v10067_v55 = vpop.f32.mrb[95].mxu1 }
0x209d   : > { %v8383_v16 = vsel %vm1912_vm15, %v8382_v38, %v8381_v20  ;;  %v8499_v44 = vpop.f32.mrb[104].mxu0 }
0x209e   : > { %v10112_v5 = vpop.f32.mrb[105].mxu0 }
0x209f   : > { %v8502_v48 = vpop.f32.mrb[106].mxu0  ;;  %v14972_v5 = vld [vmem:[#allocation87_spill] sm:$0xff] }
0x20a0   : > { %v10113_v43 = vpop.f32.mrb[107].mxu0  ;;  %v14973_v48 = vld [vmem:[#allocation65_spill] sm:$0xff] }
0x20a1   : > { %v8169_v1 = vpop.f32.mrb[96].mxu1  ;;  %v14974_v43 = vld [vmem:[#allocation89_spill] sm:$0xff] }
0x20a2   : > { %v8384_v62 = vrot.slane %v8169_v1, 3  ;;  %v10078_v39 = vpop.f32.mrb[97].mxu1 }
0x20a3   : > { %v8172_v45 = vpop.f32.mrb[98].mxu1 }
0x20a4   : > { %v10640_v25 = vpop.eup %10639  ;;  %v8385_v27 = vsel %vm1914_vm0, %v8384_v62, %v8383_v16  ;;  %v10079_v31 = vpop.f32.mrb[99].mxu1 }
0x20a5   : > { %v8365_v12 = vadd.f32 1.0, %v10640_v25  ;;  %v8387_v58 = vsel %vm1916_vm1, %v8386_v11, %v8385_v27  ;;  %v14198_v27 = vsel %vm6838_vm4, %v13760_v50, %v13757_v14  ;;  %v14963_v14 = vld [vmem:[#allocation74_spill] sm:$0xff] }
0x20a6   : > { %v14964_v50 = vld [vmem:[#allocation82_spill] sm:$0xff] }
0x20a7   : > { %10641 = vrcp.f32 %v8365_v12 }
0x20a9   : > { %v8293_v32 = vpop.f32.mrb[100].mxu1 }
0x20aa   : > { %v8388_v57 = vrot.slane %v8293_v32, 1  ;;  %v10090_v7 = vpop.f32.mrb[101].mxu1 }
0x20ab   : > { %v8296_v24 = vpop.f32.mrb[102].mxu1  ;;  %v14960_v7 = vld [vmem:[#allocation70_spill] sm:$0xff] }
0x20ac   : > { %v8389_v9 = vsel %vm1918_vm2, %v8388_v57, %v8387_v58  ;;  %v10091_v21 = vpop.f32.mrb[103].mxu1  ;;  %v14959_v57 = vld [vmem:[#allocation78_spill] sm:$0xff]  ;;  %v14961_v24 = vld [vmem:[#allocation68_spill] sm:$0xff] }
0x20ad   : > { %v14965_v21 = vld [vmem:[#allocation76_spill] sm:$0xff] }
0x20b1   : > { %v10642_v2 = vpop.eup %10641 }
0x20b2   : > { %v8391_v6 = vadd.f32 %v10642_v2, %v8389_v9  ;;  %v14962_v9 = vld [vmem:[#allocation80_spill] sm:$0xff] }
0x20b3   : > { %v14966_v2 = vld [vmem:[#allocation72_spill] sm:$0xff] }
0x20b4   : > { %v8396_v47 = vpack.c.bf16 %v8391_v6, %v8391_v6  ;;  %v14967_v6 = vld [vmem:[#allocation85_spill] sm:$0xff] }
0x20b6   : > { %10105 = vmatmul.mubr.msk.bf16.vlgmr.msra.gmra.mrb[104].mxu1 %vm1552_vm10, %v8396_v47  ;;  %v14969_v47 = vld [vmem:[#allocation91_spill] sm:$0xff] }
0x20b7   : > { %10115 = vmatpush3.bf16.msra.mxu1 %v10463_v30  ;;  %10118 = vmatprep.mubr.msk.bf16.mxu1 %vm11482_vm9, %v14905_v40  ;;  %v14968_v30 = vld [vmem:[#allocation95_spill] sm:$0xff] }
0x20b8   : > { %10116 = vmatprep.subr.bf16.mxu1 %v14905_v40 }
0x20bb   : > { %10117 = vmatpush3.bf16.msra.mxu1 %v10464_v54  ;;  %v14970_v54 = vld [vmem:[#allocation97_spill] sm:$0xff] }
0x20be   : > { %10119 = vmatmul.mubr.msk.bf16.vlgmr.msra.gmra.mrb[108].mxu1 %vm1552_vm10, %v13780_v59 }
0x2189   : > { %v8450_v37 = vpop.f32.mrb[104].mxu1 }
0x218a   : > { %v8500_v13 = vadd.f32 %v8499_v44, %v8450_v37  ;;  %v10106_v63 = vpop.f32.mrb[105].mxu1  ;;  %v14971_v44 = vld [vmem:[#allocation93_spill] sm:$0xff]  ;;  %v14975_v37 = vld [vmem:[#allocation111_spill] sm:$0xff] }
0x218b   : > { %v8453_v15 = vpop.f32.mrb[106].mxu1  ;;  %v14977_v63 = vld [vmem:[#allocation108_spill] sm:$0xff] }
0x218c   : > { %v10107_v42 = vpop.f32.mrb[107].mxu1  ;;  %v8512_v18 = vadd.f32 %v9549_v46, %v8500_v13  ;;  %v14976_v13 = vld [vmem:[#allocation112_spill] sm:$0xff]  ;;  %v14978_v15 = vld [vmem:[#allocation114_spill] sm:$0xff] }
0x218d   : > { %v14979_v42 = vld [vmem:[#allocation110_spill] sm:$0xff]  ;;  %v14980_v46 = vld [vmem:[#allocation104_spill] sm:$0xff] }
0x2191   : > { %v8563_v8 = vpop.f32.mrb[108].mxu1 }
0x2192   : > { %v8569_v38 = vadd.f32 %v8563_v8, %v8512_v18  ;;  %v10120_v28 = vpop.f32.mrb[109].mxu1  ;;  %v10465_v18 = vld [vmem:[#allocation36] sm:$0xff]  }
0x2193   : > { %v8566_v20 = vpop.f32.mrb[110].mxu1  ;;  %10123 = vmatpush3.bf16.msra.mxu0 %v10465_v18  ;;  %v14988_v28 = vld [vmem:[#allocation83_spill] sm:$0xff] }
0x2194   : > { %v8577_v55 = vadd.f32 %v9553_v29, %v8569_v38  ;;  %v10121_v16 = vpop.f32.mrb[111].mxu1  ;;  %10124 = vmatprep.subr.bf16.mxu0 %v14905_v40  ;;  %v14981_v40 = vld [vmem:[#allocation101_spill] sm:$0xff]  ;;  %v14987_v38 = vld [vmem:[#allocation75_spill] sm:$0xff] }
0x2195   : > { %v14989_v20 = vld [vmem:[#allocation77_spill] sm:$0xff]  ;;  %v14992_v16 = vld [vmem:[#allocation96_spill] sm:$0xff] }
0x2196   : > { %10643 = vtanh.f32 %v8577_v55  ;;  %v9554_v1 = vmul.f32 -1.442695, %v8577_v55  ;;  %v14990_v55 = vld [vmem:[#allocation73_spill] sm:$0xff] }
0x2198   : > { %10645 = vpow2.f32 %v9554_v1  ;;  %v14994_v1 = vld [vmem:[#allocation98_spill] sm:$0xff] }
0x21a0   : > { %v10644_v59 = vpop.eup %10643 }
0x21a1   : > { %8587 = vrot.lane.b32.xlu0 %v10644_v59, %s14806_s24  ;;  %v14993_v59 = vld [vmem:[#allocation92_spill] sm:$0xff] }
0x21a2   : > { %v10646_v62 = vpop.eup %10645 }
0x21a3   : > { %v8581_v39 = vadd.f32 1.0, %v10646_v62  ;;  %v14995_v62 = vld [vmem:[#allocation94_spill] sm:$0xff] }
0x21a5   : > { %10647 = vrcp.f32 %v8581_v39 }
0x21af   : > { %v10648_v11 = vpop.eup %10647 }
0x21b0   : > { %v8585_v31 = vmul.f32 %v10648_v11, %v14198_v27 }
0x2213   : > { %v8588_v45 = vpop.permute.xlu0 %8587 }
0x2214   : > { %v8590_v25 = vmul.f32 %v10648_v11, %v8588_v45  ;;  %v8672_v45 = vstv %s7119_s30 }
0x2216   : > { %8592 = vrot.lane.b32.xlu1 %v8590_v25, %s11485_s8  ;;  %v14998_v25 = vld [vmem:[#allocation90_spill] sm:$0xff] }
0x2288   : > { %v8593_v12 = vpop.permute.xlu1 %8592 }
0x2289   : > { %v14201_v58 = vadd.f32 %v8593_v12, %v8585_v31  ;;  %v10705_v12 = vld [vmem:[#allocation11] sm:$0xff] }
0x228a   : > { %vm8673_vm9 = vcmp.gt.s32.totalorder %v10705_v12, %v8672_v45 }
0x228b   : > { %10649 = vtanh.f32 %v14201_v58 }
0x2295   : > { %v10650_v32 = vpop.eup %10649 }
0x2296   : > { %8598 = vrot.lane.b32.xlu0 %v10650_v32, %s14806_s24  ;;  %v14999_v32 = vld [vmem:[#allocation102_spill] sm:$0xff] }
0x229a   : > { %3244 = vperm.xlu0 %10421, %v14959_v57   ;;  %v15000_v57 = vmov 0  }
0x229e   : > { %3250 = vperm.xlu0 %10421, %v14960_v7   ;;  %v8674_v7 = vsel %vm8673_vm9, 1, %v15000_v57 }
0x22a2   : > { %3256 = vperm.xlu0 %10421, %v14961_v24  }
0x22a6   : > { %3262 = vperm.xlu0 %10421, %v14962_v9   ;;  %v15001_v9 = vld [vmem:[#allocation107_spill] sm:$0xff] }
0x22aa   : > { %3268 = vperm.xlu0 %10421, %v14963_v14  }
0x22ae   : > { %3274 = vperm.xlu0 %10421, %v14964_v50   ;;  %v15002_v50 = vld [vmem:[#allocation113_spill] sm:$0xff] }
0x22b2   : > { %3280 = vperm.xlu0 %10421, %v14965_v21  }
0x22b6   : > { %3286 = vperm.xlu0 %10421, %v14966_v2   ;;  %v15003_v2 = vld [vmem:[#allocation109_spill] sm:$0xff] }
0x22ba   : > { %5085 = vperm.xlu0 %10421, %v14967_v6   ;;  %v15004_v6 = vld [vmem:[#allocation103_spill] sm:$0xff] }
0x22be   : > { %5091 = vperm.xlu0 %10421, %v14968_v30  }
0x22c2   : > { %5097 = vperm.xlu0 %10421, %v14969_v47  }
0x22c6   : > { %5103 = vperm.xlu0 %10421, %v14970_v54  }
0x22ca   : > { %5109 = vperm.xlu0 %10421, %v14971_v44  }
0x22ce   : > { %5115 = vperm.xlu0 %10421, %v14972_v5  }
0x22d2   : > { %5121 = vperm.xlu0 %10421, %v14973_v48  }
0x22d6   : > { %5127 = vperm.xlu0 %10421, %v14974_v43  }
0x22da   : > { %6925 = vperm.xlu0 %10421, %v13584_v4   ;;  %v10466_v4 = vld [vmem:[#allocation36 + $0x8] sm:$0xff]  }
0x22db   : > { %10125 = vmatpush3.bf16.msra.mxu0 %v10466_v4 }
0x22de   : > { %6931 = vperm.xlu0 %10421, %v14975_v37  }
0x22e2   : > { %6934 = vperm.xlu0 %10421, %v14976_v13  }
0x22e6   : > { %6940 = vperm.xlu0 %10421, %v14977_v63  }
0x22ea   : > { %6946 = vperm.xlu0 %10421, %v14978_v15  }
0x22ee   : > { %6952 = vperm.xlu0 %10421, %v14979_v42  }
0x22f2   : > { %6958 = vperm.xlu0 %10421, %v14980_v46  }
0x22f6   : > { %8768 = vperm.xlu0 %10421, %v14032_v10  }
0x22fa   : > { %8774 = vperm.xlu0 %10421, %v14068_v41   ;;  %v14982_v41 = vld [vmem:[#allocation79_spill] sm:$0xff] }
0x22fe   : > { %8780 = vperm.xlu0 %10421, %v14050_v3   ;;  %v14983_v3 = vld [vmem:[#allocation71_spill] sm:$0xff] }
0x2302   : > { %8786 = vperm.xlu0 %10421, %v14077_v35   ;;  %v14984_v35 = vld [vmem:[#allocation106_spill] sm:$0xff] }
0x2306   : > { %8792 = vperm.xlu0 %10421, %v14059_v0   ;;  %v14985_v0 = vld [vmem:[#allocation69_spill] sm:$0xff] }
0x2308   : > { %v8599_v8 = vpop.permute.xlu0 %8598 }
0x2309   : > { %v14234_v29 = vmul.f32 %v10648_v11, %v8599_v8  ;;  %v14997_v11 = vld [vmem:[#allocation67_spill] sm:$0xff] }
0x230a   : > { %8798 = vperm.xlu0 %10421, %v14086_v53   ;;  %v14986_v53 = vld [vmem:[#allocation81_spill] sm:$0xff] }
0x230b   : > { %v8602_v10 = vpack.c.bf16 %v14234_v29, %v14234_v29 }
0x230d   : > { %8615 = vrot.lane.b32.xlu1 %v8602_v10, %s11485_s8 }
0x230e   : > { %6964 = vperm.xlu0 %10421, %v14981_v40  }
0x2311   : > { %3247 = vperm.xlu1 %10422, %v14982_v41  }
0x2312   : > { %8804 = vperm.xlu0 %10421, %v14026_v34   ;;  %v14991_v34 = vld [vmem:[#allocation86_spill] sm:$0xff] }
0x2315   : > { %3253 = vperm.xlu1 %10422, %v14983_v3  }
0x2316   : > { %6970 = vperm.xlu0 %10421, %v14984_v35  }
0x2319   : > { %3259 = vperm.xlu1 %10422, %v14985_v0   ;;  %v14258_v39 = vpop.permute.xlu0 %3244 }
0x231a   : > { %8810 = vperm.xlu0 %10421, %v14038_v26   ;;  %v14996_v26 = vld [vmem:[#allocation88_spill] sm:$0xff]  ;;  %v3294_v3 = vrot.slane %v14258_v39, %v12450_v22 }
0x231d   : > { %3265 = vperm.xlu1 %10422, %v14986_v53   ;;  %v3251_v31 = vpop.permute.xlu0 %3250 }
0x2321   : > { %3271 = vperm.xlu1 %10422, %v14987_v38   ;;  %v3257_v24 = vpop.permute.xlu0 %3256 }
0x2322   : > { %v3312_v40 = vrot.slane %v3257_v24, %v12450_v22 }
0x2325   : > { %3277 = vperm.xlu1 %10422, %v14988_v28   ;;  %v3263_v14 = vpop.permute.xlu0 %3262 }
0x2326   : > { %v3321_v35 = vrot.slane %v3263_v14, %v12450_v22 }
0x2329   : > { %3283 = vperm.xlu1 %10422, %v14989_v20   ;;  %v3269_v21 = vpop.permute.xlu0 %3268 }
0x232a   : > { %v3330_v38 = vrot.slane %v3269_v21, %v12450_v22 }
0x232d   : > { %3289 = vperm.xlu1 %10422, %v14990_v55   ;;  %v3275_v30 = vpop.permute.xlu0 %3274 }
0x232e   : > { %v3339_v55 = vrot.slane %v3275_v30, %v12450_v22 }
0x2331   : > { %5088 = vperm.xlu1 %10422, %v14991_v34   ;;  %v3281_v47 = vpop.permute.xlu0 %3280 }
0x2335   : > { %5094 = vperm.xlu1 %10422, %v14992_v16   ;;  %v3287_v54 = vpop.permute.xlu0 %3286 }
0x2339   : > { %5100 = vperm.xlu1 %10422, %v14993_v59   ;;  %v14273_v44 = vpop.permute.xlu0 %5085 }
0x233d   : > { %5106 = vperm.xlu1 %10422, %v14994_v1   ;;  %v14277_v5 = vpop.permute.xlu0 %5091 }
0x2341   : > { %5112 = vperm.xlu1 %10422, %v14995_v62   ;;  %v14281_v43 = vpop.permute.xlu0 %5097  ;;  %v3348_v62 = vrot.slane %v3281_v47, %v12450_v22 }
0x2345   : > { %5118 = vperm.xlu1 %10422, %v14996_v26  }
0x2349   : > { %5124 = vperm.xlu1 %10422, %v14997_v11  }
0x234d   : > { %5130 = vperm.xlu1 %10422, %v14998_v25  }
0x2351   : > { %6928 = vperm.xlu1 %10422, %v14999_v32   ;;  %v3357_v32 = vrot.slane %v3287_v54, %v12450_v22 }
0x2355   : > { %8676 = vperm.xlu1 %10422, %v8674_v7  }
0x2359   : > { %6937 = vperm.xlu1 %10422, %v15001_v9  }
0x235d   : > { %6943 = vperm.xlu1 %10422, %v15002_v50  }
0x2361   : > { %6949 = vperm.xlu1 %10422, %v15003_v2  }
0x2365   : > { %6955 = vperm.xlu1 %10422, %v15004_v6  }
0x2369   : > { %8765 = vperm.xlu1 %10422, %v14029_v33   ;;  %v15005_v33 = vld [vmem:[#allocation100_spill] sm:$0xff] }
0x236d   : > { %8771 = vperm.xlu1 %10422, %v14065_v19   ;;  %v14285_v19 = vpop.permute.xlu0 %5103 }
0x2371   : > { %8777 = vperm.xlu1 %10422, %v14045_v52   ;;  %v15006_v52 = vld [vmem:[#allocation105_spill] sm:$0xff] }
0x2375   : > { %8783 = vperm.xlu1 %10422, %v14074_v51   ;;  %v14288_v51 = vpop.permute.xlu0 %5109 }
0x2379   : > { %8789 = vperm.xlu1 %10422, %v14056_v36   ;;  %v14290_v37 = vpop.permute.xlu0 %5115 }
0x237d   : > { %8795 = vperm.xlu1 %10422, %v14083_v60   ;;  %v14292_v15 = vpop.permute.xlu0 %5121 }
0x237f   : > { %v8616_v48 = vpop.permute.xlu1 %8615 }
0x2380   : > { %10127 = vmatmul.mubr.msk.bf16.vlgmr.msra.gmra.mrb[108].mxu0 %vm1552_vm10, %v8616_v48 }
0x2381   : > { %6961 = vperm.xlu1 %10422, %v15005_v33   ;;  %v14294_v46 = vpop.permute.xlu0 %5127 }
0x2385   : > { %8801 = vperm.xlu1 %10422, %v14023_v56   ;;  %v14311_v34 = vpop.permute.xlu0 %6925 }
0x2389   : > { %6967 = vperm.xlu1 %10422, %v15006_v52   ;;  %v14327_v9 = vpop.permute.xlu0 %6931 }
0x238d   : > { %8807 = vperm.xlu1 %10422, %v14035_v61   ;;  %v3303_v61 = vrot.slane %v3251_v31, %v12450_v22 }
0x2390   : > { %v3248_v36 = vpop.permute.xlu1 %3247 }
0x2391   : > { %v3298_v8 = vrot.slane %v3248_v36, %v12453_v23 }
0x2393   : > { %v3299_v16 = vsel %vm1841_vm11, %v3298_v8, %v3294_v3 }
0x2394   : > { %v3254_v60 = vpop.permute.xlu1 %3253 }
0x2395   : > { %v3307_v56 = vrot.slane %v3254_v60, %v12453_v23  ;;  %v14337_v60 = vpop.permute.xlu0 %6934 }
0x2397   : > { %v3308_v0 = vsel %vm1841_vm11, %v3307_v56, %v3303_v61 }
0x2398   : > { %v3260_v13 = vpop.permute.xlu1 %3259  ;;  %v3363_v26 = vsel %vm1906_vm12, %v3308_v0, %v3299_v16  ;;  %v5153_v16 = vrot.slane %v14281_v43, %v12450_v22 }
0x2399   : > { %v3316_v18 = vrot.slane %v3260_v13, %v12453_v23 }
0x239b   : > { %v3317_v28 = vsel %vm1841_vm11, %v3316_v18, %v3312_v40  ;;  %v14356_v40 = vpop.permute.xlu0 %6940 }
0x239c   : > { %v3266_v63 = vpop.permute.xlu1 %3265  ;;  %v3364_v11 = vsel %vm1908_vm13, %v3317_v28, %v3363_v26  ;;  %v5144_v28 = vrot.slane %v14277_v5, %v12450_v22 }
0x239d   : > { %v3325_v10 = vrot.slane %v3266_v63, %v12453_v23 }
0x239f   : > { %v3326_v59 = vsel %vm1841_vm11, %v3325_v10, %v3321_v35  ;;  %v14360_v35 = vpop.permute.xlu0 %6946 }
0x23a0   : > { %v3272_v42 = vpop.permute.xlu1 %3271  ;;  %v3365_v25 = vsel %vm1910_vm14, %v3326_v59, %v3364_v11  ;;  %v5171_v11 = vrot.slane %v14288_v51, %v12450_v22 }
0x23a1   : > { %v3334_v41 = vrot.slane %v3272_v42, %v12453_v23 }
0x23a3   : > { %v3335_v39 = vsel %vm1841_vm11, %v3334_v41, %v3330_v38  ;;  %v14375_v26 = vpop.permute.xlu0 %6952 }
0x23a4   : > { %v3278_v4 = vpop.permute.xlu1 %3277  ;;  %v3366_v57 = vsel %vm1912_vm15, %v3335_v39, %v3365_v25  ;;  %v5180_v25 = vrot.slane %v14290_v37, %v12450_v22 }
0x23a5   : > { %v3343_v53 = vrot.slane %v3278_v4, %v12453_v23 }
0x23a7   : > { %v3344_v45 = vsel %vm1841_vm11, %v3343_v53, %v3339_v55 }
0x23a8   : > { %v3284_v20 = vpop.permute.xlu1 %3283  ;;  %v3367_v24 = vsel %vm1914_vm0, %v3344_v45, %v3366_v57 }
0x23a9   : > { %v3352_v1 = vrot.slane %v3284_v20, %v12453_v23 }
0x23ab   : > { %v3353_v31 = vsel %vm1841_vm11, %v3352_v1, %v3348_v62  ;;  %v5135_v1 = vrot.slane %v14273_v44, %v12450_v22  ;;  %v5162_v62 = vrot.slane %v14285_v19, %v12450_v22 }
0x23ac   : > { %v3290_v12 = vpop.permute.xlu1 %3289  ;;  %v3368_v14 = vsel %vm1916_vm1, %v3353_v31, %v3367_v24 }
0x23ad   : > { %v3361_v7 = vrot.slane %v3290_v12, %v12453_v23  ;;  %v5189_v12 = vrot.slane %v14292_v15, %v12450_v22 }
0x23af   : > { %v3362_v50 = vsel %vm1841_vm11, %v3361_v7, %v3357_v32 }
0x23b0   : > { %v3369_v21 = vsel %vm1918_vm2, %v3362_v50, %v3368_v14  ;;  %v5089_v2 = vpop.permute.xlu1 %5088  ;;  %v5198_v50 = vrot.slane %v14294_v46, %v12450_v22 }
0x23b1   : > { %v3371_v30 = vsel %vm3153_vm5, %v3369_v21, 0.0  ;;  %v5139_v20 = vrot.slane %v5089_v2, %v12453_v23  ;;  %v14397_v21 = vpop.permute.xlu0 %6958 }
0x23b2   : > { %v3373_v47 = vcombine.high %v3371_v30, %v3371_v30  ;;  %v3380_v54 = vrot.slane %v3371_v30, %v14920_v17 }
0x23b3   : > { %v5140_v44 = vsel %vm1841_vm11, %v5139_v20, %v5135_v1 }
0x23b4   : > { %v3387_v48 = vrot.slane %v3373_v47, %v14920_v17  ;;  %v3388_v33 = vcombine.high %v3380_v54, %v3380_v54  ;;  %v3396_v52 = vrot.slane %v3380_v54, %v14920_v17  ;;  %v5095_v36 = vpop.permute.xlu1 %5094 }
0x23b5   : > { %v5148_v0 = vrot.slane %v5095_v36, %v12453_v23 }
0x23b6   : > { %v3389_v13 = vcombine.high %v3387_v48, %v3387_v48  ;;  %v3403_v63 = vrot.slane %v3387_v48, %v14920_v17  ;;  %v3410_v42 = vrot.slane %v3388_v33, %v14920_v17  ;;  %v3418_v56 = vcombine.high %v3396_v52, %v3396_v52  ;;  %3431 = vst.msk [vmem:[%s12285_s1] sm:$0x1] %vm3430_vm3, %v3396_v52 }
0x23b7   : > { %v5149_v39 = vsel %vm1841_vm11, %v5148_v0, %v5144_v28 }
0x23b8   : > { %v3417_v18 = vrot.slane %v3389_v13, %v14920_v17  ;;  %v3419_v4 = vcombine.high %v3403_v63, %v3403_v63  ;;  %v3420_v61 = vcombine.high %v3410_v42, %v3410_v42  ;;  %3432 = vst.msk [vmem:[%s12285_s1 + $0x4] sm:$0x1] %vm3430_vm3, %v3410_v42  ;;  %3433 = vst.msk [vmem:[%s12285_s1 + $0x8] sm:$0x1] %vm3430_vm3, %v3418_v56  ;;  %v5101_v8 = vpop.permute.xlu1 %5100  ;;  %v14410_v13 = vpop.permute.xlu0 %8768 }
0x23b9   : > { %3435 = vst.msk [vmem:[%s12285_s1 + $0x10] sm:$0x1] %vm3430_vm3, %v3403_v63  ;;  %v5157_v53 = vrot.slane %v5101_v8, %v12453_v23  ;;  %v5204_v32 = vsel %vm1906_vm12, %v5149_v39, %v5140_v44 }
0x23ba   : > { %v3421_v10 = vcombine.high %v3417_v18, %v3417_v18  ;;  %3434 = vst.msk [vmem:[%s12285_s1 + $0xc] sm:$0x1] %vm3430_vm3, %v3420_v61  ;;  %3436 = vst.msk [vmem:[%s12285_s1 + $0x14] sm:$0x1] %vm3430_vm3, %v3417_v18 }
0x23bb   : > { %3437 = vst.msk [vmem:[%s12285_s1 + $0x18] sm:$0x1] %vm3430_vm3, %v3419_v4  ;;  %v5158_v45 = vsel %vm1841_vm11, %v5157_v53, %v5153_v16 }
0x23bc   : > { %3438 = vst.msk [vmem:[%s12285_s1 + $0x1c] sm:$0x1] %vm3430_vm3, %v3421_v10  ;;  %v5107_v41 = vpop.permute.xlu1 %5106  ;;  %v5205_v51 = vsel %vm1908_vm13, %v5158_v45, %v5204_v32  ;;  %v6984_v32 = vrot.slane %v14327_v9, %v12450_v22  ;;  %v7015_v9 = vrot.slane %v14375_v26, %v12453_v23 }
0x23bd   : > { %v5166_v55 = vrot.slane %v5107_v41, %v12453_v23 }
0x23bf   : > { %v5167_v31 = vsel %vm1841_vm11, %v5166_v55, %v5162_v62 }
0x23c0   : > { %v5113_v3 = vpop.permute.xlu1 %5112  ;;  %v5206_v24 = vsel %vm1910_vm14, %v5167_v31, %v5205_v51  ;;  %v6988_v31 = vrot.slane %v14337_v60, %v12453_v23 }
0x23c1   : > { %v5175_v59 = vrot.slane %v5113_v3, %v12453_v23  ;;  %v15009_v3 = vld [vmem:[#allocation66_spill] sm:$0xff] }
0x23c3   : > { %v5176_v57 = vsel %vm1841_vm11, %v5175_v59, %v5171_v11 }
0x23c4   : > { %v5119_v38 = vpop.permute.xlu1 %5118  ;;  %v5207_v15 = vsel %vm1912_vm15, %v5176_v57, %v5206_v24  ;;  %v6975_v57 = vrot.slane %v14311_v34, %v12450_v22  ;;  %v6997_v24 = vrot.slane %v14356_v40, %v12453_v23  ;;  %v7024_v34 = vrot.slane %v14397_v21, %v12453_v23 }
0x23c5   : > { %v5184_v5 = vrot.slane %v5119_v38, %v12453_v23 }
0x23c7   : > { %v5185_v7 = vsel %vm1841_vm11, %v5184_v5, %v5180_v25 }
0x23c8   : > { %v5125_v43 = vpop.permute.xlu1 %5124  ;;  %v5208_v6 = vsel %vm1914_vm0, %v5185_v7, %v5207_v15  ;;  %v6989_v7 = vsel %vm1841_vm11, %v6988_v31, %v6984_v32 }
0x23c9   : > { %v5193_v19 = vrot.slane %v5125_v43, %v12453_v23 }
0x23cb   : > { %v5194_v37 = vsel %vm1841_vm11, %v5193_v19, %v5189_v12 }
0x23cc   : > { %v5131_v14 = vpop.permute.xlu1 %5130  ;;  %v5209_v30 = vsel %vm1916_vm1, %v5194_v37, %v5208_v6  ;;  %v7006_v37 = vrot.slane %v14360_v35, %v12453_v23 }
0x23cd   : > { %v5202_v2 = vrot.slane %v5131_v14, %v12453_v23 }
0x23cf   : > { %v5203_v47 = vsel %vm1841_vm11, %v5202_v2, %v5198_v50  ;;  %v8819_v50 = vrot.slane %v14410_v13, %v12453_v23 }
0x23d0   : > { %v5210_v54 = vsel %vm1918_vm2, %v5203_v47, %v5209_v30  ;;  %v14405_v48 = vpop.permute.xlu1 %6928 }
0x23d1   : > { %v5212_v46 = vsel %vm4998_vm7, %v5210_v54, 0.0  ;;  %v6979_v51 = vrot.slane %v14405_v48, %v12453_v23 }
0x23d2   : > { %v5214_v52 = vcombine.high %v5212_v46, %v5212_v46  ;;  %v5221_v36 = vrot.slane %v5212_v46, %v14920_v17 }
0x23d3   : > { %v6980_v47 = vsel %vm1841_vm11, %v6979_v51, %v6975_v57 }
0x23d4   : > { %v5228_v63 = vrot.slane %v5214_v52, %v14920_v17  ;;  %v5229_v42 = vcombine.high %v5221_v36, %v5221_v36  ;;  %v5237_v56 = vrot.slane %v5221_v36, %v14920_v17  ;;  %v14414_v18 = vpop.permute.xlu1 %8676 }
0x23d5   : > { %vm8678_vm5 = vcmp.eq.s32.totalorder %v14414_v18, 1 }
0x23d6   : > { %v5230_v4 = vcombine.high %v5228_v63, %v5228_v63  ;;  %v5244_v61 = vrot.slane %v5228_v63, %v14920_v17  ;;  %v5251_v8 = vrot.slane %v5229_v42, %v14920_v17  ;;  %v5259_v10 = vcombine.high %v5237_v56, %v5237_v56  ;;  %5271 = vst.msk [vmem:[%s12285_s1 + $0x1] sm:$0x1] %vm3430_vm3, %v5237_v56 }
0x23d7   : > { %v8680_v41 = vsel %vm8678_vm5, %v14201_v58, %v14198_v27  ;;  %v8679_v0 = vsel %vm8678_vm5, %v14234_v29, %v15009_v3  ;;  %v8775_v58 = vpop.permute.xlu0 %8774 }
0x23d8   : > { %v5258_v53 = vrot.slane %v5230_v4, %v14920_v17  ;;  %v5260_v38 = vcombine.high %v5244_v61, %v5244_v61  ;;  %v5261_v28 = vcombine.high %v5251_v8, %v5251_v8  ;;  %5272 = vst.msk [vmem:[%s12285_s1 + $0x5] sm:$0x1] %vm3430_vm3, %v5251_v8  ;;  %5273 = vst.msk [vmem:[%s12285_s1 + $0x9] sm:$0x1] %vm3430_vm3, %v5259_v10  ;;  %8965 = vrot.lane.b32.xlu0 %v8680_v41, %s11487_s25  ;;  %v6938_v27 = vpop.permute.xlu1 %6937  ;;  %s11488_s25 = smov [#allocation40]  }
0x23d9   : > { %5275 = vst.msk [vmem:[%s12285_s1 + $0x11] sm:$0x1] %vm3430_vm3, %v5244_v61  ;;  %8960 = vrot.lane.b32.xlu1 %v8679_v0, %s11485_s8  ;;  %v6993_v60 = vrot.slane %v6938_v27, %v12450_v22  ;;  %v8828_v2 = vrot.slane %v8775_v58, %v12453_v23  ;;  %v7044_v61 = vsel %vm1906_vm12, %v6989_v7, %v6980_v47  ;;  %s11296_s8 = scalar_lea.vmem %s14575_s26, 512  ;;  %s11300_s10 = sshll.u32 %s11488_s25, 4  ;;  %s11301_s10 = int_to_ptr.vmem [resolvable:$false] %s11300_s10 }
0x23da   : > { %v5262_v20 = vcombine.high %v5258_v53, %v5258_v53  ;;  %5274 = vst.msk [vmem:[%s12285_s1 + $0xd] sm:$0x1] %vm3430_vm3, %v5261_v28  ;;  %5276 = vst.msk [vmem:[%s12285_s1 + $0x15] sm:$0x1] %vm3430_vm3, %v5258_v53  ;;  %p11297_p9 = scmp.ne.s32.totalorder %s14575_s26, %s11296_s8  ;;  %s11302_s11 = scalar_lea.vmem %s11301_s10, 1024 }
0x23db   : > { %5277 = vst.msk [vmem:[%s12285_s1 + $0x19] sm:$0x1] %vm3430_vm3, %v5260_v38  ;;  %v8781_v55 = vpop.permute.xlu0 %8780  ;;  %v6998_v33 = vsel %vm1841_vm11, %v6997_v24, %v6993_v60  ;;  %p11303_p7 = scmp.lt.s32.totalorder %s14575_s26, %s11301_s10  ;;  %p11304_p1 = scmp.lt.s32.totalorder %s11302_s11, %s11296_s8 }
0x23dc   : > { %5278 = vst.msk [vmem:[%s12285_s1 + $0x1d] sm:$0x1] %vm3430_vm3, %v5262_v20  ;;  %v6944_v29 = vpop.permute.xlu1 %6943  ;;  %v8837_v40 = vrot.slane %v8781_v55, %v12453_v23  ;;  %v7045_v41 = vsel %vm1908_vm13, %v6998_v33, %v7044_v61  ;;  %p11298_p6 = pnand %p11297_p9, %p15011_p4 }
0x23dd   : > { %v7002_v15 = vrot.slane %v6944_v29, %v12450_v22  ;;  %p11305_p10 = por %p11304_p1, %p11303_p7 }
0x23de   : > { %p11299_p3 = pneg %p11298_p6 }
0x23df   : > { %v8787_v1 = vpop.permute.xlu0 %8786  ;;  %v7007_v63 = vsel %vm1841_vm11, %v7006_v37, %v7002_v15 }
0x23e0   : > { %v6950_v16 = vpop.permute.xlu1 %6949  ;;  %v8846_v35 = vrot.slane %v8787_v1, %v12453_v23  ;;  %v7046_v38 = vsel %vm1910_vm14, %v7007_v63, %v7045_v41  ;;  %p11306_p12 = pnand %p11305_p10, %p11299_p3 }
0x23e1   : > { %v7011_v6 = vrot.slane %v6950_v16, %v12450_v22 }
0x23e3   : > { %v14446_v39 = vpop.permute.xlu0 %8792  ;;  %v7016_v8 = vsel %vm1841_vm11, %v7015_v9, %v7011_v6 }
0x23e4   : > { %v6956_v59 = vpop.permute.xlu1 %6955  ;;  %v8855_v30 = vrot.slane %v14446_v39, %v12453_v23  ;;  %v7047_v29 = vsel %vm1912_vm15, %v7016_v8, %v7046_v38 }
0x23e5   : > { %v7020_v21 = vrot.slane %v6956_v59, %v12450_v22 }
0x23e7   : > { %v8799_v45 = vpop.permute.xlu0 %8798  ;;  %v7025_v3 = vsel %vm1841_vm11, %v7024_v34, %v7020_v21 }
0x23e8   : > { %v8766_v62 = vpop.permute.xlu1 %8765  ;;  %v8864_v48 = vrot.slane %v8799_v45, %v12453_v23  ;;  %v7048_v39 = vsel %vm1914_vm0, %v7025_v3, %v7047_v29 }
0x23e9   : > { %v8815_v42 = vrot.slane %v8766_v62, %v12450_v22 }
0x23eb   : > { %v6965_v25 = vpop.permute.xlu0 %6964  ;;  %v8820_v55 = vsel %vm1841_vm11, %v8819_v50, %v8815_v42 }
0x23ec   : > { %v8772_v5 = vpop.permute.xlu1 %8771  ;;  %v7033_v13 = vrot.slane %v6965_v25, %v12453_v23 }
0x23ed   : > { %v8824_v54 = vrot.slane %v8772_v5, %v12450_v22 }
0x23ef   : > { %v8805_v12 = vpop.permute.xlu0 %8804  ;;  %v8829_v0 = vsel %vm1841_vm11, %v8828_v2, %v8824_v54 }
0x23f0   : > { %v8778_v11 = vpop.permute.xlu1 %8777  ;;  %v8873_v1 = vrot.slane %v8805_v12, %v12453_v23  ;;  %v8884_v5 = vsel %vm1906_vm12, %v8829_v0, %v8820_v55 }
0x23f1   : > { %v8833_v46 = vrot.slane %v8778_v11, %v12450_v22 }
0x23f3   : > { %v6971_v26 = vpop.permute.xlu0 %6970  ;;  %v8838_v28 = vsel %vm1841_vm11, %v8837_v40, %v8833_v46 }
0x23f4   : > { %v8784_v43 = vpop.permute.xlu1 %8783  ;;  %v7042_v4 = vrot.slane %v6971_v26, %v12453_v23  ;;  %v8885_v45 = vsel %vm1908_vm13, %v8838_v28, %v8884_v5 }
0x23f5   : > { %v8842_v56 = vrot.slane %v8784_v43, %v12450_v22 }
0x23f7   : > { %v8847_v16 = vsel %vm1841_vm11, %v8846_v35, %v8842_v56  ;;  %v8811_v62 = vpop.permute.xlu0 %8810 }
0x23f8   : > { %v8790_v44 = vpop.permute.xlu1 %8789  ;;  %v8886_v31 = vsel %vm1910_vm14, %v8847_v16, %v8885_v45  ;;  %v8882_v57 = vrot.slane %v8811_v62, %v12453_v23 }
0x23f9   : > { %v8851_v10 = vrot.slane %v8790_v44, %v12450_v22 }
0x23fb   : > { %v8856_v11 = vsel %vm1841_vm11, %v8855_v30, %v8851_v10 }
0x23fc   : > { %v8796_v19 = vpop.permute.xlu1 %8795  ;;  %v8887_v51 = vsel %vm1912_vm15, %v8856_v11, %v8886_v31 }
0x23fd   : > { %v8860_v53 = vrot.slane %v8796_v19, %v12450_v22 }
0x23ff   : > { %v8865_v43 = vsel %vm1841_vm11, %v8864_v48, %v8860_v53 }
0x2400   : > { %v6962_v14 = vpop.permute.xlu1 %6961  ;;  %v8888_v37 = vsel %vm1914_vm0, %v8865_v43, %v8887_v51 }
0x2401   : > { %v7029_v52 = vrot.slane %v6962_v14, %v12450_v22 }
0x2403   : > { %v7034_v27 = vsel %vm1841_vm11, %v7033_v13, %v7029_v52 }
0x2404   : > { %v8802_v36 = vpop.permute.xlu1 %8801  ;;  %v7049_v25 = vsel %vm1916_vm1, %v7034_v27, %v7048_v39 }
0x2405   : > { %v8869_v58 = vrot.slane %v8802_v36, %v12450_v22 }
0x2407   : > { %v8874_v19 = vsel %vm1841_vm11, %v8873_v1, %v8869_v58 }
0x2408   : > { %v6968_v20 = vpop.permute.xlu1 %6967  ;;  %v8889_v9 = vsel %vm1916_vm1, %v8874_v19, %v8888_v37 }
0x2409   : > { %v7038_v59 = vrot.slane %v6968_v20, %v12450_v22 }
0x240b   : > { %v7043_v44 = vsel %vm1841_vm11, %v7042_v4, %v7038_v59 }
0x240c   : > { %v7050_v12 = vsel %vm1918_vm2, %v7043_v44, %v7049_v25  ;;  %v8808_v32 = vpop.permute.xlu1 %8807 }
0x240d   : > { %v7052_v7 = vsel %vm6838_vm4, %v7050_v12, 0.0  ;;  %v8878_v24 = vrot.slane %v8808_v32, %v12450_v22 }
0x240e   : > { %v7054_v60 = vcombine.high %v7052_v7, %v7052_v7  ;;  %v7061_v14 = vrot.slane %v7052_v7, %v14920_v17 }
0x240f   : > { %v8883_v34 = vsel %vm1841_vm11, %v8882_v57, %v8878_v24 }
0x2410   : > { %v7068_v23 = vrot.slane %v7054_v60, %v14920_v17  ;;  %v7069_v50 = vcombine.high %v7061_v14, %v7061_v14  ;;  %v7077_v49 = vrot.slane %v7061_v14, %v14920_v17  ;;  %v8890_v15 = vsel %vm1918_vm2, %v8883_v34, %v8889_v9 }
0x2411   : > { %v8892_v22 = vsel %vm8678_vm5, %v8890_v15, 0.0 }
0x2412   : > { %v7070_v2 = vcombine.high %v7068_v23, %v7068_v23  ;;  %v7084_v40 = vrot.slane %v7068_v23, %v14920_v17  ;;  %v7091_v35 = vrot.slane %v7069_v50, %v14920_v17  ;;  %v7099_v6 = vcombine.high %v7077_v49, %v7077_v49  ;;  %7111 = vst.msk [vmem:[%s12285_s1 + $0x2] sm:$0x1] %vm3430_vm3, %v7077_v49 }
0x2413   : > { %v8894_v30 = vcombine.high %v8892_v22, %v8892_v22  ;;  %v8901_v26 = vrot.slane %v8892_v22, %v14920_v17 }
0x2414   : > { %v7098_v47 = vrot.slane %v7070_v2, %v14920_v17  ;;  %v7100_v21 = vcombine.high %v7084_v40, %v7084_v40  ;;  %v7101_v54 = vcombine.high %v7091_v35, %v7091_v35  ;;  %7112 = vst.msk [vmem:[%s12285_s1 + $0x6] sm:$0x1] %vm3430_vm3, %v7091_v35  ;;  %7113 = vst.msk [vmem:[%s12285_s1 + $0xa] sm:$0x1] %vm3430_vm3, %v7099_v6 }
0x2415   : > { %7115 = vst.msk [vmem:[%s12285_s1 + $0x12] sm:$0x1] %vm3430_vm3, %v7084_v40  ;;  %v8908_v48 = vrot.slane %v8894_v30, %v14920_v17  ;;  %v8909_v33 = vcombine.high %v8901_v26, %v8901_v26  ;;  %v8917_v46 = vrot.slane %v8901_v26, %v14920_v17 }
0x2416   : > { %v7102_v52 = vcombine.high %v7098_v47, %v7098_v47  ;;  %7114 = vst.msk [vmem:[%s12285_s1 + $0xe] sm:$0x1] %vm3430_vm3, %v7101_v54  ;;  %7116 = vst.msk [vmem:[%s12285_s1 + $0x16] sm:$0x1] %vm3430_vm3, %v7098_v47 }
0x2417   : > { %7117 = vst.msk [vmem:[%s12285_s1 + $0x1a] sm:$0x1] %vm3430_vm3, %v7100_v21  ;;  %v8910_v36 = vcombine.high %v8908_v48, %v8908_v48  ;;  %v8924_v13 = vrot.slane %v8908_v48, %v14920_v17  ;;  %v8931_v63 = vrot.slane %v8909_v33, %v14920_v17  ;;  %v8939_v42 = vcombine.high %v8917_v46, %v8917_v46 }
0x2418   : > { %8951 = vst.msk [vmem:[%s12285_s1 + $0x3] sm:$0x1] %vm3430_vm3, %v8917_v46  ;;  %7118 = vst.msk [vmem:[%s12285_s1 + $0x1e] sm:$0x1] %vm3430_vm3, %v7102_v52 }
0x2419   : > { %v8938_v56 = vrot.slane %v8910_v36, %v14920_v17  ;;  %v8940_v4 = vcombine.high %v8924_v13, %v8924_v13  ;;  %v8941_v61 = vcombine.high %v8931_v63, %v8931_v63  ;;  %8952 = vst.msk [vmem:[%s12285_s1 + $0x7] sm:$0x1] %vm3430_vm3, %v8931_v63  ;;  %8953 = vst.msk [vmem:[%s12285_s1 + $0xb] sm:$0x1] %vm3430_vm3, %v8939_v42 }
0x241a   : > { %8955 = vst.msk [vmem:[%s12285_s1 + $0x13] sm:$0x1] %vm3430_vm3, %v8924_v13 }
0x241b   : > { %v8942_v8 = vcombine.high %v8938_v56, %v8938_v56  ;;  %8954 = vst.msk [vmem:[%s12285_s1 + $0xf] sm:$0x1] %vm3430_vm3, %v8941_v61  ;;  %8956 = vst.msk [vmem:[%s12285_s1 + $0x17] sm:$0x1] %vm3430_vm3, %v8938_v56 }
0x241c   : > { %8957 = vst.msk [vmem:[%s12285_s1 + $0x1b] sm:$0x1] %vm3430_vm3, %v8940_v4 }
0x241d   : > { %8958 = vst.msk [vmem:[%s12285_s1 + $0x1f] sm:$0x1] %vm3430_vm3, %v8942_v8 }
0x241e   : > { %11309 = shalt.err (!%p11306_p12)
}
0x241f   : > { %s11310_s1 = scalar_lea.hbm %s14573_s0, 512  ;;  %s11314_s22 = scalar_lea.hbm %s15010_s13, 1024 }
0x2420   : > { %p11311_p0 = scmp.ne.s32.totalorder %s14573_s0, %s11310_s1  ;;  %p11315_p2 = scmp.lt.u32.totalorder %s14573_s0, %s15010_s13 }
0x2421   : > { %p11316_p8 = scmp.lt.u32.totalorder %s11314_s22, %s11310_s1  ;;  %p11318_p9 = scmp.lt.u32.totalorder %s11310_s1, %s14573_s0 }
0x2422   : > { %p11312_p5 = pnand %p11311_p0, %p15011_p4 }
0x2423   : > { %p11317_p11 = por %p11316_p8, %p11315_p2 }
0x2424   : > { %p11313_p13 = pneg %p11312_p5 }
0x2425   : > { %p11319_p6 = por %p11318_p9, %p11317_p11 }
0x2427   : > { %p11320_p3 = pnand %p11319_p6, %p11313_p13 }
0x2429   : > { %11323 = shalt.err (!%p11320_p3)
}
0x242a   : > { %s11489_s8 = smov 128   ;;  %s11490_s11 = smov 4   ;;  %v9555_v3 = vld [vmem:[#allocation38] ss:$0 sm:$0xff] }
0x242b   : > { %10217 = dma.vmem_to_hbm [thread:$0]  (%p15011_p4), %s14575_s26, 512, %s14573_s0, %s8975_s6, %s14806_s24, %s11489_s8, %s11490_s11  }
0x242c   : > { %s8990_s26 = sshll.u32 %s12283_s5, 4  ;;  %s15012_s1 = sld [smem:[#allocation130_spill]]  ;;  %s14631_s26 = int_to_ptr.vmem [resolvable:$true] %s8990_s26 }
0x242d   : > { %s8970_s22 = scalar_lea.sflag [#allocation8], %s12201_s2  ;;  %s11324_s25 = scalar_lea.vmem %s14631_s26, 512 }
0x242e   : > { %p11325_p7 = scmp.ne.s32.totalorder %s14631_s26, %s11324_s25  ;;  %s11491_s10 = smov [#allocation39]  }
0x242f   : > { %s11328_s24 = sshll.u32 %s11491_s10, 4  ;;  %s11329_s24 = int_to_ptr.vmem [resolvable:$false] %s11328_s24 }
0x2430   : > { %p11326_p1 = pnand %p11325_p7, %p15011_p4  ;;  %s11330_s3 = scalar_lea.vmem %s11329_s24, 1024 }
0x2431   : > { %p11331_p12 = scmp.lt.s32.totalorder %s14631_s26, %s11329_s24  ;;  %p11332_p0 = scmp.lt.s32.totalorder %s11330_s3, %s11324_s25 }
0x2432   : > { %s15013_s30 = smov %s15012_s1  ;;  %s14629_s28 = scalar_lea.hbm %s15012_s1, %s9565_s14 }
0x2433   : > { %p11327_p10 = pneg %p11326_p1  ;;  %p11333_p5 = por %p11332_p0, %p11331_p12 }
0x2435   : > { %p11334_p13 = pnand %p11333_p5, %p11327_p10 }
0x244a   : > { %v8966_v41 = vpop.permute.xlu0 %8965 }
0x244b   : > { %v8961_v10 = vpop.permute.xlu1 %8960  ;;  %8968 = vst.msk [vmem:[#allocation3] sm:$0xff] %vm1552_vm10, %v8966_v41 }
0x244c   : > { %8963 = vst.msk [vmem:[#allocation2] sm:$0xff] %vm1552_vm10, %v8961_v10 }
0x2453   : > { %v8666_v0 = vpop.f32.mrb[108].mxu0 }
0x2454   : > { %v8667_v53 = vadd.f32 %v9555_v3, %v8666_v0  ;;  %v10128_v38 = vpop.f32.mrb[109].mxu0 }
0x2455   : > { %v8669_v28 = vpop.f32.mrb[110].mxu0 }
0x2456   : > { %v8681_v27 = vsel %vm8678_vm5, %v8667_v53, 0.0  ;;  %v10129_v58 = vpop.f32.mrb[111].mxu0 }
0x2457   : > { %v8683_v20 = vcombine.high %v8681_v27, %v8681_v27  ;;  %v8690_v29 = vrot.slane %v8681_v27, %v14920_v17 }
0x2459   : > { %v8697_v55 = vrot.slane %v8683_v20, %v14920_v17  ;;  %v8698_v16 = vcombine.high %v8690_v29, %v8690_v29  ;;  %v8706_v59 = vrot.slane %v8690_v29, %v14920_v17  ;;  %9559 = vst.sshfl [vmem:[%s12283_s5 + $0x3] sm:$0x1 pattern:$0x73625140] %v8690_v29 }
0x245b   : > { %v8699_v1 = vcombine.high %v8697_v55, %v8697_v55  ;;  %v8713_v62 = vrot.slane %v8697_v55, %v14920_v17  ;;  %v8720_v18 = vrot.slane %v8698_v16, %v14920_v17  ;;  %v8728_v39 = vcombine.high %v8706_v59, %v8706_v59  ;;  %9560 = vst.sshfl [vmem:[%s12283_s5 + $0x7] sm:$0x1 pattern:$0x73625140] %v8698_v16 }
0x245c   : > { %9561 = vst.sshfl [vmem:[%s12283_s5 + $0x13] sm:$0x1 pattern:$0x73625140] %v8697_v55 }
0x245d   : > { %v8727_v5 = vrot.slane %v8699_v1, %v14920_v17  ;;  %v8729_v11 = vcombine.high %v8713_v62, %v8713_v62  ;;  %v8730_v45 = vcombine.high %v8720_v18, %v8720_v18  ;;  %8742 = vst [vmem:[%s12283_s5 + $0xb] sm:$0x1] %v8728_v39  ;;  %9562 = vst.sshfl [vmem:[%s12283_s5 + $0x17] sm:$0x1 pattern:$0x73625140] %v8699_v1 }
0x245f   : > { %v8731_v43 = vcombine.high %v8727_v5, %v8727_v5  ;;  %8743 = vst [vmem:[%s12283_s5 + $0xf] sm:$0x1] %v8730_v45  ;;  %8746 = vst [vmem:[%s12283_s5 + $0x1b] sm:$0x1] %v8729_v11 }
0x2461   : > { %8747 = vst [vmem:[%s12283_s5 + $0x1f] sm:$0x1] %v8731_v43 }
0x2462   : > { %11337 = shalt.err (!%p11334_p13)
}
0x2463   : > { %s11338_s5 = scalar_lea.hbm %s14629_s28, 512  ;;  %s11342_s6 = scalar_lea.hbm %s15013_s30, 1024 }
0x2464   : > { %p11339_p2 = scmp.ne.s32.totalorder %s14629_s28, %s11338_s5  ;;  %p11343_p9 = scmp.lt.u32.totalorder %s14629_s28, %s15013_s30 }
0x2465   : > { %p11344_p6 = scmp.lt.u32.totalorder %s11342_s6, %s11338_s5  ;;  %p11346_p7 = scmp.lt.u32.totalorder %s11338_s5, %s14629_s28 }
0x2466   : > { %p11340_p8 = pnand %p11339_p2, %p15011_p4 }
0x2467   : > { %p11345_p3 = por %p11344_p6, %p11343_p9 }
0x2468   : > { %p11341_p11 = pneg %p11340_p8 }
0x2469   : > { %p11347_p1 = por %p11346_p7, %p11345_p3 }
0x246b   : > { %p11348_p10 = pnand %p11347_p1, %p11341_p11 }
0x246d   : > { %11351 = shalt.err (!%p11348_p10)
}
0x246e   : > { %s15014_s25 = smov 64  }
0x246f   : > { %10216 = dma.vmem_to_hbm [thread:$0]  (%p15011_p4), %s14631_s26, 512, %s14629_s28, %s8970_s22, %s15014_s25, %s11489_s8, %s11490_s11  }
0x2470 PF: > { %s15015_s10 = sld [smem:[#allocation56_spill]]  ;;  %s15016_s3 = sld [smem:[#allocation61_spill]] }
0x2471   : > { %p15017_p12 = scmp.ne.s32.totalorder %s14862_s9, 0 }
0x2476   : > { %s9023_s14 = sand.u32 1, %s15015_s10   ;;  %p15018_p0 = scmp.ge.s32.totalorder %s15016_s3, 2 }
0x2477   : > { %s9024_s5 = scalar_lea.sflag [#allocation8], %s9023_s14 }
0x2478   : > { %p10286_p5 = pnand %p15018_p0, %p15017_p12 }
0x247a   : > { %11425 = dma.done.wait (!%p10286_p5), %s9024_s5, 512  }
0x247b   : > { %11427 = vsyncadd (!%p10286_p5), %s9024_s5, 4294966784  ;;  %s9033_s29 = scalar_lea.sflag [#allocation41], %s9023_s14 }
0x247c   : > { %11429 = dma.done.wait (!%p10286_p5), %s9033_s29, 512  }
0x247d   : > { %11431 = vsyncadd (!%p10286_p5), %s9033_s29, 4294966784  ;;  %s55_s26 = sadd.s32 1, %s15016_s3   ;;  %s15019_s24 = sld [smem:[#allocation57_spill]] }
0x247e   : > { %p52_p13 = scmp.ge.s32.totalorder %s55_s26, 4   ;;  %s15020_s8 = sld [smem:[#allocation58_spill]] }
0x247f   : > { %s15021_s5 = sld [smem:[#allocation60_spill]]  ;;  %s15022_s25 = smov %s12139_s7 }
0x2480   : > { %s15023_s1 = smov %s15025_s4  ;;  %54 = sbr.rel (!%p52_p13) target bundleno = 36 (0x24), region = 260 }
0x2487   :  { %9038 = vsyncpa [#allocation7], 1 }
0x2488   :  { %9040 = vsyncpa [#allocation7 + $0x1], 1 }
0x2489   :  { %9041 = vsyncpa [#allocation10], 1 }
0x248a   :  { %9043 = vsyncpa [#allocation10 + $0x1], 1 }
0x248b   :  { %9044 = vsyncpa [#allocation13], 1 }
0x248c   :  { %9045 = vsyncpa [#allocation16], 1 }
0x248d   :  { %9046 = vsyncpa [#allocation19], 1 }
0x248e   :  { %9047 = vsyncpa [#allocation22], 1 }
0x248f   :  { %9048 = vsyncpa [#allocation25], 1 }
0x2490   :  { %9049 = vsyncpa [#allocation28], 1 }
0x2491   :  { %9050 = vsyncpa [#allocation31], 1 }
0x2492   :  { %9051 = vsyncpa [#allocation34], 1 }
0x2493   :  { %9052 = vsyncpa [#allocation37], 1 }
0x2494   :  { %9053 = vsyncpa [#allocation8], 1 }
0x2495   :  { %9055 = vsyncpa [#allocation8 + $0x1], 1 }
0x2496   :  { %9056 = vsyncpa [#allocation41], 1 }
0x2497   :  { %9058 = vsyncpa [#allocation41 + $0x1], 1 }

</bundles_post_ra>
